<compile_context>
chip_gen: v7x
topology: tpu7x:2x2x1
jax: 0.10.0
libtpu: 0.0.40
codegen_flags: <defaults>
</compile_context>

<pallas_src>
import math

import jax
import jax.numpy as jnp
from jax.experimental import pallas as pl
from jax.experimental.pallas import tpu as pltpu

# ---- synthetic "PLM" config (bert-tiny style, lane-dense) ----
VOCAB = 128            # small synthetic vocab, lane-aligned for one-hot gather
SEQ_LEN = 8            # L
HIDDEN = 128           # H (full 128-lane minor dim)
NUM_HEADS = 2
HEAD_DIM = HIDDEN // NUM_HEADS
INTER = 512            # FFN intermediate size
NUM_LAYERS = 2
LN_EPS = 1e-12

T_MAX = 256            # sequences per grid step (cap keeps VMEM modest on v7x)
MATMUL_DTYPE = jnp.float32   # set jnp.bfloat16 on v6e/v7x for 2x MXU rate


def _layer_norm(x, g, b):
    mu = jnp.mean(x, axis=-1, keepdims=True)
    var = jnp.mean((x - mu) ** 2, axis=-1, keepdims=True)
    return (x - mu) * jax.lax.rsqrt(var + LN_EPS) * g + b


def _gelu(x):
    # tanh approximation ("gelu_new")
    c = math.sqrt(2.0 / math.pi)
    return 0.5 * x * (1.0 + jnp.tanh(c * (x + 0.044715 * x * x * x)))


def _mm(a, b):
    return jnp.dot(a.astype(MATMUL_DTYPE), b.astype(MATMUL_DTYPE),
                   preferred_element_type=jnp.float32)


def bert_encoder_kernel(tok_ref, msk_ref,
                        wemb_ref, postype_ref, lne_ref,
                        wqkv_ref, bqkv_ref, wo_ref, bo_ref, ln1_ref,
                        wff1_ref, bff1_ref, wff2_ref, bff2_ref, ln2_ref,
                        o_ref):
    T, L, _ = tok_ref.shape
    H = HIDDEN
    TL = T * L

    # ---- fused embedding lookup: one-hot gather on the MXU + pos/type add
    tok = tok_ref[...]                                           # (T, L, 1) i32
    vocab_iota = jax.lax.broadcasted_iota(jnp.int32, (T, L, VOCAB), 2)
    onehot = (vocab_iota == tok).astype(jnp.float32)             # (T, L, V)
    emb = _mm(onehot.reshape(TL, VOCAB), wemb_ref[...])          # (T*L, H)
    emb = emb.reshape(T, L, H) + postype_ref[...]                # + pos + type
    x = emb.reshape(TL, H)

    # ---- additive attention-mask bias (hoisted out of layer/head loops)
    neg_bias = (1.0 - msk_ref[...]) * jnp.float32(-1e9)          # (T, 1, L)

    h = _layer_norm(x, lne_ref[0], lne_ref[1])                   # embeddings LN

    for l in range(NUM_LAYERS):                                  # static unroll
        attn = None
        for hd in range(NUM_HEADS):                              # static unroll
            # per-head projections (no lane slicing; 1/sqrt(dh) folded into Q)
            q = _mm(h, wqkv_ref[l, 0, hd]) + bqkv_ref[l, 0, hd]  # (TL, dh)
            k = _mm(h, wqkv_ref[l, 1, hd]) + bqkv_ref[l, 1, hd]
            v = _mm(h, wqkv_ref[l, 2, hd]) + bqkv_ref[l, 2, hd]
            q3 = q.reshape(T, L, HEAD_DIM)                       # leading split
            k3 = k.reshape(T, L, HEAD_DIM)
            v3 = v.reshape(T, L, HEAD_DIM)

            s = jnp.einsum('bqd,bkd->bqk', q3, k3,
                           preferred_element_type=jnp.float32)   # (T, L, L)
            s = s + neg_bias
            s = s - jnp.max(s, axis=-1, keepdims=True)
            p = jnp.exp(s)
            p = p / jnp.sum(p, axis=-1, keepdims=True)
            ctx = jnp.einsum('bqk,bkd->bqd', p, v3,
                             preferred_element_type=jnp.float32)  # (T, L, dh)
            # heads combined via per-head output projection (no concatenate)
            part = _mm(ctx.reshape(TL, HEAD_DIM), wo_ref[l, hd])  # (TL, H)
            attn = part if attn is None else attn + part
        attn = attn + bo_ref[l]
        h = _layer_norm(h + attn, ln1_ref[l, 0], ln1_ref[l, 1])

        ff = _gelu(_mm(h, wff1_ref[l]) + bff1_ref[l])
        ff = _mm(ff, wff2_ref[l]) + bff2_ref[l]
        h = _layer_norm(h + ff, ln2_ref[l, 0], ln2_ref[l, 1])

    o_ref[...] = h.reshape(T, L, H)                              # 128-lane store


def _round_up(x, m):
    return (x + m - 1) // m * m


def _full_spec(arr):
    nd = arr.ndim
    return pl.BlockSpec(arr.shape, lambda i, _nd=nd: (0,) * _nd)


def run_bert_pallas(token_id, attn_mask, kp):
    """token_id, attn_mask: (BN, L).  Returns last_hidden (BN, L, H) f32."""
    BN, L = token_id.shape
    T = min(T_MAX, _round_up(BN, 8))
    BN_pad = _round_up(BN, T)
    pad = BN_pad - BN
    if pad:
        token_id = jnp.pad(token_id, ((0, pad), (0, 0)))
        # pad rows get mask=1 (fully visible) so the softmax never sees an
        # entirely-masked row; padded outputs are sliced off below.
        attn_mask = jnp.pad(attn_mask, ((0, pad), (0, 0)), constant_values=1.0)

    tok3 = token_id[:, :, None].astype(jnp.int32)        # (BN_pad, L, 1)
    msk3 = attn_mask[:, None, :].astype(jnp.float32)     # (BN_pad, 1, L)

    weights = [kp['word_emb'], kp['pos_type'], kp['ln_e'],
               kp['wqkv'], kp['bqkv'], kp['wo'], kp['bo'], kp['ln1'],
               kp['wff1'], kp['bff1'], kp['wff2'], kp['bff2'], kp['ln2']]

    in_specs = [
        pl.BlockSpec((T, L, 1), lambda i: (i, 0, 0)),            # token ids
        pl.BlockSpec((T, 1, L), lambda i: (i, 0, 0)),            # attention mask
    ] + [_full_spec(w) for w in weights]                         # VMEM residents

    out = pl.pallas_call(
        bert_encoder_kernel,
        out_shape=jax.ShapeDtypeStruct((BN_pad, L, HIDDEN), jnp.float32),
        grid=(BN_pad // T,),
        in_specs=in_specs,
        out_specs=pl.BlockSpec((T, L, HIDDEN), lambda i: (i, 0, 0)),
        compiler_params=pltpu.CompilerParams(
            dimension_semantics=("parallel",),                   # megacore-shardable
            vmem_limit_bytes=32 * 1024 * 1024,                   # safe on v7x 64MiB
        ),
    )(tok3, msk3, *weights)
    return out[:BN]


def prepare_kernel_params(p):
    """Pack base params into the kernel layout; fold 1/sqrt(dh) into Q."""
    scale = 1.0 / math.sqrt(HEAD_DIM)
    return {
        'word_emb': p['word_emb'],
        'pos_type': p['pos_emb'] + p['type_emb'],                       # (L, H)
        'ln_e': jnp.stack([p['ln_e_g'], p['ln_e_b']], axis=0),          # (2,1,H)
        'wqkv': jnp.stack([p['wq'] * scale, p['wk'], p['wv']], axis=1), # (NL,3,NH,H,dh)
        'bqkv': jnp.stack([p['bq'] * scale, p['bk'], p['bv']], axis=1), # (NL,3,NH,1,dh)
        'wo': p['wo'],                                                  # (NL,NH,dh,H)
        'bo': p['bo'],                                                  # (NL,1,H)
        'ln1': jnp.stack([p['ln1_g'], p['ln1_b']], axis=1),             # (NL,2,1,H)
        'wff1': p['wff1'], 'bff1': p['bff1'],
        'wff2': p['wff2'], 'bff2': p['bff2'],
        'ln2': jnp.stack([p['ln2_g'], p['ln2_b']], axis=1),
    }


def all_bert_news_encoder_forward(token_id, attn_mask, params):
    """Mirrors AllBertNewsEncoder.forward semantics."""
    original_shape = token_id.shape                      # (B, N, L)
    L = original_shape[-1]
    tid = token_id.reshape(-1, L)                        # (B*N, L)
    msk = attn_mask.reshape(-1, L).astype(jnp.float32)   # (B*N, L)

    kp = prepare_kernel_params(params)
    last_hidden = run_bert_pallas(tid, msk, kp)          # (B*N, L, H)

    news_embedding = last_hidden[:, 0].reshape(*original_shape[:-1], -1)
    token_embedding = last_hidden.reshape(*original_shape, -1)
    return token_embedding, news_embedding


# -------- pure-JAX reference (same base weights, standard formulation) -------
def bert_ref(token_id, attn_mask, p):
    L = token_id.shape[-1]
    tid = token_id.reshape(-1, L)
    msk = attn_mask.reshape(-1, L).astype(jnp.float32)
    x = p['word_emb'][tid] + p['pos_emb'][None] + p['type_emb'][None]
    bias = ((1.0 - msk) * -1e9)[:, None, :]
    h = _layer_norm(x, p['ln_e_g'], p['ln_e_b'])
    for l in range(NUM_LAYERS):
        attn = 0.0
        for hd in range(NUM_HEADS):
            q = h @ p['wq'][l, hd] + p['bq'][l, hd]
            k = h @ p['wk'][l, hd] + p['bk'][l, hd]
            v = h @ p['wv'][l, hd] + p['bv'][l, hd]
            s = jnp.einsum('bqd,bkd->bqk', q, k) / math.sqrt(HEAD_DIM) + bias
            pr = jax.nn.softmax(s, axis=-1)
            ctx = jnp.einsum('bqk,bkd->bqd', pr, v)
            attn = attn + ctx @ p['wo'][l, hd]
        h = _layer_norm(h + attn + p['bo'][l], p['ln1_g'][l], p['ln1_b'][l])
        ff = _gelu(h @ p['wff1'][l] + p['bff1'][l])
        h = _layer_norm(h + ff @ p['wff2'][l] + p['bff2'][l],
                        p['ln2_g'][l], p['ln2_b'][l])
    return h


if __name__ == "__main__":
    key = jax.random.PRNGKey(0)
    keys = jax.random.split(key, 20)

    def rnd(k, shape):
        return 0.02 * jax.random.normal(k, shape, jnp.float32)

    # deterministic synthetic PLM parameters (bert-tiny shapes)
    p = {
        'word_emb': rnd(keys[0], (VOCAB, HIDDEN)),
        'pos_emb':  rnd(keys[1], (SEQ_LEN, HIDDEN)),
        'type_emb': rnd(keys[2], (1, HIDDEN)),
        'ln_e_g': jnp.ones((1, HIDDEN), jnp.float32),
        'ln_e_b': jnp.zeros((1, HIDDEN), jnp.float32),
        'wq': rnd(keys[3], (NUM_LAYERS, NUM_HEADS, HIDDEN, HEAD_DIM)),
        'wk': rnd(keys[4], (NUM_LAYERS, NUM_HEADS, HIDDEN, HEAD_DIM)),
        'wv': rnd(keys[5], (NUM_LAYERS, NUM_HEADS, HIDDEN, HEAD_DIM)),
        'bq': rnd(keys[6], (NUM_LAYERS, NUM_HEADS, 1, HEAD_DIM)),
        'bk': rnd(keys[7], (NUM_LAYERS, NUM_HEADS, 1, HEAD_DIM)),
        'bv': rnd(keys[8], (NUM_LAYERS, NUM_HEADS, 1, HEAD_DIM)),
        'wo': rnd(keys[9], (NUM_LAYERS, NUM_HEADS, HEAD_DIM, HIDDEN)),
        'bo': rnd(keys[10], (NUM_LAYERS, 1, HIDDEN)),
        'ln1_g': jnp.ones((NUM_LAYERS, 1, HIDDEN), jnp.float32),
        'ln1_b': jnp.zeros((NUM_LAYERS, 1, HIDDEN), jnp.float32),
        'wff1': rnd(keys[11], (NUM_LAYERS, HIDDEN, INTER)),
        'bff1': rnd(keys[12], (NUM_LAYERS, 1, INTER)),
        'wff2': rnd(keys[13], (NUM_LAYERS, INTER, HIDDEN)),
        'bff2': rnd(keys[14], (NUM_LAYERS, 1, HIDDEN)),
        'ln2_g': jnp.ones((NUM_LAYERS, 1, HIDDEN), jnp.float32),
        'ln2_b': jnp.zeros((NUM_LAYERS, 1, HIDDEN), jnp.float32),
    }

    B, N = 2, 3
    token_id = jax.random.randint(keys[15], (B, N, SEQ_LEN), 0, VOCAB, jnp.int32)
    lens = jax.random.randint(keys[16], (B, N), 4, SEQ_LEN + 1)
    attn_mask = (jnp.arange(SEQ_LEN)[None, None, :] < lens[..., None]).astype(jnp.int32)

    token_embedding, news_embedding = all_bert_news_encoder_forward(token_id, attn_mask, p)
    jax.block_until_ready((token_embedding, news_embedding))

    assert token_embedding.shape == (B, N, SEQ_LEN, HIDDEN)
    assert news_embedding.shape == (B, N, HIDDEN)

    # numerical check against pure-JAX reference
    ref = bert_ref(token_id, attn_mask, p)               # (B*N, L, H)
    err = float(jnp.max(jnp.abs(token_embedding.reshape(-1, SEQ_LEN, HIDDEN) - ref)))
    cls_err = float(jnp.max(jnp.abs(news_embedding.reshape(-1, HIDDEN) - ref[:, 0])))
    if err > 1e-2 or cls_err > 1e-2:
        raise AssertionError(f"mismatch vs reference: {err} / {cls_err}")

    print("KERNEL_OK")
</pallas_src>

<mosaic_0001>
module attributes {stable_mosaic.version = 11 : i64} {
  func.func @bert_encoder_kernel(%arg0: i32, %arg1: memref<8x8x1xi32, #tpu.memory_space<vmem>>, %arg2: memref<8x1x8xf32, #tpu.memory_space<vmem>>, %arg3: memref<128x128xf32, #tpu.memory_space<vmem>>, %arg4: memref<8x128xf32, #tpu.memory_space<vmem>>, %arg5: memref<2x1x128xf32, #tpu.memory_space<vmem>>, %arg6: memref<2x3x2x128x64xf32, #tpu.memory_space<vmem>>, %arg7: memref<2x3x2x1x64xf32, #tpu.memory_space<vmem>>, %arg8: memref<2x2x64x128xf32, #tpu.memory_space<vmem>>, %arg9: memref<2x1x128xf32, #tpu.memory_space<vmem>>, %arg10: memref<2x2x1x128xf32, #tpu.memory_space<vmem>>, %arg11: memref<2x128x512xf32, #tpu.memory_space<vmem>>, %arg12: memref<2x1x512xf32, #tpu.memory_space<vmem>>, %arg13: memref<2x512x128xf32, #tpu.memory_space<vmem>>, %arg14: memref<2x1x128xf32, #tpu.memory_space<vmem>>, %arg15: memref<2x2x1x128xf32, #tpu.memory_space<vmem>>, %arg16: memref<8x8x128xf32, #tpu.memory_space<vmem>>) attributes {dimension_semantics = [#tpu.dimension_semantics<parallel>], iteration_bounds = array<i64: 1>, scalar_prefetch = 0 : i64, scratch_operands = 0 : i64, tpu.core_type = #tpu.core_type<tc>, window_params = [{transform_indices = @transform_0, window_bounds = array<i64: 8, 8, 1>}, {transform_indices = @transform_1, window_bounds = array<i64: 8, 1, 8>}, {pipeline_mode = #tpu.pipeline_mode<synchronous>, transform_indices = @transform_2, window_bounds = array<i64: 128, 128>}, {pipeline_mode = #tpu.pipeline_mode<synchronous>, transform_indices = @transform_3, window_bounds = array<i64: 8, 128>}, {pipeline_mode = #tpu.pipeline_mode<synchronous>, transform_indices = @transform_4, window_bounds = array<i64: 2, 1, 128>}, {pipeline_mode = #tpu.pipeline_mode<synchronous>, transform_indices = @transform_5, window_bounds = array<i64: 2, 3, 2, 128, 64>}, {pipeline_mode = #tpu.pipeline_mode<synchronous>, transform_indices = @transform_6, window_bounds = array<i64: 2, 3, 2, 1, 64>}, {pipeline_mode = #tpu.pipeline_mode<synchronous>, transform_indices = @transform_7, window_bounds = array<i64: 2, 2, 64, 128>}, {pipeline_mode = #tpu.pipeline_mode<synchronous>, transform_indices = @transform_8, window_bounds = array<i64: 2, 1, 128>}, {pipeline_mode = #tpu.pipeline_mode<synchronous>, transform_indices = @transform_9, window_bounds = array<i64: 2, 2, 1, 128>}, {pipeline_mode = #tpu.pipeline_mode<synchronous>, transform_indices = @transform_10, window_bounds = array<i64: 2, 128, 512>}, {pipeline_mode = #tpu.pipeline_mode<synchronous>, transform_indices = @transform_11, window_bounds = array<i64: 2, 1, 512>}, {pipeline_mode = #tpu.pipeline_mode<synchronous>, transform_indices = @transform_12, window_bounds = array<i64: 2, 512, 128>}, {pipeline_mode = #tpu.pipeline_mode<synchronous>, transform_indices = @transform_13, window_bounds = array<i64: 2, 1, 128>}, {pipeline_mode = #tpu.pipeline_mode<synchronous>, transform_indices = @transform_14, window_bounds = array<i64: 2, 2, 1, 128>}, {transform_indices = @transform_15, window_bounds = array<i64: 8, 8, 128>}]} {
    %c0 = arith.constant 0 : index
    %c0_0 = arith.constant 0 : index
    %c0_1 = arith.constant 0 : index
    %0 = vector.load %arg1[%c0, %c0_0, %c0_1] : memref<8x8x1xi32, #tpu.memory_space<vmem>>, vector<8x8x1xi32>
    %1 = tpu.iota {dimensions = array<i32: 2>} : vector<8x8x128xi32>
    %2 = vector.broadcast %0 : vector<8x8x1xi32> to vector<8x8x128xi32>
    %3 = arith.cmpi eq, %1, %2 : vector<8x8x128xi32>
    %4 = arith.extui %3 : vector<8x8x128xi1> to vector<8x8x128xi32>
    %5 = arith.sitofp %4 : vector<8x8x128xi32> to vector<8x8x128xf32>
    %6 = vector.shape_cast %5 : vector<8x8x128xf32> to vector<64x128xf32>
    %c0_2 = arith.constant 0 : index
    %c0_3 = arith.constant 0 : index
    %7 = vector.load %arg3[%c0_2, %c0_3] : memref<128x128xf32, #tpu.memory_space<vmem>>, vector<128x128xf32>
    %cst = arith.constant dense<0.000000e+00> : vector<64x128xf32>
    %8 = tpu.matmul %6, %7, %cst {dimension_numbers = #tpu.dot_dimension_numbers<[1], [0], [0], [1], [0, 0, 1, 1], [], []>} : vector<64x128xf32>, vector<128x128xf32>, vector<64x128xf32> -> vector<64x128xf32>
    %9 = vector.shape_cast %8 : vector<64x128xf32> to vector<8x8x128xf32>
    %c0_4 = arith.constant 0 : index
    %c0_5 = arith.constant 0 : index
    %10 = vector.load %arg4[%c0_4, %c0_5] : memref<8x128xf32, #tpu.memory_space<vmem>>, vector<8x128xf32>
    %11 = vector.shape_cast %10 : vector<8x128xf32> to vector<1x8x128xf32>
    %12 = vector.broadcast %11 : vector<1x8x128xf32> to vector<8x8x128xf32>
    %13 = arith.addf %9, %12 : vector<8x8x128xf32>
    %14 = vector.shape_cast %13 : vector<8x8x128xf32> to vector<64x128xf32>
    %c0_6 = arith.constant 0 : index
    %c0_7 = arith.constant 0 : index
    %c0_8 = arith.constant 0 : index
    %15 = vector.load %arg2[%c0_6, %c0_7, %c0_8] : memref<8x1x8xf32, #tpu.memory_space<vmem>>, vector<8x1x8xf32>
    %cst_9 = arith.constant 1.000000e+00 : f32
    %16 = vector.broadcast %cst_9 : f32 to vector<8x1x8xf32>
    %17 = arith.subf %16, %15 : vector<8x1x8xf32>
    %cst_10 = arith.constant -1.000000e+09 : f32
    %18 = vector.broadcast %cst_10 : f32 to vector<8x1x8xf32>
    %19 = arith.mulf %17, %18 : vector<8x1x8xf32>
    %c0_11 = arith.constant 0 : index
    %c0_12 = arith.constant 0 : index
    %c0_13 = arith.constant 0 : index
    %20 = vector.load %arg5[%c0_11, %c0_12, %c0_13] : memref<2x1x128xf32, #tpu.memory_space<vmem>>, vector<1x1x128xf32>
    %21 = vector.shape_cast %20 : vector<1x1x128xf32> to vector<1x128xf32>
    %c1 = arith.constant 1 : index
    %c0_14 = arith.constant 0 : index
    %c0_15 = arith.constant 0 : index
    %22 = vector.load %arg5[%c1, %c0_14, %c0_15] : memref<2x1x128xf32, #tpu.memory_space<vmem>>, vector<1x1x128xf32>
    %23 = vector.shape_cast %22 : vector<1x1x128xf32> to vector<1x128xf32>
    %cst_16 = arith.constant dense<0.000000e+00> : vector<64xf32>
    %24 = vector.multi_reduction <add>, %14, %cst_16 [1] : vector<64x128xf32> to vector<64xf32>
    %25 = vector.shape_cast %24 : vector<64xf32> to vector<64x1xf32>
    %cst_17 = arith.constant 1.280000e+02 : f32
    %26 = vector.broadcast %cst_17 : f32 to vector<64x1xf32>
    %27 = arith.divf %25, %26 : vector<64x1xf32>
    %28 = vector.broadcast %27 : vector<64x1xf32> to vector<64x128xf32>
    %29 = arith.subf %14, %28 : vector<64x128xf32>
    %30 = arith.mulf %29, %29 : vector<64x128xf32>
    %cst_18 = arith.constant dense<0.000000e+00> : vector<64xf32>
    %31 = vector.multi_reduction <add>, %30, %cst_18 [1] : vector<64x128xf32> to vector<64xf32>
    %32 = vector.shape_cast %31 : vector<64xf32> to vector<64x1xf32>
    %cst_19 = arith.constant 1.280000e+02 : f32
    %33 = vector.broadcast %cst_19 : f32 to vector<64x1xf32>
    %34 = arith.divf %32, %33 : vector<64x1xf32>
    %35 = vector.broadcast %27 : vector<64x1xf32> to vector<64x128xf32>
    %36 = arith.subf %14, %35 : vector<64x128xf32>
    %cst_20 = arith.constant 9.99999996E-13 : f32
    %37 = vector.broadcast %cst_20 : f32 to vector<64x1xf32>
    %38 = arith.addf %34, %37 : vector<64x1xf32>
    %39 = math.rsqrt %38 : vector<64x1xf32>
    %40 = vector.broadcast %39 : vector<64x1xf32> to vector<64x128xf32>
    %41 = arith.mulf %36, %40 : vector<64x128xf32>
    %42 = vector.broadcast %21 : vector<1x128xf32> to vector<64x128xf32>
    %43 = arith.mulf %41, %42 : vector<64x128xf32>
    %44 = vector.broadcast %23 : vector<1x128xf32> to vector<64x128xf32>
    %45 = arith.addf %43, %44 : vector<64x128xf32>
    %c0_21 = arith.constant 0 : index
    %c0_22 = arith.constant 0 : index
    %c0_23 = arith.constant 0 : index
    %c0_24 = arith.constant 0 : index
    %c0_25 = arith.constant 0 : index
    %46 = vector.load %arg6[%c0_21, %c0_22, %c0_23, %c0_24, %c0_25] : memref<2x3x2x128x64xf32, #tpu.memory_space<vmem>>, vector<1x1x1x128x64xf32>
    %47 = vector.shape_cast %46 : vector<1x1x1x128x64xf32> to vector<128x64xf32>
    %cst_26 = arith.constant dense<0.000000e+00> : vector<64x64xf32>
    %48 = tpu.matmul %45, %47, %cst_26 {dimension_numbers = #tpu.dot_dimension_numbers<[1], [0], [0], [1], [0, 0, 1, 1], [], []>} : vector<64x128xf32>, vector<128x64xf32>, vector<64x64xf32> -> vector<64x64xf32>
    %c0_27 = arith.constant 0 : index
    %c0_28 = arith.constant 0 : index
    %c0_29 = arith.constant 0 : index
    %c0_30 = arith.constant 0 : index
    %c0_31 = arith.constant 0 : index
    %49 = vector.load %arg7[%c0_27, %c0_28, %c0_29, %c0_30, %c0_31] : memref<2x3x2x1x64xf32, #tpu.memory_space<vmem>>, vector<1x1x1x1x64xf32>
    %50 = vector.shape_cast %49 : vector<1x1x1x1x64xf32> to vector<1x64xf32>
    %51 = vector.broadcast %50 : vector<1x64xf32> to vector<64x64xf32>
    %52 = arith.addf %48, %51 : vector<64x64xf32>
    %c0_32 = arith.constant 0 : index
    %c1_33 = arith.constant 1 : index
    %c0_34 = arith.constant 0 : index
    %c0_35 = arith.constant 0 : index
    %c0_36 = arith.constant 0 : index
    %53 = vector.load %arg6[%c0_32, %c1_33, %c0_34, %c0_35, %c0_36] : memref<2x3x2x128x64xf32, #tpu.memory_space<vmem>>, vector<1x1x1x128x64xf32>
    %54 = vector.shape_cast %53 : vector<1x1x1x128x64xf32> to vector<128x64xf32>
    %cst_37 = arith.constant dense<0.000000e+00> : vector<64x64xf32>
    %55 = tpu.matmul %45, %54, %cst_37 {dimension_numbers = #tpu.dot_dimension_numbers<[1], [0], [0], [1], [0, 0, 1, 1], [], []>} : vector<64x128xf32>, vector<128x64xf32>, vector<64x64xf32> -> vector<64x64xf32>
    %c0_38 = arith.constant 0 : index
    %c1_39 = arith.constant 1 : index
    %c0_40 = arith.constant 0 : index
    %c0_41 = arith.constant 0 : index
    %c0_42 = arith.constant 0 : index
    %56 = vector.load %arg7[%c0_38, %c1_39, %c0_40, %c0_41, %c0_42] : memref<2x3x2x1x64xf32, #tpu.memory_space<vmem>>, vector<1x1x1x1x64xf32>
    %57 = vector.shape_cast %56 : vector<1x1x1x1x64xf32> to vector<1x64xf32>
    %58 = vector.broadcast %57 : vector<1x64xf32> to vector<64x64xf32>
    %59 = arith.addf %55, %58 : vector<64x64xf32>
    %c0_43 = arith.constant 0 : index
    %c2 = arith.constant 2 : index
    %c0_44 = arith.constant 0 : index
    %c0_45 = arith.constant 0 : index
    %c0_46 = arith.constant 0 : index
    %60 = vector.load %arg6[%c0_43, %c2, %c0_44, %c0_45, %c0_46] : memref<2x3x2x128x64xf32, #tpu.memory_space<vmem>>, vector<1x1x1x128x64xf32>
    %61 = vector.shape_cast %60 : vector<1x1x1x128x64xf32> to vector<128x64xf32>
    %cst_47 = arith.constant dense<0.000000e+00> : vector<64x64xf32>
    %62 = tpu.matmul %45, %61, %cst_47 {dimension_numbers = #tpu.dot_dimension_numbers<[1], [0], [0], [1], [0, 0, 1, 1], [], []>} : vector<64x128xf32>, vector<128x64xf32>, vector<64x64xf32> -> vector<64x64xf32>
    %c0_48 = arith.constant 0 : index
    %c2_49 = arith.constant 2 : index
    %c0_50 = arith.constant 0 : index
    %c0_51 = arith.constant 0 : index
    %c0_52 = arith.constant 0 : index
    %63 = vector.load %arg7[%c0_48, %c2_49, %c0_50, %c0_51, %c0_52] : memref<2x3x2x1x64xf32, #tpu.memory_space<vmem>>, vector<1x1x1x1x64xf32>
    %64 = vector.shape_cast %63 : vector<1x1x1x1x64xf32> to vector<1x64xf32>
    %65 = vector.broadcast %64 : vector<1x64xf32> to vector<64x64xf32>
    %66 = arith.addf %62, %65 : vector<64x64xf32>
    %67 = vector.shape_cast %52 : vector<64x64xf32> to vector<8x8x64xf32>
    %68 = vector.shape_cast %59 : vector<64x64xf32> to vector<8x8x64xf32>
    %69 = vector.shape_cast %66 : vector<64x64xf32> to vector<8x8x64xf32>
    "tpu.trace_start"() <{level = 10 : i32, message = "bqd,bkd->bqk"}> : () -> ()
    %cst_53 = arith.constant dense<0.000000e+00> : vector<8x8x8xf32>
    %70 = tpu.matmul %67, %68, %cst_53 {dimension_numbers = #tpu.dot_dimension_numbers<[2], [2], [1], [1], [0, 0, 0, 1, 1, 1], [0], [0]>} : vector<8x8x64xf32>, vector<8x8x64xf32>, vector<8x8x8xf32> -> vector<8x8x8xf32>
    "tpu.trace_stop"() : () -> ()
    %71 = vector.broadcast %19 : vector<8x1x8xf32> to vector<8x8x8xf32>
    %72 = arith.addf %70, %71 : vector<8x8x8xf32>
    %cst_54 = arith.constant dense<0xFF800000> : vector<8x8xf32>
    %73 = vector.multi_reduction <maximumf>, %72, %cst_54 [2] : vector<8x8x8xf32> to vector<8x8xf32>
    %74 = vector.shape_cast %73 : vector<8x8xf32> to vector<8x8x1xf32>
    %75 = vector.broadcast %74 : vector<8x8x1xf32> to vector<8x8x8xf32>
    %76 = arith.subf %72, %75 : vector<8x8x8xf32>
    %77 = math.exp %76 : vector<8x8x8xf32>
    %cst_55 = arith.constant dense<0.000000e+00> : vector<8x8xf32>
    %78 = vector.multi_reduction <add>, %77, %cst_55 [2] : vector<8x8x8xf32> to vector<8x8xf32>
    %79 = vector.shape_cast %78 : vector<8x8xf32> to vector<8x8x1xf32>
    %80 = vector.broadcast %79 : vector<8x8x1xf32> to vector<8x8x8xf32>
    %81 = arith.divf %77, %80 : vector<8x8x8xf32>
    "tpu.trace_start"() <{level = 10 : i32, message = "bqk,bkd->bqd"}> : () -> ()
    %cst_56 = arith.constant dense<0.000000e+00> : vector<8x8x64xf32>
    %82 = tpu.matmul %81, %69, %cst_56 {dimension_numbers = #tpu.dot_dimension_numbers<[2], [1], [1], [2], [0, 0, 0, 1, 1, 2], [0], [0]>} : vector<8x8x8xf32>, vector<8x8x64xf32>, vector<8x8x64xf32> -> vector<8x8x64xf32>
    "tpu.trace_stop"() : () -> ()
    %83 = vector.shape_cast %82 : vector<8x8x64xf32> to vector<64x64xf32>
    %c0_57 = arith.constant 0 : index
    %c0_58 = arith.constant 0 : index
    %c0_59 = arith.constant 0 : index
    %c0_60 = arith.constant 0 : index
    %84 = vector.load %arg8[%c0_57, %c0_58, %c0_59, %c0_60] : memref<2x2x64x128xf32, #tpu.memory_space<vmem>>, vector<1x1x64x128xf32>
    %85 = vector.shape_cast %84 : vector<1x1x64x128xf32> to vector<64x128xf32>
    %cst_61 = arith.constant dense<0.000000e+00> : vector<64x128xf32>
    %86 = tpu.matmul %83, %85, %cst_61 {dimension_numbers = #tpu.dot_dimension_numbers<[1], [0], [0], [1], [0, 0, 1, 1], [], []>} : vector<64x64xf32>, vector<64x128xf32>, vector<64x128xf32> -> vector<64x128xf32>
    %c0_62 = arith.constant 0 : index
    %c0_63 = arith.constant 0 : index
    %c1_64 = arith.constant 1 : index
    %c0_65 = arith.constant 0 : index
    %c0_66 = arith.constant 0 : index
    %87 = vector.load %arg6[%c0_62, %c0_63, %c1_64, %c0_65, %c0_66] : memref<2x3x2x128x64xf32, #tpu.memory_space<vmem>>, vector<1x1x1x128x64xf32>
    %88 = vector.shape_cast %87 : vector<1x1x1x128x64xf32> to vector<128x64xf32>
    %cst_67 = arith.constant dense<0.000000e+00> : vector<64x64xf32>
    %89 = tpu.matmul %45, %88, %cst_67 {dimension_numbers = #tpu.dot_dimension_numbers<[1], [0], [0], [1], [0, 0, 1, 1], [], []>} : vector<64x128xf32>, vector<128x64xf32>, vector<64x64xf32> -> vector<64x64xf32>
    %c0_68 = arith.constant 0 : index
    %c0_69 = arith.constant 0 : index
    %c1_70 = arith.constant 1 : index
    %c0_71 = arith.constant 0 : index
    %c0_72 = arith.constant 0 : index
    %90 = vector.load %arg7[%c0_68, %c0_69, %c1_70, %c0_71, %c0_72] : memref<2x3x2x1x64xf32, #tpu.memory_space<vmem>>, vector<1x1x1x1x64xf32>
    %91 = vector.shape_cast %90 : vector<1x1x1x1x64xf32> to vector<1x64xf32>
    %92 = vector.broadcast %91 : vector<1x64xf32> to vector<64x64xf32>
    %93 = arith.addf %89, %92 : vector<64x64xf32>
    %c0_73 = arith.constant 0 : index
    %c1_74 = arith.constant 1 : index
    %c1_75 = arith.constant 1 : index
    %c0_76 = arith.constant 0 : index
    %c0_77 = arith.constant 0 : index
    %94 = vector.load %arg6[%c0_73, %c1_74, %c1_75, %c0_76, %c0_77] : memref<2x3x2x128x64xf32, #tpu.memory_space<vmem>>, vector<1x1x1x128x64xf32>
    %95 = vector.shape_cast %94 : vector<1x1x1x128x64xf32> to vector<128x64xf32>
    %cst_78 = arith.constant dense<0.000000e+00> : vector<64x64xf32>
    %96 = tpu.matmul %45, %95, %cst_78 {dimension_numbers = #tpu.dot_dimension_numbers<[1], [0], [0], [1], [0, 0, 1, 1], [], []>} : vector<64x128xf32>, vector<128x64xf32>, vector<64x64xf32> -> vector<64x64xf32>
    %c0_79 = arith.constant 0 : index
    %c1_80 = arith.constant 1 : index
    %c1_81 = arith.constant 1 : index
    %c0_82 = arith.constant 0 : index
    %c0_83 = arith.constant 0 : index
    %97 = vector.load %arg7[%c0_79, %c1_80, %c1_81, %c0_82, %c0_83] : memref<2x3x2x1x64xf32, #tpu.memory_space<vmem>>, vector<1x1x1x1x64xf32>
    %98 = vector.shape_cast %97 : vector<1x1x1x1x64xf32> to vector<1x64xf32>
    %99 = vector.broadcast %98 : vector<1x64xf32> to vector<64x64xf32>
    %100 = arith.addf %96, %99 : vector<64x64xf32>
    %c0_84 = arith.constant 0 : index
    %c2_85 = arith.constant 2 : index
    %c1_86 = arith.constant 1 : index
    %c0_87 = arith.constant 0 : index
    %c0_88 = arith.constant 0 : index
    %101 = vector.load %arg6[%c0_84, %c2_85, %c1_86, %c0_87, %c0_88] : memref<2x3x2x128x64xf32, #tpu.memory_space<vmem>>, vector<1x1x1x128x64xf32>
    %102 = vector.shape_cast %101 : vector<1x1x1x128x64xf32> to vector<128x64xf32>
    %cst_89 = arith.constant dense<0.000000e+00> : vector<64x64xf32>
    %103 = tpu.matmul %45, %102, %cst_89 {dimension_numbers = #tpu.dot_dimension_numbers<[1], [0], [0], [1], [0, 0, 1, 1], [], []>} : vector<64x128xf32>, vector<128x64xf32>, vector<64x64xf32> -> vector<64x64xf32>
    %c0_90 = arith.constant 0 : index
    %c2_91 = arith.constant 2 : index
    %c1_92 = arith.constant 1 : index
    %c0_93 = arith.constant 0 : index
    %c0_94 = arith.constant 0 : index
    %104 = vector.load %arg7[%c0_90, %c2_91, %c1_92, %c0_93, %c0_94] : memref<2x3x2x1x64xf32, #tpu.memory_space<vmem>>, vector<1x1x1x1x64xf32>
    %105 = vector.shape_cast %104 : vector<1x1x1x1x64xf32> to vector<1x64xf32>
    %106 = vector.broadcast %105 : vector<1x64xf32> to vector<64x64xf32>
    %107 = arith.addf %103, %106 : vector<64x64xf32>
    %108 = vector.shape_cast %93 : vector<64x64xf32> to vector<8x8x64xf32>
    %109 = vector.shape_cast %100 : vector<64x64xf32> to vector<8x8x64xf32>
    %110 = vector.shape_cast %107 : vector<64x64xf32> to vector<8x8x64xf32>
    "tpu.trace_start"() <{level = 10 : i32, message = "bqd,bkd->bqk"}> : () -> ()
    %cst_95 = arith.constant dense<0.000000e+00> : vector<8x8x8xf32>
    %111 = tpu.matmul %108, %109, %cst_95 {dimension_numbers = #tpu.dot_dimension_numbers<[2], [2], [1], [1], [0, 0, 0, 1, 1, 1], [0], [0]>} : vector<8x8x64xf32>, vector<8x8x64xf32>, vector<8x8x8xf32> -> vector<8x8x8xf32>
    "tpu.trace_stop"() : () -> ()
    %112 = vector.broadcast %19 : vector<8x1x8xf32> to vector<8x8x8xf32>
    %113 = arith.addf %111, %112 : vector<8x8x8xf32>
    %cst_96 = arith.constant dense<0xFF800000> : vector<8x8xf32>
    %114 = vector.multi_reduction <maximumf>, %113, %cst_96 [2] : vector<8x8x8xf32> to vector<8x8xf32>
    %115 = vector.shape_cast %114 : vector<8x8xf32> to vector<8x8x1xf32>
    %116 = vector.broadcast %115 : vector<8x8x1xf32> to vector<8x8x8xf32>
    %117 = arith.subf %113, %116 : vector<8x8x8xf32>
    %118 = math.exp %117 : vector<8x8x8xf32>
    %cst_97 = arith.constant dense<0.000000e+00> : vector<8x8xf32>
    %119 = vector.multi_reduction <add>, %118, %cst_97 [2] : vector<8x8x8xf32> to vector<8x8xf32>
    %120 = vector.shape_cast %119 : vector<8x8xf32> to vector<8x8x1xf32>
    %121 = vector.broadcast %120 : vector<8x8x1xf32> to vector<8x8x8xf32>
    %122 = arith.divf %118, %121 : vector<8x8x8xf32>
    "tpu.trace_start"() <{level = 10 : i32, message = "bqk,bkd->bqd"}> : () -> ()
    %cst_98 = arith.constant dense<0.000000e+00> : vector<8x8x64xf32>
    %123 = tpu.matmul %122, %110, %cst_98 {dimension_numbers = #tpu.dot_dimension_numbers<[2], [1], [1], [2], [0, 0, 0, 1, 1, 2], [0], [0]>} : vector<8x8x8xf32>, vector<8x8x64xf32>, vector<8x8x64xf32> -> vector<8x8x64xf32>
    "tpu.trace_stop"() : () -> ()
    %124 = vector.shape_cast %123 : vector<8x8x64xf32> to vector<64x64xf32>
    %c0_99 = arith.constant 0 : index
    %c1_100 = arith.constant 1 : index
    %c0_101 = arith.constant 0 : index
    %c0_102 = arith.constant 0 : index
    %125 = vector.load %arg8[%c0_99, %c1_100, %c0_101, %c0_102] : memref<2x2x64x128xf32, #tpu.memory_space<vmem>>, vector<1x1x64x128xf32>
    %126 = vector.shape_cast %125 : vector<1x1x64x128xf32> to vector<64x128xf32>
    %cst_103 = arith.constant dense<0.000000e+00> : vector<64x128xf32>
    %127 = tpu.matmul %124, %126, %cst_103 {dimension_numbers = #tpu.dot_dimension_numbers<[1], [0], [0], [1], [0, 0, 1, 1], [], []>} : vector<64x64xf32>, vector<64x128xf32>, vector<64x128xf32> -> vector<64x128xf32>
    %128 = arith.addf %86, %127 : vector<64x128xf32>
    %c0_104 = arith.constant 0 : index
    %c0_105 = arith.constant 0 : index
    %c0_106 = arith.constant 0 : index
    %129 = vector.load %arg9[%c0_104, %c0_105, %c0_106] : memref<2x1x128xf32, #tpu.memory_space<vmem>>, vector<1x1x128xf32>
    %130 = vector.shape_cast %129 : vector<1x1x128xf32> to vector<1x128xf32>
    %131 = vector.broadcast %130 : vector<1x128xf32> to vector<64x128xf32>
    %132 = arith.addf %128, %131 : vector<64x128xf32>
    %133 = arith.addf %45, %132 : vector<64x128xf32>
    %c0_107 = arith.constant 0 : index
    %c0_108 = arith.constant 0 : index
    %c0_109 = arith.constant 0 : index
    %c0_110 = arith.constant 0 : index
    %134 = vector.load %arg10[%c0_107, %c0_108, %c0_109, %c0_110] : memref<2x2x1x128xf32, #tpu.memory_space<vmem>>, vector<1x1x1x128xf32>
    %135 = vector.shape_cast %134 : vector<1x1x1x128xf32> to vector<1x128xf32>
    %c0_111 = arith.constant 0 : index
    %c1_112 = arith.constant 1 : index
    %c0_113 = arith.constant 0 : index
    %c0_114 = arith.constant 0 : index
    %136 = vector.load %arg10[%c0_111, %c1_112, %c0_113, %c0_114] : memref<2x2x1x128xf32, #tpu.memory_space<vmem>>, vector<1x1x1x128xf32>
    %137 = vector.shape_cast %136 : vector<1x1x1x128xf32> to vector<1x128xf32>
    %cst_115 = arith.constant dense<0.000000e+00> : vector<64xf32>
    %138 = vector.multi_reduction <add>, %133, %cst_115 [1] : vector<64x128xf32> to vector<64xf32>
    %139 = vector.shape_cast %138 : vector<64xf32> to vector<64x1xf32>
    %cst_116 = arith.constant 1.280000e+02 : f32
    %140 = vector.broadcast %cst_116 : f32 to vector<64x1xf32>
    %141 = arith.divf %139, %140 : vector<64x1xf32>
    %142 = vector.broadcast %141 : vector<64x1xf32> to vector<64x128xf32>
    %143 = arith.subf %133, %142 : vector<64x128xf32>
    %144 = arith.mulf %143, %143 : vector<64x128xf32>
    %cst_117 = arith.constant dense<0.000000e+00> : vector<64xf32>
    %145 = vector.multi_reduction <add>, %144, %cst_117 [1] : vector<64x128xf32> to vector<64xf32>
    %146 = vector.shape_cast %145 : vector<64xf32> to vector<64x1xf32>
    %cst_118 = arith.constant 1.280000e+02 : f32
    %147 = vector.broadcast %cst_118 : f32 to vector<64x1xf32>
    %148 = arith.divf %146, %147 : vector<64x1xf32>
    %149 = vector.broadcast %141 : vector<64x1xf32> to vector<64x128xf32>
    %150 = arith.subf %133, %149 : vector<64x128xf32>
    %cst_119 = arith.constant 9.99999996E-13 : f32
    %151 = vector.broadcast %cst_119 : f32 to vector<64x1xf32>
    %152 = arith.addf %148, %151 : vector<64x1xf32>
    %153 = math.rsqrt %152 : vector<64x1xf32>
    %154 = vector.broadcast %153 : vector<64x1xf32> to vector<64x128xf32>
    %155 = arith.mulf %150, %154 : vector<64x128xf32>
    %156 = vector.broadcast %135 : vector<1x128xf32> to vector<64x128xf32>
    %157 = arith.mulf %155, %156 : vector<64x128xf32>
    %158 = vector.broadcast %137 : vector<1x128xf32> to vector<64x128xf32>
    %159 = arith.addf %157, %158 : vector<64x128xf32>
    %c0_120 = arith.constant 0 : index
    %c0_121 = arith.constant 0 : index
    %c0_122 = arith.constant 0 : index
    %160 = vector.load %arg11[%c0_120, %c0_121, %c0_122] : memref<2x128x512xf32, #tpu.memory_space<vmem>>, vector<1x128x512xf32>
    %161 = vector.shape_cast %160 : vector<1x128x512xf32> to vector<128x512xf32>
    %cst_123 = arith.constant dense<0.000000e+00> : vector<64x512xf32>
    %162 = tpu.matmul %159, %161, %cst_123 {dimension_numbers = #tpu.dot_dimension_numbers<[1], [0], [0], [1], [0, 0, 1, 1], [], []>} : vector<64x128xf32>, vector<128x512xf32>, vector<64x512xf32> -> vector<64x512xf32>
    %c0_124 = arith.constant 0 : index
    %c0_125 = arith.constant 0 : index
    %c0_126 = arith.constant 0 : index
    %163 = vector.load %arg12[%c0_124, %c0_125, %c0_126] : memref<2x1x512xf32, #tpu.memory_space<vmem>>, vector<1x1x512xf32>
    %164 = vector.shape_cast %163 : vector<1x1x512xf32> to vector<1x512xf32>
    %165 = vector.broadcast %164 : vector<1x512xf32> to vector<64x512xf32>
    %166 = arith.addf %162, %165 : vector<64x512xf32>
    %cst_127 = arith.constant 5.000000e-01 : f32
    %167 = vector.broadcast %cst_127 : f32 to vector<64x512xf32>
    %168 = arith.mulf %167, %166 : vector<64x512xf32>
    %cst_128 = arith.constant 4.471500e-02 : f32
    %169 = vector.broadcast %cst_128 : f32 to vector<64x512xf32>
    %170 = arith.mulf %169, %166 : vector<64x512xf32>
    %171 = arith.mulf %170, %166 : vector<64x512xf32>
    %172 = arith.mulf %171, %166 : vector<64x512xf32>
    %173 = arith.addf %166, %172 : vector<64x512xf32>
    %cst_129 = arith.constant 0.797884583 : f32
    %174 = vector.broadcast %cst_129 : f32 to vector<64x512xf32>
    %175 = arith.mulf %174, %173 : vector<64x512xf32>
    %176 = math.tanh %175 : vector<64x512xf32>
    %cst_130 = arith.constant 1.000000e+00 : f32
    %177 = vector.broadcast %cst_130 : f32 to vector<64x512xf32>
    %178 = arith.addf %177, %176 : vector<64x512xf32>
    %179 = arith.mulf %168, %178 : vector<64x512xf32>
    %c0_131 = arith.constant 0 : index
    %c0_132 = arith.constant 0 : index
    %c0_133 = arith.constant 0 : index
    %180 = vector.load %arg13[%c0_131, %c0_132, %c0_133] : memref<2x512x128xf32, #tpu.memory_space<vmem>>, vector<1x512x128xf32>
    %181 = vector.shape_cast %180 : vector<1x512x128xf32> to vector<512x128xf32>
    %cst_134 = arith.constant dense<0.000000e+00> : vector<64x128xf32>
    %182 = tpu.matmul %179, %181, %cst_134 {dimension_numbers = #tpu.dot_dimension_numbers<[1], [0], [0], [1], [0, 0, 1, 1], [], []>} : vector<64x512xf32>, vector<512x128xf32>, vector<64x128xf32> -> vector<64x128xf32>
    %c0_135 = arith.constant 0 : index
    %c0_136 = arith.constant 0 : index
    %c0_137 = arith.constant 0 : index
    %183 = vector.load %arg14[%c0_135, %c0_136, %c0_137] : memref<2x1x128xf32, #tpu.memory_space<vmem>>, vector<1x1x128xf32>
    %184 = vector.shape_cast %183 : vector<1x1x128xf32> to vector<1x128xf32>
    %185 = vector.broadcast %184 : vector<1x128xf32> to vector<64x128xf32>
    %186 = arith.addf %182, %185 : vector<64x128xf32>
    %187 = arith.addf %159, %186 : vector<64x128xf32>
    %c0_138 = arith.constant 0 : index
    %c0_139 = arith.constant 0 : index
    %c0_140 = arith.constant 0 : index
    %c0_141 = arith.constant 0 : index
    %188 = vector.load %arg15[%c0_138, %c0_139, %c0_140, %c0_141] : memref<2x2x1x128xf32, #tpu.memory_space<vmem>>, vector<1x1x1x128xf32>
    %189 = vector.shape_cast %188 : vector<1x1x1x128xf32> to vector<1x128xf32>
    %c0_142 = arith.constant 0 : index
    %c1_143 = arith.constant 1 : index
    %c0_144 = arith.constant 0 : index
    %c0_145 = arith.constant 0 : index
    %190 = vector.load %arg15[%c0_142, %c1_143, %c0_144, %c0_145] : memref<2x2x1x128xf32, #tpu.memory_space<vmem>>, vector<1x1x1x128xf32>
    %191 = vector.shape_cast %190 : vector<1x1x1x128xf32> to vector<1x128xf32>
    %cst_146 = arith.constant dense<0.000000e+00> : vector<64xf32>
    %192 = vector.multi_reduction <add>, %187, %cst_146 [1] : vector<64x128xf32> to vector<64xf32>
    %193 = vector.shape_cast %192 : vector<64xf32> to vector<64x1xf32>
    %cst_147 = arith.constant 1.280000e+02 : f32
    %194 = vector.broadcast %cst_147 : f32 to vector<64x1xf32>
    %195 = arith.divf %193, %194 : vector<64x1xf32>
    %196 = vector.broadcast %195 : vector<64x1xf32> to vector<64x128xf32>
    %197 = arith.subf %187, %196 : vector<64x128xf32>
    %198 = arith.mulf %197, %197 : vector<64x128xf32>
    %cst_148 = arith.constant dense<0.000000e+00> : vector<64xf32>
    %199 = vector.multi_reduction <add>, %198, %cst_148 [1] : vector<64x128xf32> to vector<64xf32>
    %200 = vector.shape_cast %199 : vector<64xf32> to vector<64x1xf32>
    %cst_149 = arith.constant 1.280000e+02 : f32
    %201 = vector.broadcast %cst_149 : f32 to vector<64x1xf32>
    %202 = arith.divf %200, %201 : vector<64x1xf32>
    %203 = vector.broadcast %195 : vector<64x1xf32> to vector<64x128xf32>
    %204 = arith.subf %187, %203 : vector<64x128xf32>
    %cst_150 = arith.constant 9.99999996E-13 : f32
    %205 = vector.broadcast %cst_150 : f32 to vector<64x1xf32>
    %206 = arith.addf %202, %205 : vector<64x1xf32>
    %207 = math.rsqrt %206 : vector<64x1xf32>
    %208 = vector.broadcast %207 : vector<64x1xf32> to vector<64x128xf32>
    %209 = arith.mulf %204, %208 : vector<64x128xf32>
    %210 = vector.broadcast %189 : vector<1x128xf32> to vector<64x128xf32>
    %211 = arith.mulf %209, %210 : vector<64x128xf32>
    %212 = vector.broadcast %191 : vector<1x128xf32> to vector<64x128xf32>
    %213 = arith.addf %211, %212 : vector<64x128xf32>
    %c1_151 = arith.constant 1 : index
    %c0_152 = arith.constant 0 : index
    %c0_153 = arith.constant 0 : index
    %c0_154 = arith.constant 0 : index
    %c0_155 = arith.constant 0 : index
    %214 = vector.load %arg6[%c1_151, %c0_152, %c0_153, %c0_154, %c0_155] : memref<2x3x2x128x64xf32, #tpu.memory_space<vmem>>, vector<1x1x1x128x64xf32>
    %215 = vector.shape_cast %214 : vector<1x1x1x128x64xf32> to vector<128x64xf32>
    %cst_156 = arith.constant dense<0.000000e+00> : vector<64x64xf32>
    %216 = tpu.matmul %213, %215, %cst_156 {dimension_numbers = #tpu.dot_dimension_numbers<[1], [0], [0], [1], [0, 0, 1, 1], [], []>} : vector<64x128xf32>, vector<128x64xf32>, vector<64x64xf32> -> vector<64x64xf32>
    %c1_157 = arith.constant 1 : index
    %c0_158 = arith.constant 0 : index
    %c0_159 = arith.constant 0 : index
    %c0_160 = arith.constant 0 : index
    %c0_161 = arith.constant 0 : index
    %217 = vector.load %arg7[%c1_157, %c0_158, %c0_159, %c0_160, %c0_161] : memref<2x3x2x1x64xf32, #tpu.memory_space<vmem>>, vector<1x1x1x1x64xf32>
    %218 = vector.shape_cast %217 : vector<1x1x1x1x64xf32> to vector<1x64xf32>
    %219 = vector.broadcast %218 : vector<1x64xf32> to vector<64x64xf32>
    %220 = arith.addf %216, %219 : vector<64x64xf32>
    %c1_162 = arith.constant 1 : index
    %c1_163 = arith.constant 1 : index
    %c0_164 = arith.constant 0 : index
    %c0_165 = arith.constant 0 : index
    %c0_166 = arith.constant 0 : index
    %221 = vector.load %arg6[%c1_162, %c1_163, %c0_164, %c0_165, %c0_166] : memref<2x3x2x128x64xf32, #tpu.memory_space<vmem>>, vector<1x1x1x128x64xf32>
    %222 = vector.shape_cast %221 : vector<1x1x1x128x64xf32> to vector<128x64xf32>
    %cst_167 = arith.constant dense<0.000000e+00> : vector<64x64xf32>
    %223 = tpu.matmul %213, %222, %cst_167 {dimension_numbers = #tpu.dot_dimension_numbers<[1], [0], [0], [1], [0, 0, 1, 1], [], []>} : vector<64x128xf32>, vector<128x64xf32>, vector<64x64xf32> -> vector<64x64xf32>
    %c1_168 = arith.constant 1 : index
    %c1_169 = arith.constant 1 : index
    %c0_170 = arith.constant 0 : index
    %c0_171 = arith.constant 0 : index
    %c0_172 = arith.constant 0 : index
    %224 = vector.load %arg7[%c1_168, %c1_169, %c0_170, %c0_171, %c0_172] : memref<2x3x2x1x64xf32, #tpu.memory_space<vmem>>, vector<1x1x1x1x64xf32>
    %225 = vector.shape_cast %224 : vector<1x1x1x1x64xf32> to vector<1x64xf32>
    %226 = vector.broadcast %225 : vector<1x64xf32> to vector<64x64xf32>
    %227 = arith.addf %223, %226 : vector<64x64xf32>
    %c1_173 = arith.constant 1 : index
    %c2_174 = arith.constant 2 : index
    %c0_175 = arith.constant 0 : index
    %c0_176 = arith.constant 0 : index
    %c0_177 = arith.constant 0 : index
    %228 = vector.load %arg6[%c1_173, %c2_174, %c0_175, %c0_176, %c0_177] : memref<2x3x2x128x64xf32, #tpu.memory_space<vmem>>, vector<1x1x1x128x64xf32>
    %229 = vector.shape_cast %228 : vector<1x1x1x128x64xf32> to vector<128x64xf32>
    %cst_178 = arith.constant dense<0.000000e+00> : vector<64x64xf32>
    %230 = tpu.matmul %213, %229, %cst_178 {dimension_numbers = #tpu.dot_dimension_numbers<[1], [0], [0], [1], [0, 0, 1, 1], [], []>} : vector<64x128xf32>, vector<128x64xf32>, vector<64x64xf32> -> vector<64x64xf32>
    %c1_179 = arith.constant 1 : index
    %c2_180 = arith.constant 2 : index
    %c0_181 = arith.constant 0 : index
    %c0_182 = arith.constant 0 : index
    %c0_183 = arith.constant 0 : index
    %231 = vector.load %arg7[%c1_179, %c2_180, %c0_181, %c0_182, %c0_183] : memref<2x3x2x1x64xf32, #tpu.memory_space<vmem>>, vector<1x1x1x1x64xf32>
    %232 = vector.shape_cast %231 : vector<1x1x1x1x64xf32> to vector<1x64xf32>
    %233 = vector.broadcast %232 : vector<1x64xf32> to vector<64x64xf32>
    %234 = arith.addf %230, %233 : vector<64x64xf32>
    %235 = vector.shape_cast %220 : vector<64x64xf32> to vector<8x8x64xf32>
    %236 = vector.shape_cast %227 : vector<64x64xf32> to vector<8x8x64xf32>
    %237 = vector.shape_cast %234 : vector<64x64xf32> to vector<8x8x64xf32>
    "tpu.trace_start"() <{level = 10 : i32, message = "bqd,bkd->bqk"}> : () -> ()
    %cst_184 = arith.constant dense<0.000000e+00> : vector<8x8x8xf32>
    %238 = tpu.matmul %235, %236, %cst_184 {dimension_numbers = #tpu.dot_dimension_numbers<[2], [2], [1], [1], [0, 0, 0, 1, 1, 1], [0], [0]>} : vector<8x8x64xf32>, vector<8x8x64xf32>, vector<8x8x8xf32> -> vector<8x8x8xf32>
    "tpu.trace_stop"() : () -> ()
    %239 = vector.broadcast %19 : vector<8x1x8xf32> to vector<8x8x8xf32>
    %240 = arith.addf %238, %239 : vector<8x8x8xf32>
    %cst_185 = arith.constant dense<0xFF800000> : vector<8x8xf32>
    %241 = vector.multi_reduction <maximumf>, %240, %cst_185 [2] : vector<8x8x8xf32> to vector<8x8xf32>
    %242 = vector.shape_cast %241 : vector<8x8xf32> to vector<8x8x1xf32>
    %243 = vector.broadcast %242 : vector<8x8x1xf32> to vector<8x8x8xf32>
    %244 = arith.subf %240, %243 : vector<8x8x8xf32>
    %245 = math.exp %244 : vector<8x8x8xf32>
    %cst_186 = arith.constant dense<0.000000e+00> : vector<8x8xf32>
    %246 = vector.multi_reduction <add>, %245, %cst_186 [2] : vector<8x8x8xf32> to vector<8x8xf32>
    %247 = vector.shape_cast %246 : vector<8x8xf32> to vector<8x8x1xf32>
    %248 = vector.broadcast %247 : vector<8x8x1xf32> to vector<8x8x8xf32>
    %249 = arith.divf %245, %248 : vector<8x8x8xf32>
    "tpu.trace_start"() <{level = 10 : i32, message = "bqk,bkd->bqd"}> : () -> ()
    %cst_187 = arith.constant dense<0.000000e+00> : vector<8x8x64xf32>
    %250 = tpu.matmul %249, %237, %cst_187 {dimension_numbers = #tpu.dot_dimension_numbers<[2], [1], [1], [2], [0, 0, 0, 1, 1, 2], [0], [0]>} : vector<8x8x8xf32>, vector<8x8x64xf32>, vector<8x8x64xf32> -> vector<8x8x64xf32>
    "tpu.trace_stop"() : () -> ()
    %251 = vector.shape_cast %250 : vector<8x8x64xf32> to vector<64x64xf32>
    %c1_188 = arith.constant 1 : index
    %c0_189 = arith.constant 0 : index
    %c0_190 = arith.constant 0 : index
    %c0_191 = arith.constant 0 : index
    %252 = vector.load %arg8[%c1_188, %c0_189, %c0_190, %c0_191] : memref<2x2x64x128xf32, #tpu.memory_space<vmem>>, vector<1x1x64x128xf32>
    %253 = vector.shape_cast %252 : vector<1x1x64x128xf32> to vector<64x128xf32>
    %cst_192 = arith.constant dense<0.000000e+00> : vector<64x128xf32>
    %254 = tpu.matmul %251, %253, %cst_192 {dimension_numbers = #tpu.dot_dimension_numbers<[1], [0], [0], [1], [0, 0, 1, 1], [], []>} : vector<64x64xf32>, vector<64x128xf32>, vector<64x128xf32> -> vector<64x128xf32>
    %c1_193 = arith.constant 1 : index
    %c0_194 = arith.constant 0 : index
    %c1_195 = arith.constant 1 : index
    %c0_196 = arith.constant 0 : index
    %c0_197 = arith.constant 0 : index
    %255 = vector.load %arg6[%c1_193, %c0_194, %c1_195, %c0_196, %c0_197] : memref<2x3x2x128x64xf32, #tpu.memory_space<vmem>>, vector<1x1x1x128x64xf32>
    %256 = vector.shape_cast %255 : vector<1x1x1x128x64xf32> to vector<128x64xf32>
    %cst_198 = arith.constant dense<0.000000e+00> : vector<64x64xf32>
    %257 = tpu.matmul %213, %256, %cst_198 {dimension_numbers = #tpu.dot_dimension_numbers<[1], [0], [0], [1], [0, 0, 1, 1], [], []>} : vector<64x128xf32>, vector<128x64xf32>, vector<64x64xf32> -> vector<64x64xf32>
    %c1_199 = arith.constant 1 : index
    %c0_200 = arith.constant 0 : index
    %c1_201 = arith.constant 1 : index
    %c0_202 = arith.constant 0 : index
    %c0_203 = arith.constant 0 : index
    %258 = vector.load %arg7[%c1_199, %c0_200, %c1_201, %c0_202, %c0_203] : memref<2x3x2x1x64xf32, #tpu.memory_space<vmem>>, vector<1x1x1x1x64xf32>
    %259 = vector.shape_cast %258 : vector<1x1x1x1x64xf32> to vector<1x64xf32>
    %260 = vector.broadcast %259 : vector<1x64xf32> to vector<64x64xf32>
    %261 = arith.addf %257, %260 : vector<64x64xf32>
    %c1_204 = arith.constant 1 : index
    %c1_205 = arith.constant 1 : index
    %c1_206 = arith.constant 1 : index
    %c0_207 = arith.constant 0 : index
    %c0_208 = arith.constant 0 : index
    %262 = vector.load %arg6[%c1_204, %c1_205, %c1_206, %c0_207, %c0_208] : memref<2x3x2x128x64xf32, #tpu.memory_space<vmem>>, vector<1x1x1x128x64xf32>
    %263 = vector.shape_cast %262 : vector<1x1x1x128x64xf32> to vector<128x64xf32>
    %cst_209 = arith.constant dense<0.000000e+00> : vector<64x64xf32>
    %264 = tpu.matmul %213, %263, %cst_209 {dimension_numbers = #tpu.dot_dimension_numbers<[1], [0], [0], [1], [0, 0, 1, 1], [], []>} : vector<64x128xf32>, vector<128x64xf32>, vector<64x64xf32> -> vector<64x64xf32>
    %c1_210 = arith.constant 1 : index
    %c1_211 = arith.constant 1 : index
    %c1_212 = arith.constant 1 : index
    %c0_213 = arith.constant 0 : index
    %c0_214 = arith.constant 0 : index
    %265 = vector.load %arg7[%c1_210, %c1_211, %c1_212, %c0_213, %c0_214] : memref<2x3x2x1x64xf32, #tpu.memory_space<vmem>>, vector<1x1x1x1x64xf32>
    %266 = vector.shape_cast %265 : vector<1x1x1x1x64xf32> to vector<1x64xf32>
    %267 = vector.broadcast %266 : vector<1x64xf32> to vector<64x64xf32>
    %268 = arith.addf %264, %267 : vector<64x64xf32>
    %c1_215 = arith.constant 1 : index
    %c2_216 = arith.constant 2 : index
    %c1_217 = arith.constant 1 : index
    %c0_218 = arith.constant 0 : index
    %c0_219 = arith.constant 0 : index
    %269 = vector.load %arg6[%c1_215, %c2_216, %c1_217, %c0_218, %c0_219] : memref<2x3x2x128x64xf32, #tpu.memory_space<vmem>>, vector<1x1x1x128x64xf32>
    %270 = vector.shape_cast %269 : vector<1x1x1x128x64xf32> to vector<128x64xf32>
    %cst_220 = arith.constant dense<0.000000e+00> : vector<64x64xf32>
    %271 = tpu.matmul %213, %270, %cst_220 {dimension_numbers = #tpu.dot_dimension_numbers<[1], [0], [0], [1], [0, 0, 1, 1], [], []>} : vector<64x128xf32>, vector<128x64xf32>, vector<64x64xf32> -> vector<64x64xf32>
    %c1_221 = arith.constant 1 : index
    %c2_222 = arith.constant 2 : index
    %c1_223 = arith.constant 1 : index
    %c0_224 = arith.constant 0 : index
    %c0_225 = arith.constant 0 : index
    %272 = vector.load %arg7[%c1_221, %c2_222, %c1_223, %c0_224, %c0_225] : memref<2x3x2x1x64xf32, #tpu.memory_space<vmem>>, vector<1x1x1x1x64xf32>
    %273 = vector.shape_cast %272 : vector<1x1x1x1x64xf32> to vector<1x64xf32>
    %274 = vector.broadcast %273 : vector<1x64xf32> to vector<64x64xf32>
    %275 = arith.addf %271, %274 : vector<64x64xf32>
    %276 = vector.shape_cast %261 : vector<64x64xf32> to vector<8x8x64xf32>
    %277 = vector.shape_cast %268 : vector<64x64xf32> to vector<8x8x64xf32>
    %278 = vector.shape_cast %275 : vector<64x64xf32> to vector<8x8x64xf32>
    "tpu.trace_start"() <{level = 10 : i32, message = "bqd,bkd->bqk"}> : () -> ()
    %cst_226 = arith.constant dense<0.000000e+00> : vector<8x8x8xf32>
    %279 = tpu.matmul %276, %277, %cst_226 {dimension_numbers = #tpu.dot_dimension_numbers<[2], [2], [1], [1], [0, 0, 0, 1, 1, 1], [0], [0]>} : vector<8x8x64xf32>, vector<8x8x64xf32>, vector<8x8x8xf32> -> vector<8x8x8xf32>
    "tpu.trace_stop"() : () -> ()
    %280 = vector.broadcast %19 : vector<8x1x8xf32> to vector<8x8x8xf32>
    %281 = arith.addf %279, %280 : vector<8x8x8xf32>
    %cst_227 = arith.constant dense<0xFF800000> : vector<8x8xf32>
    %282 = vector.multi_reduction <maximumf>, %281, %cst_227 [2] : vector<8x8x8xf32> to vector<8x8xf32>
    %283 = vector.shape_cast %282 : vector<8x8xf32> to vector<8x8x1xf32>
    %284 = vector.broadcast %283 : vector<8x8x1xf32> to vector<8x8x8xf32>
    %285 = arith.subf %281, %284 : vector<8x8x8xf32>
    %286 = math.exp %285 : vector<8x8x8xf32>
    %cst_228 = arith.constant dense<0.000000e+00> : vector<8x8xf32>
    %287 = vector.multi_reduction <add>, %286, %cst_228 [2] : vector<8x8x8xf32> to vector<8x8xf32>
    %288 = vector.shape_cast %287 : vector<8x8xf32> to vector<8x8x1xf32>
    %289 = vector.broadcast %288 : vector<8x8x1xf32> to vector<8x8x8xf32>
    %290 = arith.divf %286, %289 : vector<8x8x8xf32>
    "tpu.trace_start"() <{level = 10 : i32, message = "bqk,bkd->bqd"}> : () -> ()
    %cst_229 = arith.constant dense<0.000000e+00> : vector<8x8x64xf32>
    %291 = tpu.matmul %290, %278, %cst_229 {dimension_numbers = #tpu.dot_dimension_numbers<[2], [1], [1], [2], [0, 0, 0, 1, 1, 2], [0], [0]>} : vector<8x8x8xf32>, vector<8x8x64xf32>, vector<8x8x64xf32> -> vector<8x8x64xf32>
    "tpu.trace_stop"() : () -> ()
    %292 = vector.shape_cast %291 : vector<8x8x64xf32> to vector<64x64xf32>
    %c1_230 = arith.constant 1 : index
    %c1_231 = arith.constant 1 : index
    %c0_232 = arith.constant 0 : index
    %c0_233 = arith.constant 0 : index
    %293 = vector.load %arg8[%c1_230, %c1_231, %c0_232, %c0_233] : memref<2x2x64x128xf32, #tpu.memory_space<vmem>>, vector<1x1x64x128xf32>
    %294 = vector.shape_cast %293 : vector<1x1x64x128xf32> to vector<64x128xf32>
    %cst_234 = arith.constant dense<0.000000e+00> : vector<64x128xf32>
    %295 = tpu.matmul %292, %294, %cst_234 {dimension_numbers = #tpu.dot_dimension_numbers<[1], [0], [0], [1], [0, 0, 1, 1], [], []>} : vector<64x64xf32>, vector<64x128xf32>, vector<64x128xf32> -> vector<64x128xf32>
    %296 = arith.addf %254, %295 : vector<64x128xf32>
    %c1_235 = arith.constant 1 : index
    %c0_236 = arith.constant 0 : index
    %c0_237 = arith.constant 0 : index
    %297 = vector.load %arg9[%c1_235, %c0_236, %c0_237] : memref<2x1x128xf32, #tpu.memory_space<vmem>>, vector<1x1x128xf32>
    %298 = vector.shape_cast %297 : vector<1x1x128xf32> to vector<1x128xf32>
    %299 = vector.broadcast %298 : vector<1x128xf32> to vector<64x128xf32>
    %300 = arith.addf %296, %299 : vector<64x128xf32>
    %301 = arith.addf %213, %300 : vector<64x128xf32>
    %c1_238 = arith.constant 1 : index
    %c0_239 = arith.constant 0 : index
    %c0_240 = arith.constant 0 : index
    %c0_241 = arith.constant 0 : index
    %302 = vector.load %arg10[%c1_238, %c0_239, %c0_240, %c0_241] : memref<2x2x1x128xf32, #tpu.memory_space<vmem>>, vector<1x1x1x128xf32>
    %303 = vector.shape_cast %302 : vector<1x1x1x128xf32> to vector<1x128xf32>
    %c1_242 = arith.constant 1 : index
    %c1_243 = arith.constant 1 : index
    %c0_244 = arith.constant 0 : index
    %c0_245 = arith.constant 0 : index
    %304 = vector.load %arg10[%c1_242, %c1_243, %c0_244, %c0_245] : memref<2x2x1x128xf32, #tpu.memory_space<vmem>>, vector<1x1x1x128xf32>
    %305 = vector.shape_cast %304 : vector<1x1x1x128xf32> to vector<1x128xf32>
    %cst_246 = arith.constant dense<0.000000e+00> : vector<64xf32>
    %306 = vector.multi_reduction <add>, %301, %cst_246 [1] : vector<64x128xf32> to vector<64xf32>
    %307 = vector.shape_cast %306 : vector<64xf32> to vector<64x1xf32>
    %cst_247 = arith.constant 1.280000e+02 : f32
    %308 = vector.broadcast %cst_247 : f32 to vector<64x1xf32>
    %309 = arith.divf %307, %308 : vector<64x1xf32>
    %310 = vector.broadcast %309 : vector<64x1xf32> to vector<64x128xf32>
    %311 = arith.subf %301, %310 : vector<64x128xf32>
    %312 = arith.mulf %311, %311 : vector<64x128xf32>
    %cst_248 = arith.constant dense<0.000000e+00> : vector<64xf32>
    %313 = vector.multi_reduction <add>, %312, %cst_248 [1] : vector<64x128xf32> to vector<64xf32>
    %314 = vector.shape_cast %313 : vector<64xf32> to vector<64x1xf32>
    %cst_249 = arith.constant 1.280000e+02 : f32
    %315 = vector.broadcast %cst_249 : f32 to vector<64x1xf32>
    %316 = arith.divf %314, %315 : vector<64x1xf32>
    %317 = vector.broadcast %309 : vector<64x1xf32> to vector<64x128xf32>
    %318 = arith.subf %301, %317 : vector<64x128xf32>
    %cst_250 = arith.constant 9.99999996E-13 : f32
    %319 = vector.broadcast %cst_250 : f32 to vector<64x1xf32>
    %320 = arith.addf %316, %319 : vector<64x1xf32>
    %321 = math.rsqrt %320 : vector<64x1xf32>
    %322 = vector.broadcast %321 : vector<64x1xf32> to vector<64x128xf32>
    %323 = arith.mulf %318, %322 : vector<64x128xf32>
    %324 = vector.broadcast %303 : vector<1x128xf32> to vector<64x128xf32>
    %325 = arith.mulf %323, %324 : vector<64x128xf32>
    %326 = vector.broadcast %305 : vector<1x128xf32> to vector<64x128xf32>
    %327 = arith.addf %325, %326 : vector<64x128xf32>
    %c1_251 = arith.constant 1 : index
    %c0_252 = arith.constant 0 : index
    %c0_253 = arith.constant 0 : index
    %328 = vector.load %arg11[%c1_251, %c0_252, %c0_253] : memref<2x128x512xf32, #tpu.memory_space<vmem>>, vector<1x128x512xf32>
    %329 = vector.shape_cast %328 : vector<1x128x512xf32> to vector<128x512xf32>
    %cst_254 = arith.constant dense<0.000000e+00> : vector<64x512xf32>
    %330 = tpu.matmul %327, %329, %cst_254 {dimension_numbers = #tpu.dot_dimension_numbers<[1], [0], [0], [1], [0, 0, 1, 1], [], []>} : vector<64x128xf32>, vector<128x512xf32>, vector<64x512xf32> -> vector<64x512xf32>
    %c1_255 = arith.constant 1 : index
    %c0_256 = arith.constant 0 : index
    %c0_257 = arith.constant 0 : index
    %331 = vector.load %arg12[%c1_255, %c0_256, %c0_257] : memref<2x1x512xf32, #tpu.memory_space<vmem>>, vector<1x1x512xf32>
    %332 = vector.shape_cast %331 : vector<1x1x512xf32> to vector<1x512xf32>
    %333 = vector.broadcast %332 : vector<1x512xf32> to vector<64x512xf32>
    %334 = arith.addf %330, %333 : vector<64x512xf32>
    %cst_258 = arith.constant 5.000000e-01 : f32
    %335 = vector.broadcast %cst_258 : f32 to vector<64x512xf32>
    %336 = arith.mulf %335, %334 : vector<64x512xf32>
    %cst_259 = arith.constant 4.471500e-02 : f32
    %337 = vector.broadcast %cst_259 : f32 to vector<64x512xf32>
    %338 = arith.mulf %337, %334 : vector<64x512xf32>
    %339 = arith.mulf %338, %334 : vector<64x512xf32>
    %340 = arith.mulf %339, %334 : vector<64x512xf32>
    %341 = arith.addf %334, %340 : vector<64x512xf32>
    %cst_260 = arith.constant 0.797884583 : f32
    %342 = vector.broadcast %cst_260 : f32 to vector<64x512xf32>
    %343 = arith.mulf %342, %341 : vector<64x512xf32>
    %344 = math.tanh %343 : vector<64x512xf32>
    %cst_261 = arith.constant 1.000000e+00 : f32
    %345 = vector.broadcast %cst_261 : f32 to vector<64x512xf32>
    %346 = arith.addf %345, %344 : vector<64x512xf32>
    %347 = arith.mulf %336, %346 : vector<64x512xf32>
    %c1_262 = arith.constant 1 : index
    %c0_263 = arith.constant 0 : index
    %c0_264 = arith.constant 0 : index
    %348 = vector.load %arg13[%c1_262, %c0_263, %c0_264] : memref<2x512x128xf32, #tpu.memory_space<vmem>>, vector<1x512x128xf32>
    %349 = vector.shape_cast %348 : vector<1x512x128xf32> to vector<512x128xf32>
    %cst_265 = arith.constant dense<0.000000e+00> : vector<64x128xf32>
    %350 = tpu.matmul %347, %349, %cst_265 {dimension_numbers = #tpu.dot_dimension_numbers<[1], [0], [0], [1], [0, 0, 1, 1], [], []>} : vector<64x512xf32>, vector<512x128xf32>, vector<64x128xf32> -> vector<64x128xf32>
    %c1_266 = arith.constant 1 : index
    %c0_267 = arith.constant 0 : index
    %c0_268 = arith.constant 0 : index
    %351 = vector.load %arg14[%c1_266, %c0_267, %c0_268] : memref<2x1x128xf32, #tpu.memory_space<vmem>>, vector<1x1x128xf32>
    %352 = vector.shape_cast %351 : vector<1x1x128xf32> to vector<1x128xf32>
    %353 = vector.broadcast %352 : vector<1x128xf32> to vector<64x128xf32>
    %354 = arith.addf %350, %353 : vector<64x128xf32>
    %355 = arith.addf %327, %354 : vector<64x128xf32>
    %c1_269 = arith.constant 1 : index
    %c0_270 = arith.constant 0 : index
    %c0_271 = arith.constant 0 : index
    %c0_272 = arith.constant 0 : index
    %356 = vector.load %arg15[%c1_269, %c0_270, %c0_271, %c0_272] : memref<2x2x1x128xf32, #tpu.memory_space<vmem>>, vector<1x1x1x128xf32>
    %357 = vector.shape_cast %356 : vector<1x1x1x128xf32> to vector<1x128xf32>
    %c1_273 = arith.constant 1 : index
    %c1_274 = arith.constant 1 : index
    %c0_275 = arith.constant 0 : index
    %c0_276 = arith.constant 0 : index
    %358 = vector.load %arg15[%c1_273, %c1_274, %c0_275, %c0_276] : memref<2x2x1x128xf32, #tpu.memory_space<vmem>>, vector<1x1x1x128xf32>
    %359 = vector.shape_cast %358 : vector<1x1x1x128xf32> to vector<1x128xf32>
    %cst_277 = arith.constant dense<0.000000e+00> : vector<64xf32>
    %360 = vector.multi_reduction <add>, %355, %cst_277 [1] : vector<64x128xf32> to vector<64xf32>
    %361 = vector.shape_cast %360 : vector<64xf32> to vector<64x1xf32>
    %cst_278 = arith.constant 1.280000e+02 : f32
    %362 = vector.broadcast %cst_278 : f32 to vector<64x1xf32>
    %363 = arith.divf %361, %362 : vector<64x1xf32>
    %364 = vector.broadcast %363 : vector<64x1xf32> to vector<64x128xf32>
    %365 = arith.subf %355, %364 : vector<64x128xf32>
    %366 = arith.mulf %365, %365 : vector<64x128xf32>
    %cst_279 = arith.constant dense<0.000000e+00> : vector<64xf32>
    %367 = vector.multi_reduction <add>, %366, %cst_279 [1] : vector<64x128xf32> to vector<64xf32>
    %368 = vector.shape_cast %367 : vector<64xf32> to vector<64x1xf32>
    %cst_280 = arith.constant 1.280000e+02 : f32
    %369 = vector.broadcast %cst_280 : f32 to vector<64x1xf32>
    %370 = arith.divf %368, %369 : vector<64x1xf32>
    %371 = vector.broadcast %363 : vector<64x1xf32> to vector<64x128xf32>
    %372 = arith.subf %355, %371 : vector<64x128xf32>
    %cst_281 = arith.constant 9.99999996E-13 : f32
    %373 = vector.broadcast %cst_281 : f32 to vector<64x1xf32>
    %374 = arith.addf %370, %373 : vector<64x1xf32>
    %375 = math.rsqrt %374 : vector<64x1xf32>
    %376 = vector.broadcast %375 : vector<64x1xf32> to vector<64x128xf32>
    %377 = arith.mulf %372, %376 : vector<64x128xf32>
    %378 = vector.broadcast %357 : vector<1x128xf32> to vector<64x128xf32>
    %379 = arith.mulf %377, %378 : vector<64x128xf32>
    %380 = vector.broadcast %359 : vector<1x128xf32> to vector<64x128xf32>
    %381 = arith.addf %379, %380 : vector<64x128xf32>
    %382 = vector.shape_cast %381 : vector<64x128xf32> to vector<8x8x128xf32>
    %c0_282 = arith.constant 0 : index
    %c0_283 = arith.constant 0 : index
    %c0_284 = arith.constant 0 : index
    %383 = vector.load %arg16[%c0_282, %c0_283, %c0_284] : memref<8x8x128xf32, #tpu.memory_space<vmem>>, vector<8x8x128xf32>
    tpu.vector_store %arg16[%c0_282, %c0_283, %c0_284], %382 {strides = array<i32>} : memref<8x8x128xf32, #tpu.memory_space<vmem>>, vector<8x8x128xf32>,
    return
  }
  func.func @transform_0(%arg0: i32) -> (i32, i32, i32) {
    %c0_i32 = arith.constant 0 : i32
    %c0_i32_0 = arith.constant 0 : i32
    %c0_i32_1 = arith.constant 0 : i32
    return %arg0, %c0_i32, %c0_i32_0 : i32, i32, i32
  }
  func.func @transform_1(%arg0: i32) -> (i32, i32, i32) {
    %c0_i32 = arith.constant 0 : i32
    %c0_i32_0 = arith.constant 0 : i32
    %c0_i32_1 = arith.constant 0 : i32
    return %arg0, %c0_i32, %c0_i32_0 : i32, i32, i32
  }
  func.func @transform_2(%arg0: i32) -> (i32, i32) {
    %c0_i32 = arith.constant 0 : i32
    %c0_i32_0 = arith.constant 0 : i32
    %c0_i32_1 = arith.constant 0 : i32
    return %c0_i32, %c0_i32_0 : i32, i32
  }
  func.func @transform_3(%arg0: i32) -> (i32, i32) {
    %c0_i32 = arith.constant 0 : i32
    %c0_i32_0 = arith.constant 0 : i32
    %c0_i32_1 = arith.constant 0 : i32
    return %c0_i32, %c0_i32_0 : i32, i32
  }
  func.func @transform_4(%arg0: i32) -> (i32, i32, i32) {
    %c0_i32 = arith.constant 0 : i32
    %c0_i32_0 = arith.constant 0 : i32
    %c0_i32_1 = arith.constant 0 : i32
    %c0_i32_2 = arith.constant 0 : i32
    return %c0_i32, %c0_i32_0, %c0_i32_1 : i32, i32, i32
  }
  func.func @transform_5(%arg0: i32) -> (i32, i32, i32, i32, i32) {
    %c0_i32 = arith.constant 0 : i32
    %c0_i32_0 = arith.constant 0 : i32
    %c0_i32_1 = arith.constant 0 : i32
    %c0_i32_2 = arith.constant 0 : i32
    %c0_i32_3 = arith.constant 0 : i32
    %c0_i32_4 = arith.constant 0 : i32
    return %c0_i32, %c0_i32_0, %c0_i32_1, %c0_i32_2, %c0_i32_3 : i32, i32, i32, i32, i32
  }
  func.func @transform_6(%arg0: i32) -> (i32, i32, i32, i32, i32) {
    %c0_i32 = arith.constant 0 : i32
    %c0_i32_0 = arith.constant 0 : i32
    %c0_i32_1 = arith.constant 0 : i32
    %c0_i32_2 = arith.constant 0 : i32
    %c0_i32_3 = arith.constant 0 : i32
    %c0_i32_4 = arith.constant 0 : i32
    return %c0_i32, %c0_i32_0, %c0_i32_1, %c0_i32_2, %c0_i32_3 : i32, i32, i32, i32, i32
  }
  func.func @transform_7(%arg0: i32) -> (i32, i32, i32, i32) {
    %c0_i32 = arith.constant 0 : i32
    %c0_i32_0 = arith.constant 0 : i32
    %c0_i32_1 = arith.constant 0 : i32
    %c0_i32_2 = arith.constant 0 : i32
    %c0_i32_3 = arith.constant 0 : i32
    return %c0_i32, %c0_i32_0, %c0_i32_1, %c0_i32_2 : i32, i32, i32, i32
  }
  func.func @transform_8(%arg0: i32) -> (i32, i32, i32) {
    %c0_i32 = arith.constant 0 : i32
    %c0_i32_0 = arith.constant 0 : i32
    %c0_i32_1 = arith.constant 0 : i32
    %c0_i32_2 = arith.constant 0 : i32
    return %c0_i32, %c0_i32_0, %c0_i32_1 : i32, i32, i32
  }
  func.func @transform_9(%arg0: i32) -> (i32, i32, i32, i32) {
    %c0_i32 = arith.constant 0 : i32
    %c0_i32_0 = arith.constant 0 : i32
    %c0_i32_1 = arith.constant 0 : i32
    %c0_i32_2 = arith.constant 0 : i32
    %c0_i32_3 = arith.constant 0 : i32
    return %c0_i32, %c0_i32_0, %c0_i32_1, %c0_i32_2 : i32, i32, i32, i32
  }
  func.func @transform_10(%arg0: i32) -> (i32, i32, i32) {
    %c0_i32 = arith.constant 0 : i32
    %c0_i32_0 = arith.constant 0 : i32
    %c0_i32_1 = arith.constant 0 : i32
    %c0_i32_2 = arith.constant 0 : i32
    return %c0_i32, %c0_i32_0, %c0_i32_1 : i32, i32, i32
  }
  func.func @transform_11(%arg0: i32) -> (i32, i32, i32) {
    %c0_i32 = arith.constant 0 : i32
    %c0_i32_0 = arith.constant 0 : i32
    %c0_i32_1 = arith.constant 0 : i32
    %c0_i32_2 = arith.constant 0 : i32
    return %c0_i32, %c0_i32_0, %c0_i32_1 : i32, i32, i32
  }
  func.func @transform_12(%arg0: i32) -> (i32, i32, i32) {
    %c0_i32 = arith.constant 0 : i32
    %c0_i32_0 = arith.constant 0 : i32
    %c0_i32_1 = arith.constant 0 : i32
    %c0_i32_2 = arith.constant 0 : i32
    return %c0_i32, %c0_i32_0, %c0_i32_1 : i32, i32, i32
  }
  func.func @transform_13(%arg0: i32) -> (i32, i32, i32) {
    %c0_i32 = arith.constant 0 : i32
    %c0_i32_0 = arith.constant 0 : i32
    %c0_i32_1 = arith.constant 0 : i32
    %c0_i32_2 = arith.constant 0 : i32
    return %c0_i32, %c0_i32_0, %c0_i32_1 : i32, i32, i32
  }
  func.func @transform_14(%arg0: i32) -> (i32, i32, i32, i32) {
    %c0_i32 = arith.constant 0 : i32
    %c0_i32_0 = arith.constant 0 : i32
    %c0_i32_1 = arith.constant 0 : i32
    %c0_i32_2 = arith.constant 0 : i32
    %c0_i32_3 = arith.constant 0 : i32
    return %c0_i32, %c0_i32_0, %c0_i32_1, %c0_i32_2 : i32, i32, i32, i32
  }
  func.func @transform_15(%arg0: i32) -> (i32, i32, i32) {
    %c0_i32 = arith.constant 0 : i32
    %c0_i32_0 = arith.constant 0 : i32
    %c0_i32_1 = arith.constant 0 : i32
    return %arg0, %c0_i32, %c0_i32_0 : i32, i32, i32
  }
}

</mosaic_0001>

<bundles_post_ra>
// kernel: tpu_custom_call.1
= control target key start
LH: loop header
LB: loop body
LE: loop exit
PB: predicated region body
PF: predicated region fallthrough
CT: control target
= control target key end

     0   :  { %20 = vsyncpa [#allocation3], 0  ;;  %s17066_s0 = inlined_call_operand.vmem [shape: s32[8,8,1], index: 0, kind: input, shape index: {}]   ;;  %s17067_s1 = inlined_call_operand.vmem [shape: f32[8,1,8], index: 1, kind: input, shape index: {}]   ;;  %s17068_s2 = inlined_call_operand.hbm [shape: f32[128,128], index: 2, kind: input, shape index: {}]   ;;  %s17069_s3 = inlined_call_operand.vmem [shape: f32[8,128], index: 3, kind: input, shape index: {}]   ;;  %s17070_s4 = inlined_call_operand.vmem [shape: f32[2,1,128], index: 4, kind: input, shape index: {}]   ;;  %s17071_s5 = inlined_call_operand.vmem [shape: f32[2,3,2,128,64], index: 5, kind: input, shape index: {}]   ;;  %s17072_s6 = inlined_call_operand.vmem [shape: f32[2,3,2,1,64], index: 6, kind: input, shape index: {}]   ;;  %s17073_s7 = inlined_call_operand.vmem [shape: f32[2,2,64,128], index: 7, kind: input, shape index: {}]   ;;  %s17074_s8 = inlined_call_operand.vmem [shape: f32[2,1,128], index: 8, kind: input, shape index: {}]   ;;  %s17075_s9 = inlined_call_operand.vmem [shape: f32[2,2,1,128], index: 9, kind: input, shape index: {}]   ;;  %s17076_s10 = inlined_call_operand.vmem [shape: f32[2,128,512], index: 10, kind: input, shape index: {}]   ;;  %s17077_s11 = inlined_call_operand.vmem [shape: f32[2,1,512], index: 11, kind: input, shape index: {}]   ;;  %s17078_s12 = inlined_call_operand.vmem [shape: f32[2,512,128], index: 12, kind: input, shape index: {}]   ;;  %s17079_s13 = inlined_call_operand.vmem [shape: f32[2,1,128], index: 13, kind: input, shape index: {}]   ;;  %s17080_s14 = inlined_call_operand.vmem [shape: f32[2,2,1,128], index: 14, kind: input, shape index: {}]   ;;  %s17081_s15 = inlined_call_operand.hbm [shape: f32[8,8,128], index: 15, kind: output, shape index: {}]  }
   0x1   :  { %21 = vsyncpa [#allocation4], 0  ;;  %s13405_s18 = smov [#allocation2]   ;;  %s13357_s22 = scalar_lea.hbm %s17068_s2, 2048 }
   0x2   :  { %s31_s19 = sshll.u32 %s13405_s18, 4  ;;  %p13358_p0 = scmp.ne.s32.totalorder %s17068_s2, %s13357_s22  ;;  %s32_s19 = int_to_ptr.vmem [resolvable:$true] %s31_s19 }
   0x3   :  { %p13361_p1 = scmp.lt.u32.totalorder %s13357_s22, %s17068_s2 }
   0x5   :  { %p13363_p2 = pnand %p13361_p1, %p13358_p0 }
   0x7   :  { %13366 = shalt.err (!%p13363_p2)
}
   0x8   :  { %s13367_s27 = scalar_lea.vmem %s32_s19, 2048  ;;  %p13372_p4 = scmp.lt.s32.totalorder %s32_s19, %s32_s19 }
   0x9   :  { %p13368_p3 = scmp.ne.s32.totalorder %s32_s19, %s13367_s27  ;;  %p13373_p5 = scmp.lt.s32.totalorder %s13367_s27, %s13367_s27 }
   0xb   :  { %p13374_p6 = por %p13373_p5, %p13372_p4 }
   0xd   :  { %p13375_p7 = pnand %p13374_p6, %p13368_p3 }
   0xf   :  { %13378 = shalt.err (!%p13375_p7)
}
  0x10   :  { %s13406_s28 = smov 128   ;;  %s13407_s29 = smov 8  }
  0x11   :  { %37 = dma.hbm_to_vmem [thread:$0]  %s17068_s2, 2048, %s32_s19, [#allocation3], %s13406_s28, %s13406_s28, %s13407_s29  }
  0x12   :  { %13401 = dma.done.wait [#allocation3], 2048  }
  0x13   :  { %13402 = vsyncadd [#allocation3], 4294965248  ;;  %v13408_v0 = vmov 0   ;;  %v67_v1 = vld [vmem:[%s17066_s0 + $0x10] sm:$0xff]  ;;  %v65_v2 = vld [vmem:[%s17066_s0] sm:$0xff]  ;;  %v73_v33 = vlaneseq  ;;  %v13409_v37 = vmov 1.0  }
  0x14   :  { %13020 = vset.pattern.permute.xlu1 %v13408_v0  ;;  %13019 = vset.pattern.permute.xlu0 %v13408_v0  ;;  %v68_v3 = vld [vmem:[%s17066_s0 + $0x18] sm:$0xff]  ;;  %v66_v4 = vld [vmem:[%s17066_s0 + $0x8] sm:$0xff]  ;;  %v124_v6 = vld [vmem:[#allocation2 + $0x8] sm:$0xff]  ;;  %vm13411_vm8 = vmmov 0   ;;  %vm833_vm9 = vcmask 523264   ;;  %vm1442_vm10 = vcmask 64512  }
  0x15   :  { %82 = vperm.xlu1 %13020, %v67_v1   ;;  %76 = vperm.xlu0 %13019, %v65_v2   ;;  %v123_v5 = vld [vmem:[#allocation2] sm:$0xff]  ;;  %v125_v7 = vld [vmem:[#allocation2 + $0x10] sm:$0xff]  ;;  %v126_v8 = vld [vmem:[#allocation2 + $0x18] sm:$0xff]  ;;  %v74_v34 = vand.u32 127, %v73_v33 }
  0x16   :  { %v12259_v9 = vpack.c.bf16 %v124_v6, %v123_v5  ;;  %v12263_v10 = vpack.c.bf16 %v126_v8, %v125_v7  ;;  %v127_v11 = vld [vmem:[#allocation2 + $0x20] sm:$0xff]  ;;  %v128_v12 = vld [vmem:[#allocation2 + $0x28] sm:$0xff]  ;;  %v69_v14 = vld [vmem:[%s17066_s0 + $0x20] sm:$0xff] }
  0x17   :  { %v70_v13 = vld [vmem:[%s17066_s0 + $0x28] sm:$0xff]  ;;  %v12267_v15 = vpack.c.bf16 %v128_v12, %v127_v11  ;;  %v129_v16 = vld [vmem:[#allocation2 + $0x30] sm:$0xff]  ;;  %v130_v17 = vld [vmem:[#allocation2 + $0x38] sm:$0xff] }
  0x18   :  { %12260 = vmatprep.subr.bf16.mxu0 %v12259_v9  ;;  %v72_v18 = vld [vmem:[%s17066_s0 + $0x38] sm:$0xff]  ;;  %v71_v19 = vld [vmem:[%s17066_s0 + $0x30] sm:$0xff]  ;;  %v12271_v20 = vpack.c.bf16 %v130_v17, %v129_v16  ;;  %v131_v21 = vld [vmem:[#allocation2 + $0x40] sm:$0xff] }
  0x19   :  { %85 = vperm.xlu1 %13020, %v68_v3   ;;  %79 = vperm.xlu0 %13019, %v66_v4   ;;  %v132_v22 = vld [vmem:[#allocation2 + $0x48] sm:$0xff]  ;;  %v133_v24 = vld [vmem:[#allocation2 + $0x50] sm:$0xff]  ;;  %v134_v25 = vld [vmem:[#allocation2 + $0x58] sm:$0xff] }
  0x1a   :  { %12262 = vmatpush3.bf16.msra.mxu0 %v12259_v9  ;;  %v12275_v23 = vpack.c.bf16 %v132_v22, %v131_v21  ;;  %v12279_v26 = vpack.c.bf16 %v134_v25, %v133_v24  ;;  %v135_v27 = vld [vmem:[#allocation2 + $0x60] sm:$0xff]  ;;  %v136_v28 = vld [vmem:[#allocation2 + $0x68] sm:$0xff]  ;;  %v137_v30 = vld [vmem:[#allocation2 + $0x70] sm:$0xff] }
  0x1b   :  { %12264 = vmatprep.subr.bf16.mxu0 %v12263_v10  ;;  %v12283_v29 = vpack.c.bf16 %v136_v28, %v135_v27  ;;  %v138_v31 = vld [vmem:[#allocation2 + $0x78] sm:$0xff]  ;;  %v398_v62 = vld [vmem:[%s17071_s5 + $0x8] sm:$0xff]  ;;  %v399_v2 = vld [vmem:[%s17071_s5 + $0x10] sm:$0xff] }
  0x1c   :  { %v12287_v32 = vpack.c.bf16 %v138_v31, %v137_v30  ;;  %v244_v44 = vld [vmem:[%s17069_s3] sm:$0xff]  ;;  %v10029_v1 = vld [vmem:[%s17071_s5 + $0x108] sm:$0xff]  ;;  %v400_v3 = vld [vmem:[%s17071_s5 + $0x18] sm:$0xff] }
  0x1d   :  { %91 = vperm.xlu1 %13020, %v70_v13   ;;  %88 = vperm.xlu0 %13019, %v69_v14   ;;  %v397_v61 = vld [vmem:[%s17071_s5] sm:$0xff]  ;;  %v12295_v5 = vpack.c.bf16 %v400_v3, %v399_v2  ;;  %v10030_v6 = vld [vmem:[%s17071_s5 + $0x110] sm:$0xff]  ;;  %v10031_v7 = vld [vmem:[%s17071_s5 + $0x118] sm:$0xff] }
  0x1e   :  { %12266 = vmatpush3.bf16.msra.mxu0 %v12263_v10  ;;  %v10028_v63 = vld [vmem:[%s17071_s5 + $0x100] sm:$0xff]  ;;  %v12291_v0 = vpack.c.bf16 %v398_v62, %v397_v61  ;;  %v12327_v9 = vpack.c.bf16 %v10031_v7, %v10030_v6  ;;  %v402_v10 = vld [vmem:[%s17071_s5 + $0x28] sm:$0xff]  ;;  %v408_v61 = vld [vmem:[%s17071_s5 + $0x58] sm:$0xff] }
  0x1f   :  { %12268 = vmatprep.subr.bf16.mxu0 %v12267_v15  ;;  %v12323_v4 = vpack.c.bf16 %v10029_v1, %v10028_v63  ;;  %v401_v8 = vld [vmem:[%s17071_s5 + $0x20] sm:$0xff]  ;;  %v10033_v12 = vld [vmem:[%s17071_s5 + $0x128] sm:$0xff]  ;;  %v10038_v63 = vld [vmem:[%s17071_s5 + $0x150] sm:$0xff] }
  0x20   :  { %12292 = vmatprep.subr.bf16.mxu1 %v12291_v0  ;;  %v10032_v11 = vld [vmem:[%s17071_s5 + $0x120] sm:$0xff]  ;;  %v12299_v13 = vpack.c.bf16 %v402_v10, %v401_v8  ;;  %v410_v3 = vld [vmem:[%s17071_s5 + $0x68] sm:$0xff]  ;;  %v411_v8 = vld [vmem:[%s17071_s5 + $0x70] sm:$0xff] }
  0x21   :  { %97 = vperm.xlu1 %13020, %v72_v18   ;;  %94 = vperm.xlu0 %13019, %v71_v19   ;;  %v12331_v14 = vpack.c.bf16 %v10033_v12, %v10032_v11  ;;  %v409_v2 = vld [vmem:[%s17071_s5 + $0x60] sm:$0xff]  ;;  %v10041_v6 = vld [vmem:[%s17071_s5 + $0x168] sm:$0xff]  ;;  %v10042_v11 = vld [vmem:[%s17071_s5 + $0x170] sm:$0xff] }
  0x22   :  { %12270 = vmatpush3.bf16.msra.mxu0 %v12267_v15  ;;  %12294 = vmatpush3.bf16.msra.mxu1 %v12291_v0  ;;  %v10039_v0 = vld [vmem:[%s17071_s5 + $0x158] sm:$0xff] }
  0x23   :  { %12272 = vmatprep.subr.bf16.mxu0 %v12271_v20  ;;  %12296 = vmatprep.subr.bf16.mxu1 %v12295_v5  ;;  %v12343_v1 = vpack.c.bf16 %v10039_v0, %v10038_v63  ;;  %v10043_v12 = vld [vmem:[%s17071_s5 + $0x178] sm:$0xff]  ;;  %v10050_v0 = vld [vmem:[%s17071_s5 + $0x220] sm:$0xff] }
  0x26   :  { %12274 = vmatpush3.bf16.msra.mxu0 %v12271_v20  ;;  %12298 = vmatpush3.bf16.msra.mxu1 %v12295_v5  ;;  %v10040_v5 = vld [vmem:[%s17071_s5 + $0x160] sm:$0xff] }
  0x27   :  { %12276 = vmatprep.subr.bf16.mxu0 %v12275_v23  ;;  %12300 = vmatprep.subr.bf16.mxu1 %v12299_v13  ;;  %v12347_v7 = vpack.c.bf16 %v10041_v6, %v10040_v5 }
  0x2a   :  { %12278 = vmatpush3.bf16.msra.mxu0 %v12275_v23  ;;  %12302 = vmatpush3.bf16.msra.mxu1 %v12299_v13  ;;  %v12351_v13 = vpack.c.bf16 %v10043_v12, %v10042_v11 }
  0x2b   :  { %12280 = vmatprep.subr.bf16.mxu0 %v12279_v26 }
  0x2e   :  { %12282 = vmatpush3.bf16.msra.mxu0 %v12279_v26 }
  0x2f   :  { %12284 = vmatprep.subr.bf16.mxu0 %v12283_v29 }
  0x32   :  { %12286 = vmatpush3.bf16.msra.mxu0 %v12283_v29 }
  0x33   :  { %12288 = vmatprep.subr.bf16.mxu0 %v12287_v32 }
  0x36   :  { %12290 = vmatpush3.bf16.msra.mxu0 %v12287_v32 }
  0x37   :  { %12324 = vmatprep.subr.bf16.mxu0 %v12323_v4 }
  0x94   :  { %v83_v35 = vpop.permute.xlu1 %82  ;;  %v77_v36 = vpop.permute.xlu0 %76 }
  0x95   :  { %vm99_vm0 = vcmp.eq.s32.totalorder %v74_v34, %v77_v36  ;;  %vm101_vm1 = vcmp.eq.s32.totalorder %v74_v34, %v83_v35 }
  0x96   :  { %11287 = vmatprep.mubr.msk.f32.mxu0 %vm99_vm0, %v13409_v37 }
  0x98   :  { %v86_v38 = vpop.permute.xlu1 %85  ;;  %v80_v39 = vpop.permute.xlu0 %79 }
  0x99   :  { %vm100_vm2 = vcmp.eq.s32.totalorder %v74_v34, %v80_v39  ;;  %vm102_vm3 = vcmp.eq.s32.totalorder %v74_v34, %v86_v38 }
  0x9a   :  { %11288 = vmatmul.mubr.msk.f32.vlgmr.msra.gmra.mrb[0].mxu0 %vm100_vm2, %v13409_v37 }
  0x9b   :  { %11290 = vmatprep.mubr.msk.f32.mxu0 %vm101_vm1, %v13409_v37  ;;  %12326 = vmatpush3.bf16.msra.mxu0 %v12323_v4  ;;  %v12315_v4 = vpack.c.bf16 %v410_v3, %v409_v2 }
  0x9c   :  { %v92_v40 = vpop.permute.xlu1 %91  ;;  %v89_v41 = vpop.permute.xlu0 %88  ;;  %12328 = vmatprep.subr.bf16.mxu0 %v12327_v9 }
  0x9d   :  { %vm103_vm4 = vcmp.eq.s32.totalorder %v74_v34, %v89_v41  ;;  %vm104_vm5 = vcmp.eq.s32.totalorder %v74_v34, %v92_v40 }
  0x9e   :  { %11291 = vmatmul.mubr.msk.f32.gmra.mrb[2].mxu0 %vm102_vm3, %v13409_v37 }
  0x9f   :  { %11293 = vmatprep.mubr.msk.f32.mxu0 %vm103_vm4, %v13409_v37  ;;  %12330 = vmatpush3.bf16.msra.mxu0 %v12327_v9  ;;  %v412_v9 = vld [vmem:[%s17071_s5 + $0x78] sm:$0xff] }
  0xa0   :  { %v95_v42 = vpop.permute.xlu0 %94  ;;  %v98_v43 = vpop.permute.xlu1 %97  ;;  %12332 = vmatprep.subr.bf16.mxu0 %v12331_v14  ;;  %v12319_v10 = vpack.c.bf16 %v412_v9, %v411_v8 }
  0xa1   :  { %vm105_vm6 = vcmp.eq.s32.totalorder %v74_v34, %v95_v42  ;;  %vm106_vm7 = vcmp.eq.s32.totalorder %v74_v34, %v98_v43 }
  0xa2   :  { %11294 = vmatmul.mubr.msk.f32.gmra.mrb[4].mxu0 %vm104_vm5, %v13409_v37 }
  0xa3   :  { %11296 = vmatprep.mubr.msk.f32.mxu0 %vm105_vm6, %v13409_v37  ;;  %12334 = vmatpush3.bf16.msra.mxu0 %v12331_v14  ;;  %v10046_v14 = vld [vmem:[%s17071_s5 + $0x200] sm:$0xff] }
  0xa6   :  { %11297 = vmatmul.mubr.msk.f32.gmra.mrb[6].mxu0 %vm106_vm7, %v13409_v37 }
 0x16d   :  { %v11289_v45 = vpop.f32.mrb[0].mxu0 }
 0x16e   :  { %v246_v46 = vadd.f32 %v11289_v45, %v244_v44  ;;  %v205_v47 = vpop.f32.mrb[1].mxu0 }
 0x16f   :  { %v245_v48 = vadd.f32 %v244_v44, %v205_v47  ;;  %v403_v47 = vld [vmem:[%s17071_s5 + $0x30] sm:$0xff] }
 0x170   :  { %282 = vadd.xlane.f32.xlu1 %v246_v46 }
 0x171   :  { %280 = vadd.xlane.f32.xlu0 %v245_v48  ;;  %v11292_v49 = vpop.f32.mrb[2].mxu0 }
 0x172   :  { %v215_v50 = vpop.f32.mrb[3].mxu0  ;;  %v248_v54 = vadd.f32 %v11292_v49, %v244_v44 }
 0x173   :  { %v247_v51 = vadd.f32 %v244_v44, %v215_v50  ;;  %v10034_v50 = vld [vmem:[%s17071_s5 + $0x130] sm:$0xff] }
 0x175   :  { %284 = vadd.xlane.f32.xlu0 %v247_v51  ;;  %v11295_v52 = vpop.f32.mrb[4].mxu0 }
 0x176   :  { %v225_v53 = vpop.f32.mrb[5].mxu0  ;;  %v13536_v58 = vadd.f32 %v11295_v52, %v244_v44 }
 0x177   :  { %v249_v55 = vadd.f32 %v244_v44, %v225_v53 }
 0x179   :  { %286 = vadd.xlane.f32.xlu0 %v248_v54  ;;  %288 = vadd.xlane.f32.xlu1 %v249_v55  ;;  %v11298_v56 = vpop.f32.mrb[6].mxu0 }
 0x17a   :  { %v235_v57 = vpop.f32.mrb[7].mxu0  ;;  %v13542_v60 = vadd.f32 %v11298_v56, %v244_v44 }
 0x17b   :  { %v13538_v59 = vadd.f32 %v244_v44, %v235_v57  ;;  %v10036_v57 = vld [vmem:[%s17071_s5 + $0x140] sm:$0xff] }
 0x17d   :  { %290 = vadd.xlane.f32.xlu0 %v13536_v58  ;;  %292 = vadd.xlane.f32.xlu1 %v13538_v59 }
 0x181   :  { %294 = vadd.xlane.f32.xlu0 %v13542_v60 }
 0x1fd   :  { %v283_v15 = vpop.xlane.xlu1 %282 }
 0x1fe   :  { %v298_v16 = vmul.f32 0.0078125, %v283_v15  ;;  %v281_v17 = vpop.xlane.xlu0 %280  ;;  %v10047_v15 = vld [vmem:[%s17071_s5 + $0x208] sm:$0xff] }
 0x1ff   :  { %v297_v18 = vmul.f32 0.0078125, %v281_v17 }
 0x200   :  { %v13581_v19 = vsub.f32 %v246_v46, %v298_v16  ;;  %v12355_v16 = vpack.c.bf16 %v10047_v15, %v10046_v14 }
 0x201   :  { %v13583_v20 = vsub.f32 %v245_v48, %v297_v18  ;;  %v404_v48 = vld [vmem:[%s17071_s5 + $0x38] sm:$0xff] }
 0x202   :  { %v285_v21 = vpop.xlane.xlu0 %284  ;;  %v314_v22 = vmul.f32 %v13581_v19, %v13581_v19  ;;  %v12303_v49 = vpack.c.bf16 %v404_v48, %v403_v47 }
 0x203   :  { %v299_v23 = vmul.f32 0.0078125, %v285_v21  ;;  %v313_v24 = vmul.f32 %v13583_v20, %v13583_v20 }
 0x204   :  { %323 = vadd.xlane.f32.xlu0 %v314_v22  ;;  %12304 = vmatprep.subr.bf16.mxu1 %v12303_v49 }
 0x205   :  { %321 = vadd.xlane.f32.xlu1 %v313_v24  ;;  %v13589_v25 = vsub.f32 %v247_v51, %v299_v23  ;;  %v10035_v51 = vld [vmem:[%s17071_s5 + $0x138] sm:$0xff]  ;;  %12306 = vmatpush3.bf16.msra.mxu1 %v12303_v49 }
 0x206   :  { %v289_v26 = vpop.xlane.xlu1 %288  ;;  %v287_v27 = vpop.xlane.xlu0 %286  ;;  %v12335_v53 = vpack.c.bf16 %v10035_v51, %v10034_v50 }
 0x207   :  { %v301_v28 = vmul.f32 0.0078125, %v289_v26  ;;  %v300_v29 = vmul.f32 0.0078125, %v287_v27  ;;  %v315_v30 = vmul.f32 %v13589_v25, %v13589_v25 }
 0x208   :  { %12336 = vmatprep.subr.bf16.mxu0 %v12335_v53 }
 0x209   :  { %325 = vadd.xlane.f32.xlu1 %v315_v30  ;;  %v13593_v31 = vsub.f32 %v249_v55, %v301_v28  ;;  %v13595_v32 = vsub.f32 %v248_v54, %v300_v29  ;;  %v405_v54 = vld [vmem:[%s17071_s5 + $0x40] sm:$0xff]  ;;  %v406_v55 = vld [vmem:[%s17071_s5 + $0x48] sm:$0xff]  ;;  %12338 = vmatpush3.bf16.msra.mxu0 %v12335_v53 }
 0x20a   :  { %v293_v34 = vpop.xlane.xlu1 %292  ;;  %v291_v35 = vpop.xlane.xlu0 %290  ;;  %v12307_v56 = vpack.c.bf16 %v406_v55, %v405_v54  ;;  %v13692_v53 = vld [vmem:[%s17070_s4 + $0x1] ss:$0 sm:$0xff] }
 0x20b   :  { %v303_v36 = vmul.f32 0.0078125, %v293_v34  ;;  %v302_v37 = vmul.f32 0.0078125, %v291_v35  ;;  %v317_v38 = vmul.f32 %v13593_v31, %v13593_v31  ;;  %v316_v39 = vmul.f32 %v13595_v32, %v13595_v32 }
 0x20c   :  { %12308 = vmatprep.subr.bf16.mxu1 %v12307_v56 }
 0x20d   :  { %329 = vadd.xlane.f32.xlu1 %v317_v38  ;;  %327 = vadd.xlane.f32.xlu0 %v316_v39  ;;  %v13602_v40 = vsub.f32 %v13538_v59, %v303_v36  ;;  %v13605_v41 = vsub.f32 %v13536_v58, %v302_v37  ;;  %v10037_v58 = vld [vmem:[%s17071_s5 + $0x148] sm:$0xff] }
 0x20e   :  { %v295_v42 = vpop.xlane.xlu0 %294  ;;  %v12339_v59 = vpack.c.bf16 %v10037_v58, %v10036_v57  ;;  %12310 = vmatpush3.bf16.msra.mxu1 %v12307_v56 }
 0x20f   :  { %v304_v43 = vmul.f32 0.0078125, %v295_v42  ;;  %v319_v44 = vmul.f32 %v13602_v40, %v13602_v40  ;;  %v318_v45 = vmul.f32 %v13605_v41, %v13605_v41 }
 0x210   :  { %12340 = vmatprep.subr.bf16.mxu0 %v12339_v59 }
 0x211   :  { %333 = vadd.xlane.f32.xlu1 %v319_v44  ;;  %331 = vadd.xlane.f32.xlu0 %v318_v45  ;;  %v13612_v46 = vsub.f32 %v13542_v60, %v304_v43  ;;  %v407_v60 = vld [vmem:[%s17071_s5 + $0x50] sm:$0xff]  ;;  %v13685_v45 = vld [vmem:[%s17070_s4] ss:$0 sm:$0xff] }
 0x212   :  { %12342 = vmatpush3.bf16.msra.mxu0 %v12339_v59  ;;  %v12311_v62 = vpack.c.bf16 %v408_v61, %v407_v60 }
 0x213   :  { %v320_v52 = vmul.f32 %v13612_v46, %v13612_v46  ;;  %12344 = vmatprep.subr.bf16.mxu0 %v12343_v1 }
 0x214   :  { %12312 = vmatprep.subr.bf16.mxu1 %v12311_v62 }
 0x215   :  { %335 = vadd.xlane.f32.xlu0 %v320_v52  ;;  %12314 = vmatpush3.bf16.msra.mxu1 %v12311_v62 }
 0x216   :  { %12346 = vmatpush3.bf16.msra.mxu0 %v12343_v1  ;;  %12316 = vmatprep.subr.bf16.mxu1 %v12315_v4  ;;  %v10051_v1 = vld [vmem:[%s17071_s5 + $0x228] sm:$0xff] }
 0x217   :  { %12348 = vmatprep.subr.bf16.mxu0 %v12347_v7  ;;  %v12363_v6 = vpack.c.bf16 %v10051_v1, %v10050_v0 }
 0x219   :  { %12318 = vmatpush3.bf16.msra.mxu1 %v12315_v4 }
 0x21a   :  { %12350 = vmatpush3.bf16.msra.mxu0 %v12347_v7  ;;  %12320 = vmatprep.subr.bf16.mxu1 %v12319_v10 }
 0x21b   :  { %12352 = vmatprep.subr.bf16.mxu0 %v12351_v13 }
 0x21d   :  { %12322 = vmatpush3.bf16.msra.mxu1 %v12319_v10  ;;  %v10052_v10 = vld [vmem:[%s17071_s5 + $0x230] sm:$0xff] }
 0x21e   :  { %12354 = vmatpush3.bf16.msra.mxu0 %v12351_v13  ;;  %12356 = vmatprep.subr.bf16.mxu1 %v12355_v16 }
 0x291   :  { %v324_v17 = vpop.xlane.xlu0 %323 }
 0x292   :  { %v338_v18 = vmul.f32 0.0078125, %v324_v17  ;;  %v322_v21 = vpop.xlane.xlu1 %321 }
 0x293   :  { %v337_v22 = vmul.f32 0.0078125, %v322_v21  ;;  %v10055_v21 = vld [vmem:[%s17071_s5 + $0x248] sm:$0xff] }
 0x294   :  { %v346_v23 = vadd.f32 1e-12, %v338_v18 }
 0x295   :  { %v345_v24 = vadd.f32 1e-12, %v337_v22 }
 0x296   :  { %13021 = vrsqrt.f32 %v346_v23  ;;  %v326_v26 = vpop.xlane.xlu1 %325 }
 0x297   :  { %13023 = vrsqrt.f32 %v345_v24  ;;  %v339_v27 = vmul.f32 0.0078125, %v326_v26 }
 0x299   :  { %v347_v28 = vadd.f32 1e-12, %v339_v27  ;;  %v10057_v27 = vld [vmem:[%s17071_s5 + $0x258] sm:$0xff] }
 0x29a   :  { %v330_v29 = vpop.xlane.xlu1 %329  ;;  %v328_v30 = vpop.xlane.xlu0 %327 }
 0x29b   :  { %13025 = vrsqrt.f32 %v347_v28  ;;  %v341_v34 = vmul.f32 0.0078125, %v330_v29  ;;  %v340_v35 = vmul.f32 0.0078125, %v328_v30  ;;  %v10058_v30 = vld [vmem:[%s17071_s5 + $0x260] sm:$0xff] }
 0x29d   :  { %v349_v36 = vadd.f32 1e-12, %v341_v34  ;;  %v348_v37 = vadd.f32 1e-12, %v340_v35  ;;  %v10059_v34 = vld [vmem:[%s17071_s5 + $0x268] sm:$0xff] }
 0x29e   :  { %v334_v38 = vpop.xlane.xlu1 %333  ;;  %v332_v39 = vpop.xlane.xlu0 %331  ;;  %v12379_v35 = vpack.c.bf16 %v10059_v34, %v10058_v30 }
 0x29f   :  { %13027 = vrsqrt.f32 %v349_v36  ;;  %v343_v42 = vmul.f32 0.0078125, %v334_v38  ;;  %v342_v43 = vmul.f32 0.0078125, %v332_v39  ;;  %v10060_v36 = vld [vmem:[%s17071_s5 + $0x270] sm:$0xff]  ;;  %v17085_v39 = vmov 0.0  }
 0x2a0   :  { %v13022_v44 = vpop.eup %13021  ;;  %13029 = vrsqrt.f32 %v348_v37  ;;  %v10061_v37 = vld [vmem:[%s17071_s5 + $0x278] sm:$0xff]  ;;  %11431 = vmatprep.subr.mxu0 %v17085_v39 }
 0x2a1   :  { %v13024_v47 = vpop.eup %13023  ;;  %v362_v48 = vmul.f32 %v13022_v44, %v13581_v19  ;;  %v351_v49 = vadd.f32 1e-12, %v343_v42  ;;  %v350_v50 = vadd.f32 1e-12, %v342_v43  ;;  %v10048_v19 = vld [vmem:[%s17071_s5 + $0x210] sm:$0xff]  ;;  %v12383_v38 = vpack.c.bf16 %v10061_v37, %v10060_v36 }
 0x2a2   :  { %v361_v51 = vmul.f32 %v13024_v47, %v13583_v20  ;;  %v336_v52 = vpop.xlane.xlu0 %335  ;;  %v10049_v20 = vld [vmem:[%s17071_s5 + $0x218] sm:$0xff]  ;;  %v10045_v42 = vld [vmem:[%s17072_s6 + $0x2] ss:$0 sm:$0xff]  ;;  %v254_v36 = vld [vmem:[%s17067_s1 + $0x1] sm:$0x1] }
 0x2a3   :  { %v376_v54 = vmul.f32 %v13685_v45, %v362_v48  ;;  %13031 = vrsqrt.f32 %v351_v49  ;;  %v344_v55 = vmul.f32 0.0078125, %v336_v52  ;;  %v12359_v62 = vpack.c.bf16 %v10049_v20, %v10048_v19  ;;  %v253_v37 = vld [vmem:[%s17067_s1] sm:$0x1] }
 0x2a4   :  { %v375_v56 = vmul.f32 %v13685_v45, %v361_v51  ;;  %13033 = vrsqrt.f32 %v350_v50 }
 0x2a5   :  { %v13026_v57 = vpop.eup %13025  ;;  %v352_v58 = vadd.f32 1e-12, %v344_v55  ;;  %v13707_v61 = vadd.f32 %v13692_v53, %v376_v54 }
 0x2a6   :  { %v13703_v59 = vadd.f32 %v13692_v53, %v375_v56  ;;  %v363_v60 = vmul.f32 %v13026_v57, %v13589_v25 }
 0x2a7   :  { %13035 = vrsqrt.f32 %v352_v58 }
 0x2a8   :  { %v377_v63 = vmul.f32 %v13685_v45, %v363_v60  ;;  %11331 = vmatprep.mubr.f32.mxu1 %v13703_v59  ;;  %11375 = vmatprep.mubr.f32.mxu0 %v13703_v59 }
 0x2a9   :  { %v13028_v25 = vpop.eup %13027  ;;  %11332 = vmatmul.mubr.f32.vlgmr.msra.gmra.mrb[0].mxu1 %v13707_v61  ;;  %11376 = vmatmul.mubr.f32.vlgmr.msra.gmra.mrb[8].mxu0 %v13707_v61 }
 0x2aa   :  { %v13030_v2 = vpop.eup %13029  ;;  %v13721_v3 = vadd.f32 %v13692_v53, %v377_v63  ;;  %v365_v4 = vmul.f32 %v13028_v25, %v13593_v31  ;;  %12358 = vmatpush3.bf16.msra.mxu1 %v12355_v16  ;;  %v10053_v31 = vld [vmem:[%s17071_s5 + $0x238] sm:$0xff] }
 0x2ab   :  { %v364_v5 = vmul.f32 %v13030_v2, %v13595_v32  ;;  %12360 = vmatprep.subr.bf16.mxu1 %v12359_v62  ;;  %v12367_v16 = vpack.c.bf16 %v10053_v31, %v10052_v10 }
 0x2ac   :  { %v379_v7 = vmul.f32 %v13685_v45, %v365_v4  ;;  %11334 = vmatprep.mubr.f32.mxu1 %v13721_v3  ;;  %11378 = vmatprep.mubr.f32.mxu0 %v13721_v3 }
 0x2ad   :  { %v13032_v8 = vpop.eup %13031  ;;  %v378_v9 = vmul.f32 %v13685_v45, %v364_v5 }
 0x2ae   :  { %v13034_v32 = vpop.eup %13033  ;;  %v13736_v11 = vadd.f32 %v13692_v53, %v379_v7  ;;  %v367_v12 = vmul.f32 %v13032_v8, %v13602_v40  ;;  %12362 = vmatpush3.bf16.msra.mxu1 %v12359_v62  ;;  %v10054_v40 = vld [vmem:[%s17071_s5 + $0x240] sm:$0xff] }
 0x2af   :  { %v13740_v13 = vadd.f32 %v13692_v53, %v378_v9  ;;  %v366_v14 = vmul.f32 %v13034_v32, %v13605_v41  ;;  %12364 = vmatprep.subr.bf16.mxu1 %v12363_v6  ;;  %v12371_v26 = vpack.c.bf16 %v10055_v21, %v10054_v40 }
 0x2b0   :  { %v381_v15 = vmul.f32 %v13685_v45, %v367_v12  ;;  %v10063_v12 = vld [vmem:[%s17072_s6 + $0x4] ss:$0 sm:$0xff] }
 0x2b1   :  { %v13036_v17 = vpop.eup %13035  ;;  %v380_v18 = vmul.f32 %v13685_v45, %v366_v14  ;;  %11335 = vmatmul.mubr.f32.gmra.mrb[2].mxu1 %v13740_v13  ;;  %11379 = vmatmul.mubr.f32.gmra.mrb[10].mxu0 %v13740_v13 }
 0x2b2   :  { %v13754_v41 = vadd.f32 %v13692_v53, %v381_v15  ;;  %v368_v22 = vmul.f32 %v13036_v17, %v13612_v46  ;;  %11337 = vmatprep.mubr.f32.mxu1 %v13736_v11  ;;  %11381 = vmatprep.mubr.f32.mxu0 %v13736_v11  ;;  %v10056_v46 = vld [vmem:[%s17071_s5 + $0x250] sm:$0xff] }
 0x2b3   :  { %v13760_v23 = vadd.f32 %v13692_v53, %v380_v18  ;;  %12366 = vmatpush3.bf16.msra.mxu1 %v12363_v6  ;;  %v12375_v29 = vpack.c.bf16 %v10057_v27, %v10056_v46 }
 0x2b4   :  { %v382_v24 = vmul.f32 %v13685_v45, %v368_v22  ;;  %12368 = vmatprep.subr.bf16.mxu1 %v12367_v16  ;;  %v10027_v45 = vld [vmem:[%s17072_s6] ss:$0 sm:$0xff] }
 0x2b5   :  { %11338 = vmatmul.mubr.f32.gmra.mrb[4].mxu1 %v13760_v23  ;;  %11382 = vmatmul.mubr.f32.gmra.mrb[12].mxu0 %v13760_v23 }
 0x2b6   :  { %v13772_v28 = vadd.f32 %v13692_v53, %v382_v24  ;;  %11340 = vmatprep.mubr.f32.mxu1 %v13754_v41  ;;  %11384 = vmatprep.mubr.f32.mxu0 %v13754_v41 }
 0x2b7   :  { %12370 = vmatpush3.bf16.msra.mxu1 %v12367_v16 }
 0x2b8   :  { %12372 = vmatprep.subr.bf16.mxu1 %v12371_v26 }
 0x2b9   :  { %11341 = vmatmul.mubr.f32.gmra.mrb[6].mxu1 %v13772_v28  ;;  %11385 = vmatmul.mubr.f32.gmra.mrb[14].mxu0 %v13772_v28 }
 0x2ba   :  { %11419 = vmatprep.mubr.f32.mxu1 %v13703_v59  ;;  %11433 = vmatprep.mubr.msk.f32.mxu0 %vm13411_vm8, %v17085_v39 }
 0x2bb   :  { %12374 = vmatpush3.bf16.msra.mxu1 %v12371_v26 }
 0x2bc   :  { %12376 = vmatprep.subr.bf16.mxu1 %v12375_v29 }
 0x2bf   :  { %12378 = vmatpush3.bf16.msra.mxu1 %v12375_v29 }
 0x2c0   :  { %12380 = vmatprep.subr.bf16.mxu1 %v12379_v35 }
 0x2c3   :  { %12382 = vmatpush3.bf16.msra.mxu1 %v12379_v35 }
 0x2c4   :  { %12384 = vmatprep.subr.bf16.mxu1 %v12383_v38 }
 0x2c7   :  { %12386 = vmatpush3.bf16.msra.mxu1 %v12383_v38  ;;  %v13874_v38 = vshrl.u32 %v73_v33, 7 }
 0x2c8   :  { %11436 = vmatprep.subr.mxu1 %v17085_v39 }
 0x2c9   :  { %17134 = vst [vmem:[#allocation8_spill] sm:$0xff] %v13874_v38 }
 0x2ca   :  { %11420 = vmatmul.mubr.f32.vlgmr.msra.gmra.mrb[8].mxu1 %v13707_v61 }
 0x2cb   :  { %11422 = vmatprep.mubr.f32.mxu1 %v13721_v3 }
 0x2ce   :  { %11423 = vmatmul.mubr.f32.gmra.mrb[10].mxu1 %v13740_v13 }
 0x2cf   :  { %11425 = vmatprep.mubr.f32.mxu1 %v13736_v11 }
 0x2d2   :  { %11426 = vmatmul.mubr.f32.gmra.mrb[12].mxu1 %v13760_v23 }
 0x2d3   :  { %11428 = vmatprep.mubr.f32.mxu1 %v13754_v41 }
 0x2d6   :  { %11429 = vmatmul.mubr.f32.gmra.mrb[14].mxu1 %v13772_v28 }
 0x2d7   :  { %11438 = vmatprep.mubr.msk.f32.mxu1 %vm13411_vm8, %v17085_v39 }
 0x37c   :  { %v11333_v43 = vpop.f32.mrb[0].mxu1  ;;  %v11377_v44 = vpop.f32.mrb[8].mxu0 }
 0x37d   :  { %v622_v47 = vadd.f32 %v11377_v44, %v10045_v42  ;;  %v486_v48 = vpop.f32.mrb[1].mxu1  ;;  %v616_v49 = vpop.f32.mrb[9].mxu0  ;;  %v492_v51 = vadd.f32 %v11333_v43, %v10027_v45  ;;  %v261_v43 = vsub.f32 1.0, %v253_v37  ;;  %v13877_v44 = vsub.s32 0, %v13874_v38 }
 0x37e   :  { %v617_v50 = vadd.f32 %v10045_v42, %v616_v49  ;;  %v487_v52 = vadd.f32 %v10027_v45, %v486_v48  ;;  %v256_v48 = vld [vmem:[%s17067_s1 + $0x3] sm:$0x1]  ;;  %v255_v49 = vld [vmem:[%s17067_s1 + $0x2] sm:$0x1] }
 0x37f   :  { %11437 = vmatpush3.xpose.msk.msra.mxu1 %vm833_vm9, %v622_v47  ;;  %17135 = vst [vmem:[#allocation9_spill] sm:$0xff] %v13877_v44  ;;  %v269_v47 = vmul.f32 -1e+09, %v261_v43  ;;  %v264_v33 = vsub.f32 1.0, %v256_v48 }
 0x380   :  { %11432 = vmatpush3.xpose.msk.msra.mxu0 %vm833_vm9, %v617_v50  ;;  %11446 = vmatprep.subr.mxu1 %v17085_v39 }
 0x381   :  { %11441 = vmatprep.subr.mxu0 %v17085_v39 }
 0x382   :  { %11439 = vmatmul.mubr.msk.f32.vlgmr.msra.gmra.mrb[16].mxu1 %vm833_vm9, %v492_v51  ;;  %v13889_v51 = vrot.slane %v269_v47, %v13877_v44 }
 0x383   :  { %11434 = vmatmul.mubr.msk.f32.vlgmr.msra.gmra.mrb[16].mxu0 %vm833_vm9, %v487_v52  ;;  %11448 = vmatprep.mubr.msk.f32.mxu1 %vm13411_vm8, %v17085_v39  ;;  %v263_v52 = vsub.f32 1.0, %v255_v49 }
 0x384   :  { %v11336_v53 = vpop.f32.mrb[2].mxu1  ;;  %v11380_v54 = vpop.f32.mrb[10].mxu0  ;;  %11443 = vmatprep.mubr.msk.f32.mxu0 %vm13411_vm8, %v17085_v39  ;;  %17137 = vst [vmem:[#allocation11_spill] sm:$0xff] %v13889_v51 }
 0x385   :  { %v632_v55 = vadd.f32 %v11380_v54, %v10045_v42  ;;  %v496_v56 = vpop.f32.mrb[3].mxu1  ;;  %v626_v19 = vpop.f32.mrb[11].mxu0  ;;  %v502_v57 = vadd.f32 %v11336_v53, %v10027_v45  ;;  %v258_v53 = vld [vmem:[%s17067_s1 + $0x5] sm:$0x1]  ;;  %v257_v54 = vld [vmem:[%s17067_s1 + $0x4] sm:$0x1] }
 0x386   :  { %v627_v20 = vadd.f32 %v10045_v42, %v626_v19  ;;  %v497_v62 = vadd.f32 %v10027_v45, %v496_v56 }
 0x387   :  { %11447 = vmatpush3.xpose.msk.msra.mxu1 %vm833_vm9, %v632_v55 }
 0x388   :  { %v11339_v58 = vpop.f32.mrb[4].mxu1  ;;  %v11383_v60 = vpop.f32.mrb[12].mxu0  ;;  %11442 = vmatpush3.xpose.msk.msra.mxu0 %vm833_vm9, %v627_v20  ;;  %11456 = vmatprep.subr.mxu1 %v17085_v39 }
 0x389   :  { %v642_v63 = vadd.f32 %v11383_v60, %v10045_v42  ;;  %v506_v0 = vpop.f32.mrb[5].mxu1  ;;  %v636_v1 = vpop.f32.mrb[13].mxu0  ;;  %11451 = vmatprep.subr.mxu0 %v17085_v39  ;;  %v512_v2 = vadd.f32 %v11339_v58, %v10027_v45  ;;  %v266_v58 = vsub.f32 1.0, %v258_v53 }
 0x38a   :  { %v637_v25 = vadd.f32 %v10045_v42, %v636_v1  ;;  %11449 = vmatmul.mubr.msk.f32.vlgmr.msra.gmra.mrb[18].mxu1 %vm833_vm9, %v502_v57  ;;  %v507_v6 = vadd.f32 %v10027_v45, %v506_v0  ;;  %v272_v57 = vmul.f32 -1e+09, %v264_v33  ;;  %v265_v0 = vsub.f32 1.0, %v257_v54  ;;  %v260_v1 = vld [vmem:[%s17067_s1 + $0x7] sm:$0x1] }
 0x38b   :  { %11444 = vmatmul.mubr.msk.f32.vlgmr.msra.gmra.mrb[18].mxu0 %vm833_vm9, %v497_v62  ;;  %11457 = vmatpush3.xpose.msk.msra.mxu1 %vm833_vm9, %v642_v63  ;;  %v271_v63 = vmul.f32 -1e+09, %v263_v52 }
 0x38c   :  { %v11342_v4 = vpop.f32.mrb[6].mxu1  ;;  %v11386_v5 = vpop.f32.mrb[14].mxu0  ;;  %11452 = vmatpush3.xpose.msk.msra.mxu0 %vm833_vm9, %v637_v25  ;;  %11458 = vmatprep.mubr.msk.f32.mxu1 %vm13411_vm8, %v17085_v39 }
 0x38d   :  { %v652_v7 = vadd.f32 %v11386_v5, %v10045_v42  ;;  %v516_v8 = vpop.f32.mrb[7].mxu1  ;;  %v646_v9 = vpop.f32.mrb[15].mxu0  ;;  %11453 = vmatprep.mubr.msk.f32.mxu0 %vm13411_vm8, %v17085_v39  ;;  %11466 = vmatprep.subr.mxu1 %v17085_v39  ;;  %v522_v31 = vadd.f32 %v11342_v4, %v10027_v45  ;;  %v13908_v5 = vrot.slane %v272_v57, %v13877_v44 }
 0x38e   :  { %v647_v10 = vadd.f32 %v10045_v42, %v646_v9  ;;  %11459 = vmatmul.mubr.msk.f32.vlgmr.msra.gmra.mrb[20].mxu1 %vm833_vm9, %v512_v2  ;;  %11461 = vmatprep.subr.mxu0 %v17085_v39  ;;  %v517_v32 = vadd.f32 %v10027_v45, %v516_v8  ;;  %v262_v42 = vsub.f32 1.0, %v254_v36  ;;  %v259_v2 = vld [vmem:[%s17067_s1 + $0x6] sm:$0x1]  ;;  %v13911_v8 = vrot.slane %v271_v63, %v13877_v44 }
 0x38f   :  { %11454 = vmatmul.mubr.msk.f32.vlgmr.msra.gmra.mrb[20].mxu0 %vm833_vm9, %v507_v6  ;;  %11467 = vmatpush3.xpose.msk.msra.mxu1 %vm833_vm9, %v652_v7  ;;  %17138 = vst [vmem:[#allocation12_spill] sm:$0xff] %v13908_v5  ;;  %v274_v6 = vmul.f32 -1e+09, %v266_v58  ;;  %v268_v7 = vsub.f32 1.0, %v260_v1  ;;  %v273_v9 = vmul.f32 -1e+09, %v265_v0 }
 0x390   :  { %11462 = vmatpush3.xpose.msk.msra.mxu0 %vm833_vm9, %v647_v10  ;;  %11468 = vmatprep.mubr.msk.f32.mxu1 %vm13411_vm8, %v17085_v39  ;;  %v270_v45 = vmul.f32 -1e+09, %v262_v42  ;;  %17139 = vst [vmem:[#allocation13_spill] sm:$0xff] %v13911_v8  ;;  %v267_v10 = vsub.f32 1.0, %v259_v2 }
 0x391   :  { %11463 = vmatprep.mubr.msk.f32.mxu0 %vm13411_vm8, %v17085_v39  ;;  %11476 = vmatprep.subr.mxu1 %v17085_v39 }
 0x392   :  { %11469 = vmatmul.mubr.msk.f32.vlgmr.msra.gmra.mrb[22].mxu1 %vm833_vm9, %v522_v31  ;;  %11471 = vmatprep.subr.mxu0 %v17085_v39  ;;  %v13886_v50 = vrot.slane %v270_v45, %v13877_v44 }
 0x393   :  { %11464 = vmatmul.mubr.msk.f32.vlgmr.msra.gmra.mrb[22].mxu0 %vm833_vm9, %v517_v32  ;;  %11478 = vmatprep.mubr.msk.f32.mxu1 %vm13411_vm8, %v17085_v39 }
 0x394   :  { %11473 = vmatprep.mubr.msk.f32.mxu0 %vm13411_vm8, %v17085_v39  ;;  %17136 = vst [vmem:[#allocation10_spill] sm:$0xff] %v13886_v50 }
 0x39d   :  { %v11421_v14 = vpop.f32.mrb[8].mxu1 }
 0x39e   :  { %v752_v15 = vadd.f32 %v11421_v14, %v10063_v12  ;;  %v746_v16 = vpop.f32.mrb[9].mxu1 }
 0x39f   :  { %v747_v17 = vadd.f32 %v10063_v12, %v746_v16  ;;  %v276_v16 = vmul.f32 -1e+09, %v268_v7 }
 0x3a0   :  { %11477 = vmatpush3.msra.mxu1 %v752_v15  ;;  %v13915_v15 = vrot.slane %v274_v6, %v13877_v44 }
 0x3a1   :  { %v11424_v18 = vpop.f32.mrb[10].mxu1  ;;  %11472 = vmatpush3.msra.mxu0 %v747_v17  ;;  %11486 = vmatprep.subr.mxu1 %v17085_v39  ;;  %v13925_v43 = vrot.slane %v276_v16, %v13877_v44 }
 0x3a2   :  { %v13854_v40 = vadd.f32 %v11424_v18, %v10063_v12  ;;  %v756_v21 = vpop.f32.mrb[11].mxu1  ;;  %11481 = vmatprep.subr.mxu0 %v17085_v39  ;;  %17140 = vst [vmem:[#allocation14_spill] sm:$0xff] %v13915_v15 }
 0x3a3   :  { %v13857_v22 = vadd.f32 %v10063_v12, %v756_v21  ;;  %v13919_v21 = vrot.slane %v273_v9, %v13877_v44  ;;  %17142 = vst [vmem:[#allocation16_spill] sm:$0xff] %v13925_v43 }
 0x3a5   :  { %v11427_v24 = vpop.f32.mrb[12].mxu1  ;;  %17141 = vst [vmem:[#allocation15_spill] sm:$0xff] %v13919_v21 }
 0x3a6   :  { %v13859_v26 = vadd.f32 %v11427_v24, %v10063_v12  ;;  %v766_v46 = vpop.f32.mrb[13].mxu1  ;;  %v275_v24 = vmul.f32 -1e+09, %v267_v10 }
 0x3a7   :  { %v13861_v27 = vadd.f32 %v10063_v12, %v766_v46 }
 0x3a8   :  { %v13929_v48 = vrot.slane %v275_v24, %v13877_v44 }
 0x3a9   :  { %v11430_v29 = vpop.f32.mrb[14].mxu1 }
 0x3aa   :  { %v13863_v30 = vadd.f32 %v11430_v29, %v10063_v12  ;;  %v776_v34 = vpop.f32.mrb[15].mxu1  ;;  %17143 = vst [vmem:[#allocation17_spill] sm:$0xff] %v13929_v48 }
 0x3ab   :  { %v13865_v35 = vadd.f32 %v10063_v12, %v776_v34 }
 0x455   :  { %v982_v55 = vpop.f32.mrb[16].mxu1 }
 0x456   :  { %v983_v56 = vadd.f32 %v982_v55, %v13886_v50  ;;  %v906_v19 = vpop.f32.mrb[16].mxu0  ;;  %v11440_v20 = vpop.f32.mrb[17].mxu1 }
 0x457   :  { %v907_v60 = vadd.f32 %v906_v19, %v13889_v51  ;;  %v11435_v62 = vpop.f32.mrb[17].mxu0 }
 0x458   :  { %v1446_v25 = vsel %vm1442_vm10, %v983_v56, -inf }
 0x459   :  { %1447 = vmax.xlane.f32.xlu1 %v1446_v25  ;;  %v1443_v4 = vsel %vm1442_vm10, %v907_v60, -inf }
 0x45a   :  { %1444 = vmax.xlane.f32.xlu0 %v1443_v4 }
 0x45d   :  { %v1134_v31 = vpop.f32.mrb[18].mxu1 }
 0x45e   :  { %v1135_v32 = vadd.f32 %v1134_v31, %v13908_v5  ;;  %v1058_v12 = vpop.f32.mrb[18].mxu0  ;;  %v11450_v14 = vpop.f32.mrb[19].mxu1 }
 0x45f   :  { %v1059_v17 = vadd.f32 %v1058_v12, %v13911_v8  ;;  %v11445_v18 = vpop.f32.mrb[19].mxu0 }
 0x460   :  { %v1452_v46 = vsel %vm1442_vm10, %v1135_v32, -inf }
 0x461   :  { %1453 = vmax.xlane.f32.xlu1 %v1452_v46  ;;  %v1286_v29 = vpop.f32.mrb[20].mxu1  ;;  %v1449_v34 = vsel %vm1442_vm10, %v1059_v17, -inf }
 0x462   :  { %v1287_v36 = vadd.f32 %v1286_v29, %v13915_v15  ;;  %1450 = vmax.xlane.f32.xlu0 %v1449_v34  ;;  %v1210_v37 = vpop.f32.mrb[20].mxu0  ;;  %v11460_v42 = vpop.f32.mrb[21].mxu1 }
 0x463   :  { %v1211_v45 = vadd.f32 %v1210_v37, %v13919_v21  ;;  %v11455_v47 = vpop.f32.mrb[21].mxu0 }
 0x464   :  { %v1458_v49 = vsel %vm1442_vm10, %v1287_v36, -inf }
 0x465   :  { %1459 = vmax.xlane.f32.xlu1 %v1458_v49  ;;  %v1438_v33 = vpop.f32.mrb[22].mxu1  ;;  %v1455_v52 = vsel %vm1442_vm10, %v1211_v45, -inf }
 0x466   :  { %v1439_v53 = vadd.f32 %v1438_v33, %v13925_v43  ;;  %1456 = vmax.xlane.f32.xlu0 %v1455_v52  ;;  %v1362_v54 = vpop.f32.mrb[22].mxu0  ;;  %v11470_v55 = vpop.f32.mrb[23].mxu1 }
 0x467   :  { %v1363_v19 = vadd.f32 %v1362_v54, %v13929_v48  ;;  %v11465_v20 = vpop.f32.mrb[23].mxu0 }
 0x468   :  { %v1464_v57 = vsel %vm1442_vm10, %v1439_v53, -inf }
 0x469   :  { %1465 = vmax.xlane.f32.xlu1 %v1464_v57  ;;  %v1461_v58 = vsel %vm1442_vm10, %v1363_v19, -inf }
 0x46a   :  { %1462 = vmax.xlane.f32.xlu0 %v1461_v58 }
 0x4e6   :  { %v1448_v62 = vpop.xlane.xlu1 %1447 }
 0x4e7   :  { %v1468_v63 = vsub.f32 %v983_v56, %v1448_v62  ;;  %v1445_v0 = vpop.xlane.xlu0 %1444 }
 0x4e8   :  { %v1467_v1 = vsub.f32 %v907_v60, %v1445_v0 }
 0x4e9   :  { %v1477_v25 = vmul.f32 1.442695, %v1468_v63 }
 0x4ea   :  { %v1475_v2 = vmul.f32 1.442695, %v1467_v1 }
 0x4eb   :  { %13037 = vpow2.f32 %v1477_v25 }
 0x4ec   :  { %13039 = vpow2.f32 %v1475_v2 }
 0x4ee   :  { %v1454_v4 = vpop.xlane.xlu1 %1453 }
 0x4ef   :  { %v1470_v6 = vsub.f32 %v1135_v32, %v1454_v4  ;;  %v1451_v7 = vpop.xlane.xlu0 %1450 }
 0x4f0   :  { %v1469_v9 = vsub.f32 %v1059_v17, %v1451_v7 }
 0x4f1   :  { %v1481_v10 = vmul.f32 1.442695, %v1470_v6 }
 0x4f2   :  { %v1479_v31 = vmul.f32 1.442695, %v1469_v9  ;;  %v1460_v12 = vpop.xlane.xlu1 %1459 }
 0x4f3   :  { %13041 = vpow2.f32 %v1481_v10  ;;  %v1472_v14 = vsub.f32 %v1287_v36, %v1460_v12  ;;  %v1457_v16 = vpop.xlane.xlu0 %1456 }
 0x4f4   :  { %13043 = vpow2.f32 %v1479_v31  ;;  %v1471_v18 = vsub.f32 %v1211_v45, %v1457_v16 }
 0x4f5   :  { %v13038_v24 = vpop.eup %13037  ;;  %v1485_v56 = vmul.f32 1.442695, %v1472_v14 }
 0x4f6   :  { %v13040_v46 = vpop.eup %13039  ;;  %v1483_v60 = vmul.f32 1.442695, %v1471_v18  ;;  %v1466_v29 = vpop.xlane.xlu1 %1465  ;;  %v1494_v34 = vsel %vm1442_vm10, %v13038_v24, 0.0 }
 0x4f7   :  { %13045 = vpow2.f32 %v1485_v56  ;;  %v1474_v37 = vsub.f32 %v1439_v53, %v1466_v29  ;;  %v1463_v32 = vpop.xlane.xlu0 %1462  ;;  %1495 = vadd.xlane.f32.xlu1 %v1494_v34  ;;  %v1491_v17 = vsel %vm1442_vm10, %v13040_v46, 0.0 }
 0x4f8   :  { %13047 = vpow2.f32 %v1483_v60  ;;  %v1473_v42 = vsub.f32 %v1363_v19, %v1463_v32  ;;  %1492 = vadd.xlane.f32.xlu0 %v1491_v17  ;;  %v10089_v60 = vld [vmem:[%s17071_s5 + $0x88] sm:$0xff]  ;;  %v10109_v17 = vld [vmem:[%s17071_s5 + $0x198] sm:$0xff] }
 0x4f9   :  { %v1489_v36 = vmul.f32 1.442695, %v1474_v37 }
 0x4fa   :  { %v1487_v47 = vmul.f32 1.442695, %v1473_v42 }
 0x4fb   :  { %13049 = vpow2.f32 %v1489_v36  ;;  %v10090_v36 = vld [vmem:[%s17071_s5 + $0x90] sm:$0xff] }
 0x4fc   :  { %13051 = vpow2.f32 %v1487_v47  ;;  %v10091_v47 = vld [vmem:[%s17071_s5 + $0x98] sm:$0xff] }
 0x4fd   :  { %v13042_v45 = vpop.eup %13041 }
 0x4fe   :  { %v13044_v49 = vpop.eup %13043  ;;  %v1500_v33 = vsel %vm1442_vm10, %v13042_v45, 0.0 }
 0x4ff   :  { %1501 = vadd.xlane.f32.xlu1 %v1500_v33  ;;  %v1497_v52 = vsel %vm1442_vm10, %v13044_v49, 0.0 }
 0x500   :  { %1498 = vadd.xlane.f32.xlu0 %v1497_v52  ;;  %v10110_v52 = vld [vmem:[%s17071_s5 + $0x1a0] sm:$0xff] }
 0x501   :  { %v13046_v53 = vpop.eup %13045 }
 0x502   :  { %v13048_v54 = vpop.eup %13047  ;;  %v1506_v55 = vsel %vm1442_vm10, %v13046_v53, 0.0 }
 0x503   :  { %1507 = vadd.xlane.f32.xlu1 %v1506_v55  ;;  %v1503_v19 = vsel %vm1442_vm10, %v13048_v54, 0.0  ;;  %v10093_v55 = vld [vmem:[%s17071_s5 + $0xa8] sm:$0xff] }
 0x504   :  { %1504 = vadd.xlane.f32.xlu0 %v1503_v19 }
 0x505   :  { %v13943_v20 = vpop.eup %13049 }
 0x506   :  { %v13945_v57 = vpop.eup %13051  ;;  %v1512_v58 = vsel %vm1442_vm10, %v13943_v20, 0.0 }
 0x507   :  { %1513 = vadd.xlane.f32.xlu1 %v1512_v58  ;;  %v1509_v62 = vsel %vm1442_vm10, %v13945_v57, 0.0  ;;  %v10113_v58 = vld [vmem:[%s17071_s5 + $0x1b8] sm:$0xff] }
 0x508   :  { %1510 = vadd.xlane.f32.xlu0 %v1509_v62  ;;  %v10094_v62 = vld [vmem:[%s17071_s5 + $0xb0] sm:$0xff] }
 0x584   :  { %v1496_v63 = vpop.xlane.xlu1 %1495 }
 0x585   :  { %13053 = vrcp.f32 %v1496_v63  ;;  %v1493_v0 = vpop.xlane.xlu0 %1492  ;;  %v10095_v63 = vld [vmem:[%s17071_s5 + $0xb8] sm:$0xff] }
 0x586   :  { %13055 = vrcp.f32 %v1493_v0 }
 0x58c   :  { %v1502_v1 = vpop.xlane.xlu1 %1501 }
 0x58d   :  { %13057 = vrcp.f32 %v1502_v1  ;;  %v1499_v25 = vpop.xlane.xlu0 %1498  ;;  %v12399_v1 = vpack.c.bf16 %v10095_v63, %v10094_v62  ;;  %v10136_v63 = vld [vmem:[%s17071_s5 + $0x2e0] sm:$0xff] }
 0x58e   :  { %13059 = vrcp.f32 %v1499_v25  ;;  %v10114_v25 = vld [vmem:[%s17071_s5 + $0x1c0] sm:$0xff] }
 0x58f   :  { %v13054_v2 = vpop.eup %13053 }
 0x590   :  { %v13056_v4 = vpop.eup %13055  ;;  %v1508_v6 = vpop.xlane.xlu1 %1507  ;;  %v1518_v7 = vmul.f32 %v13054_v2, %v13038_v24  ;;  %v10107_v24 = vld [vmem:[%s17071_s5 + $0x188] sm:$0xff] }
 0x591   :  { %13061 = vrcp.f32 %v1508_v6  ;;  %v1505_v9 = vpop.xlane.xlu0 %1504  ;;  %v1516_v10 = vmul.f32 %v13056_v4, %v13040_v46  ;;  %v10088_v46 = vld [vmem:[%s17071_s5 + $0x80] sm:$0xff]  ;;  %v10115_v2 = vld [vmem:[%s17071_s5 + $0x1c8] sm:$0xff] }
 0x592   :  { %13063 = vrcp.f32 %v1505_v9  ;;  %11479 = vmatmul.mubr.msk.f32.vlgmr.msra.gmra.mrb[24].mxu1 %vm1442_vm10, %v1518_v7  ;;  %v12387_v32 = vpack.c.bf16 %v10089_v60, %v10088_v46  ;;  %v10096_v4 = vld [vmem:[%s17071_s5 + $0xc0] sm:$0xff]  ;;  %v10097_v6 = vld [vmem:[%s17071_s5 + $0xc8] sm:$0xff]  ;;  %v12435_v7 = vpack.c.bf16 %v10115_v2, %v10114_v25  ;;  %v10138_v25 = vld [vmem:[%s17071_s5 + $0x2f0] sm:$0xff] }
 0x593   :  { %11487 = vmatpush3.msra.mxu1 %v13854_v40  ;;  %11474 = vmatmul.mubr.msk.f32.vlgmr.msra.gmra.mrb[24].mxu0 %vm1442_vm10, %v1516_v10  ;;  %v12403_v9 = vpack.c.bf16 %v10097_v6, %v10096_v4  ;;  %v10116_v10 = vld [vmem:[%s17071_s5 + $0x1d0] sm:$0xff]  ;;  %v10139_v2 = vld [vmem:[%s17071_s5 + $0x2f8] sm:$0xff] }
 0x594   :  { %v1514_v31 = vpop.xlane.xlu1 %1513  ;;  %11482 = vmatpush3.msra.mxu0 %v13857_v22  ;;  %11488 = vmatprep.mubr.msk.f32.mxu1 %vm13411_vm8, %v17085_v39  ;;  %v10106_v22 = vld [vmem:[%s17071_s5 + $0x180] sm:$0xff]  ;;  %v12479_v4 = vpack.c.bf16 %v10139_v2, %v10138_v25 }
 0x595   :  { %13065 = vrcp.f32 %v1514_v31  ;;  %v1511_v12 = vpop.xlane.xlu0 %1510  ;;  %11496 = vmatprep.subr.mxu1 %v17085_v39  ;;  %11483 = vmatprep.mubr.msk.f32.mxu0 %vm13411_vm8, %v17085_v39  ;;  %v12419_v37 = vpack.c.bf16 %v10107_v24, %v10106_v22  ;;  %v10117_v31 = vld [vmem:[%s17071_s5 + $0x1d8] sm:$0xff]  ;;  %v10119_v22 = vld [vmem:[%s17071_s5 + $0x1e8] sm:$0xff]  ;;  %v10100_v24 = vld [vmem:[%s17071_s5 + $0xe0] sm:$0xff] }
 0x596   :  { %13067 = vrcp.f32 %v1511_v12  ;;  %11491 = vmatprep.subr.mxu0 %v17085_v39  ;;  %v10098_v12 = vld [vmem:[%s17071_s5 + $0xd0] sm:$0xff] }
 0x597   :  { %v13058_v14 = vpop.eup %13057 }
 0x598   :  { %v13060_v40 = vpop.eup %13059  ;;  %v1522_v16 = vmul.f32 %v13058_v14, %v13042_v45  ;;  %v10099_v14 = vld [vmem:[%s17071_s5 + $0xd8] sm:$0xff] }
 0x599   :  { %v1520_v18 = vmul.f32 %v13060_v40, %v13044_v49  ;;  %v12439_v40 = vpack.c.bf16 %v10117_v31, %v10116_v10 }
 0x59a   :  { %11489 = vmatmul.mubr.msk.f32.vlgmr.msra.gmra.mrb[26].mxu1 %vm1442_vm10, %v1522_v16  ;;  %v12407_v16 = vpack.c.bf16 %v10099_v14, %v10098_v12 }
 0x59b   :  { %v13062_v56 = vpop.eup %13061  ;;  %11497 = vmatpush3.msra.mxu1 %v13859_v26  ;;  %11484 = vmatmul.mubr.msk.f32.vlgmr.msra.gmra.mrb[26].mxu0 %vm1442_vm10, %v1520_v18  ;;  %v10118_v18 = vld [vmem:[%s17071_s5 + $0x1e0] sm:$0xff] }
 0x59c   :  { %v13064_v29 = vpop.eup %13063  ;;  %11492 = vmatpush3.msra.mxu0 %v13861_v27  ;;  %11498 = vmatprep.mubr.msk.f32.mxu1 %vm13411_vm8, %v17085_v39  ;;  %v1526_v34 = vmul.f32 %v13062_v56, %v13046_v53  ;;  %v10108_v27 = vld [vmem:[%s17071_s5 + $0x190] sm:$0xff]  ;;  %v12391_v53 = vpack.c.bf16 %v10091_v47, %v10090_v36  ;;  %v10101_v56 = vld [vmem:[%s17071_s5 + $0xe8] sm:$0xff]  ;;  %v12443_v46 = vpack.c.bf16 %v10119_v22, %v10118_v18 }
 0x59d   :  { %11506 = vmatprep.subr.mxu1 %v17085_v39  ;;  %11493 = vmatprep.mubr.msk.f32.mxu0 %vm13411_vm8, %v17085_v39  ;;  %v1524_v26 = vmul.f32 %v13064_v29, %v13048_v54  ;;  %v12423_v33 = vpack.c.bf16 %v10109_v17, %v10108_v27  ;;  %v10092_v54 = vld [vmem:[%s17071_s5 + $0xa0] sm:$0xff]  ;;  %v12411_v60 = vpack.c.bf16 %v10101_v56, %v10100_v24  ;;  %v10120_v29 = vld [vmem:[%s17071_s5 + $0x1f0] sm:$0xff] }
 0x59e   :  { %11499 = vmatmul.mubr.msk.f32.vlgmr.msra.gmra.mrb[28].mxu1 %vm1442_vm10, %v1526_v34  ;;  %11501 = vmatprep.subr.mxu0 %v17085_v39  ;;  %v10121_v34 = vld [vmem:[%s17071_s5 + $0x1f8] sm:$0xff]  ;;  %v10124_v17 = vld [vmem:[%s17071_s5 + $0x280] sm:$0xff]  ;;  %v10126_v47 = vld [vmem:[%s17071_s5 + $0x290] sm:$0xff] }
 0x59f   :  { %v13066_v42 = vpop.eup %13065  ;;  %11507 = vmatpush3.msra.mxu1 %v13863_v30  ;;  %11494 = vmatmul.mubr.msk.f32.vlgmr.msra.gmra.mrb[28].mxu0 %vm1442_vm10, %v1524_v26  ;;  %v10102_v26 = vld [vmem:[%s17071_s5 + $0xf0] sm:$0xff] }
 0x5a0   :  { %v13068_v45 = vpop.eup %13067  ;;  %11502 = vmatpush3.msra.mxu0 %v13865_v35  ;;  %11508 = vmatprep.mubr.msk.f32.mxu1 %vm13411_vm8, %v17085_v39  ;;  %v1530_v49 = vmul.f32 %v13066_v42, %v13943_v20  ;;  %v10111_v35 = vld [vmem:[%s17071_s5 + $0x1a8] sm:$0xff]  ;;  %v12395_v20 = vpack.c.bf16 %v10093_v55, %v10092_v54  ;;  %v10132_v55 = vld [vmem:[%s17071_s5 + $0x2c0] sm:$0xff] }
 0x5a1   :  { %12420 = vmatprep.subr.bf16.mxu1 %v12419_v37  ;;  %11503 = vmatprep.mubr.msk.f32.mxu0 %vm13411_vm8, %v17085_v39  ;;  %v1528_v30 = vmul.f32 %v13068_v45, %v13945_v57  ;;  %v12427_v19 = vpack.c.bf16 %v10111_v35, %v10110_v52  ;;  %v10112_v57 = vld [vmem:[%s17071_s5 + $0x1b0] sm:$0xff]  ;;  %v10125_v42 = vld [vmem:[%s17071_s5 + $0x288] sm:$0xff]  ;;  %v10127_v45 = vld [vmem:[%s17071_s5 + $0x298] sm:$0xff] }
 0x5a2   :  { %11509 = vmatmul.mubr.msk.f32.vlgmr.msra.gmra.mrb[30].mxu1 %vm1442_vm10, %v1530_v49  ;;  %12388 = vmatprep.subr.bf16.mxu0 %v12387_v32  ;;  %v12431_v0 = vpack.c.bf16 %v10113_v58, %v10112_v57  ;;  %v12451_v36 = vpack.c.bf16 %v10125_v42, %v10124_v17  ;;  %v12455_v49 = vpack.c.bf16 %v10127_v45, %v10126_v47  ;;  %v10130_v35 = vld [vmem:[%s17071_s5 + $0x2b0] sm:$0xff]  ;;  %v10135_v58 = vld [vmem:[%s17071_s5 + $0x2d8] sm:$0xff] }
 0x5a3   :  { %12422 = vmatpush3.bf16.msra.mxu1 %v12419_v37  ;;  %11504 = vmatmul.mubr.msk.f32.vlgmr.msra.gmra.mrb[30].mxu0 %vm1442_vm10, %v1528_v30  ;;  %v10103_v37 = vld [vmem:[%s17071_s5 + $0xf8] sm:$0xff]  ;;  %v10128_v30 = vld [vmem:[%s17071_s5 + $0x2a0] sm:$0xff]  ;;  %v10134_v57 = vld [vmem:[%s17071_s5 + $0x2d0] sm:$0xff] }
 0x5a4   :  { %12390 = vmatpush3.bf16.msra.mxu0 %v12387_v32  ;;  %11587 = vmatprep.mubr.f32.mxu1 %v13703_v59  ;;  %v12447_v32 = vpack.c.bf16 %v10121_v34, %v10120_v29  ;;  %v12415_v27 = vpack.c.bf16 %v10103_v37, %v10102_v26  ;;  %v12471_v62 = vpack.c.bf16 %v10135_v58, %v10134_v57  ;;  %v10123_v34 = vld [vmem:[%s17072_s6 + $0x3] ss:$0 sm:$0xff] }
 0x5a5   :  { %11543 = vmatprep.mubr.f32.mxu0 %v13703_v59  ;;  %12424 = vmatprep.subr.bf16.mxu1 %v12423_v33 }
 0x5a6   :  { %12392 = vmatprep.subr.bf16.mxu0 %v12391_v53 }
 0x5a7   :  { %12426 = vmatpush3.bf16.msra.mxu1 %v12423_v33  ;;  %v10129_v33 = vld [vmem:[%s17071_s5 + $0x2a8] sm:$0xff] }
 0x5a8   :  { %12394 = vmatpush3.bf16.msra.mxu0 %v12391_v53  ;;  %12428 = vmatprep.subr.bf16.mxu1 %v12427_v19  ;;  %v12459_v52 = vpack.c.bf16 %v10129_v33, %v10128_v30  ;;  %v10131_v53 = vld [vmem:[%s17071_s5 + $0x2b8] sm:$0xff] }
 0x5a9   :  { %12396 = vmatprep.subr.bf16.mxu0 %v12395_v20  ;;  %v12463_v54 = vpack.c.bf16 %v10131_v53, %v10130_v35 }
 0x5ab   :  { %12430 = vmatpush3.bf16.msra.mxu1 %v12427_v19  ;;  %v10133_v19 = vld [vmem:[%s17071_s5 + $0x2c8] sm:$0xff] }
 0x5ac   :  { %12398 = vmatpush3.bf16.msra.mxu0 %v12395_v20  ;;  %12432 = vmatprep.subr.bf16.mxu1 %v12431_v0  ;;  %v12467_v20 = vpack.c.bf16 %v10133_v19, %v10132_v55 }
 0x5ad   :  { %12400 = vmatprep.subr.bf16.mxu0 %v12399_v1 }
 0x5af   :  { %12434 = vmatpush3.bf16.msra.mxu1 %v12431_v0  ;;  %v10137_v0 = vld [vmem:[%s17071_s5 + $0x2e8] sm:$0xff] }
 0x5b0   :  { %12402 = vmatpush3.bf16.msra.mxu0 %v12399_v1  ;;  %12436 = vmatprep.subr.bf16.mxu1 %v12435_v7  ;;  %v12475_v1 = vpack.c.bf16 %v10137_v0, %v10136_v63 }
 0x5b1   :  { %12404 = vmatprep.subr.bf16.mxu0 %v12403_v9 }
 0x5b3   :  { %12438 = vmatpush3.bf16.msra.mxu1 %v12435_v7 }
 0x5b4   :  { %12406 = vmatpush3.bf16.msra.mxu0 %v12403_v9  ;;  %12440 = vmatprep.subr.bf16.mxu1 %v12439_v40 }
 0x5b5   :  { %12408 = vmatprep.subr.bf16.mxu0 %v12407_v16 }
 0x5b7   :  { %12442 = vmatpush3.bf16.msra.mxu1 %v12439_v40 }
 0x5b8   :  { %12410 = vmatpush3.bf16.msra.mxu0 %v12407_v16  ;;  %12444 = vmatprep.subr.bf16.mxu1 %v12443_v46 }
 0x5b9   :  { %12412 = vmatprep.subr.bf16.mxu0 %v12411_v60 }
 0x5bb   :  { %12446 = vmatpush3.bf16.msra.mxu1 %v12443_v46 }
 0x5bc   :  { %12414 = vmatpush3.bf16.msra.mxu0 %v12411_v60  ;;  %12448 = vmatprep.subr.bf16.mxu1 %v12447_v32 }
 0x5bd   :  { %12416 = vmatprep.subr.bf16.mxu0 %v12415_v27 }
 0x5bf   :  { %12450 = vmatpush3.bf16.msra.mxu1 %v12447_v32 }
 0x5c0   :  { %12418 = vmatpush3.bf16.msra.mxu0 %v12415_v27  ;;  %11643 = vmatprep.subr.mxu1 %v17085_v39  ;;  %v10105_v27 = vld [vmem:[%s17072_s6 + $0x1] ss:$0 sm:$0xff] }
 0x5c1   :  { %12452 = vmatprep.subr.bf16.mxu0 %v12451_v36 }
 0x5c2   :  { %11588 = vmatmul.mubr.f32.vlgmr.msra.gmra.mrb[32].mxu1 %v13707_v61 }
 0x5c3   :  { %11544 = vmatmul.mubr.f32.vlgmr.msra.gmra.mrb[32].mxu0 %v13707_v61  ;;  %11590 = vmatprep.mubr.f32.mxu1 %v13721_v3 }
 0x5c4   :  { %11546 = vmatprep.mubr.f32.mxu0 %v13721_v3  ;;  %12454 = vmatpush3.bf16.msra.mxu0 %v12451_v36 }
 0x5c5   :  { %12456 = vmatprep.subr.bf16.mxu0 %v12455_v49 }
 0x5c6   :  { %11591 = vmatmul.mubr.f32.gmra.mrb[34].mxu1 %v13740_v13 }
 0x5c7   :  { %11547 = vmatmul.mubr.f32.gmra.mrb[34].mxu0 %v13740_v13  ;;  %11593 = vmatprep.mubr.f32.mxu1 %v13736_v11 }
 0x5c8   :  { %11549 = vmatprep.mubr.f32.mxu0 %v13736_v11  ;;  %12458 = vmatpush3.bf16.msra.mxu0 %v12455_v49 }
 0x5c9   :  { %12460 = vmatprep.subr.bf16.mxu0 %v12459_v52 }
 0x5ca   :  { %11594 = vmatmul.mubr.f32.gmra.mrb[36].mxu1 %v13760_v23 }
 0x5cb   :  { %11550 = vmatmul.mubr.f32.gmra.mrb[36].mxu0 %v13760_v23  ;;  %11596 = vmatprep.mubr.f32.mxu1 %v13754_v41 }
 0x5cc   :  { %11552 = vmatprep.mubr.f32.mxu0 %v13754_v41  ;;  %12462 = vmatpush3.bf16.msra.mxu0 %v12459_v52 }
 0x5cd   :  { %12464 = vmatprep.subr.bf16.mxu0 %v12463_v54 }
 0x5ce   :  { %11597 = vmatmul.mubr.f32.gmra.mrb[38].mxu1 %v13772_v28 }
 0x5cf   :  { %11553 = vmatmul.mubr.f32.gmra.mrb[38].mxu0 %v13772_v28  ;;  %11645 = vmatprep.mubr.msk.f32.mxu1 %vm13411_vm8, %v17085_v39 }
 0x5d0   :  { %12466 = vmatpush3.bf16.msra.mxu0 %v12463_v54  ;;  %11631 = vmatprep.mubr.f32.mxu0 %v13703_v59 }
 0x5d1   :  { %12468 = vmatprep.subr.bf16.mxu0 %v12467_v20 }
 0x5d4   :  { %12470 = vmatpush3.bf16.msra.mxu0 %v12467_v20 }
 0x5d5   :  { %12472 = vmatprep.subr.bf16.mxu0 %v12471_v62 }
 0x5d8   :  { %12474 = vmatpush3.bf16.msra.mxu0 %v12471_v62 }
 0x5d9   :  { %12476 = vmatprep.subr.bf16.mxu0 %v12475_v1 }
 0x5dc   :  { %12478 = vmatpush3.bf16.msra.mxu0 %v12475_v1 }
 0x5dd   :  { %12480 = vmatprep.subr.bf16.mxu0 %v12479_v4 }
 0x5e0   :  { %12482 = vmatpush3.bf16.msra.mxu0 %v12479_v4 }
 0x5e1   :  { %11683 = vmatprep.subr.mxu0 %v17085_v39 }
 0x5e3   :  { %11632 = vmatmul.mubr.f32.vlgmr.msra.gmra.mrb[40].mxu0 %v13707_v61 }
 0x5e4   :  { %11634 = vmatprep.mubr.f32.mxu0 %v13721_v3 }
 0x5e7   :  { %11635 = vmatmul.mubr.f32.gmra.mrb[42].mxu0 %v13740_v13 }
 0x5e8   :  { %11637 = vmatprep.mubr.f32.mxu0 %v13736_v11 }
 0x5eb   :  { %11638 = vmatmul.mubr.f32.gmra.mrb[44].mxu0 %v13760_v23 }
 0x5ec   :  { %11640 = vmatprep.mubr.f32.mxu0 %v13754_v41 }
 0x5ef   :  { %11641 = vmatmul.mubr.f32.gmra.mrb[46].mxu0 %v13772_v28 }
 0x5f0   :  { %11685 = vmatprep.mubr.msk.f32.mxu0 %vm13411_vm8, %v17085_v39 }
 0x665   :  { %v14157_v6 = vpop.f32.mrb[24].mxu1 }
 0x666   :  { %v14159_v7 = vpop.f32.mrb[24].mxu0  ;;  %v11480_v9 = vpop.f32.mrb[25].mxu1 }
 0x667   :  { %v11475_v10 = vpop.f32.mrb[25].mxu0 }
 0x66d   :  { %v14161_v31 = vpop.f32.mrb[26].mxu1 }
 0x66e   :  { %v14163_v12 = vpop.f32.mrb[26].mxu0  ;;  %v11490_v14 = vpop.f32.mrb[27].mxu1 }
 0x66f   :  { %v11485_v40 = vpop.f32.mrb[27].mxu0 }
 0x671   :  { %v14165_v16 = vpop.f32.mrb[28].mxu1 }
 0x672   :  { %v14167_v18 = vpop.f32.mrb[28].mxu0  ;;  %v11500_v22 = vpop.f32.mrb[29].mxu1 }
 0x673   :  { %v11495_v24 = vpop.f32.mrb[29].mxu0  ;;  %v10141_v22 = vld [vmem:[%s17072_s6 + $0x5] ss:$0 sm:$0xff] }
 0x675   :  { %v14169_v56 = vpop.f32.mrb[30].mxu1 }
 0x676   :  { %v14171_v46 = vpop.f32.mrb[30].mxu0  ;;  %v11510_v60 = vpop.f32.mrb[31].mxu1 }
 0x677   :  { %v11505_v29 = vpop.f32.mrb[31].mxu0 }
 0x695   :  { %v11589_v26 = vpop.f32.mrb[32].mxu1 }
 0x696   :  { %v11545_v37 = vpop.f32.mrb[32].mxu0  ;;  %v2344_v32 = vpop.f32.mrb[33].mxu1  ;;  %v2350_v30 = vadd.f32 %v11589_v26, %v10123_v34 }
 0x697   :  { %v2345_v17 = vadd.f32 %v10123_v34, %v2344_v32  ;;  %v2214_v42 = vpop.f32.mrb[33].mxu0  ;;  %v2220_v35 = vadd.f32 %v11545_v37, %v10105_v27 }
 0x698   :  { %v2215_v47 = vadd.f32 %v10105_v27, %v2214_v42 }
 0x699   :  { %v11592_v36 = vpop.f32.mrb[34].mxu1  ;;  %11644 = vmatpush3.xpose.msk.msra.mxu1 %vm833_vm9, %v2345_v17 }
 0x69a   :  { %v11548_v45 = vpop.f32.mrb[34].mxu0  ;;  %v2354_v49 = vpop.f32.mrb[35].mxu1  ;;  %11648 = vmatprep.subr.mxu1 %v17085_v39  ;;  %v2360_v63 = vadd.f32 %v11592_v36, %v10123_v34 }
 0x69b   :  { %v2224_v33 = vpop.f32.mrb[35].mxu0  ;;  %v2355_v55 = vadd.f32 %v10123_v34, %v2354_v49  ;;  %v2230_v1 = vadd.f32 %v11548_v45, %v10105_v27 }
 0x69c   :  { %11646 = vmatmul.mubr.msk.f32.vlgmr.msra.gmra.mrb[40].mxu1 %vm833_vm9, %v2215_v47  ;;  %v2225_v57 = vadd.f32 %v10105_v27, %v2224_v33 }
 0x69d   :  { %v11595_v52 = vpop.f32.mrb[36].mxu1  ;;  %11649 = vmatpush3.xpose.msk.msra.mxu1 %vm833_vm9, %v2350_v30  ;;  %11650 = vmatprep.mubr.msk.f32.mxu1 %vm13411_vm8, %v17085_v39 }
 0x69e   :  { %v11551_v53 = vpop.f32.mrb[36].mxu0  ;;  %v2364_v54 = vpop.f32.mrb[37].mxu1  ;;  %11653 = vmatprep.subr.mxu1 %v17085_v39  ;;  %v2370_v4 = vadd.f32 %v11595_v52, %v10123_v34 }
 0x69f   :  { %v2234_v19 = vpop.f32.mrb[37].mxu0  ;;  %v2365_v25 = vadd.f32 %v10123_v34, %v2364_v54  ;;  %v2240_v9 = vadd.f32 %v11551_v53, %v10105_v27 }
 0x6a0   :  { %11651 = vmatmul.mubr.msk.f32.vlgmr.msra.gmra.mrb[42].mxu1 %vm833_vm9, %v2220_v35  ;;  %v2235_v2 = vadd.f32 %v10105_v27, %v2234_v19 }
 0x6a1   :  { %v11598_v20 = vpop.f32.mrb[38].mxu1  ;;  %11654 = vmatpush3.xpose.msk.msra.mxu1 %vm833_vm9, %v2355_v55  ;;  %11655 = vmatprep.mubr.msk.f32.mxu1 %vm13411_vm8, %v17085_v39 }
 0x6a2   :  { %v11554_v58 = vpop.f32.mrb[38].mxu0  ;;  %v2374_v62 = vpop.f32.mrb[39].mxu1  ;;  %11658 = vmatprep.subr.mxu1 %v17085_v39  ;;  %v2380_v40 = vadd.f32 %v11598_v20, %v10123_v34 }
 0x6a3   :  { %v2244_v0 = vpop.f32.mrb[39].mxu0  ;;  %v2375_v10 = vadd.f32 %v10123_v34, %v2374_v62  ;;  %v2250_v24 = vadd.f32 %v11554_v58, %v10105_v27 }
 0x6a4   :  { %11656 = vmatmul.mubr.msk.f32.vlgmr.msra.gmra.mrb[44].mxu1 %vm833_vm9, %v2225_v57  ;;  %v2245_v14 = vadd.f32 %v10105_v27, %v2244_v0 }
 0x6a5   :  { %11659 = vmatpush3.xpose.msk.msra.mxu1 %vm833_vm9, %v2360_v63  ;;  %11660 = vmatprep.mubr.msk.f32.mxu1 %vm13411_vm8, %v17085_v39 }
 0x6a6   :  { %11663 = vmatprep.subr.mxu1 %v17085_v39 }
 0x6a8   :  { %11661 = vmatmul.mubr.msk.f32.vlgmr.msra.gmra.mrb[46].mxu1 %vm833_vm9, %v2230_v1 }
 0x6a9   :  { %11664 = vmatpush3.xpose.msk.msra.mxu1 %vm833_vm9, %v2365_v25  ;;  %11665 = vmatprep.mubr.msk.f32.mxu1 %vm13411_vm8, %v17085_v39 }
 0x6aa   :  { %11668 = vmatprep.subr.mxu1 %v17085_v39 }
 0x6ac   :  { %11666 = vmatmul.mubr.msk.f32.vlgmr.msra.gmra.mrb[48].mxu1 %vm833_vm9, %v2235_v2 }
 0x6ad   :  { %11669 = vmatpush3.xpose.msk.msra.mxu1 %vm833_vm9, %v2370_v4  ;;  %11670 = vmatprep.mubr.msk.f32.mxu1 %vm13411_vm8, %v17085_v39 }
 0x6ae   :  { %11673 = vmatprep.subr.mxu1 %v17085_v39 }
 0x6b0   :  { %11671 = vmatmul.mubr.msk.f32.vlgmr.msra.gmra.mrb[50].mxu1 %vm833_vm9, %v2240_v9 }
 0x6b1   :  { %11674 = vmatpush3.xpose.msk.msra.mxu1 %vm833_vm9, %v2375_v10  ;;  %11675 = vmatprep.mubr.msk.f32.mxu1 %vm13411_vm8, %v17085_v39 }
 0x6b2   :  { %11678 = vmatprep.subr.mxu1 %v17085_v39 }
 0x6b4   :  { %11676 = vmatmul.mubr.msk.f32.vlgmr.msra.gmra.mrb[52].mxu1 %vm833_vm9, %v2245_v14 }
 0x6b5   :  { %11679 = vmatpush3.xpose.msk.msra.mxu1 %vm833_vm9, %v2380_v40  ;;  %11680 = vmatprep.mubr.msk.f32.mxu1 %vm13411_vm8, %v17085_v39 }
 0x6b6   :  { %v11633_v60 = vpop.f32.mrb[40].mxu0  ;;  %11688 = vmatprep.subr.mxu1 %v17085_v39 }
 0x6b7   :  { %v2480_v29 = vadd.f32 %v11633_v60, %v10141_v22  ;;  %v2474_v26 = vpop.f32.mrb[41].mxu0 }
 0x6b8   :  { %v2475_v37 = vadd.f32 %v10141_v22, %v2474_v26  ;;  %11681 = vmatmul.mubr.msk.f32.vlgmr.msra.gmra.mrb[54].mxu1 %vm833_vm9, %v2250_v24 }
 0x6b9   :  { %11689 = vmatpush3.msra.mxu1 %v2480_v29  ;;  %11690 = vmatprep.mubr.msk.f32.mxu1 %vm13411_vm8, %v17085_v39 }
 0x6ba   :  { %v11636_v34 = vpop.f32.mrb[42].mxu0  ;;  %11684 = vmatpush3.msra.mxu0 %v2475_v37  ;;  %11698 = vmatprep.subr.mxu1 %v17085_v39 }
 0x6bb   :  { %v14223_v32 = vadd.f32 %v11636_v34, %v10141_v22  ;;  %v2484_v17 = vpop.f32.mrb[43].mxu0  ;;  %11693 = vmatprep.subr.mxu0 %v17085_v39 }
 0x6bc   :  { %v14226_v27 = vadd.f32 %v10141_v22, %v2484_v17 }
 0x6be   :  { %v11639_v42 = vpop.f32.mrb[44].mxu0 }
 0x6bf   :  { %v14228_v36 = vadd.f32 %v11639_v42, %v10141_v22  ;;  %v2494_v47 = vpop.f32.mrb[45].mxu0 }
 0x6c0   :  { %v14230_v45 = vadd.f32 %v10141_v22, %v2494_v47 }
 0x6c2   :  { %v11642_v49 = vpop.f32.mrb[46].mxu0 }
 0x6c3   :  { %v14232_v30 = vadd.f32 %v11642_v49, %v10141_v22  ;;  %v2504_v33 = vpop.f32.mrb[47].mxu0 }
 0x6c4   :  { %v14234_v52 = vadd.f32 %v10141_v22, %v2504_v33 }
 0x76f   :  { %v2585_v35 = vpop.f32.mrb[40].mxu1 }
 0x770   :  { %v2586_v53 = vadd.f32 %v2585_v35, %v13889_v51  ;;  %v11647_v54 = vpop.f32.mrb[41].mxu1 }
 0x772   :  { %v3121_v55 = vsel %vm1442_vm10, %v2586_v53, -inf }
 0x773   :  { %3122 = vmax.xlane.f32.xlu1 %v3121_v55  ;;  %v2661_v19 = vpop.f32.mrb[42].mxu1 }
 0x774   :  { %v2662_v20 = vadd.f32 %v2661_v19, %v13886_v50  ;;  %v11652_v57 = vpop.f32.mrb[43].mxu1 }
 0x776   :  { %v3124_v58 = vsel %vm1442_vm10, %v2662_v20, -inf }
 0x777   :  { %3125 = vmax.xlane.f32.xlu0 %v3124_v58  ;;  %v2737_v62 = vpop.f32.mrb[44].mxu1 }
 0x778   :  { %v2738_v63 = vadd.f32 %v2737_v62, %v13911_v8  ;;  %v11657_v0 = vpop.f32.mrb[45].mxu1 }
 0x77a   :  { %v3127_v1 = vsel %vm1442_vm10, %v2738_v63, -inf }
 0x77b   :  { %3128 = vmax.xlane.f32.xlu1 %v3127_v1  ;;  %v2813_v25 = vpop.f32.mrb[46].mxu1 }
 0x77c   :  { %v2814_v2 = vadd.f32 %v2813_v25, %v13908_v5  ;;  %v11662_v4 = vpop.f32.mrb[47].mxu1 }
 0x77e   :  { %v3130_v9 = vsel %vm1442_vm10, %v2814_v2, -inf }
 0x77f   :  { %3131 = vmax.xlane.f32.xlu0 %v3130_v9  ;;  %v2889_v10 = vpop.f32.mrb[48].mxu1 }
 0x780   :  { %v2890_v14 = vadd.f32 %v2889_v10, %v13919_v21  ;;  %v11667_v40 = vpop.f32.mrb[49].mxu1 }
 0x782   :  { %v3133_v22 = vsel %vm1442_vm10, %v2890_v14, -inf }
 0x783   :  { %3134 = vmax.xlane.f32.xlu1 %v3133_v22  ;;  %v2965_v24 = vpop.f32.mrb[50].mxu1 }
 0x784   :  { %v2966_v60 = vadd.f32 %v2965_v24, %v13915_v15  ;;  %v11672_v29 = vpop.f32.mrb[51].mxu1 }
 0x786   :  { %v3136_v26 = vsel %vm1442_vm10, %v2966_v60, -inf }
 0x787   :  { %3137 = vmax.xlane.f32.xlu0 %v3136_v26  ;;  %v3041_v37 = vpop.f32.mrb[52].mxu1 }
 0x788   :  { %v3042_v34 = vadd.f32 %v3041_v37, %v13929_v48  ;;  %v11677_v17 = vpop.f32.mrb[53].mxu1 }
 0x78a   :  { %v3139_v42 = vsel %vm1442_vm10, %v3042_v34, -inf }
 0x78b   :  { %3140 = vmax.xlane.f32.xlu1 %v3139_v42  ;;  %v3117_v47 = vpop.f32.mrb[54].mxu1 }
 0x78c   :  { %v3118_v49 = vadd.f32 %v3117_v47, %v13925_v43  ;;  %v11682_v33 = vpop.f32.mrb[55].mxu1 }
 0x78e   :  { %v3142_v35 = vsel %vm1442_vm10, %v3118_v49, -inf }
 0x78f   :  { %3143 = vmax.xlane.f32.xlu0 %v3142_v35 }
 0x800   :  { %v3123_v54 = vpop.xlane.xlu1 %3122 }
 0x801   :  { %v3145_v55 = vsub.f32 %v2586_v53, %v3123_v54 }
 0x803   :  { %v3153_v19 = vmul.f32 1.442695, %v3145_v55 }
 0x804   :  { %v3126_v57 = vpop.xlane.xlu0 %3125 }
 0x805   :  { %13069 = vpow2.f32 %v3153_v19  ;;  %v3146_v58 = vsub.f32 %v2662_v20, %v3126_v57 }
 0x807   :  { %v3155_v62 = vmul.f32 1.442695, %v3146_v58 }
 0x808   :  { %v3129_v0 = vpop.xlane.xlu1 %3128 }
 0x809   :  { %13071 = vpow2.f32 %v3155_v62  ;;  %v3147_v1 = vsub.f32 %v2738_v63, %v3129_v0 }
 0x80b   :  { %v3157_v25 = vmul.f32 1.442695, %v3147_v1 }
 0x80c   :  { %v3132_v4 = vpop.xlane.xlu0 %3131 }
 0x80d   :  { %13073 = vpow2.f32 %v3157_v25  ;;  %v3148_v9 = vsub.f32 %v2814_v2, %v3132_v4 }
 0x80f   :  { %v13070_v10 = vpop.eup %13069  ;;  %v3159_v40 = vmul.f32 1.442695, %v3148_v9 }
 0x810   :  { %v3135_v22 = vpop.xlane.xlu1 %3134  ;;  %v3169_v24 = vsel %vm1442_vm10, %v13070_v10, 0.0 }
 0x811   :  { %13075 = vpow2.f32 %v3159_v40  ;;  %v3149_v29 = vsub.f32 %v2890_v14, %v3135_v22  ;;  %3170 = vadd.xlane.f32.xlu1 %v3169_v24 }
 0x813   :  { %v13072_v53 = vpop.eup %13071  ;;  %v3161_v26 = vmul.f32 1.442695, %v3149_v29 }
 0x814   :  { %v3138_v37 = vpop.xlane.xlu0 %3137  ;;  %v3172_v20 = vsel %vm1442_vm10, %v13072_v53, 0.0 }
 0x815   :  { %13077 = vpow2.f32 %v3161_v26  ;;  %v3150_v17 = vsub.f32 %v2966_v60, %v3138_v37  ;;  %3173 = vadd.xlane.f32.xlu0 %v3172_v20 }
 0x817   :  { %v13074_v63 = vpop.eup %13073  ;;  %v3163_v42 = vmul.f32 1.442695, %v3150_v17 }
 0x818   :  { %v3141_v47 = vpop.xlane.xlu1 %3140  ;;  %v3175_v2 = vsel %vm1442_vm10, %v13074_v63, 0.0 }
 0x819   :  { %13079 = vpow2.f32 %v3163_v42  ;;  %v3151_v33 = vsub.f32 %v3042_v34, %v3141_v47  ;;  %3176 = vadd.xlane.f32.xlu1 %v3175_v2 }
 0x81b   :  { %v13076_v35 = vpop.eup %13075  ;;  %v3165_v54 = vmul.f32 1.442695, %v3151_v33 }
 0x81c   :  { %v3144_v14 = vpop.xlane.xlu0 %3143  ;;  %v3178_v55 = vsel %vm1442_vm10, %v13076_v35, 0.0 }
 0x81d   :  { %13081 = vpow2.f32 %v3165_v54  ;;  %v3152_v19 = vsub.f32 %v3118_v49, %v3144_v14  ;;  %3179 = vadd.xlane.f32.xlu0 %v3178_v55  ;;  %v10166_v54 = vld [vmem:[%s17073_s7 + $0x40] sm:$0xff]  ;;  %v10167_v14 = vld [vmem:[%s17073_s7 + $0x48] sm:$0xff] }
 0x81f   :  { %v13078_v57 = vpop.eup %13077  ;;  %v3167_v58 = vmul.f32 1.442695, %v3152_v19  ;;  %v12483_v19 = vpack.c.bf16 %v10167_v14, %v10166_v54 }
 0x820   :  { %v3181_v60 = vsel %vm1442_vm10, %v13078_v57, 0.0 }
 0x821   :  { %13083 = vpow2.f32 %v3167_v58  ;;  %3182 = vadd.xlane.f32.xlu1 %v3181_v60  ;;  %v2118_v58 = vld [vmem:[%s17073_s7 + $0x18] sm:$0xff] }
 0x823   :  { %v13080_v62 = vpop.eup %13079 }
 0x824   :  { %v3184_v0 = vsel %vm1442_vm10, %v13080_v62, 0.0 }
 0x825   :  { %3185 = vadd.xlane.f32.xlu0 %v3184_v0  ;;  %v2119_v0 = vld [vmem:[%s17073_s7 + $0x20] sm:$0xff] }
 0x827   :  { %v14258_v34 = vpop.eup %13081 }
 0x828   :  { %v3187_v1 = vsel %vm1442_vm10, %v14258_v34, 0.0 }
 0x829   :  { %3188 = vadd.xlane.f32.xlu1 %v3187_v1  ;;  %v2120_v1 = vld [vmem:[%s17073_s7 + $0x28] sm:$0xff] }
 0x82b   :  { %v14262_v25 = vpop.eup %13083 }
 0x82c   :  { %v3190_v49 = vsel %vm1442_vm10, %v14262_v25, 0.0 }
 0x82d   :  { %3191 = vadd.xlane.f32.xlu0 %v3190_v49  ;;  %v10168_v49 = vld [vmem:[%s17073_s7 + $0x50] sm:$0xff] }
 0x89e   :  { %v3171_v4 = vpop.xlane.xlu1 %3170 }
 0x89f   :  { %13085 = vrcp.f32 %v3171_v4 }
 0x8a2   :  { %v3174_v9 = vpop.xlane.xlu0 %3173 }
 0x8a3   :  { %13087 = vrcp.f32 %v3174_v9  ;;  %v12507_v9 = vpack.c.bf16 %v2120_v1, %v2119_v0 }
 0x8a6   :  { %v3177_v40 = vpop.xlane.xlu1 %3176 }
 0x8a7   :  { %13089 = vrcp.f32 %v3177_v40  ;;  %v2121_v40 = vld [vmem:[%s17073_s7 + $0x30] sm:$0xff] }
 0x8a9   :  { %v13086_v22 = vpop.eup %13085 }
 0x8aa   :  { %v3194_v24 = vmul.f32 %v13086_v22, %v13070_v10  ;;  %v3180_v29 = vpop.xlane.xlu0 %3179 }
 0x8ab   :  { %13091 = vrcp.f32 %v3180_v29  ;;  %v10170_v29 = vld [vmem:[%s17073_s7 + $0x60] sm:$0xff] }
 0x8ac   :  { %11686 = vmatmul.mubr.msk.f32.vlgmr.msra.gmra.mrb[48].mxu0 %vm1442_vm10, %v3194_v24  ;;  %v2122_v24 = vld [vmem:[%s17073_s7 + $0x38] sm:$0xff] }
 0x8ad   :  { %v13088_v26 = vpop.eup %13087  ;;  %11694 = vmatpush3.msra.mxu0 %v14226_v27  ;;  %11695 = vmatprep.mubr.msk.f32.mxu0 %vm13411_vm8, %v17085_v39 }
 0x8ae   :  { %v3183_v37 = vpop.xlane.xlu1 %3182  ;;  %v3196_v20 = vmul.f32 %v13088_v26, %v13072_v53  ;;  %11703 = vmatprep.subr.mxu0 %v17085_v39 }
 0x8af   :  { %13093 = vrcp.f32 %v3183_v37 }
 0x8b0   :  { %11691 = vmatmul.mubr.msk.f32.vlgmr.msra.gmra.mrb[56].mxu1 %vm1442_vm10, %v3196_v20 }
 0x8b1   :  { %v13090_v17 = vpop.eup %13089  ;;  %11699 = vmatpush3.msra.mxu1 %v14223_v32  ;;  %11700 = vmatprep.mubr.msk.f32.mxu1 %vm13411_vm8, %v17085_v39  ;;  %v2115_v32 = vld [vmem:[%s17073_s7] sm:$0xff] }
 0x8b2   :  { %v3186_v10 = vpop.xlane.xlu0 %3185  ;;  %v3198_v42 = vmul.f32 %v13090_v17, %v13074_v63  ;;  %11708 = vmatprep.subr.mxu1 %v17085_v39  ;;  %v2116_v63 = vld [vmem:[%s17073_s7 + $0x8] sm:$0xff] }
 0x8b3   :  { %13095 = vrcp.f32 %v3186_v10 }
 0x8b4   :  { %11696 = vmatmul.mubr.msk.f32.vlgmr.msra.gmra.mrb[50].mxu0 %vm1442_vm10, %v3198_v42 }
 0x8b5   :  { %v13092_v27 = vpop.eup %13091  ;;  %11704 = vmatpush3.msra.mxu0 %v14230_v45  ;;  %11705 = vmatprep.mubr.msk.f32.mxu0 %vm13411_vm8, %v17085_v39 }
 0x8b6   :  { %v3189_v53 = vpop.xlane.xlu1 %3188  ;;  %v3200_v47 = vmul.f32 %v13092_v27, %v13076_v35  ;;  %11713 = vmatprep.subr.mxu0 %v17085_v39  ;;  %v12499_v35 = vpack.c.bf16 %v2116_v63, %v2115_v32 }
 0x8b7   :  { %13097 = vrcp.f32 %v3189_v53 }
 0x8b8   :  { %11701 = vmatmul.mubr.msk.f32.vlgmr.msra.gmra.mrb[58].mxu1 %vm1442_vm10, %v3200_v47 }
 0x8b9   :  { %v13094_v2 = vpop.eup %13093  ;;  %11709 = vmatpush3.msra.mxu1 %v14228_v36  ;;  %11710 = vmatprep.mubr.msk.f32.mxu1 %vm13411_vm8, %v17085_v39 }
 0x8ba   :  { %v3192_v45 = vpop.xlane.xlu0 %3191  ;;  %v3202_v33 = vmul.f32 %v13094_v2, %v13078_v57  ;;  %11718 = vmatprep.subr.mxu1 %v17085_v39  ;;  %v2117_v57 = vld [vmem:[%s17073_s7 + $0x10] sm:$0xff] }
 0x8bb   :  { %13099 = vrcp.f32 %v3192_v45 }
 0x8bc   :  { %11706 = vmatmul.mubr.msk.f32.vlgmr.msra.gmra.mrb[52].mxu0 %vm1442_vm10, %v3202_v33 }
 0x8bd   :  { %v13096_v36 = vpop.eup %13095  ;;  %11714 = vmatpush3.msra.mxu0 %v14234_v52  ;;  %11715 = vmatprep.mubr.msk.f32.mxu0 %vm13411_vm8, %v17085_v39 }
 0x8be   :  { %v3204_v55 = vmul.f32 %v13096_v36, %v13080_v62  ;;  %12500 = vmatprep.subr.bf16.mxu0 %v12499_v35  ;;  %v12503_v62 = vpack.c.bf16 %v2118_v58, %v2117_v57 }
 0x8c0   :  { %11711 = vmatmul.mubr.msk.f32.vlgmr.msra.gmra.mrb[60].mxu1 %vm1442_vm10, %v3204_v55 }
 0x8c1   :  { %v13098_v60 = vpop.eup %13097  ;;  %11719 = vmatpush3.msra.mxu1 %v14232_v30  ;;  %11720 = vmatprep.mubr.msk.f32.mxu1 %vm13411_vm8, %v17085_v39  ;;  %v10169_v30 = vld [vmem:[%s17073_s7 + $0x58] sm:$0xff] }
 0x8c2   :  { %v3206_v52 = vmul.f32 %v13098_v60, %v14258_v34  ;;  %12484 = vmatprep.subr.bf16.mxu1 %v12483_v19  ;;  %v12487_v22 = vpack.c.bf16 %v10169_v30, %v10168_v49  ;;  %v10190_v60 = vld [vmem:[%s17074_s8] ss:$0 sm:$0xff] }
 0x8c4   :  { %11716 = vmatmul.mubr.msk.f32.vlgmr.msra.gmra.mrb[54].mxu0 %vm1442_vm10, %v3206_v52 }
 0x8c5   :  { %v13100_v34 = vpop.eup %13099  ;;  %12502 = vmatpush3.bf16.msra.mxu0 %v12499_v35  ;;  %11767 = vmatprep.mubr.msk.f32.mxu0 %vm833_vm9, %v14159_v7  ;;  %v10171_v7 = vld [vmem:[%s17073_s7 + $0x68] sm:$0xff] }
 0x8c6   :  { %v3208_v4 = vmul.f32 %v13100_v34, %v14262_v25  ;;  %12504 = vmatprep.subr.bf16.mxu0 %v12503_v62  ;;  %v12511_v25 = vpack.c.bf16 %v2122_v24, %v2121_v40  ;;  %v12491_v26 = vpack.c.bf16 %v10171_v7, %v10170_v29 }
 0x8c8   :  { %11721 = vmatmul.mubr.msk.f32.vlgmr.msra.gmra.mrb[62].mxu1 %vm1442_vm10, %v3208_v4 }
 0x8c9   :  { %12506 = vmatpush3.bf16.msra.mxu0 %v12503_v62  ;;  %12486 = vmatpush3.bf16.msra.mxu1 %v12483_v19 }
 0x8ca   :  { %12508 = vmatprep.subr.bf16.mxu0 %v12507_v9  ;;  %12488 = vmatprep.subr.bf16.mxu1 %v12487_v22 }
 0x8cd   :  { %12510 = vmatpush3.bf16.msra.mxu0 %v12507_v9  ;;  %12490 = vmatpush3.bf16.msra.mxu1 %v12487_v22 }
 0x8ce   :  { %12512 = vmatprep.subr.bf16.mxu0 %v12511_v25  ;;  %12492 = vmatprep.subr.bf16.mxu1 %v12491_v26 }
 0x8d1   :  { %12514 = vmatpush3.bf16.msra.mxu0 %v12511_v25  ;;  %12494 = vmatpush3.bf16.msra.mxu1 %v12491_v26 }
 0x8d4   :  { %11768 = vmatmul.mubr.msk.f32.vlgmr.msra.gmra.mrb[56].mxu0 %vm833_vm9, %v14157_v6  ;;  %v10172_v6 = vld [vmem:[%s17073_s7 + $0x70] sm:$0xff] }
 0x8d5   :  { %11770 = vmatprep.mubr.msk.f32.mxu0 %vm833_vm9, %v14163_v12 }
 0x8d8   :  { %11771 = vmatmul.mubr.msk.f32.gmra.mrb[58].mxu0 %vm833_vm9, %v14161_v31  ;;  %v10173_v31 = vld [vmem:[%s17073_s7 + $0x78] sm:$0xff] }
 0x8d9   :  { %11773 = vmatprep.mubr.msk.f32.mxu0 %vm833_vm9, %v14167_v18  ;;  %v12495_v12 = vpack.c.bf16 %v10173_v31, %v10172_v6 }
 0x8db   :  { %12496 = vmatprep.subr.bf16.mxu1 %v12495_v12 }
 0x8dc   :  { %11774 = vmatmul.mubr.msk.f32.gmra.mrb[60].mxu0 %vm833_vm9, %v14165_v16  ;;  %12498 = vmatpush3.bf16.msra.mxu1 %v12495_v12 }
 0x8dd   :  { %11776 = vmatprep.mubr.msk.f32.mxu0 %vm833_vm9, %v14171_v46 }
 0x8e0   :  { %11777 = vmatmul.mubr.msk.f32.gmra.mrb[62].mxu0 %vm833_vm9, %v14169_v56 }
 0x8e1   :  { %4465 = vmatprep.mubr.f32.mxu0 %v17085_v39 }
 0x97f   :  { %v3278_v16 = vpop.f32.mrb[48].mxu0 }
 0x980   :  { %v11687_v18 = vpop.f32.mrb[49].mxu0  ;;  %11739 = vmatprep.mubr.msk.f32.mxu1 %vm833_vm9, %v3278_v16 }
 0x983   :  { %v3351_v46 = vpop.f32.mrb[56].mxu1 }
 0x984   :  { %v11692_v37 = vpop.f32.mrb[57].mxu1  ;;  %11740 = vmatmul.mubr.msk.f32.vlgmr.msra.gmra.mrb[64].mxu1 %vm833_vm9, %v3351_v46 }
 0x987   :  { %v3424_v56 = vpop.f32.mrb[50].mxu0 }
 0x988   :  { %v11697_v20 = vpop.f32.mrb[51].mxu0  ;;  %11742 = vmatprep.mubr.msk.f32.mxu1 %vm833_vm9, %v3424_v56 }
 0x98b   :  { %v3497_v17 = vpop.f32.mrb[58].mxu1 }
 0x98c   :  { %v11702_v10 = vpop.f32.mrb[59].mxu1  ;;  %11743 = vmatmul.mubr.msk.f32.gmra.mrb[66].mxu1 %vm833_vm9, %v3497_v17 }
 0x98f   :  { %v3570_v42 = vpop.f32.mrb[52].mxu0 }
 0x990   :  { %v11707_v27 = vpop.f32.mrb[53].mxu0  ;;  %11745 = vmatprep.mubr.msk.f32.mxu1 %vm833_vm9, %v3570_v42 }
 0x991   :  { %v4202_v27 = vld [vmem:[%s17076_s10] sm:$0xff] }
 0x993   :  { %v3643_v53 = vpop.f32.mrb[60].mxu1 }
 0x994   :  { %v11712_v47 = vpop.f32.mrb[61].mxu1  ;;  %11746 = vmatmul.mubr.msk.f32.gmra.mrb[68].mxu1 %vm833_vm9, %v3643_v53  ;;  %v4206_v53 = vld [vmem:[%s17076_s10 + $0x20] sm:$0xff] }
 0x997   :  { %v3716_v32 = vpop.f32.mrb[54].mxu0 }
 0x998   :  { %v11717_v63 = vpop.f32.mrb[55].mxu0  ;;  %11748 = vmatprep.mubr.msk.f32.mxu1 %vm833_vm9, %v3716_v32  ;;  %v12517_v32 = vpack.c.bf16 %v4206_v53, %v4202_v27 }
 0x999   :  { %v4204_v63 = vld [vmem:[%s17076_s10 + $0x10] sm:$0xff] }
 0x99b   :  { %v3789_v2 = vpop.f32.mrb[62].mxu1 }
 0x99c   :  { %v11722_v45 = vpop.f32.mrb[63].mxu1  ;;  %11749 = vmatmul.mubr.msk.f32.gmra.mrb[70].mxu1 %vm833_vm9, %v3789_v2  ;;  %v4208_v2 = vld [vmem:[%s17076_s10 + $0x30] sm:$0xff] }
 0x99d   :  { %4352 = vmatprep.mubr.f32.mxu1 %v17085_v39  ;;  %v4211_v45 = vld [vmem:[%s17076_s10 + $0x48] sm:$0xff] }
 0x9a7   :  { %v11769_v33 = vpop.f32.mrb[56].mxu0 }
 0x9a8   :  { %v4021_v35 = vpop.f32.mrb[57].mxu0 }
 0x9ab   :  { %v11772_v54 = vpop.f32.mrb[58].mxu0 }
 0x9ac   :  { %v4031_v14 = vpop.f32.mrb[59].mxu0 }
 0x9af   :  { %v11775_v36 = vpop.f32.mrb[60].mxu0 }
 0x9b0   :  { %v4041_v55 = vpop.f32.mrb[61].mxu0 }
 0x9b3   :  { %v11778_v19 = vpop.f32.mrb[62].mxu0 }
 0x9b4   :  { %v4051_v57 = vpop.f32.mrb[63].mxu0 }
 0xa57   :  { %v11741_v58 = vpop.f32.mrb[64].mxu1 }
 0xa58   :  { %v4027_v52 = vadd.f32 %v11769_v33, %v11741_v58  ;;  %v3892_v62 = vpop.f32.mrb[65].mxu1  ;;  %v12549_v33 = vpack.c.bf16 %v4208_v2, %v4204_v63  ;;  %v4212_v58 = vld [vmem:[%s17076_s10 + $0x50] sm:$0xff]  ;;  %v4227_v2 = vld [vmem:[%s17076_s10 + $0xc8] sm:$0xff] }
 0xa59   :  { %v4022_v0 = vadd.f32 %v4021_v35, %v3892_v62  ;;  %v4215_v35 = vld [vmem:[%s17076_s10 + $0x68] sm:$0xff] }
 0xa5a   :  { %v4068_v1 = vadd.f32 %v10190_v60, %v4027_v52  ;;  %v4216_v52 = vld [vmem:[%s17076_s10 + $0x70] sm:$0xff]  ;;  %v4219_v62 = vld [vmem:[%s17076_s10 + $0x88] sm:$0xff] }
 0xa5b   :  { %v4067_v49 = vadd.f32 %v10190_v60, %v4022_v0  ;;  %v4223_v0 = vld [vmem:[%s17076_s10 + $0xa8] sm:$0xff] }
 0xa5c   :  { %v14376_v30 = vadd.f32 %v4068_v1, %v13707_v61  ;;  %v12553_v1 = vpack.c.bf16 %v4216_v52, %v4212_v58 }
 0xa5d   :  { %v14379_v34 = vadd.f32 %v4067_v49, %v13703_v59  ;;  %v12523_v49 = vpack.c.bf16 %v4223_v0, %v4219_v62  ;;  %v4235_v0 = vld [vmem:[%s17076_s10 + $0x108] sm:$0xff] }
 0xa5e   :  { %4088 = vadd.xlane.f32.xlu0 %v14376_v30 }
 0xa5f   :  { %4086 = vadd.xlane.f32.xlu1 %v14379_v34  ;;  %v11744_v4 = vpop.f32.mrb[66].mxu1 }
 0xa60   :  { %v4037_v9 = vadd.f32 %v11772_v54, %v11744_v4  ;;  %v3902_v40 = vpop.f32.mrb[67].mxu1  ;;  %v4213_v54 = vld [vmem:[%s17076_s10 + $0x58] sm:$0xff] }
 0xa61   :  { %v4032_v22 = vadd.f32 %v4031_v14, %v3902_v40  ;;  %v4217_v14 = vld [vmem:[%s17076_s10 + $0x78] sm:$0xff]  ;;  %v4218_v40 = vld [vmem:[%s17076_s10 + $0x80] sm:$0xff] }
 0xa62   :  { %v4070_v24 = vadd.f32 %v10190_v60, %v4037_v9  ;;  %v4221_v4 = vld [vmem:[%s17076_s10 + $0x98] sm:$0xff] }
 0xa63   :  { %v4069_v29 = vadd.f32 %v10190_v60, %v4032_v22  ;;  %v4225_v9 = vld [vmem:[%s17076_s10 + $0xb8] sm:$0xff] }
 0xa64   :  { %v14384_v7 = vadd.f32 %v4070_v24, %v13740_v13  ;;  %v12555_v22 = vpack.c.bf16 %v4225_v9, %v4221_v4  ;;  %v4222_v24 = vld [vmem:[%s17076_s10 + $0xa0] sm:$0xff] }
 0xa65   :  { %v14387_v25 = vadd.f32 %v4069_v29, %v13721_v3  ;;  %v4220_v29 = vld [vmem:[%s17076_s10 + $0x90] sm:$0xff] }
 0xa66   :  { %4092 = vadd.xlane.f32.xlu0 %v14384_v7 }
 0xa67   :  { %4090 = vadd.xlane.f32.xlu1 %v14387_v25  ;;  %v11747_v59 = vpop.f32.mrb[68].mxu1 }
 0xa68   :  { %v4047_v61 = vadd.f32 %v11775_v36, %v11747_v59  ;;  %v3912_v26 = vpop.f32.mrb[69].mxu1  ;;  %v12519_v36 = vpack.c.bf16 %v4215_v35, %v4211_v45  ;;  %v4224_v59 = vld [vmem:[%s17076_s10 + $0xb0] sm:$0xff]  ;;  %v4231_v45 = vld [vmem:[%s17076_s10 + $0xe8] sm:$0xff]  ;;  %v4233_v35 = vld [vmem:[%s17076_s10 + $0xf8] sm:$0xff] }
 0xa69   :  { %v4042_v6 = vadd.f32 %v4041_v55, %v3912_v26  ;;  %v12551_v55 = vpack.c.bf16 %v4217_v14, %v4213_v54  ;;  %v12557_v26 = vpack.c.bf16 %v4224_v59, %v4220_v29  ;;  %v4226_v54 = vld [vmem:[%s17076_s10 + $0xc0] sm:$0xff] }
 0xa6a   :  { %v4072_v31 = vadd.f32 %v10190_v60, %v4047_v61  ;;  %v12525_v61 = vpack.c.bf16 %v4222_v24, %v4218_v40  ;;  %v4230_v14 = vld [vmem:[%s17076_s10 + $0xe0] sm:$0xff]  ;;  %v4241_v40 = vld [vmem:[%s17076_s10 + $0x138] sm:$0xff] }
 0xa6b   :  { %v4071_v12 = vadd.f32 %v10190_v60, %v4042_v6  ;;  %v4238_v24 = vld [vmem:[%s17076_s10 + $0x120] sm:$0xff] }
 0xa6c   :  { %v14392_v16 = vadd.f32 %v4072_v31, %v13760_v23  ;;  %v4207_v23 = vld [vmem:[%s17076_s10 + $0x28] sm:$0xff] }
 0xa6d   :  { %v14395_v18 = vadd.f32 %v4071_v12, %v13736_v11  ;;  %v4203_v11 = vld [vmem:[%s17076_s10 + $0x8] sm:$0xff] }
 0xa6e   :  { %4096 = vadd.xlane.f32.xlu0 %v14392_v16  ;;  %v12515_v42 = vpack.c.bf16 %v4207_v23, %v4203_v11 }
 0xa6f   :  { %4094 = vadd.xlane.f32.xlu1 %v14395_v18  ;;  %v11750_v3 = vpop.f32.mrb[70].mxu1 }
 0xa70   :  { %v4057_v13 = vadd.f32 %v11778_v19, %v11750_v3  ;;  %v3922_v46 = vpop.f32.mrb[71].mxu1  ;;  %12516 = vmatprep.subr.bf16.mxu1 %v12515_v42  ;;  %v4210_v19 = vld [vmem:[%s17076_s10 + $0x40] sm:$0xff] }
 0xa71   :  { %v4052_v37 = vadd.f32 %v4051_v57, %v3922_v46  ;;  %12518 = vmatpush1.bf16.msra.mxu1 %v12517_v32  ;;  %v4214_v57 = vld [vmem:[%s17076_s10 + $0x60] sm:$0xff] }
 0xa72   :  { %v4074_v56 = vadd.f32 %v10190_v60, %v4057_v13  ;;  %12520 = vmatprep.subr.bf16.mxu1 %v12519_v36 }
 0xa73   :  { %v4073_v20 = vadd.f32 %v10190_v60, %v4052_v37  ;;  %v12521_v60 = vpack.c.bf16 %v4214_v57, %v4210_v19  ;;  %v4228_v19 = vld [vmem:[%s17076_s10 + $0xd0] sm:$0xff] }
 0xa74   :  { %v14400_v17 = vadd.f32 %v4074_v56, %v13772_v28  ;;  %v4205_v28 = vld [vmem:[%s17076_s10 + $0x18] sm:$0xff]  ;;  %v4232_v57 = vld [vmem:[%s17076_s10 + $0xf0] sm:$0xff] }
 0xa75   :  { %v14403_v10 = vadd.f32 %v4073_v20, %v13754_v41  ;;  %v4209_v41 = vld [vmem:[%s17076_s10 + $0x38] sm:$0xff]  ;;  %12522 = vmatpush1.bf16.msra.mxu1 %v12521_v60  ;;  %v12561_v60 = vpack.c.bf16 %v4232_v57, %v4228_v19  ;;  %v4259_v19 = vld [vmem:[%s17076_s10 + $0x1c8] sm:$0xff] }
 0xa76   :  { %4100 = vadd.xlane.f32.xlu0 %v14400_v17  ;;  %v12547_v47 = vpack.c.bf16 %v4209_v41, %v4205_v28  ;;  %12524 = vmatprep.subr.bf16.mxu1 %v12523_v49  ;;  %v4237_v49 = vld [vmem:[%s17076_s10 + $0x118] sm:$0xff]  ;;  %v4263_v57 = vld [vmem:[%s17076_s10 + $0x1e8] sm:$0xff] }
 0xa77   :  { %4098 = vadd.xlane.f32.xlu1 %v14403_v10  ;;  %v12563_v59 = vpack.c.bf16 %v4241_v40, %v4237_v49 }
 0xa78   :  { %12548 = vmatprep.subr.bf16.mxu0 %v12547_v47 }
 0xa79   :  { %12550 = vmatpush1.bf16.msra.mxu0 %v12549_v33  ;;  %12526 = vmatpush1.bf16.msra.mxu1 %v12525_v61  ;;  %v4229_v33 = vld [vmem:[%s17076_s10 + $0xd8] sm:$0xff] }
 0xa7a   :  { %12552 = vmatprep.subr.bf16.mxu0 %v12551_v55  ;;  %v12559_v36 = vpack.c.bf16 %v4233_v35, %v4229_v33  ;;  %v12529_v55 = vpack.c.bf16 %v4230_v14, %v4226_v54  ;;  %v4257_v33 = vld [vmem:[%s17076_s10 + $0x1b8] sm:$0xff]  ;;  %v4252_v14 = vld [vmem:[%s17076_s10 + $0x190] sm:$0xff] }
 0xa7d   :  { %12554 = vmatpush1.bf16.msra.mxu0 %v12553_v1  ;;  %v4239_v1 = vld [vmem:[%s17076_s10 + $0x128] sm:$0xff] }
 0xa7e   :  { %12556 = vmatprep.subr.bf16.mxu0 %v12555_v22  ;;  %v12531_v9 = vpack.c.bf16 %v4239_v1, %v4235_v0  ;;  %v4234_v22 = vld [vmem:[%s17076_s10 + $0x100] sm:$0xff] }
 0xa7f   :  { %v12533_v61 = vpack.c.bf16 %v4238_v24, %v4234_v22  ;;  %v4262_v0 = vld [vmem:[%s17076_s10 + $0x1e0] sm:$0xff]  ;;  %v4819_v24 = vld [vmem:[%s17078_s12 + $0x88] sm:$0xff] }
 0xa80   :  { %v4818_v22 = vld [vmem:[%s17078_s12 + $0x80] sm:$0xff] }
 0xa81   :  { %12558 = vmatpush1.bf16.msra.mxu0 %v12557_v26  ;;  %v4236_v26 = vld [vmem:[%s17076_s10 + $0x110] sm:$0xff] }
 0xa82   :  { %12560 = vmatprep.subr.bf16.mxu0 %v12559_v36  ;;  %v4256_v36 = vld [vmem:[%s17076_s10 + $0x1b0] sm:$0xff] }
 0xa85   :  { %12562 = vmatpush1.bf16.msra.mxu0 %v12561_v60  ;;  %v12543_v60 = vpack.c.bf16 %v4263_v57, %v4259_v19 }
 0xa86   :  { %12564 = vmatprep.subr.bf16.mxu0 %v12563_v59  ;;  %v4850_v59 = vld [vmem:[%s17078_s12 + $0x180] sm:$0xff] }
 0xaeb   :  { %v4089_v6 = vpop.xlane.xlu0 %4088 }
 0xaec   :  { %v4103_v31 = vmul.f32 0.0078125, %v4089_v6  ;;  %v4087_v12 = vpop.xlane.xlu1 %4086  ;;  %v4240_v6 = vld [vmem:[%s17076_s10 + $0x130] sm:$0xff] }
 0xaed   :  { %v4102_v3 = vmul.f32 0.0078125, %v4087_v12  ;;  %v12565_v12 = vpack.c.bf16 %v4240_v6, %v4236_v26  ;;  %v4851_v26 = vld [vmem:[%s17078_s12 + $0x188] sm:$0xff] }
 0xaee   :  { %v14480_v13 = vsub.f32 %v14376_v30, %v4103_v31  ;;  %v12611_v6 = vpack.c.bf16 %v4851_v26, %v4850_v59 }
 0xaef   :  { %v14483_v46 = vsub.f32 %v14379_v34, %v4102_v3  ;;  %12566 = vmatpush1.bf16.msra.mxu0 %v12565_v12 }
 0xaf0   :  { %v4119_v37 = vmul.f32 %v14480_v13, %v14480_v13 }
 0xaf1   :  { %v4118_v56 = vmul.f32 %v14483_v46, %v14483_v46 }
 0xaf2   :  { %4128 = vadd.xlane.f32.xlu0 %v4119_v37  ;;  %v4247_v37 = vld [vmem:[%s17076_s10 + $0x168] sm:$0xff] }
 0xaf3   :  { %v4093_v20 = vpop.xlane.xlu0 %4092  ;;  %4126 = vadd.xlane.f32.xlu1 %v4118_v56 }
 0xaf4   :  { %v4105_v11 = vmul.f32 0.0078125, %v4093_v20  ;;  %v4091_v23 = vpop.xlane.xlu1 %4090 }
 0xaf5   :  { %v4104_v28 = vmul.f32 0.0078125, %v4091_v23  ;;  %v4242_v23 = vld [vmem:[%s17076_s10 + $0x140] sm:$0xff] }
 0xaf6   :  { %v14490_v42 = vsub.f32 %v14384_v7, %v4105_v11  ;;  %v4249_v11 = vld [vmem:[%s17076_s10 + $0x178] sm:$0xff] }
 0xaf7   :  { %v14493_v30 = vsub.f32 %v14387_v25, %v4104_v28  ;;  %v4246_v28 = vld [vmem:[%s17076_s10 + $0x160] sm:$0xff] }
 0xaf8   :  { %v4121_v34 = vmul.f32 %v14490_v42, %v14490_v42 }
 0xaf9   :  { %v4120_v41 = vmul.f32 %v14493_v30, %v14493_v30 }
 0xafa   :  { %4132 = vadd.xlane.f32.xlu0 %v4121_v34 }
 0xafb   :  { %v4097_v27 = vpop.xlane.xlu0 %4096  ;;  %4130 = vadd.xlane.f32.xlu1 %v4120_v41  ;;  %v12537_v41 = vpack.c.bf16 %v4246_v28, %v4242_v23 }
 0xafc   :  { %v4107_v53 = vmul.f32 0.0078125, %v4097_v27  ;;  %v4095_v47 = vpop.xlane.xlu1 %4094  ;;  %v4244_v27 = vld [vmem:[%s17076_s10 + $0x150] sm:$0xff] }
 0xafd   :  { %v4106_v32 = vmul.f32 0.0078125, %v4095_v47 }
 0xafe   :  { %v14500_v63 = vsub.f32 %v14392_v16, %v4107_v53  ;;  %v4248_v53 = vld [vmem:[%s17076_s10 + $0x170] sm:$0xff] }
 0xaff   :  { %v14503_v7 = vsub.f32 %v14395_v18, %v4106_v32  ;;  %v12527_v18 = vpack.c.bf16 %v4231_v45, %v4227_v2  ;;  %v12569_v47 = vpack.c.bf16 %v4248_v53, %v4244_v27  ;;  %v4251_v32 = vld [vmem:[%s17076_s10 + $0x188] sm:$0xff]  ;;  %v4253_v2 = vld [vmem:[%s17076_s10 + $0x198] sm:$0xff] }
 0xb00   :  { %v4123_v25 = vmul.f32 %v14500_v63, %v14500_v63  ;;  %v12571_v35 = vpack.c.bf16 %v4257_v33, %v4253_v2 }
 0xb01   :  { %v4122_v16 = vmul.f32 %v14503_v7, %v14503_v7  ;;  %12528 = vmatprep.subr.bf16.mxu1 %v12527_v18  ;;  %v4254_v18 = vld [vmem:[%s17076_s10 + $0x1a0] sm:$0xff] }
 0xb02   :  { %4136 = vadd.xlane.f32.xlu0 %v4123_v25  ;;  %12530 = vmatpush1.bf16.msra.mxu1 %v12529_v55  ;;  %v4255_v25 = vld [vmem:[%s17076_s10 + $0x1a8] sm:$0xff]  ;;  %v12573_v55 = vpack.c.bf16 %v4256_v36, %v4252_v14 }
 0xb03   :  { %v4101_v58 = vpop.xlane.xlu0 %4100  ;;  %4134 = vadd.xlane.f32.xlu1 %v4122_v16  ;;  %12532 = vmatprep.subr.bf16.mxu1 %v12531_v9  ;;  %v12539_v45 = vpack.c.bf16 %v4255_v25, %v4251_v32  ;;  %v4250_v16 = vld [vmem:[%s17076_s10 + $0x180] sm:$0xff]  ;;  %v4264_v9 = vld [vmem:[%s17076_s10 + $0x1f0] sm:$0xff] }
 0xb04   :  { %v4109_v52 = vmul.f32 0.0078125, %v4101_v58  ;;  %v4099_v62 = vpop.xlane.xlu1 %4098  ;;  %v12541_v54 = vpack.c.bf16 %v4254_v18, %v4250_v16  ;;  %v4261_v58 = vld [vmem:[%s17076_s10 + $0x1d8] sm:$0xff]  ;;  %v14654_v32 = vld [vmem:[%s17075_s9] ss:$0 sm:$0xff]  ;;  %v4803_v18 = vld [vmem:[%s17078_s12 + $0x8] sm:$0xff] }
 0xb05   :  { %v4108_v4 = vmul.f32 0.0078125, %v4099_v62  ;;  %v4258_v62 = vld [vmem:[%s17076_s10 + $0x1c0] sm:$0xff] }
 0xb06   :  { %v14552_v29 = vsub.f32 %v14400_v17, %v4109_v52  ;;  %12534 = vmatpush1.bf16.msra.mxu1 %v12533_v61  ;;  %v4243_v17 = vld [vmem:[%s17076_s10 + $0x148] sm:$0xff]  ;;  %v4265_v52 = vld [vmem:[%s17076_s10 + $0x1f8] sm:$0xff]  ;;  %v12545_v49 = vpack.c.bf16 %v4262_v0, %v4258_v62  ;;  %v12579_v61 = vpack.c.bf16 %v4819_v24, %v4818_v22  ;;  %v4802_v16 = vld [vmem:[%s17078_s12] sm:$0xff] }
 0xb07   :  { %v14561_v31 = vsub.f32 %v14403_v10, %v4108_v4  ;;  %v4245_v10 = vld [vmem:[%s17076_s10 + $0x158] sm:$0xff]  ;;  %v12535_v20 = vpack.c.bf16 %v4247_v37, %v4243_v17  ;;  %v12575_v1 = vpack.c.bf16 %v4265_v52, %v4261_v58  ;;  %v4260_v4 = vld [vmem:[%s17076_s10 + $0x1d0] sm:$0xff]  ;;  %v12581_v19 = vpack.c.bf16 %v4803_v18, %v4802_v16 }
 0xb08   :  { %v4125_v3 = vmul.f32 %v14552_v29, %v14552_v29  ;;  %v12567_v34 = vpack.c.bf16 %v4249_v11, %v4245_v10  ;;  %v12577_v40 = vpack.c.bf16 %v4264_v9, %v4260_v4  ;;  %v4836_v16 = vld [vmem:[%s17078_s12 + $0x110] sm:$0xff]  ;;  %v4837_v18 = vld [vmem:[%s17078_s12 + $0x118] sm:$0xff] }
 0xb09   :  { %v4124_v56 = vmul.f32 %v14561_v31, %v14561_v31  ;;  %12536 = vmatprep.subr.bf16.mxu1 %v12535_v20 }
 0xb0a   :  { %4140 = vadd.xlane.f32.xlu0 %v4125_v3  ;;  %12568 = vmatprep.subr.bf16.mxu0 %v12567_v34 }
 0xb0b   :  { %4138 = vadd.xlane.f32.xlu1 %v4124_v56  ;;  %12538 = vmatpush1.bf16.msra.mxu1 %v12537_v41 }
 0xb0c   :  { %12570 = vmatpush1.bf16.msra.mxu0 %v12569_v47  ;;  %12540 = vmatprep.subr.bf16.mxu1 %v12539_v45 }
 0xb0d   :  { %12572 = vmatprep.subr.bf16.mxu0 %v12571_v35 }
 0xb0f   :  { %12542 = vmatpush1.bf16.msra.mxu1 %v12541_v54  ;;  %v14667_v54 = vld [vmem:[%s17075_s9 + $0x1] ss:$0 sm:$0xff] }
 0xb10   :  { %12574 = vmatpush1.bf16.msra.mxu0 %v12573_v55  ;;  %12544 = vmatprep.subr.bf16.mxu1 %v12543_v60 }
 0xb11   :  { %12576 = vmatprep.subr.bf16.mxu0 %v12575_v1 }
 0xb13   :  { %12546 = vmatpush1.bf16.msra.mxu1 %v12545_v49 }
 0xb14   :  { %12578 = vmatpush1.bf16.msra.mxu0 %v12577_v40  ;;  %12580 = vmatprep.subr.bf16.mxu1 %v12579_v61 }
 0xb15   :  { %12612 = vmatprep.subr.bf16.mxu0 %v12611_v6 }
 0xb7f   :  { %v4129_v12 = vpop.xlane.xlu0 %4128 }
 0xb80   :  { %v4143_v3 = vmul.f32 0.0078125, %v4129_v12  ;;  %v4127_v17 = vpop.xlane.xlu1 %4126 }
 0xb81   :  { %v4142_v37 = vmul.f32 0.0078125, %v4127_v17 }
 0xb82   :  { %v4151_v10 = vadd.f32 1e-12, %v4143_v3 }
 0xb83   :  { %v4150_v56 = vadd.f32 1e-12, %v4142_v37 }
 0xb84   :  { %13101 = vrsqrt.f32 %v4151_v10 }
 0xb85   :  { %13103 = vrsqrt.f32 %v4150_v56 }
 0xb87   :  { %v4133_v20 = vpop.xlane.xlu0 %4132 }
 0xb88   :  { %v4145_v11 = vmul.f32 0.0078125, %v4133_v20  ;;  %v4131_v23 = vpop.xlane.xlu1 %4130 }
 0xb89   :  { %v4144_v28 = vmul.f32 0.0078125, %v4131_v23 }
 0xb8a   :  { %v4153_v34 = vadd.f32 1e-12, %v4145_v11 }
 0xb8b   :  { %v4152_v41 = vadd.f32 1e-12, %v4144_v28 }
 0xb8c   :  { %13105 = vrsqrt.f32 %v4153_v34 }
 0xb8d   :  { %13107 = vrsqrt.f32 %v4152_v41 }
 0xb8e   :  { %v13102_v27 = vpop.eup %13101 }
 0xb8f   :  { %v13104_v53 = vpop.eup %13103  ;;  %v4137_v47 = vpop.xlane.xlu0 %4136  ;;  %v4167_v33 = vmul.f32 %v13102_v27, %v14480_v13  ;;  %v4835_v13 = vld [vmem:[%s17078_s12 + $0x108] sm:$0xff]  ;;  %v4821_v27 = vld [vmem:[%s17078_s12 + $0x98] sm:$0xff] }
 0xb90   :  { %v4166_v25 = vmul.f32 %v13104_v53, %v14483_v46  ;;  %v4147_v2 = vmul.f32 0.0078125, %v4137_v47  ;;  %v4135_v45 = vpop.xlane.xlu1 %4134  ;;  %v4834_v46 = vld [vmem:[%s17078_s12 + $0x100] sm:$0xff]  ;;  %v4852_v53 = vld [vmem:[%s17078_s12 + $0x190] sm:$0xff] }
 0xb91   :  { %v4146_v35 = vmul.f32 0.0078125, %v4135_v45  ;;  %v4181_v58 = vmul.f32 %v14654_v32, %v4167_v33  ;;  %v12613_v60 = vpack.c.bf16 %v4835_v13, %v4834_v46  ;;  %v4823_v46 = vld [vmem:[%s17078_s12 + $0xa8] sm:$0xff]  ;;  %v4854_v13 = vld [vmem:[%s17078_s12 + $0x1a0] sm:$0xff] }
 0xb92   :  { %v4155_v14 = vadd.f32 1e-12, %v4147_v2  ;;  %v4180_v36 = vmul.f32 %v14654_v32, %v4166_v25  ;;  %v4804_v25 = vld [vmem:[%s17078_s12 + $0x10] sm:$0xff]  ;;  %v4805_v2 = vld [vmem:[%s17078_s12 + $0x18] sm:$0xff] }
 0xb93   :  { %v4154_v55 = vadd.f32 1e-12, %v4146_v35  ;;  %v14685_v4 = vadd.f32 %v14667_v54, %v4181_v58  ;;  %v12585_v33 = vpack.c.bf16 %v4805_v2, %v4804_v25  ;;  %v12617_v35 = vpack.c.bf16 %v4837_v18, %v4836_v16  ;;  %v4860_v25 = vld [vmem:[%s17078_s12 + $0x1d0] sm:$0xff]  ;;  %v4813_v16 = vld [vmem:[%s17078_s12 + $0x58] sm:$0xff] }
 0xb94   :  { %13109 = vrsqrt.f32 %v4155_v14  ;;  %v14677_v57 = vadd.f32 %v14667_v54, %v4180_v36  ;;  %v4855_v36 = vld [vmem:[%s17078_s12 + $0x1a8] sm:$0xff] }
 0xb95   :  { %13111 = vrsqrt.f32 %v4154_v55  ;;  %17145 = vst [vmem:[#allocation19_spill] sm:$0xff] %v14685_v4  ;;  %v4806_v55 = vld [vmem:[%s17078_s12 + $0x20] sm:$0xff]  ;;  %v12619_v58 = vpack.c.bf16 %v4855_v36, %v4854_v13  ;;  %v4831_v36 = vld [vmem:[%s17078_s12 + $0xe8] sm:$0xff] }
 0xb96   :  { %17144 = vst [vmem:[#allocation18_spill] sm:$0xff] %v14677_v57  ;;  %v13106_v52 = vpop.eup %13105  ;;  %4353 = vmatmul.mubr.f32.vlgmr.msra.gmra.mrb[72].mxu1 %v14677_v57  ;;  %4466 = vmatmul.mubr.f32.vlgmr.msra.gmra.mrb[64].mxu0 %v14677_v57 }
 0xb97   :  { %v13108_v62 = vpop.eup %13107  ;;  %v4141_v0 = vpop.xlane.xlu0 %4140  ;;  %4358 = vmatprep.mubr.f32.mxu1 %v17085_v39  ;;  %4471 = vmatprep.mubr.f32.mxu0 %v17085_v39  ;;  %v4169_v40 = vmul.f32 %v13106_v52, %v14490_v42  ;;  %v4838_v52 = vld [vmem:[%s17078_s12 + $0x120] sm:$0xff] }
 0xb98   :  { %v4149_v1 = vmul.f32 0.0078125, %v4141_v0  ;;  %v4139_v49 = vpop.xlane.xlu1 %4138  ;;  %v4168_v9 = vmul.f32 %v13108_v62, %v14493_v30  ;;  %12582 = vmatpush3.bf16.msra.mxu1 %v12581_v19  ;;  %12614 = vmatpush3.bf16.msra.mxu0 %v12613_v60  ;;  %v4807_v19 = vld [vmem:[%s17078_s12 + $0x28] sm:$0xff] }
 0xb99   :  { %v4148_v22 = vmul.f32 0.0078125, %v4139_v49  ;;  %v4183_v42 = vmul.f32 %v14654_v32, %v4169_v40  ;;  %v12589_v60 = vpack.c.bf16 %v4807_v19, %v4806_v55  ;;  %v4839_v62 = vld [vmem:[%s17078_s12 + $0x128] sm:$0xff]  ;;  %v4825_v49 = vld [vmem:[%s17078_s12 + $0xb8] sm:$0xff]  ;;  %v4862_v55 = vld [vmem:[%s17078_s12 + $0x1e0] sm:$0xff] }
 0xb9a   :  { %v4157_v24 = vadd.f32 1e-12, %v4149_v1  ;;  %4359 = vmatmul.mubr.f32.gmra.mrb[74].mxu1 %v14685_v4  ;;  %4472 = vmatmul.mubr.f32.gmra.mrb[66].mxu0 %v14685_v4  ;;  %v4182_v59 = vmul.f32 %v14654_v32, %v4168_v9  ;;  %v12621_v0 = vpack.c.bf16 %v4839_v62, %v4838_v52  ;;  %v4824_v1 = vld [vmem:[%s17078_s12 + $0xb0] sm:$0xff]  ;;  %v4815_v52 = vld [vmem:[%s17078_s12 + $0x68] sm:$0xff] }
 0xb9b   :  { %v4156_v61 = vadd.f32 1e-12, %v4148_v22  ;;  %4364 = vmatprep.mubr.f32.mxu1 %v17085_v39  ;;  %4477 = vmatprep.mubr.f32.mxu0 %v17085_v39  ;;  %v14703_v12 = vadd.f32 %v14667_v54, %v4183_v42  ;;  %v4856_v9 = vld [vmem:[%s17078_s12 + $0x1b0] sm:$0xff]  ;;  %v12591_v40 = vpack.c.bf16 %v4825_v49, %v4824_v1  ;;  %v4857_v22 = vld [vmem:[%s17078_s12 + $0x1b8] sm:$0xff]  ;;  %v4846_v1 = vld [vmem:[%s17078_s12 + $0x160] sm:$0xff] }
 0xb9c   :  { %13113 = vrsqrt.f32 %v4157_v24  ;;  %v14695_v30 = vadd.f32 %v14667_v54, %v4182_v59  ;;  %v4808_v24 = vld [vmem:[%s17078_s12 + $0x30] sm:$0xff]  ;;  %v4809_v59 = vld [vmem:[%s17078_s12 + $0x38] sm:$0xff]  ;;  %v4847_v49 = vld [vmem:[%s17078_s12 + $0x168] sm:$0xff] }
 0xb9d   :  { %13115 = vrsqrt.f32 %v4156_v61  ;;  %17147 = vst [vmem:[#allocation21_spill] sm:$0xff] %v14703_v12  ;;  %v12623_v61 = vpack.c.bf16 %v4857_v22, %v4856_v9  ;;  %v12593_v42 = vpack.c.bf16 %v4809_v59, %v4808_v24  ;;  %v12637_v9 = vpack.c.bf16 %v4847_v49, %v4846_v1  ;;  %v4833_v22 = vld [vmem:[%s17078_s12 + $0xf8] sm:$0xff]  ;;  %v4864_v24 = vld [vmem:[%s17078_s12 + $0x1f0] sm:$0xff] }
 0xb9e   :  { %17146 = vst [vmem:[#allocation20_spill] sm:$0xff] %v14695_v30  ;;  %v13110_v26 = vpop.eup %13109  ;;  %4365 = vmatmul.mubr.f32.gmra.mrb[76].mxu1 %v14695_v30  ;;  %4478 = vmatmul.mubr.f32.gmra.mrb[68].mxu0 %v14695_v30 }
 0xb9f   :  { %v13112_v6 = vpop.eup %13111  ;;  %4370 = vmatprep.mubr.f32.mxu1 %v17085_v39  ;;  %4483 = vmatprep.mubr.f32.mxu0 %v17085_v39  ;;  %v4171_v17 = vmul.f32 %v13110_v26, %v14500_v63  ;;  %v4840_v26 = vld [vmem:[%s17078_s12 + $0x130] sm:$0xff] }
 0xba0   :  { %v4170_v3 = vmul.f32 %v13112_v6, %v14503_v7  ;;  %v4841_v6 = vld [vmem:[%s17078_s12 + $0x138] sm:$0xff] }
 0xba1   :  { %v4185_v56 = vmul.f32 %v14654_v32, %v4171_v17  ;;  %v4826_v17 = vld [vmem:[%s17078_s12 + $0xc0] sm:$0xff] }
 0xba2   :  { %4371 = vmatmul.mubr.f32.gmra.mrb[78].mxu1 %v14703_v12  ;;  %4484 = vmatmul.mubr.f32.gmra.mrb[70].mxu0 %v14703_v12  ;;  %v4184_v37 = vmul.f32 %v14654_v32, %v4170_v3  ;;  %v12625_v3 = vpack.c.bf16 %v4841_v6, %v4840_v26  ;;  %v4817_v26 = vld [vmem:[%s17078_s12 + $0x78] sm:$0xff] }
 0xba3   :  { %4376 = vmatprep.mubr.f32.mxu1 %v17085_v39  ;;  %4489 = vmatprep.mubr.f32.mxu0 %v17085_v39  ;;  %v14721_v7 = vadd.f32 %v14667_v54, %v4185_v56  ;;  %v4858_v56 = vld [vmem:[%s17078_s12 + $0x1c0] sm:$0xff] }
 0xba4   :  { %v14713_v10 = vadd.f32 %v14667_v54, %v4184_v37  ;;  %v4827_v37 = vld [vmem:[%s17078_s12 + $0xc8] sm:$0xff] }
 0xba5   :  { %17149 = vst [vmem:[#allocation23_spill] sm:$0xff] %v14721_v7 }
 0xba6   :  { %17148 = vst [vmem:[#allocation22_spill] sm:$0xff] %v14713_v10  ;;  %v13114_v20 = vpop.eup %13113  ;;  %4377 = vmatmul.mubr.f32.gmra.mrb[80].mxu1 %v14713_v10  ;;  %4490 = vmatmul.mubr.f32.gmra.mrb[72].mxu0 %v14713_v10 }
 0xba7   :  { %v13116_v63 = vpop.eup %13115  ;;  %4382 = vmatprep.mubr.f32.mxu1 %v17085_v39  ;;  %4495 = vmatprep.mubr.f32.mxu0 %v17085_v39  ;;  %v4173_v23 = vmul.f32 %v13114_v20, %v14552_v29  ;;  %v12595_v20 = vpack.c.bf16 %v4827_v37, %v4826_v17  ;;  %v4848_v17 = vld [vmem:[%s17078_s12 + $0x170] sm:$0xff]  ;;  %v4849_v37 = vld [vmem:[%s17078_s12 + $0x178] sm:$0xff] }
 0xba8   :  { %v4172_v11 = vmul.f32 %v13116_v63, %v14561_v31  ;;  %v4820_v31 = vld [vmem:[%s17078_s12 + $0x90] sm:$0xff]  ;;  %v4859_v63 = vld [vmem:[%s17078_s12 + $0x1c8] sm:$0xff] }
 0xba9   :  { %v4187_v41 = vmul.f32 %v14654_v32, %v4173_v23  ;;  %v12583_v47 = vpack.c.bf16 %v4821_v27, %v4820_v31  ;;  %v4811_v23 = vld [vmem:[%s17078_s12 + $0x48] sm:$0xff]  ;;  %v4842_v31 = vld [vmem:[%s17078_s12 + $0x140] sm:$0xff] }
 0xbaa   :  { %4383 = vmatmul.mubr.f32.gmra.mrb[82].mxu1 %v14721_v7  ;;  %4496 = vmatmul.mubr.f32.gmra.mrb[74].mxu0 %v14721_v7  ;;  %v4186_v28 = vmul.f32 %v14654_v32, %v4172_v11  ;;  %v4853_v32 = vld [vmem:[%s17078_s12 + $0x198] sm:$0xff]  ;;  %v4810_v11 = vld [vmem:[%s17078_s12 + $0x40] sm:$0xff]  ;;  %v4843_v27 = vld [vmem:[%s17078_s12 + $0x148] sm:$0xff] }
 0xbab   :  { %4388 = vmatprep.mubr.f32.mxu1 %v17085_v39  ;;  %4501 = vmatprep.mubr.f32.mxu0 %v17085_v39  ;;  %v14739_v29 = vadd.f32 %v14667_v54, %v4187_v41  ;;  %v12615_v45 = vpack.c.bf16 %v4853_v32, %v4852_v53  ;;  %v12597_v41 = vpack.c.bf16 %v4811_v23, %v4810_v11  ;;  %v4829_v32 = vld [vmem:[%s17078_s12 + $0xd8] sm:$0xff]  ;;  %v17083_v11 = vsub.s32 1, %v13874_v38 }
 0xbac   :  { %v14731_v34 = vadd.f32 %v14667_v54, %v4186_v28  ;;  %12584 = vmatprep.subr.bf16.mxu1 %v12583_v47  ;;  %v4822_v54 = vld [vmem:[%s17078_s12 + $0xa0] sm:$0xff]  ;;  %v12627_v28 = vpack.c.bf16 %v4859_v63, %v4858_v56  ;;  %v12629_v53 = vpack.c.bf16 %v4843_v27, %v4842_v31  ;;  %v4828_v47 = vld [vmem:[%s17078_s12 + $0xd0] sm:$0xff]  ;;  %v12641_v56 = vpack.c.bf16 %v4849_v37, %v4848_v17 }
 0xbad   :  { %17151 = vst [vmem:[#allocation25_spill] sm:$0xff] %v14739_v29  ;;  %12616 = vmatprep.subr.bf16.mxu0 %v12615_v45  ;;  %12586 = vmatpush3.bf16.msra.mxu1 %v12585_v33  ;;  %v12587_v14 = vpack.c.bf16 %v4823_v46, %v4822_v54  ;;  %v12599_v2 = vpack.c.bf16 %v4829_v32, %v4828_v47  ;;  %v4861_v45 = vld [vmem:[%s17078_s12 + $0x1d8] sm:$0xff]  ;;  %v4812_v33 = vld [vmem:[%s17078_s12 + $0x50] sm:$0xff]  ;;  %v4266_v63 = vld [vmem:[%s17077_s11] sm:$0xf]  ;;  %v17082_v23 = vsub.s32 3, %v13874_v38 }
 0xbae   :  { %17150 = vst [vmem:[#allocation24_spill] sm:$0xff] %v14731_v34  ;;  %4389 = vmatmul.mubr.f32.gmra.mrb[84].mxu1 %v14731_v34  ;;  %4502 = vmatmul.mubr.f32.gmra.mrb[76].mxu0 %v14731_v34  ;;  %v12631_v18 = vpack.c.bf16 %v4861_v45, %v4860_v25  ;;  %v4844_v54 = vld [vmem:[%s17078_s12 + $0x150] sm:$0xff]  ;;  %v4845_v46 = vld [vmem:[%s17078_s12 + $0x158] sm:$0xff]  ;;  %v14926_v31 = vrot.slane %v4266_v63, %v17083_v11 }
 0xbaf   :  { %4394 = vmatprep.mubr.f32.mxu1 %v17085_v39  ;;  %4507 = vmatprep.mubr.f32.mxu0 %v17085_v39  ;;  %v12633_v13 = vpack.c.bf16 %v4845_v46, %v4844_v54  ;;  %v14930_v27 = vrot.slane %v4266_v63, %v17082_v23 }
 0xbb0   :  { %12618 = vmatpush3.bf16.msra.mxu0 %v12617_v35  ;;  %12588 = vmatprep.subr.bf16.mxu1 %v12587_v14  ;;  %v12601_v35 = vpack.c.bf16 %v4813_v16, %v4812_v33  ;;  %v4830_v14 = vld [vmem:[%s17078_s12 + $0xe0] sm:$0xff] }
 0xbb1   :  { %12620 = vmatprep.subr.bf16.mxu0 %v12619_v58  ;;  %12590 = vmatpush3.bf16.msra.mxu1 %v12589_v60  ;;  %v12603_v19 = vpack.c.bf16 %v4831_v36, %v4830_v14  ;;  %v4863_v58 = vld [vmem:[%s17078_s12 + $0x1e8] sm:$0xff]  ;;  %v4814_v60 = vld [vmem:[%s17078_s12 + $0x60] sm:$0xff] }
 0xbb2   :  { %4395 = vmatmul.mubr.f32.gmra.mrb[86].mxu1 %v14739_v29  ;;  %4508 = vmatmul.mubr.f32.gmra.mrb[78].mxu0 %v14739_v29  ;;  %v12635_v62 = vpack.c.bf16 %v4863_v58, %v4862_v55 }
 0xbb3   :  { %12592 = vmatprep.subr.bf16.mxu1 %v12591_v40  ;;  %v4832_v40 = vld [vmem:[%s17078_s12 + $0xf0] sm:$0xff] }
 0xbb4   :  { %12622 = vmatpush3.bf16.msra.mxu0 %v12621_v0  ;;  %v12605_v0 = vpack.c.bf16 %v4815_v52, %v4814_v60  ;;  %v12607_v59 = vpack.c.bf16 %v4833_v22, %v4832_v40 }
 0xbb5   :  { %12624 = vmatprep.subr.bf16.mxu0 %v12623_v61  ;;  %12594 = vmatpush3.bf16.msra.mxu1 %v12593_v42  ;;  %v4865_v61 = vld [vmem:[%s17078_s12 + $0x1f8] sm:$0xff]  ;;  %v4816_v42 = vld [vmem:[%s17078_s12 + $0x70] sm:$0xff] }
 0xbb6   :  { %12596 = vmatprep.subr.bf16.mxu1 %v12595_v20  ;;  %v12639_v6 = vpack.c.bf16 %v4865_v61, %v4864_v24  ;;  %v17084_v20 = vsub.s32 2, %v13874_v38 }
 0xbb8   :  { %12626 = vmatpush3.bf16.msra.mxu0 %v12625_v3  ;;  %v12609_v3 = vpack.c.bf16 %v4817_v26, %v4816_v42 }
 0xbb9   :  { %12628 = vmatprep.subr.bf16.mxu0 %v12627_v28  ;;  %12598 = vmatpush3.bf16.msra.mxu1 %v12597_v41  ;;  %v14918_v28 = vrot.slane %v4266_v63, %v13877_v44  ;;  %v14922_v41 = vrot.slane %v4266_v63, %v17084_v20 }
 0xbba   :  { %12600 = vmatprep.subr.bf16.mxu1 %v12599_v2 }
 0xbbc   :  { %12630 = vmatpush3.bf16.msra.mxu0 %v12629_v53 }
 0xbbd   :  { %12632 = vmatprep.subr.bf16.mxu0 %v12631_v18  ;;  %12602 = vmatpush3.bf16.msra.mxu1 %v12601_v35 }
 0xbbe   :  { %12604 = vmatprep.subr.bf16.mxu1 %v12603_v19 }
 0xbc0   :  { %12634 = vmatpush3.bf16.msra.mxu0 %v12633_v13 }
 0xbc1   :  { %12636 = vmatprep.subr.bf16.mxu0 %v12635_v62  ;;  %12606 = vmatpush3.bf16.msra.mxu1 %v12605_v0 }
 0xbc2   :  { %12608 = vmatprep.subr.bf16.mxu1 %v12607_v59 }
 0xbc4   :  { %12638 = vmatpush3.bf16.msra.mxu0 %v12637_v9 }
 0xbc5   :  { %12640 = vmatprep.subr.bf16.mxu0 %v12639_v6  ;;  %12610 = vmatpush3.bf16.msra.mxu1 %v12609_v3 }
 0xbc8   :  { %12642 = vmatpush3.bf16.msra.mxu0 %v12641_v56 }
 0xc69   :  { %v4354_v53 = vpop.f32.mrb[72].mxu1  ;;  %v4467_v47 = vpop.f32.mrb[64].mxu0 }
 0xc6a   :  { %v4355_v32 = vadd.f32 %v4354_v53, %v14918_v28  ;;  %v4468_v25 = vadd.f32 %v4467_v47, %v14922_v41  ;;  %v4356_v2 = vpop.f32.mrb[73].mxu1  ;;  %v4469_v45 = vpop.f32.mrb[65].mxu0 }
 0xc6b   :  { %v14935_v33 = vadd.f32 %v4356_v2, %v14926_v31  ;;  %v14938_v16 = vadd.f32 %v4469_v45, %v14930_v27 }
 0xc6c   :  { %v4546_v18 = vmul.f32 0.044715, %v4355_v32  ;;  %v4548_v35 = vmul.f32 0.044715, %v4468_v25  ;;  %v14958_v17 = vmul.f32 0.5, %v4355_v32  ;;  %v14967_v53 = vmul.f32 0.5, %v4468_v25 }
 0xc6d   :  { %v4547_v54 = vmul.f32 0.044715, %v14935_v33  ;;  %v4549_v46 = vmul.f32 0.044715, %v14938_v16  ;;  %v4360_v13 = vpop.f32.mrb[74].mxu1  ;;  %v4473_v14 = vpop.f32.mrb[66].mxu0 }
 0xc6e   :  { %v4578_v36 = vmul.f32 %v4546_v18, %v4355_v32  ;;  %v4580_v55 = vmul.f32 %v4548_v35, %v4468_v25  ;;  %v14943_v19 = vadd.f32 %v4360_v13, %v14918_v28  ;;  %v14946_v58 = vadd.f32 %v4473_v14, %v14922_v41  ;;  %v4362_v60 = vpop.f32.mrb[75].mxu1  ;;  %v4475_v52 = vpop.f32.mrb[67].mxu0 }
 0xc6f   :  { %v14949_v62 = vadd.f32 %v4362_v60, %v14926_v31  ;;  %v4579_v49 = vmul.f32 %v4547_v54, %v14935_v33  ;;  %v4581_v9 = vmul.f32 %v4549_v46, %v14938_v16  ;;  %v14954_v40 = vadd.f32 %v4475_v52, %v14930_v27 }
 0xc70   :  { %v4610_v0 = vmul.f32 %v4578_v36, %v4355_v32  ;;  %v4612_v1 = vmul.f32 %v4580_v55, %v4468_v25  ;;  %v4550_v42 = vmul.f32 0.044715, %v14943_v19  ;;  %v4552_v26 = vmul.f32 0.044715, %v14946_v58 }
 0xc71   :  { %v4366_v22 = vpop.f32.mrb[76].mxu1  ;;  %v4479_v24 = vpop.f32.mrb[68].mxu0  ;;  %v4551_v37 = vmul.f32 0.044715, %v14949_v62  ;;  %v4611_v45 = vmul.f32 %v4579_v49, %v14935_v33  ;;  %v4553_v18 = vmul.f32 0.044715, %v14954_v40  ;;  %v4613_v46 = vmul.f32 %v4581_v9, %v14938_v16 }
 0xc72   :  { %v4642_v59 = vadd.f32 %v4610_v0, %v4355_v32  ;;  %v4644_v61 = vadd.f32 %v4612_v1, %v4468_v25  ;;  %v4368_v6 = vpop.f32.mrb[77].mxu1  ;;  %v4481_v3 = vpop.f32.mrb[69].mxu0  ;;  %v14962_v56 = vadd.f32 %v4366_v22, %v14918_v28  ;;  %v14965_v63 = vadd.f32 %v4479_v24, %v14922_v41 }
 0xc73   :  { %v14970_v47 = vadd.f32 %v4368_v6, %v14926_v31  ;;  %v14973_v2 = vadd.f32 %v4481_v3, %v14930_v27  ;;  %v14979_v14 = vmul.f32 %v4550_v42, %v14943_v19  ;;  %v14982_v25 = vmul.f32 %v4552_v26, %v14946_v58 }
 0xc74   :  { %v4674_v32 = vmul.f32 0.7978846, %v4642_v59  ;;  %v4676_v13 = vmul.f32 0.7978846, %v4644_v61  ;;  %v4583_v52 = vmul.f32 %v4551_v37, %v14949_v62  ;;  %v4554_v0 = vmul.f32 0.044715, %v14962_v56 }
 0xc75   :  { %v4372_v35 = vpop.f32.mrb[78].mxu1  ;;  %v4485_v54 = vpop.f32.mrb[70].mxu0  ;;  %v4556_v1 = vmul.f32 0.044715, %v14965_v63  ;;  %v4555_v9 = vmul.f32 0.044715, %v14970_v47  ;;  %v4643_v59 = vadd.f32 %v4611_v45, %v14935_v33  ;;  %v4585_v61 = vmul.f32 %v4553_v18, %v14954_v40 }
 0xc76   :  { %v14985_v36 = vadd.f32 %v4372_v35, %v14918_v28  ;;  %v4374_v55 = vpop.f32.mrb[79].mxu1  ;;  %v4487_v60 = vpop.f32.mrb[71].mxu0  ;;  %v14991_v49 = vadd.f32 %v4485_v54, %v14922_v41  ;;  %v4557_v22 = vmul.f32 0.044715, %v14973_v2  ;;  %13117 = vtanh.f32 %v4674_v32 }
 0xc77   :  { %v14996_v24 = vadd.f32 %v4374_v55, %v14926_v31  ;;  %v15001_v42 = vadd.f32 %v4487_v60, %v14930_v27  ;;  %v4645_v3 = vadd.f32 %v4613_v46, %v14938_v16  ;;  %13119 = vtanh.f32 %v4676_v13 }
 0xc78   :  { %v4558_v37 = vmul.f32 0.044715, %v14985_v36  ;;  %v15012_v18 = vmul.f32 %v4554_v0, %v14962_v56  ;;  %v4560_v55 = vmul.f32 0.044715, %v14991_v49  ;;  %v15018_v13 = vmul.f32 %v4556_v1, %v14965_v63 }
 0xc79   :  { %v4378_v26 = vpop.f32.mrb[80].mxu1  ;;  %v4491_v6 = vpop.f32.mrb[72].mxu0  ;;  %v4559_v60 = vmul.f32 0.044715, %v14996_v24  ;;  %v4561_v46 = vmul.f32 0.044715, %v15001_v42 }
 0xc7a   :  { %v15006_v35 = vadd.f32 %v4378_v26, %v14918_v28  ;;  %v15009_v54 = vadd.f32 %v4491_v6, %v14922_v41  ;;  %v4380_v45 = vpop.f32.mrb[81].mxu1  ;;  %v4493_v32 = vpop.f32.mrb[73].mxu0  ;;  %v15021_v26 = vmul.f32 %v4555_v9, %v14970_v47  ;;  %v15024_v6 = vmul.f32 %v4557_v22, %v14973_v2 }
 0xc7b   :  { %v4675_v23 = vmul.f32 0.7978846, %v4643_v59  ;;  %v15028_v0 = vadd.f32 %v4380_v45, %v14926_v31  ;;  %v15031_v20 = vadd.f32 %v4493_v32, %v14930_v27  ;;  %v15034_v1 = vmul.f32 0.5, %v14935_v33 }
 0xc7c   :  { %17152 = vst [vmem:[#allocation26_spill] sm:$0xff] %v15006_v35  ;;  %17153 = vst [vmem:[#allocation27_spill] sm:$0xff] %v15009_v54  ;;  %v4562_v11 = vmul.f32 0.044715, %v15006_v35  ;;  %v15037_v9 = vmul.f32 %v4558_v37, %v14985_v36  ;;  %v4564_v22 = vmul.f32 0.044715, %v15009_v54  ;;  %v15047_v32 = vmul.f32 %v4560_v55, %v14991_v49 }
 0xc7d   :  { %17154 = vst [vmem:[#allocation28_spill] sm:$0xff] %v15031_v20  ;;  %v4384_v39 = vpop.f32.mrb[82].mxu1  ;;  %v4497_v38 = vpop.f32.mrb[74].mxu0  ;;  %v15044_v45 = vmul.f32 0.5, %v14938_v16  ;;  %v15050_v43 = vmul.f32 %v4559_v60, %v14996_v24  ;;  %v15053_v33 = vmul.f32 %v4561_v46, %v15001_v42  ;;  %13121 = vtanh.f32 %v4675_v23 }
 0xc7e   :  { %v15041_v59 = vadd.f32 %v4384_v39, %v14918_v28  ;;  %v4386_v44 = vpop.f32.mrb[83].mxu1  ;;  %v4499_v48 = vpop.f32.mrb[75].mxu0  ;;  %v15056_v37 = vadd.f32 %v4497_v38, %v14922_v41  ;;  %v4677_v16 = vmul.f32 0.7978846, %v4645_v3  ;;  %v15065_v55 = vmul.f32 %v4562_v11, %v15006_v35 }
 0xc7f   :  { %v15059_v39 = vadd.f32 %v4386_v44, %v14926_v31  ;;  %v15062_v21 = vadd.f32 %v4499_v48, %v14930_v27  ;;  %v4563_v60 = vmul.f32 0.044715, %v15028_v0  ;;  %v4565_v15 = vmul.f32 0.044715, %v15031_v20 }
 0xc80   :  { %17155 = vst [vmem:[#allocation29_spill] sm:$0xff] %v15065_v55  ;;  %v4615_v38 = vmul.f32 %v4583_v52, %v14949_v62  ;;  %v15071_v5 = vmul.f32 %v4564_v22, %v15009_v54  ;;  %v4566_v44 = vmul.f32 0.044715, %v15041_v59  ;;  %v13118_v51 = vpop.eup %13117  ;;  %v4568_v50 = vmul.f32 0.044715, %v15056_v37 }
 0xc81   :  { %v4390_v46 = vpop.f32.mrb[84].mxu1  ;;  %v4503_v8 = vpop.f32.mrb[76].mxu0  ;;  %v4617_v22 = vmul.f32 %v4585_v61, %v14954_v40  ;;  %v4569_v7 = vmul.f32 0.044715, %v15062_v21  ;;  %13123 = vtanh.f32 %v4677_v16  ;;  %v15092_v10 = vmul.f32 %v4563_v60, %v15028_v0 }
 0xc82   :  { %17156 = vst [vmem:[#allocation30_spill] sm:$0xff] %v15071_v5  ;;  %v15075_v48 = vadd.f32 %v4390_v46, %v14918_v28  ;;  %v15078_v23 = vadd.f32 %v4503_v8, %v14922_v41  ;;  %v4392_v11 = vpop.f32.mrb[85].mxu1  ;;  %v4505_v3 = vpop.f32.mrb[77].mxu0  ;;  %v4567_v46 = vmul.f32 0.044715, %v15059_v39  ;;  %v15095_v12 = vmul.f32 %v4565_v15, %v15031_v20 }
 0xc83   :  { %v15082_v29 = vadd.f32 %v4392_v11, %v14926_v31  ;;  %v15085_v52 = vadd.f32 %v4505_v3, %v14930_v27  ;;  %v13120_v34 = vpop.eup %13119  ;;  %v4647_v54 = vadd.f32 %v4615_v38, %v14949_v62  ;;  %v15108_v15 = vmul.f32 %v4566_v44, %v15041_v59 }
 0xc84   :  { %v4570_v8 = vmul.f32 0.044715, %v15075_v48  ;;  %17157 = vst [vmem:[#allocation31_spill] sm:$0xff] %v15095_v12  ;;  %v4572_v11 = vmul.f32 0.044715, %v15078_v23  ;;  %v15111_v55 = vmul.f32 %v4568_v50, %v15056_v37  ;;  %v4738_v35 = vadd.f32 1.0, %v13118_v51 }
 0xc85   :  { %v4571_v3 = vmul.f32 0.044715, %v15082_v29  ;;  %v4396_v30 = vpop.f32.mrb[86].mxu1  ;;  %v4509_v61 = vpop.f32.mrb[78].mxu0  ;;  %v4573_v4 = vmul.f32 0.044715, %v15085_v52  ;;  %v4649_v12 = vadd.f32 %v4617_v22, %v14954_v40  ;;  %v15115_v20 = vmul.f32 %v4567_v46, %v15059_v39 }
 0xc86   :  { %v15101_v57 = vadd.f32 %v4396_v30, %v14918_v28  ;;  %v15104_v5 = vadd.f32 %v4509_v61, %v14922_v41  ;;  %v4398_v16 = vpop.f32.mrb[87].mxu1  ;;  %v4511_v60 = vpop.f32.mrb[79].mxu0  ;;  %v4614_v41 = vmul.f32 %v14979_v14, %v14943_v19  ;;  %v15126_v38 = vmul.f32 %v4569_v7, %v15062_v21 }
 0xc87   :  { %v15118_v30 = vadd.f32 %v4398_v16, %v14926_v31  ;;  %v15121_v28 = vadd.f32 %v4511_v60, %v14930_v27  ;;  %v15129_v50 = vmul.f32 %v4570_v8, %v15075_v48  ;;  %v15132_v51 = vmul.f32 %v4572_v11, %v15078_v23  ;;  %v13122_v31 = vpop.eup %13121 }
 0xc88   :  { %v15135_v44 = vmul.f32 %v4571_v3, %v15082_v29  ;;  %v15138_v22 = vmul.f32 %v4573_v4, %v15085_v52  ;;  %v4574_v27 = vmul.f32 0.044715, %v15101_v57  ;;  %v4576_v14 = vmul.f32 0.044715, %v15104_v5 }
 0xc89   :  { %17158 = vst [vmem:[#allocation32_spill] sm:$0xff] %v15132_v51  ;;  %v4679_v46 = vmul.f32 0.7978846, %v4647_v54  ;;  %v4739_v7 = vadd.f32 1.0, %v13122_v31  ;;  %v4770_v61 = vmul.f32 %v4738_v35, %v14958_v17  ;;  %v4740_v8 = vadd.f32 1.0, %v13120_v34 }
 0xc8a   :  { %v4681_v16 = vmul.f32 0.7978846, %v4649_v12  ;;  %v4575_v11 = vmul.f32 0.044715, %v15118_v30  ;;  %v4577_v60 = vmul.f32 0.044715, %v15121_v28  ;;  %v4646_v3 = vadd.f32 %v4614_v41, %v14943_v19 }
 0xc8b   :  { %13125 = vtanh.f32 %v4679_v46  ;;  %v4771_v4 = vmul.f32 %v4739_v7, %v15034_v1  ;;  %v4519_v51 = vmul.f32 0.5, %v14949_v62  ;;  %v4616_v54 = vmul.f32 %v14982_v25, %v14946_v58  ;;  %v13124_v31 = vpop.eup %13123 }
 0xc8c   :  { %13127 = vtanh.f32 %v4681_v16  ;;  %v4521_v17 = vmul.f32 0.5, %v14954_v40  ;;  %v4678_v34 = vmul.f32 0.7978846, %v4646_v3  ;;  %v4619_v12 = vmul.f32 %v15021_v26, %v14970_v47 }
 0xc8d   :  { %v4621_v35 = vmul.f32 %v15024_v6, %v14973_v2  ;;  %v15156_v41 = vmul.f32 %v4574_v27, %v15101_v57  ;;  %4937 = vmatprep.mubr.f32.mxu1 %v4771_v4  ;;  %v4741_v1 = vadd.f32 1.0, %v13124_v31  ;;  %v4648_v62 = vadd.f32 %v4616_v54, %v14946_v58 }
 0xc8e   :  { %v4618_v25 = vmul.f32 %v15012_v18, %v14962_v56  ;;  %v15162_v46 = vmul.f32 %v4576_v14, %v15104_v5  ;;  %4938 = vmatmul.mubr.f32.vlgmr.msra.gmra.mrb[88].mxu1 %v4770_v61  ;;  %13129 = vtanh.f32 %v4678_v34  ;;  %v4651_v40 = vadd.f32 %v4619_v12, %v14970_v47 }
 0xc8f   :  { %v4653_v26 = vadd.f32 %v4621_v35, %v14973_v2  ;;  %v4773_v6 = vmul.f32 %v4741_v1, %v15044_v45  ;;  %v4680_v27 = vmul.f32 0.7978846, %v4648_v62  ;;  %v4620_v16 = vmul.f32 %v15018_v13, %v14965_v63 }
 0xc90   :  { %v4650_v7 = vadd.f32 %v4618_v25, %v14962_v56  ;;  %v4772_v3 = vmul.f32 %v4740_v8, %v14967_v53  ;;  %v4683_v18 = vmul.f32 0.7978846, %v4651_v40  ;;  %v4623_v14 = vmul.f32 %v15050_v43, %v14996_v24 }
 0xc91   :  { %v4685_v4 = vmul.f32 0.7978846, %v4653_v26  ;;  %v15174_v61 = vmul.f32 %v4575_v11, %v15118_v30  ;;  %5042 = vmatprep.mubr.f32.mxu0 %v4773_v6  ;;  %13131 = vtanh.f32 %v4680_v27  ;;  %v4652_v45 = vadd.f32 %v4620_v16, %v14965_v63 }
 0xc92   :  { %v4682_v54 = vmul.f32 0.7978846, %v4650_v7  ;;  %v15178_v31 = vmul.f32 %v4577_v60, %v15121_v28  ;;  %5043 = vmatmul.mubr.f32.vlgmr.msra.gmra.mrb[80].mxu0 %v4772_v3  ;;  %13133 = vtanh.f32 %v4683_v18  ;;  %v4655_v53 = vadd.f32 %v4623_v14, %v14996_v24  ;;  %v17160_v18 = vld [vmem:[#allocation31_spill] sm:$0xff] }
 0xc93   :  { %v4625_v13 = vmul.f32 %v15053_v33, %v15001_v42  ;;  %v4518_v43 = vmul.f32 0.5, %v14943_v19  ;;  %13135 = vtanh.f32 %v4685_v4  ;;  %v4684_v8 = vmul.f32 0.7978846, %v4652_v45  ;;  %v17161_v45 = vld [vmem:[#allocation26_spill] sm:$0xff] }
 0xc94   :  { %v4622_v11 = vmul.f32 %v15037_v9, %v14985_v36  ;;  %13137 = vtanh.f32 %v4682_v54  ;;  %v4687_v12 = vmul.f32 0.7978846, %v4655_v53  ;;  %v4624_v35 = vmul.f32 %v15047_v32, %v14991_v49 }
 0xc95   :  { %v13126_v34 = vpop.eup %13125  ;;  %v4657_v60 = vadd.f32 %v4625_v13, %v15001_v42  ;;  %v4520_v25 = vmul.f32 0.5, %v14946_v58  ;;  %13139 = vtanh.f32 %v4684_v8  ;;  %v4523_v6 = vmul.f32 0.5, %v14970_v47  ;;  %v17159_v58 = vld [vmem:[#allocation28_spill] sm:$0xff] }
 0xc96   :  { %v13128_v1 = vpop.eup %13127  ;;  %v4743_v62 = vadd.f32 1.0, %v13126_v34  ;;  %v4654_v19 = vadd.f32 %v4622_v11, %v14985_v36  ;;  %13141 = vtanh.f32 %v4687_v12  ;;  %v4656_v9 = vadd.f32 %v4624_v35, %v14991_v49  ;;  %v17163_v12 = vld [vmem:[#allocation27_spill] sm:$0xff] }
 0xc97   :  { %v4745_v33 = vadd.f32 1.0, %v13128_v1  ;;  %v4689_v40 = vmul.f32 0.7978846, %v4657_v60  ;;  %v4627_v7 = vmul.f32 %v15092_v10, %v15028_v0  ;;  %v4629_v4 = vmul.f32 %v17160_v18, %v17159_v58  ;;  %v17164_v60 = vld [vmem:[#allocation30_spill] sm:$0xff] }
 0xc98   :  { %v4775_v26 = vmul.f32 %v4743_v62, %v4519_v51  ;;  %v4686_v27 = vmul.f32 0.7978846, %v4654_v19  ;;  %v13130_v32 = vpop.eup %13129  ;;  %v4688_v3 = vmul.f32 0.7978846, %v4656_v9  ;;  %v4525_v54 = vmul.f32 0.5, %v14973_v2 }
 0xc99   :  { %v4777_v16 = vmul.f32 %v4745_v33, %v4521_v17  ;;  %13143 = vtanh.f32 %v4689_v40  ;;  %v4742_v14 = vadd.f32 1.0, %v13130_v32  ;;  %v4659_v51 = vadd.f32 %v4627_v7, %v15028_v0  ;;  %v17162_v17 = vld [vmem:[#allocation29_spill] sm:$0xff] }
 0xc9a   :  { %4942 = vmatprep.mubr.f32.mxu1 %v4775_v26  ;;  %13145 = vtanh.f32 %v4686_v27  ;;  %v4522_v47 = vmul.f32 0.5, %v14962_v56  ;;  %v4661_v10 = vadd.f32 %v4629_v4, %v17159_v58  ;;  %v4626_v53 = vmul.f32 %v17162_v17, %v17161_v45 }
 0xc9b   :  { %5047 = vmatprep.mubr.f32.mxu0 %v4777_v16  ;;  %13147 = vtanh.f32 %v4688_v3  ;;  %v13132_v13 = vpop.eup %13131  ;;  %v4774_v8 = vmul.f32 %v4742_v14, %v4518_v43  ;;  %v4524_v11 = vmul.f32 0.5, %v14965_v63  ;;  %v4691_v34 = vmul.f32 0.7978846, %v4659_v51 }
 0xc9c   :  { %v4628_v2 = vmul.f32 %v17164_v60, %v17163_v12  ;;  %v13134_v35 = vpop.eup %13133  ;;  %v4744_v1 = vadd.f32 1.0, %v13132_v13  ;;  %v4693_v62 = vmul.f32 0.7978846, %v4661_v10  ;;  %v4658_v19 = vadd.f32 %v4626_v53, %v17161_v45 }
 0xc9d   :  { %v4631_v56 = vmul.f32 %v15115_v20, %v15059_v39  ;;  %v13136_v33 = vpop.eup %13135  ;;  %4943 = vmatmul.mubr.f32.gmra.mrb[90].mxu1 %v4774_v8  ;;  %v4747_v40 = vadd.f32 1.0, %v13134_v35  ;;  %v4527_v9 = vmul.f32 0.5, %v14996_v24  ;;  %13149 = vtanh.f32 %v4691_v34 }
 0xc9e   :  { %v4660_v63 = vadd.f32 %v4628_v2, %v17163_v12  ;;  %v13138_v43 = vpop.eup %13137  ;;  %v4776_v26 = vmul.f32 %v4744_v1, %v4520_v25  ;;  %v4749_v27 = vadd.f32 1.0, %v13136_v33  ;;  %13151 = vtanh.f32 %v4693_v62 }
 0xc9f   :  { %v4690_v7 = vmul.f32 0.7978846, %v4658_v19  ;;  %v13140_v32 = vpop.eup %13139  ;;  %v4779_v16 = vmul.f32 %v4747_v40, %v4523_v6  ;;  %v4746_v3 = vadd.f32 1.0, %v13138_v43  ;;  %v4663_v4 = vadd.f32 %v4631_v56, %v15059_v39 }
 0xca0   :  { %v4692_v18 = vmul.f32 0.7978846, %v4660_v63  ;;  %v13142_v20 = vpop.eup %13141  ;;  %5048 = vmatmul.mubr.f32.gmra.mrb[82].mxu0 %v4776_v26  ;;  %v4781_v14 = vmul.f32 %v4749_v27, %v4525_v54  ;;  %v4748_v51 = vadd.f32 1.0, %v13140_v32  ;;  %v4633_v24 = vmul.f32 %v15126_v38, %v15062_v21 }
 0xca1   :  { %13153 = vtanh.f32 %v4690_v7  ;;  %4947 = vmatprep.mubr.f32.mxu1 %v4779_v16  ;;  %v4778_v10 = vmul.f32 %v4746_v3, %v4522_v47  ;;  %v4751_v25 = vadd.f32 1.0, %v13142_v20  ;;  %v4695_v17 = vmul.f32 0.7978846, %v4663_v4 }
 0xca2   :  { %13155 = vtanh.f32 %v4692_v18  ;;  %5052 = vmatprep.mubr.f32.mxu0 %v4781_v14  ;;  %v4780_v6 = vmul.f32 %v4748_v51, %v4524_v11  ;;  %v4529_v13 = vmul.f32 0.5, %v15001_v42  ;;  %v4665_v8 = vadd.f32 %v4633_v24, %v15062_v21 }
 0xca3   :  { %v13144_v53 = vpop.eup %13143  ;;  %v4630_v54 = vmul.f32 %v15108_v15, %v15041_v59  ;;  %4948 = vmatmul.mubr.f32.gmra.mrb[92].mxu1 %v4778_v10  ;;  %v4783_v60 = vmul.f32 %v4751_v25, %v4527_v9  ;;  %v4526_v38 = vmul.f32 0.5, %v14985_v36  ;;  %13157 = vtanh.f32 %v4695_v17 }
 0xca4   :  { %v13146_v34 = vpop.eup %13145  ;;  %v4753_v2 = vadd.f32 1.0, %v13144_v53  ;;  %5053 = vmatmul.mubr.f32.gmra.mrb[84].mxu0 %v4780_v6  ;;  %v4697_v1 = vmul.f32 0.7978846, %v4665_v8  ;;  %v4632_v42 = vmul.f32 %v15111_v55, %v15056_v37  ;;  %v4528_v15 = vmul.f32 0.5, %v14991_v49 }
 0xca5   :  { %v13148_v47 = vpop.eup %13147  ;;  %v4750_v35 = vadd.f32 1.0, %v13146_v34  ;;  %v4662_v11 = vadd.f32 %v4630_v54, %v15041_v59  ;;  %4952 = vmatprep.mubr.f32.mxu1 %v4783_v60  ;;  %v4635_v56 = vmul.f32 %v15135_v44, %v15082_v29  ;;  %v4531_v43 = vmul.f32 0.5, %v15028_v0 }
 0xca6   :  { %v4785_v62 = vmul.f32 %v4753_v2, %v4529_v13  ;;  %v4752_v19 = vadd.f32 1.0, %v13148_v47  ;;  %13159 = vtanh.f32 %v4697_v1  ;;  %v4664_v40 = vadd.f32 %v4632_v42, %v15056_v37 }
 0xca7   :  { %v4782_v33 = vmul.f32 %v4750_v35, %v4526_v38  ;;  %v4694_v36 = vmul.f32 0.7978846, %v4662_v11  ;;  %v13150_v9 = vpop.eup %13149  ;;  %v4667_v55 = vadd.f32 %v4635_v56, %v15082_v29  ;;  %v4637_v26 = vmul.f32 %v15138_v22, %v15085_v52  ;;  %v17165_v22 = vld [vmem:[#allocation32_spill] sm:$0xff] }
 0xca8   :  { %5057 = vmatprep.mubr.f32.mxu0 %v4785_v62  ;;  %v4784_v63 = vmul.f32 %v4752_v19, %v4528_v15  ;;  %v13152_v49 = vpop.eup %13151  ;;  %v4755_v27 = vadd.f32 1.0, %v13150_v9  ;;  %v4533_v44 = vmul.f32 0.5, %v17159_v58  ;;  %v4696_v7 = vmul.f32 0.7978846, %v4664_v40 }
 0xca9   :  { %4953 = vmatmul.mubr.f32.gmra.mrb[94].mxu1 %v4782_v33  ;;  %13161 = vtanh.f32 %v4694_v36  ;;  %v4757_v32 = vadd.f32 1.0, %v13152_v49  ;;  %v4699_v16 = vmul.f32 0.7978846, %v4667_v55  ;;  %v4669_v3 = vadd.f32 %v4637_v26, %v15085_v52 }
 0xcaa   :  { %5058 = vmatmul.mubr.f32.gmra.mrb[86].mxu0 %v4784_v63  ;;  %v4634_v0 = vmul.f32 %v15129_v50, %v15075_v48  ;;  %v4787_v4 = vmul.f32 %v4755_v27, %v4531_v43  ;;  %v4530_v20 = vmul.f32 0.5, %v17161_v45  ;;  %13163 = vtanh.f32 %v4696_v7 }
 0xcab   :  { %v13154_v18 = vpop.eup %13153  ;;  %v4636_v14 = vmul.f32 %v17165_v22, %v15078_v23  ;;  %v4789_v58 = vmul.f32 %v4757_v32, %v4533_v44  ;;  %13165 = vtanh.f32 %v4699_v16  ;;  %v4701_v10 = vmul.f32 0.7978846, %v4669_v3 }
 0xcac   :  { %v13156_v51 = vpop.eup %13155  ;;  %v4754_v24 = vadd.f32 1.0, %v13154_v18  ;;  %4957 = vmatprep.mubr.f32.mxu1 %v4787_v4  ;;  %v4532_v25 = vmul.f32 0.5, %v17163_v12  ;;  %v4666_v53 = vadd.f32 %v4634_v0, %v15075_v48  ;;  %v4535_v13 = vmul.f32 0.5, %v15059_v39 }
 0xcad   :  { %v4756_v17 = vadd.f32 1.0, %v13156_v51  ;;  %v4668_v50 = vadd.f32 %v4636_v14, %v15078_v23  ;;  %v13158_v6 = vpop.eup %13157  ;;  %5062 = vmatprep.mubr.f32.mxu0 %v4789_v58  ;;  %13167 = vtanh.f32 %v4701_v10  ;;  %v4639_v8 = vmul.f32 %v15174_v61, %v15118_v30 }
 0xcae   :  { %v4786_v45 = vmul.f32 %v4754_v24, %v4530_v20  ;;  %v4759_v34 = vadd.f32 1.0, %v13158_v6  ;;  %v4698_v60 = vmul.f32 0.7978846, %v4666_v53  ;;  %v4641_v38 = vmul.f32 %v15178_v31, %v15121_v28 }
 0xcaf   :  { %v4788_v54 = vmul.f32 %v4756_v17, %v4532_v25  ;;  %v4700_v2 = vmul.f32 0.7978846, %v4668_v50  ;;  %v4671_v12 = vadd.f32 %v4639_v8, %v15118_v30  ;;  %v4638_v47 = vmul.f32 %v15156_v41, %v15101_v57 }
 0xcb0   :  { %4958 = vmatmul.mubr.f32.gmra.mrb[96].mxu1 %v4786_v45  ;;  %v13160_v35 = vpop.eup %13159  ;;  %v4791_v39 = vmul.f32 %v4759_v34, %v4535_v13  ;;  %v4537_v1 = vmul.f32 0.5, %v15062_v21  ;;  %13169 = vtanh.f32 %v4698_v60  ;;  %v4640_v61 = vmul.f32 %v15162_v46, %v15104_v5 }
 0xcb1   :  { %5063 = vmatmul.mubr.f32.gmra.mrb[88].mxu0 %v4788_v54  ;;  %v4761_v11 = vadd.f32 1.0, %v13160_v35  ;;  %13171 = vtanh.f32 %v4700_v2  ;;  %v4703_v42 = vmul.f32 0.7978846, %v4671_v12  ;;  %v4673_v62 = vadd.f32 %v4641_v38, %v15121_v28  ;;  %v17166_v38 = vld [vmem:[#allocation18_spill] sm:$0xff] }
 0xcb2   :  { %4962 = vmatprep.mubr.f32.mxu1 %v4791_v39  ;;  %v4534_v31 = vmul.f32 0.5, %v15041_v59  ;;  %v4670_v41 = vadd.f32 %v4638_v47, %v15101_v57  ;;  %v4672_v19 = vadd.f32 %v4640_v61, %v15104_v5  ;;  %v4536_v43 = vmul.f32 0.5, %v15056_v37 }
 0xcb3   :  { %v13162_v15 = vpop.eup %13161  ;;  %v4793_v56 = vmul.f32 %v4761_v11, %v4537_v1  ;;  %13173 = vtanh.f32 %v4703_v42  ;;  %v4705_v21 = vmul.f32 0.7978846, %v4673_v62  ;;  %v4539_v59 = vmul.f32 0.5, %v15082_v29 }
 0xcb4   :  { %v4758_v33 = vadd.f32 1.0, %v13162_v15  ;;  %v13164_v36 = vpop.eup %13163  ;;  %v4702_v40 = vmul.f32 0.7978846, %v4670_v41  ;;  %v4704_v46 = vmul.f32 0.7978846, %v4672_v19  ;;  %v4541_v7 = vmul.f32 0.5, %v15085_v52 }
 0xcb5   :  { %v13166_v9 = vpop.eup %13165  ;;  %5067 = vmatprep.mubr.f32.mxu0 %v4793_v56  ;;  %v4760_v55 = vadd.f32 1.0, %v13164_v36  ;;  %13175 = vtanh.f32 %v4705_v21  ;;  %v4538_v37 = vmul.f32 0.5, %v15075_v48  ;;  %v4540_v29 = vmul.f32 0.5, %v15078_v23  ;;  %v17167_v36 = vld [vmem:[#allocation19_spill] sm:$0xff] }
 0xcb6   :  { %v4790_v63 = vmul.f32 %v4758_v33, %v4534_v31  ;;  %v4763_v26 = vadd.f32 1.0, %v13166_v9  ;;  %13177 = vtanh.f32 %v4702_v40  ;;  %v4543_v51 = vmul.f32 0.5, %v15118_v30 }
 0xcb7   :  { %v13168_v49 = vpop.eup %13167  ;;  %v4792_v27 = vmul.f32 %v4760_v55, %v4536_v43  ;;  %13179 = vtanh.f32 %v4704_v46  ;;  %v4545_v25 = vmul.f32 0.5, %v15121_v28  ;;  %v4542_v53 = vmul.f32 0.5, %v15101_v57  ;;  %v15267_v28 = vld [vmem:[%s17079_s13] ss:$0 sm:$0xff] }
 0xcb8   :  { %4963 = vmatmul.mubr.f32.gmra.mrb[98].mxu1 %v4790_v63  ;;  %v4795_v44 = vmul.f32 %v4763_v26, %v4539_v59  ;;  %v4765_v32 = vadd.f32 1.0, %v13168_v49  ;;  %v4544_v6 = vmul.f32 0.5, %v15104_v5 }
 0xcb9   :  { %5068 = vmatmul.mubr.f32.gmra.mrb[90].mxu0 %v4792_v27  ;;  %v17168_v27 = vld [vmem:[#allocation20_spill] sm:$0xff] }
 0xcba   :  { %v13170_v16 = vpop.eup %13169  ;;  %4967 = vmatprep.mubr.f32.mxu1 %v4795_v44  ;;  %v4797_v3 = vmul.f32 %v4765_v32, %v4541_v7 }
 0xcbb   :  { %v13172_v0 = vpop.eup %13171  ;;  %v4762_v18 = vadd.f32 1.0, %v13170_v16 }
 0xcbc   :  { %5072 = vmatprep.mubr.f32.mxu0 %v4797_v3  ;;  %v4764_v4 = vadd.f32 1.0, %v13172_v0 }
 0xcbd   :  { %v13174_v20 = vpop.eup %13173  ;;  %v4794_v22 = vmul.f32 %v4762_v18, %v4538_v37  ;;  %v17169_v37 = vld [vmem:[#allocation21_spill] sm:$0xff] }
 0xcbe   :  { %v4796_v14 = vmul.f32 %v4764_v4, %v4540_v29  ;;  %v4767_v58 = vadd.f32 1.0, %v13174_v20 }
 0xcbf   :  { %v13176_v52 = vpop.eup %13175  ;;  %4968 = vmatmul.mubr.f32.gmra.mrb[100].mxu1 %v4794_v22 }
 0xcc0   :  { %v13178_v24 = vpop.eup %13177  ;;  %5073 = vmatmul.mubr.f32.gmra.mrb[92].mxu0 %v4796_v14  ;;  %v4799_v10 = vmul.f32 %v4767_v58, %v4543_v51  ;;  %v4769_v17 = vadd.f32 1.0, %v13176_v52  ;;  %v17170_v58 = vld [vmem:[#allocation22_spill] sm:$0xff] }
 0xcc1   :  { %v13180_v48 = vpop.eup %13179  ;;  %v4766_v50 = vadd.f32 1.0, %v13178_v24 }
 0xcc2   :  { %4972 = vmatprep.mubr.f32.mxu1 %v4799_v10  ;;  %v4801_v23 = vmul.f32 %v4769_v17, %v4545_v25  ;;  %v4768_v45 = vadd.f32 1.0, %v13180_v48 }
 0xcc3   :  { %v4798_v13 = vmul.f32 %v4766_v50, %v4542_v53 }
 0xcc4   :  { %5077 = vmatprep.mubr.f32.mxu0 %v4801_v23  ;;  %v4800_v30 = vmul.f32 %v4768_v45, %v4544_v6  ;;  %v17171_v6 = vld [vmem:[#allocation23_spill] sm:$0xff] }
 0xcc5   :  { %4973 = vmatmul.mubr.f32.gmra.mrb[102].mxu1 %v4798_v13 }
 0xcc6   :  { %5078 = vmatmul.mubr.f32.gmra.mrb[94].mxu0 %v4800_v30 }
 0xd61   :  { %v10823_v8 = vpop.f32.mrb[88].mxu1 }
 0xd62   :  { %v10824_v54 = vpop.f32.mrb[89].mxu1 }
 0xd63   :  { %v10825_v34 = vadd.f32 %v10824_v54, %v10823_v8 }
 0xd65   :  { %v10879_v57 = vpop.f32.mrb[80].mxu0  ;;  %v4940_v60 = vadd.f32 %v10825_v34, %v15267_v28 }
 0xd66   :  { %v10880_v2 = vpop.f32.mrb[81].mxu0 }
 0xd67   :  { %v10881_v12 = vadd.f32 %v10880_v2, %v10879_v57 }
 0xd69   :  { %v5045_v5 = vadd.f32 %v10881_v12, %v4940_v60 }
 0xd6b   :  { %v15271_v47 = vadd.f32 %v5045_v5, %v17166_v38 }
 0xd6d   :  { %5094 = vadd.xlane.f32.xlu1 %v15271_v47 }
 0xd70   :  { %v10826_v35 = vpop.f32.mrb[90].mxu1 }
 0xd71   :  { %v10827_v39 = vpop.f32.mrb[91].mxu1 }
 0xd72   :  { %v10828_v1 = vadd.f32 %v10827_v39, %v10826_v35  ;;  %v17172_v39 = vld [vmem:[#allocation24_spill] sm:$0xff] }
 0xd73   :  { %v10882_v61 = vpop.f32.mrb[82].mxu0 }
 0xd74   :  { %v4945_v11 = vadd.f32 %v10828_v1, %v15267_v28  ;;  %v10883_v42 = vpop.f32.mrb[83].mxu0 }
 0xd75   :  { %v10884_v62 = vadd.f32 %v10883_v42, %v10882_v61 }
 0xd76   :  { %v10829_v15 = vpop.f32.mrb[92].mxu1 }
 0xd77   :  { %v5050_v31 = vadd.f32 %v10884_v62, %v4945_v11  ;;  %v10885_v41 = vpop.f32.mrb[84].mxu0  ;;  %v10830_v19 = vpop.f32.mrb[93].mxu1  ;;  %v17173_v62 = vld [vmem:[#allocation25_spill] sm:$0xff] }
 0xd78   :  { %v10831_v56 = vadd.f32 %v10830_v19, %v10829_v15  ;;  %v10886_v33 = vpop.f32.mrb[85].mxu0 }
 0xd79   :  { %v10887_v21 = vadd.f32 %v10886_v33, %v10885_v41  ;;  %v15276_v40 = vadd.f32 %v5050_v31, %v17167_v36  ;;  %v10198_v31 = vld [vmem:[%s17071_s5 + $0x300] sm:$0xff]  ;;  %v10199_v41 = vld [vmem:[%s17071_s5 + $0x308] sm:$0xff]  ;;  %v10200_v33 = vld [vmem:[%s17071_s5 + $0x310] sm:$0xff] }
 0xd7a   :  { %v4950_v46 = vadd.f32 %v10831_v56, %v15267_v28  ;;  %v12643_v19 = vpack.c.bf16 %v10199_v41, %v10198_v31  ;;  %v10217_v56 = vld [vmem:[%s17071_s5 + $0x408] sm:$0xff]  ;;  %v10226_v41 = vld [vmem:[%s17071_s5 + $0x450] sm:$0xff] }
 0xd7b   :  { %5096 = vadd.xlane.f32.xlu0 %v15276_v40 }
 0xd7c   :  { %v10832_v9 = vpop.f32.mrb[94].mxu1  ;;  %v5055_v63 = vadd.f32 %v10887_v21, %v4950_v46  ;;  %v10201_v21 = vld [vmem:[%s17071_s5 + $0x318] sm:$0xff]  ;;  %12644 = vmatprep.subr.bf16.mxu1 %v12643_v19 }
 0xd7d   :  { %v10888_v43 = vpop.f32.mrb[86].mxu0  ;;  %v10833_v55 = vpop.f32.mrb[95].mxu1  ;;  %v12647_v46 = vpack.c.bf16 %v10201_v21, %v10200_v33  ;;  %12646 = vmatpush3.bf16.msra.mxu1 %v12643_v19  ;;  %v10211_v33 = vld [vmem:[%s17071_s5 + $0x368] sm:$0xff] }
 0xd7e   :  { %v10834_v59 = vadd.f32 %v10833_v55, %v10832_v9  ;;  %v10889_v26 = vpop.f32.mrb[87].mxu0  ;;  %v15281_v44 = vadd.f32 %v5055_v63, %v17168_v27  ;;  %v10218_v9 = vld [vmem:[%s17071_s5 + $0x410] sm:$0xff]  ;;  %v10219_v63 = vld [vmem:[%s17071_s5 + $0x418] sm:$0xff] }
 0xd7f   :  { %v10890_v49 = vadd.f32 %v10889_v26, %v10888_v43  ;;  %v12679_v43 = vpack.c.bf16 %v10219_v63, %v10218_v9  ;;  %12648 = vmatprep.subr.bf16.mxu1 %v12647_v46  ;;  %v10212_v63 = vld [vmem:[%s17071_s5 + $0x370] sm:$0xff] }
 0xd80   :  { %v4955_v7 = vadd.f32 %v10834_v59, %v15267_v28  ;;  %5098 = vadd.xlane.f32.xlu1 %v15281_v44 }
 0xd81   :  { %12650 = vmatpush3.bf16.msra.mxu1 %v12647_v46  ;;  %v10229_v46 = vld [vmem:[%s17071_s5 + $0x468] sm:$0xff] }
 0xd82   :  { %v5060_v32 = vadd.f32 %v10890_v49, %v4955_v7 }
 0xd83   :  { %v10835_v16 = vpop.f32.mrb[96].mxu1 }
 0xd84   :  { %v10891_v3 = vpop.f32.mrb[88].mxu0  ;;  %v10836_v0 = vpop.f32.mrb[97].mxu1  ;;  %v15286_v18 = vadd.f32 %v5060_v32, %v17169_v37 }
 0xd85   :  { %v10837_v29 = vadd.f32 %v10836_v0, %v10835_v16  ;;  %v10892_v4 = vpop.f32.mrb[89].mxu0 }
 0xd86   :  { %v10893_v20 = vadd.f32 %v10892_v4, %v10891_v3  ;;  %5100 = vadd.xlane.f32.xlu0 %v15286_v18 }
 0xd87   :  { %v4960_v22 = vadd.f32 %v10837_v29, %v15267_v28 }
 0xd89   :  { %v5065_v14 = vadd.f32 %v10893_v20, %v4960_v22 }
 0xd8b   :  { %v10838_v51 = vpop.f32.mrb[98].mxu1  ;;  %v15291_v52 = vadd.f32 %v5065_v14, %v17170_v58 }
 0xd8c   :  { %v10839_v24 = vpop.f32.mrb[99].mxu1  ;;  %v10894_v10 = vpop.f32.mrb[90].mxu0 }
 0xd8d   :  { %v10840_v25 = vadd.f32 %v10839_v24, %v10838_v51  ;;  %5102 = vadd.xlane.f32.xlu1 %v15291_v52  ;;  %v10895_v17 = vpop.f32.mrb[91].mxu0 }
 0xd8e   :  { %v10896_v53 = vadd.f32 %v10895_v17, %v10894_v10  ;;  %v10203_v10 = vld [vmem:[%s17071_s5 + $0x328] sm:$0xff] }
 0xd8f   :  { %v4965_v48 = vadd.f32 %v10840_v25, %v15267_v28  ;;  %v10220_v25 = vld [vmem:[%s17071_s5 + $0x420] sm:$0xff]  ;;  %v10221_v17 = vld [vmem:[%s17071_s5 + $0x428] sm:$0xff] }
 0xd91   :  { %v5070_v50 = vadd.f32 %v10896_v53, %v4965_v48  ;;  %v12683_v53 = vpack.c.bf16 %v10221_v17, %v10220_v25 }
 0xd92   :  { %v10841_v23 = vpop.f32.mrb[100].mxu1 }
 0xd93   :  { %v15296_v45 = vadd.f32 %v5070_v50, %v17171_v6  ;;  %v10897_v13 = vpop.f32.mrb[92].mxu0  ;;  %v10842_v30 = vpop.f32.mrb[101].mxu1 }
 0xd94   :  { %v10843_v8 = vadd.f32 %v10842_v30, %v10841_v23  ;;  %v10898_v54 = vpop.f32.mrb[93].mxu0 }
 0xd95   :  { %5104 = vadd.xlane.f32.xlu0 %v15296_v45  ;;  %v10899_v34 = vadd.f32 %v10898_v54, %v10897_v13  ;;  %v10205_v54 = vld [vmem:[%s17071_s5 + $0x338] sm:$0xff] }
 0xd96   :  { %v4970_v57 = vadd.f32 %v10843_v8, %v15267_v28 }
 0xd98   :  { %v5075_v60 = vadd.f32 %v10899_v34, %v4970_v57  ;;  %v10844_v2 = vpop.f32.mrb[102].mxu1 }
 0xd99   :  { %v10900_v12 = vpop.f32.mrb[94].mxu0  ;;  %v10845_v5 = vpop.f32.mrb[103].mxu1 }
 0xd9a   :  { %v10846_v38 = vadd.f32 %v10845_v5, %v10844_v2  ;;  %v10901_v35 = vpop.f32.mrb[95].mxu0  ;;  %v15301_v1 = vadd.f32 %v5075_v60, %v17172_v39  ;;  %v10222_v60 = vld [vmem:[%s17071_s5 + $0x430] sm:$0xff]  ;;  %v10223_v2 = vld [vmem:[%s17071_s5 + $0x438] sm:$0xff] }
 0xd9b   :  { %v10902_v61 = vadd.f32 %v10901_v35, %v10900_v12  ;;  %v12687_v12 = vpack.c.bf16 %v10223_v2, %v10222_v60  ;;  %v10207_v35 = vld [vmem:[%s17071_s5 + $0x348] sm:$0xff] }
 0xd9c   :  { %v4975_v11 = vadd.f32 %v10846_v38, %v15267_v28  ;;  %5106 = vadd.xlane.f32.xlu1 %v15301_v1  ;;  %v10216_v28 = vld [vmem:[%s17071_s5 + $0x400] sm:$0xff] }
 0xd9d   :  { %v12675_v36 = vpack.c.bf16 %v10217_v56, %v10216_v28  ;;  %v10206_v38 = vld [vmem:[%s17071_s5 + $0x340] sm:$0xff]  ;;  %v10227_v28 = vld [vmem:[%s17071_s5 + $0x458] sm:$0xff] }
 0xd9e   :  { %v5080_v42 = vadd.f32 %v10902_v61, %v4975_v11  ;;  %v10224_v61 = vld [vmem:[%s17071_s5 + $0x440] sm:$0xff]  ;;  %v10225_v11 = vld [vmem:[%s17071_s5 + $0x448] sm:$0xff]  ;;  %v12695_v19 = vpack.c.bf16 %v10227_v28, %v10226_v41  ;;  %v10241_v41 = vld [vmem:[%s17071_s5 + $0x538] sm:$0xff] }
 0xd9f   :  { %12676 = vmatprep.subr.bf16.mxu0 %v12675_v36  ;;  %v10210_v56 = vld [vmem:[%s17071_s5 + $0x360] sm:$0xff] }
 0xda0   :  { %v15306_v15 = vadd.f32 %v5080_v42, %v17173_v62  ;;  %12678 = vmatpush3.bf16.msra.mxu0 %v12675_v36  ;;  %v12691_v42 = vpack.c.bf16 %v10225_v11, %v10224_v61  ;;  %v10208_v62 = vld [vmem:[%s17071_s5 + $0x350] sm:$0xff]  ;;  %v12667_v21 = vpack.c.bf16 %v10211_v33, %v10210_v56  ;;  %v10228_v36 = vld [vmem:[%s17071_s5 + $0x460] sm:$0xff] }
 0xda1   :  { %12680 = vmatprep.subr.bf16.mxu0 %v12679_v43  ;;  %v12699_v9 = vpack.c.bf16 %v10229_v46, %v10228_v36  ;;  %v10242_v33 = vld [vmem:[%s17071_s5 + $0x540] sm:$0xff] }
 0xda2   :  { %5108 = vadd.xlane.f32.xlu0 %v15306_v15 }
 0xda4   :  { %12682 = vmatpush3.bf16.msra.mxu0 %v12679_v43  ;;  %v10213_v43 = vld [vmem:[%s17071_s5 + $0x378] sm:$0xff] }
 0xda5   :  { %12684 = vmatprep.subr.bf16.mxu0 %v12683_v53 }
 0xda8   :  { %12686 = vmatpush3.bf16.msra.mxu0 %v12683_v53 }
 0xda9   :  { %12688 = vmatprep.subr.bf16.mxu0 %v12687_v12 }
 0xdac   :  { %12690 = vmatpush3.bf16.msra.mxu0 %v12687_v12 }
 0xdad   :  { %12692 = vmatprep.subr.bf16.mxu0 %v12691_v42 }
 0xdb0   :  { %12694 = vmatpush3.bf16.msra.mxu0 %v12691_v42 }
 0xdb1   :  { %12696 = vmatprep.subr.bf16.mxu0 %v12695_v19 }
 0xdb4   :  { %12698 = vmatpush3.bf16.msra.mxu0 %v12695_v19 }
 0xdb5   :  { %12700 = vmatprep.subr.bf16.mxu0 %v12699_v9 }
 0xdb8   :  { %12702 = vmatpush3.bf16.msra.mxu0 %v12699_v9 }
 0xdfa   :  { %v5095_v55 = vpop.xlane.xlu1 %5094 }
 0xdfb   :  { %v5110_v59 = vmul.f32 0.0078125, %v5095_v55  ;;  %v12671_v55 = vpack.c.bf16 %v10213_v43, %v10212_v63 }
 0xdfd   :  { %v15334_v26 = vsub.f32 %v15271_v47, %v5110_v59  ;;  %v10230_v59 = vld [vmem:[%s17071_s5 + $0x470] sm:$0xff] }
 0xdff   :  { %v5126_v49 = vmul.f32 %v15334_v26, %v15334_v26 }
 0xe01   :  { %5134 = vadd.xlane.f32.xlu1 %v5126_v49  ;;  %v10231_v49 = vld [vmem:[%s17071_s5 + $0x478] sm:$0xff] }
 0xe08   :  { %v5097_v27 = vpop.xlane.xlu0 %5096 }
 0xe09   :  { %v5111_v7 = vmul.f32 0.0078125, %v5097_v27  ;;  %v12703_v27 = vpack.c.bf16 %v10231_v49, %v10230_v59  ;;  %v10244_v59 = vld [vmem:[%s17071_s5 + $0x550] sm:$0xff]  ;;  %v10245_v49 = vld [vmem:[%s17071_s5 + $0x558] sm:$0xff] }
 0xe0b   :  { %v15339_v32 = vsub.f32 %v15276_v40, %v5111_v7  ;;  %12704 = vmatprep.subr.bf16.mxu0 %v12703_v27  ;;  %v10234_v7 = vld [vmem:[%s17071_s5 + $0x500] sm:$0xff] }
 0xe0c   :  { %12706 = vmatpush3.bf16.msra.mxu0 %v12703_v27 }
 0xe0d   :  { %v5099_v16 = vpop.xlane.xlu1 %5098  ;;  %v5127_v3 = vmul.f32 %v15339_v32, %v15339_v32 }
 0xe0e   :  { %v5112_v0 = vmul.f32 0.0078125, %v5099_v16  ;;  %v10235_v16 = vld [vmem:[%s17071_s5 + $0x508] sm:$0xff] }
 0xe0f   :  { %5136 = vadd.xlane.f32.xlu0 %v5127_v3  ;;  %v12707_v3 = vpack.c.bf16 %v10235_v16, %v10234_v7 }
 0xe10   :  { %v15344_v37 = vsub.f32 %v15281_v44, %v5112_v0  ;;  %v17174_v0 = vmov 0.0  }
 0xe11   :  { %11911 = vmatprep.subr.mxu0 %v17174_v0 }
 0xe12   :  { %v5128_v29 = vmul.f32 %v15344_v37, %v15344_v37 }
 0xe13   :  { %v5101_v47 = vpop.xlane.xlu0 %5100 }
 0xe14   :  { %v5113_v4 = vmul.f32 0.0078125, %v5101_v47  ;;  %5138 = vadd.xlane.f32.xlu1 %v5128_v29 }
 0xe16   :  { %v15349_v20 = vsub.f32 %v15286_v18, %v5113_v4  ;;  %v10202_v18 = vld [vmem:[%s17071_s5 + $0x320] sm:$0xff] }
 0xe18   :  { %v5129_v40 = vmul.f32 %v15349_v20, %v15349_v20 }
 0xe1a   :  { %v5103_v22 = vpop.xlane.xlu1 %5102  ;;  %5140 = vadd.xlane.f32.xlu0 %v5129_v40 }
 0xe1b   :  { %v5114_v14 = vmul.f32 0.0078125, %v5103_v22 }
 0xe1d   :  { %v15354_v51 = vsub.f32 %v15291_v52, %v5114_v14  ;;  %v12651_v52 = vpack.c.bf16 %v10203_v10, %v10202_v18  ;;  %v15455_v14 = vld [vmem:[%s17080_s14] ss:$0 sm:$0xff] }
 0xe1f   :  { %v5130_v44 = vmul.f32 %v15354_v51, %v15354_v51  ;;  %12652 = vmatprep.subr.bf16.mxu1 %v12651_v52 }
 0xe20   :  { %12654 = vmatpush3.bf16.msra.mxu1 %v12651_v52 }
 0xe21   :  { %5142 = vadd.xlane.f32.xlu1 %v5130_v44 }
 0xe22   :  { %v5105_v58 = vpop.xlane.xlu0 %5104 }
 0xe23   :  { %v5115_v24 = vmul.f32 0.0078125, %v5105_v58 }
 0xe25   :  { %v15371_v48 = vsub.f32 %v15296_v45, %v5115_v24  ;;  %v10204_v45 = vld [vmem:[%s17071_s5 + $0x330] sm:$0xff]  ;;  %v15461_v24 = vld [vmem:[%s17080_s14 + $0x1] ss:$0 sm:$0xff] }
 0xe26   :  { %v12655_v57 = vpack.c.bf16 %v10205_v54, %v10204_v45  ;;  %v10236_v45 = vld [vmem:[%s17071_s5 + $0x510] sm:$0xff]  ;;  %v10237_v54 = vld [vmem:[%s17071_s5 + $0x518] sm:$0xff] }
 0xe27   :  { %v5131_v50 = vmul.f32 %v15371_v48, %v15371_v48 }
 0xe28   :  { %12656 = vmatprep.subr.bf16.mxu1 %v12655_v57 }
 0xe29   :  { %5144 = vadd.xlane.f32.xlu0 %v5131_v50  ;;  %v5107_v23 = vpop.xlane.xlu1 %5106  ;;  %12658 = vmatpush3.bf16.msra.mxu1 %v12655_v57 }
 0xe2a   :  { %v5116_v6 = vmul.f32 0.0078125, %v5107_v23 }
 0xe2c   :  { %v15376_v13 = vsub.f32 %v15301_v1, %v5116_v6  ;;  %v12659_v1 = vpack.c.bf16 %v10207_v35, %v10206_v38  ;;  %v12711_v38 = vpack.c.bf16 %v10237_v54, %v10236_v45  ;;  %v10238_v35 = vld [vmem:[%s17071_s5 + $0x520] sm:$0xff] }
 0xe2e   :  { %v5132_v30 = vmul.f32 %v15376_v13, %v15376_v13  ;;  %12660 = vmatprep.subr.bf16.mxu1 %v12659_v1 }
 0xe2f   :  { %v5109_v8 = vpop.xlane.xlu0 %5108  ;;  %12662 = vmatpush3.bf16.msra.mxu1 %v12659_v1 }
 0xe30   :  { %v5117_v34 = vmul.f32 0.0078125, %v5109_v8  ;;  %5146 = vadd.xlane.f32.xlu1 %v5132_v30 }
 0xe32   :  { %v15393_v5 = vsub.f32 %v15306_v15, %v5117_v34  ;;  %v10209_v15 = vld [vmem:[%s17071_s5 + $0x358] sm:$0xff] }
 0xe33   :  { %v12663_v31 = vpack.c.bf16 %v10209_v15, %v10208_v62 }
 0xe34   :  { %v5133_v39 = vmul.f32 %v15393_v5, %v15393_v5 }
 0xe35   :  { %12664 = vmatprep.subr.bf16.mxu1 %v12663_v31 }
 0xe36   :  { %5148 = vadd.xlane.f32.xlu0 %v5133_v39  ;;  %12666 = vmatpush3.bf16.msra.mxu1 %v12663_v31  ;;  %v10239_v39 = vld [vmem:[%s17071_s5 + $0x528] sm:$0xff]  ;;  %v10240_v31 = vld [vmem:[%s17071_s5 + $0x530] sm:$0xff] }
 0xe37   :  { %12668 = vmatprep.subr.bf16.mxu1 %v12667_v21  ;;  %v12715_v42 = vpack.c.bf16 %v10239_v39, %v10238_v35  ;;  %v12719_v56 = vpack.c.bf16 %v10241_v41, %v10240_v31 }
 0xe3a   :  { %12670 = vmatpush3.bf16.msra.mxu1 %v12667_v21  ;;  %v10243_v21 = vld [vmem:[%s17071_s5 + $0x548] sm:$0xff] }
 0xe3b   :  { %12672 = vmatprep.subr.bf16.mxu1 %v12671_v55  ;;  %v12723_v43 = vpack.c.bf16 %v10243_v21, %v10242_v33 }
 0xe3e   :  { %12674 = vmatpush3.bf16.msra.mxu1 %v12671_v55 }
 0xe3f   :  { %12708 = vmatprep.subr.bf16.mxu1 %v12707_v3 }
 0xe8e   :  { %v5135_v47 = vpop.xlane.xlu1 %5134 }
 0xe8f   :  { %v5150_v29 = vmul.f32 0.0078125, %v5135_v47  ;;  %v10247_v47 = vld [vmem:[%s17071_s5 + $0x568] sm:$0xff] }
 0xe91   :  { %v5158_v4 = vadd.f32 1e-12, %v5150_v29 }
 0xe93   :  { %13181 = vrsqrt.f32 %v5158_v4 }
 0xe9c   :  { %v5137_v40 = vpop.xlane.xlu0 %5136 }
 0xe9d   :  { %v13182_v22 = vpop.eup %13181  ;;  %v5151_v44 = vmul.f32 0.0078125, %v5137_v40 }
 0xe9e   :  { %v5174_v58 = vmul.f32 %v13182_v22, %v15334_v26 }
 0xe9f   :  { %v5159_v18 = vadd.f32 1e-12, %v5151_v44 }
 0xea0   :  { %v5188_v10 = vmul.f32 %v15455_v14, %v5174_v58 }
 0xea1   :  { %13183 = vrsqrt.f32 %v5159_v18  ;;  %v5139_v25 = vpop.xlane.xlu1 %5138  ;;  %v10248_v18 = vld [vmem:[%s17071_s5 + $0x570] sm:$0xff] }
 0xea2   :  { %v15465_v52 = vadd.f32 %v15461_v24, %v5188_v10  ;;  %v5152_v17 = vmul.f32 0.0078125, %v5139_v25  ;;  %v10249_v10 = vld [vmem:[%s17071_s5 + $0x578] sm:$0xff] }
 0xea4   :  { %v5160_v53 = vadd.f32 1e-12, %v5152_v17  ;;  %11811 = vmatprep.mubr.f32.mxu1 %v15465_v52  ;;  %11855 = vmatprep.mubr.f32.mxu0 %v15465_v52 }
 0xea6   :  { %13185 = vrsqrt.f32 %v5160_v53 }
 0xea7   :  { %v5141_v26 = vpop.xlane.xlu0 %5140 }
 0xea8   :  { %v5153_v50 = vmul.f32 0.0078125, %v5141_v26 }
 0xeaa   :  { %v5161_v23 = vadd.f32 1e-12, %v5153_v50 }
 0xeab   :  { %v13184_v6 = vpop.eup %13183 }
 0xeac   :  { %13187 = vrsqrt.f32 %v5161_v23  ;;  %v5175_v30 = vmul.f32 %v13184_v6, %v15339_v32 }
 0xeae   :  { %v5143_v8 = vpop.xlane.xlu1 %5142  ;;  %v5189_v34 = vmul.f32 %v15455_v14, %v5175_v30 }
 0xeaf   :  { %v5154_v57 = vmul.f32 0.0078125, %v5143_v8  ;;  %v10215_v8 = vld [vmem:[%s17072_s6 + $0x6] ss:$0 sm:$0xff] }
 0xeb0   :  { %v13186_v60 = vpop.eup %13185  ;;  %v15478_v2 = vadd.f32 %v15461_v24, %v5189_v34 }
 0xeb1   :  { %v5162_v12 = vadd.f32 1e-12, %v5154_v57  ;;  %v5176_v32 = vmul.f32 %v13186_v60, %v15344_v37 }
 0xeb2   :  { %11812 = vmatmul.mubr.f32.vlgmr.msra.gmra.mrb[104].mxu1 %v15478_v2  ;;  %11856 = vmatmul.mubr.f32.vlgmr.msra.gmra.mrb[96].mxu0 %v15478_v2 }
 0xeb3   :  { %13189 = vrsqrt.f32 %v5162_v12  ;;  %v5190_v1 = vmul.f32 %v15455_v14, %v5176_v32  ;;  %12710 = vmatpush3.bf16.msra.mxu1 %v12707_v3  ;;  %v10246_v3 = vld [vmem:[%s17071_s5 + $0x560] sm:$0xff] }
 0xeb4   :  { %12712 = vmatprep.subr.bf16.mxu1 %v12711_v38  ;;  %v12731_v44 = vpack.c.bf16 %v10247_v47, %v10246_v3 }
 0xeb5   :  { %v15491_v37 = vadd.f32 %v15461_v24, %v5190_v1 }
 0xeb6   :  { %v13188_v61 = vpop.eup %13187  ;;  %v5145_v11 = vpop.xlane.xlu0 %5144 }
 0xeb7   :  { %v5177_v62 = vmul.f32 %v13188_v61, %v15349_v20  ;;  %v5155_v15 = vmul.f32 0.0078125, %v5145_v11  ;;  %11814 = vmatprep.mubr.f32.mxu1 %v15491_v37  ;;  %11858 = vmatprep.mubr.f32.mxu0 %v15491_v37 }
 0xeb8   :  { %12714 = vmatpush3.bf16.msra.mxu1 %v12711_v38 }
 0xeb9   :  { %v5191_v28 = vmul.f32 %v15455_v14, %v5177_v62  ;;  %v5163_v19 = vadd.f32 1e-12, %v5155_v15  ;;  %12716 = vmatprep.subr.bf16.mxu1 %v12715_v42 }
 0xebb   :  { %v15504_v20 = vadd.f32 %v15461_v24, %v5191_v28  ;;  %13191 = vrsqrt.f32 %v5163_v19 }
 0xebc   :  { %12718 = vmatpush3.bf16.msra.mxu1 %v12715_v42 }
 0xebd   :  { %v13190_v36 = vpop.eup %13189  ;;  %11815 = vmatmul.mubr.f32.gmra.mrb[106].mxu1 %v15504_v20  ;;  %11859 = vmatmul.mubr.f32.gmra.mrb[98].mxu0 %v15504_v20  ;;  %v5147_v9 = vpop.xlane.xlu1 %5146 }
 0xebe   :  { %v5178_v46 = vmul.f32 %v13190_v36, %v15354_v51  ;;  %v5156_v63 = vmul.f32 0.0078125, %v5147_v9  ;;  %12720 = vmatprep.subr.bf16.mxu1 %v12719_v56  ;;  %v12727_v51 = vpack.c.bf16 %v10245_v49, %v10244_v59 }
 0xec0   :  { %v5192_v55 = vmul.f32 %v15455_v14, %v5178_v46  ;;  %v5164_v27 = vadd.f32 1e-12, %v5156_v63  ;;  %12722 = vmatpush3.bf16.msra.mxu1 %v12719_v56 }
 0xec1   :  { %12724 = vmatprep.subr.bf16.mxu1 %v12723_v43 }
 0xec2   :  { %v15523_v7 = vadd.f32 %v15461_v24, %v5192_v55  ;;  %13193 = vrsqrt.f32 %v5164_v27  ;;  %v10251_v55 = vld [vmem:[%s17072_s6 + $0xa] ss:$0 sm:$0xff] }
 0xec3   :  { %v5149_v16 = vpop.xlane.xlu0 %5148 }
 0xec4   :  { %11817 = vmatprep.mubr.f32.mxu1 %v15523_v7  ;;  %11861 = vmatprep.mubr.f32.mxu0 %v15523_v7  ;;  %v5157_v4 = vmul.f32 0.0078125, %v5149_v16 }
 0xec5   :  { %v13192_v29 = vpop.eup %13191  ;;  %12726 = vmatpush3.bf16.msra.mxu1 %v12723_v43 }
 0xec6   :  { %v5179_v40 = vmul.f32 %v13192_v29, %v15371_v48  ;;  %v5165_v22 = vadd.f32 1e-12, %v5157_v4  ;;  %12728 = vmatprep.subr.bf16.mxu1 %v12727_v51  ;;  %v12735_v48 = vpack.c.bf16 %v10249_v10, %v10248_v18 }
 0xec8   :  { %v5193_v58 = vmul.f32 %v15455_v14, %v5179_v40  ;;  %13195 = vrsqrt.f32 %v5165_v22 }
 0xec9   :  { %12730 = vmatpush3.bf16.msra.mxu1 %v12727_v51 }
 0xeca   :  { %v15542_v25 = vadd.f32 %v15461_v24, %v5193_v58  ;;  %12732 = vmatprep.subr.bf16.mxu1 %v12731_v44 }
 0xecc   :  { %11818 = vmatmul.mubr.f32.gmra.mrb[108].mxu1 %v15542_v25  ;;  %11862 = vmatmul.mubr.f32.gmra.mrb[100].mxu0 %v15542_v25  ;;  %v13194_v17 = vpop.eup %13193 }
 0xecd   :  { %v5180_v53 = vmul.f32 %v13194_v17, %v15376_v13  ;;  %12734 = vmatpush3.bf16.msra.mxu1 %v12731_v44 }
 0xece   :  { %12736 = vmatprep.subr.bf16.mxu1 %v12735_v48 }
 0xecf   :  { %v5194_v26 = vmul.f32 %v15455_v14, %v5180_v53 }
 0xed1   :  { %v15549_v50 = vadd.f32 %v15461_v24, %v5194_v26  ;;  %12738 = vmatpush3.bf16.msra.mxu1 %v12735_v48 }
 0xed2   :  { %v13196_v23 = vpop.eup %13195  ;;  %11916 = vmatprep.subr.mxu1 %v17174_v0 }
 0xed3   :  { %v5181_v6 = vmul.f32 %v13196_v23, %v15393_v5  ;;  %11820 = vmatprep.mubr.f32.mxu1 %v15549_v50  ;;  %11864 = vmatprep.mubr.f32.mxu0 %v15549_v50  ;;  %v10233_v5 = vld [vmem:[%s17072_s6 + $0x8] ss:$0 sm:$0xff]  ;;  %v17175_v23 = vld [vmem:[#allocation10_spill] sm:$0xff] }
 0xed5   :  { %v5195_v30 = vmul.f32 %v15455_v14, %v5181_v6 }
 0xed7   :  { %v15557_v13 = vadd.f32 %v15461_v24, %v5195_v30 }
 0xed9   :  { %11821 = vmatmul.mubr.f32.gmra.mrb[110].mxu1 %v15557_v13  ;;  %11865 = vmatmul.mubr.f32.gmra.mrb[102].mxu0 %v15557_v13 }
 0xeda   :  { %11899 = vmatprep.mubr.f32.mxu1 %v15465_v52  ;;  %11913 = vmatprep.mubr.msk.f32.mxu0 %vm13411_vm8, %v17174_v0 }
 0xedd   :  { %11900 = vmatmul.mubr.f32.vlgmr.msra.gmra.mrb[112].mxu1 %v15478_v2 }
 0xede   :  { %11902 = vmatprep.mubr.f32.mxu1 %v15491_v37 }
 0xee1   :  { %11903 = vmatmul.mubr.f32.gmra.mrb[114].mxu1 %v15504_v20 }
 0xee2   :  { %11905 = vmatprep.mubr.f32.mxu1 %v15523_v7 }
 0xee5   :  { %11906 = vmatmul.mubr.f32.gmra.mrb[116].mxu1 %v15542_v25 }
 0xee6   :  { %11908 = vmatprep.mubr.f32.mxu1 %v15549_v50 }
 0xee9   :  { %11909 = vmatmul.mubr.f32.gmra.mrb[118].mxu1 %v15557_v13 }
 0xeea   :  { %11918 = vmatprep.mubr.msk.f32.mxu1 %vm13411_vm8, %v17174_v0 }
 0xf85   :  { %v11813_v14 = vpop.f32.mrb[104].mxu1  ;;  %v11857_v24 = vpop.f32.mrb[96].mxu0 }
 0xf86   :  { %v5437_v45 = vadd.f32 %v11857_v24, %v10233_v5  ;;  %v5301_v54 = vpop.f32.mrb[105].mxu1  ;;  %v5431_v34 = vpop.f32.mrb[97].mxu0  ;;  %v5307_v60 = vadd.f32 %v11813_v14, %v10215_v8  ;;  %v17176_v14 = vld [vmem:[#allocation11_spill] sm:$0xff] }
 0xf87   :  { %v5432_v57 = vadd.f32 %v10233_v5, %v5431_v34  ;;  %v5302_v12 = vadd.f32 %v10215_v8, %v5301_v54 }
 0xf88   :  { %11917 = vmatpush3.xpose.msk.msra.mxu1 %vm833_vm9, %v5437_v45 }
 0xf89   :  { %11912 = vmatpush3.xpose.msk.msra.mxu0 %vm833_vm9, %v5432_v57  ;;  %11926 = vmatprep.subr.mxu1 %v17174_v0  ;;  %v17177_v57 = vld [vmem:[#allocation12_spill] sm:$0xff] }
 0xf8a   :  { %11921 = vmatprep.subr.mxu0 %v17174_v0 }
 0xf8b   :  { %11919 = vmatmul.mubr.msk.f32.vlgmr.msra.gmra.mrb[120].mxu1 %vm833_vm9, %v5307_v60 }
 0xf8c   :  { %11914 = vmatmul.mubr.msk.f32.vlgmr.msra.gmra.mrb[104].mxu0 %vm833_vm9, %v5302_v12  ;;  %11928 = vmatprep.mubr.msk.f32.mxu1 %vm13411_vm8, %v17174_v0 }
 0xf8d   :  { %11923 = vmatprep.mubr.msk.f32.mxu0 %vm13411_vm8, %v17174_v0 }
 0xf90   :  { %v11816_v38 = vpop.f32.mrb[106].mxu1  ;;  %v11860_v32 = vpop.f32.mrb[98].mxu0 }
 0xf91   :  { %v5447_v35 = vadd.f32 %v11860_v32, %v10233_v5  ;;  %v5311_v39 = vpop.f32.mrb[107].mxu1  ;;  %v5441_v1 = vpop.f32.mrb[99].mxu0  ;;  %v5317_v11 = vadd.f32 %v11816_v38, %v10215_v8  ;;  %v17178_v32 = vld [vmem:[#allocation13_spill] sm:$0xff] }
 0xf92   :  { %v5442_v61 = vadd.f32 %v10233_v5, %v5441_v1  ;;  %v5312_v42 = vadd.f32 %v10215_v8, %v5311_v39 }
 0xf93   :  { %11927 = vmatpush3.xpose.msk.msra.mxu1 %vm833_vm9, %v5447_v35 }
 0xf94   :  { %11922 = vmatpush3.xpose.msk.msra.mxu0 %vm833_vm9, %v5442_v61  ;;  %11936 = vmatprep.subr.mxu1 %v17174_v0 }
 0xf95   :  { %11931 = vmatprep.subr.mxu0 %v17174_v0 }
 0xf96   :  { %11929 = vmatmul.mubr.msk.f32.vlgmr.msra.gmra.mrb[122].mxu1 %vm833_vm9, %v5317_v11 }
 0xf97   :  { %11924 = vmatmul.mubr.msk.f32.vlgmr.msra.gmra.mrb[106].mxu0 %vm833_vm9, %v5312_v42  ;;  %11938 = vmatprep.mubr.msk.f32.mxu1 %vm13411_vm8, %v17174_v0  ;;  %v17179_v42 = vld [vmem:[#allocation14_spill] sm:$0xff] }
 0xf98   :  { %11933 = vmatprep.mubr.msk.f32.mxu0 %vm13411_vm8, %v17174_v0 }
 0xf9f   :  { %v11819_v62 = vpop.f32.mrb[108].mxu1  ;;  %v11863_v15 = vpop.f32.mrb[100].mxu0 }
 0xfa0   :  { %v5457_v31 = vadd.f32 %v11863_v15, %v10233_v5  ;;  %v5321_v41 = vpop.f32.mrb[109].mxu1  ;;  %v5451_v28 = vpop.f32.mrb[101].mxu0  ;;  %v5327_v56 = vadd.f32 %v11819_v62, %v10215_v8 }
 0xfa1   :  { %v5452_v19 = vadd.f32 %v10233_v5, %v5451_v28  ;;  %v5322_v33 = vadd.f32 %v10215_v8, %v5321_v41  ;;  %v17180_v41 = vld [vmem:[#allocation15_spill] sm:$0xff] }
 0xfa2   :  { %11937 = vmatpush3.xpose.msk.msra.mxu1 %vm833_vm9, %v5457_v31 }
 0xfa3   :  { %11932 = vmatpush3.xpose.msk.msra.mxu0 %vm833_vm9, %v5452_v19  ;;  %11946 = vmatprep.subr.mxu1 %v17174_v0 }
 0xfa4   :  { %11941 = vmatprep.subr.mxu0 %v17174_v0 }
 0xfa5   :  { %11939 = vmatmul.mubr.msk.f32.vlgmr.msra.gmra.mrb[124].mxu1 %vm833_vm9, %v5327_v56 }
 0xfa6   :  { %11934 = vmatmul.mubr.msk.f32.vlgmr.msra.gmra.mrb[108].mxu0 %vm833_vm9, %v5322_v33  ;;  %11948 = vmatprep.mubr.msk.f32.mxu1 %vm13411_vm8, %v17174_v0 }
 0xfa7   :  { %11943 = vmatprep.mubr.msk.f32.mxu0 %vm13411_vm8, %v17174_v0 }
 0xfac   :  { %v11822_v21 = vpop.f32.mrb[110].mxu1  ;;  %v11866_v36 = vpop.f32.mrb[102].mxu0 }
 0xfad   :  { %v5467_v46 = vadd.f32 %v11866_v36, %v10233_v5  ;;  %v5331_v9 = vpop.f32.mrb[111].mxu1  ;;  %v5461_v63 = vpop.f32.mrb[103].mxu0  ;;  %v5337_v59 = vadd.f32 %v11822_v21, %v10215_v8  ;;  %v17181_v36 = vld [vmem:[#allocation16_spill] sm:$0xff] }
 0xfae   :  { %v5462_v43 = vadd.f32 %v10233_v5, %v5461_v63  ;;  %v5332_v27 = vadd.f32 %v10215_v8, %v5331_v9 }
 0xfaf   :  { %11947 = vmatpush3.xpose.msk.msra.mxu1 %vm833_vm9, %v5467_v46 }
 0xfb0   :  { %11942 = vmatpush3.xpose.msk.msra.mxu0 %vm833_vm9, %v5462_v43  ;;  %v11901_v49 = vpop.f32.mrb[112].mxu1  ;;  %11956 = vmatprep.subr.mxu1 %v17174_v0  ;;  %v17182_v43 = vld [vmem:[#allocation17_spill] sm:$0xff] }
 0xfb1   :  { %v5567_v51 = vadd.f32 %v11901_v49, %v10251_v55  ;;  %v5561_v16 = vpop.f32.mrb[113].mxu1  ;;  %11951 = vmatprep.subr.mxu0 %v17174_v0 }
 0xfb2   :  { %11949 = vmatmul.mubr.msk.f32.vlgmr.msra.gmra.mrb[126].mxu1 %vm833_vm9, %v5337_v59  ;;  %v5562_v3 = vadd.f32 %v10251_v55, %v5561_v16 }
 0xfb3   :  { %11944 = vmatmul.mubr.msk.f32.vlgmr.msra.gmra.mrb[110].mxu0 %vm833_vm9, %v5332_v27  ;;  %11957 = vmatpush3.msra.mxu1 %v5567_v51 }
 0xfb4   :  { %v11904_v47 = vpop.f32.mrb[114].mxu1  ;;  %11952 = vmatpush3.msra.mxu0 %v5562_v3  ;;  %11958 = vmatprep.mubr.msk.f32.mxu1 %vm13411_vm8, %v17174_v0 }
 0xfb5   :  { %v15620_v29 = vadd.f32 %v11904_v47, %v10251_v55  ;;  %v5571_v4 = vpop.f32.mrb[115].mxu1  ;;  %11966 = vmatprep.subr.mxu1 %v17174_v0  ;;  %11953 = vmatprep.mubr.msk.f32.mxu0 %vm13411_vm8, %v17174_v0 }
 0xfb6   :  { %v15625_v40 = vadd.f32 %v10251_v55, %v5571_v4  ;;  %11961 = vmatprep.subr.mxu0 %v17174_v0 }
 0xfb8   :  { %v11907_v22 = vpop.f32.mrb[116].mxu1 }
 0xfb9   :  { %v15628_v44 = vadd.f32 %v11907_v22, %v10251_v55  ;;  %v5581_v58 = vpop.f32.mrb[117].mxu1 }
 0xfba   :  { %v15630_v18 = vadd.f32 %v10251_v55, %v5581_v58 }
 0xfbc   :  { %v11910_v10 = vpop.f32.mrb[118].mxu1 }
 0xfbd   :  { %v15632_v48 = vadd.f32 %v11910_v10, %v10251_v55  ;;  %v5591_v17 = vpop.f32.mrb[119].mxu1 }
 0xfbe   :  { %v15634_v53 = vadd.f32 %v10251_v55, %v5591_v17 }
0x105e   :  { %v5748_v26 = vpop.f32.mrb[120].mxu1 }
0x105f   :  { %v5749_v6 = vadd.f32 %v5748_v26, %v17175_v23  ;;  %v5672_v30 = vpop.f32.mrb[104].mxu0  ;;  %v11920_v5 = vpop.f32.mrb[121].mxu1 }
0x1060   :  { %v5673_v24 = vadd.f32 %v5672_v30, %v17176_v14  ;;  %v11915_v8 = vpop.f32.mrb[105].mxu0 }
0x1061   :  { %v6211_v45 = vsel %vm1442_vm10, %v5749_v6, -inf }
0x1062   :  { %6212 = vmax.xlane.f32.xlu1 %v6211_v45  ;;  %v6208_v54 = vsel %vm1442_vm10, %v5673_v24, -inf }
0x1063   :  { %6209 = vmax.xlane.f32.xlu0 %v6208_v54 }
0x1069   :  { %v5900_v34 = vpop.f32.mrb[122].mxu1 }
0x106a   :  { %v5901_v60 = vadd.f32 %v5900_v34, %v17177_v57  ;;  %v5824_v12 = vpop.f32.mrb[106].mxu0  ;;  %v11930_v38 = vpop.f32.mrb[123].mxu1 }
0x106b   :  { %v5825_v35 = vadd.f32 %v5824_v12, %v17178_v32  ;;  %v11925_v39 = vpop.f32.mrb[107].mxu0 }
0x106c   :  { %v6217_v1 = vsel %vm1442_vm10, %v5901_v60, -inf }
0x106d   :  { %6218 = vmax.xlane.f32.xlu1 %v6217_v1  ;;  %v6214_v61 = vsel %vm1442_vm10, %v5825_v35, -inf }
0x106e   :  { %6215 = vmax.xlane.f32.xlu0 %v6214_v61 }
0x1078   :  { %v6052_v11 = vpop.f32.mrb[124].mxu1 }
0x1079   :  { %v6053_v62 = vadd.f32 %v6052_v11, %v17179_v42  ;;  %v5976_v15 = vpop.f32.mrb[108].mxu0  ;;  %v11940_v31 = vpop.f32.mrb[125].mxu1 }
0x107a   :  { %v5977_v28 = vadd.f32 %v5976_v15, %v17180_v41  ;;  %v11935_v19 = vpop.f32.mrb[109].mxu0 }
0x107b   :  { %v6223_v56 = vsel %vm1442_vm10, %v6053_v62, -inf }
0x107c   :  { %6224 = vmax.xlane.f32.xlu1 %v6223_v56  ;;  %v6220_v33 = vsel %vm1442_vm10, %v5977_v28, -inf }
0x107d   :  { %6221 = vmax.xlane.f32.xlu0 %v6220_v33 }
0x1085   :  { %v6204_v21 = vpop.f32.mrb[126].mxu1 }
0x1086   :  { %v6205_v46 = vadd.f32 %v6204_v21, %v17181_v36  ;;  %v6128_v9 = vpop.f32.mrb[110].mxu0  ;;  %v11950_v63 = vpop.f32.mrb[127].mxu1 }
0x1087   :  { %v6129_v55 = vadd.f32 %v6128_v9, %v17182_v43  ;;  %v11945_v59 = vpop.f32.mrb[111].mxu0 }
0x1088   :  { %v6229_v49 = vsel %vm1442_vm10, %v6205_v46, -inf }
0x1089   :  { %6230 = vmax.xlane.f32.xlu1 %v6229_v49  ;;  %v6226_v27 = vsel %vm1442_vm10, %v6129_v55, -inf }
0x108a   :  { %6227 = vmax.xlane.f32.xlu0 %v6226_v27 }
0x10ef   :  { %v6213_v51 = vpop.xlane.xlu1 %6212 }
0x10f0   :  { %v6233_v16 = vsub.f32 %v5749_v6, %v6213_v51  ;;  %v6210_v3 = vpop.xlane.xlu0 %6209 }
0x10f1   :  { %v6232_v47 = vsub.f32 %v5673_v24, %v6210_v3 }
0x10f2   :  { %v6242_v4 = vmul.f32 1.442695, %v6233_v16 }
0x10f3   :  { %v6240_v22 = vmul.f32 1.442695, %v6232_v47 }
0x10f4   :  { %13197 = vpow2.f32 %v6242_v4 }
0x10f5   :  { %13199 = vpow2.f32 %v6240_v22 }
0x10fa   :  { %v6219_v58 = vpop.xlane.xlu1 %6218 }
0x10fb   :  { %v6235_v10 = vsub.f32 %v5901_v60, %v6219_v58  ;;  %v6216_v17 = vpop.xlane.xlu0 %6215 }
0x10fc   :  { %v6234_v26 = vsub.f32 %v5825_v35, %v6216_v17 }
0x10fd   :  { %v6246_v30 = vmul.f32 1.442695, %v6235_v10 }
0x10fe   :  { %v6244_v5 = vmul.f32 1.442695, %v6234_v26  ;;  %v13198_v8 = vpop.eup %13197 }
0x10ff   :  { %13201 = vpow2.f32 %v6246_v30  ;;  %v13200_v45 = vpop.eup %13199  ;;  %v6259_v54 = vsel %vm1442_vm10, %v13198_v8, 0.0 }
0x1100   :  { %13203 = vpow2.f32 %v6244_v5  ;;  %6260 = vadd.xlane.f32.xlu1 %v6259_v54  ;;  %v6256_v6 = vsel %vm1442_vm10, %v13200_v45, 0.0  ;;  %v10303_v5 = vld [vmem:[%s17071_s5 + $0x488] sm:$0xff] }
0x1101   :  { %6257 = vadd.xlane.f32.xlu0 %v6256_v6 }
0x1109   :  { %v13202_v24 = vpop.eup %13201  ;;  %v6225_v34 = vpop.xlane.xlu1 %6224 }
0x110a   :  { %v13204_v12 = vpop.eup %13203  ;;  %v6237_v38 = vsub.f32 %v6053_v62, %v6225_v34  ;;  %v6222_v39 = vpop.xlane.xlu0 %6221  ;;  %v6265_v60 = vsel %vm1442_vm10, %v13202_v24, 0.0 }
0x110b   :  { %v6236_v35 = vsub.f32 %v5977_v28, %v6222_v39  ;;  %6266 = vadd.xlane.f32.xlu1 %v6265_v60  ;;  %v6262_v1 = vsel %vm1442_vm10, %v13204_v12, 0.0  ;;  %v10304_v60 = vld [vmem:[%s17071_s5 + $0x490] sm:$0xff] }
0x110c   :  { %v6250_v61 = vmul.f32 1.442695, %v6237_v38  ;;  %6263 = vadd.xlane.f32.xlu0 %v6262_v1  ;;  %v10287_v1 = vld [vmem:[%s17071_s5 + $0x398] sm:$0xff] }
0x110d   :  { %v6248_v11 = vmul.f32 1.442695, %v6236_v35 }
0x110e   :  { %13205 = vpow2.f32 %v6250_v61 }
0x110f   :  { %13207 = vpow2.f32 %v6248_v11 }
0x1116   :  { %v6231_v15 = vpop.xlane.xlu1 %6230 }
0x1117   :  { %v6239_v19 = vsub.f32 %v6205_v46, %v6231_v15  ;;  %v6228_v56 = vpop.xlane.xlu0 %6227 }
0x1118   :  { %v13206_v31 = vpop.eup %13205  ;;  %v6238_v21 = vsub.f32 %v6129_v55, %v6228_v56  ;;  %v10307_v56 = vld [vmem:[%s17071_s5 + $0x4a8] sm:$0xff] }
0x1119   :  { %v13208_v33 = vpop.eup %13207  ;;  %v6271_v62 = vsel %vm1442_vm10, %v13206_v31, 0.0  ;;  %v6254_v9 = vmul.f32 1.442695, %v6239_v19  ;;  %v10306_v19 = vld [vmem:[%s17071_s5 + $0x4a0] sm:$0xff] }
0x111a   :  { %6272 = vadd.xlane.f32.xlu1 %v6271_v62  ;;  %v6268_v28 = vsel %vm1442_vm10, %v13208_v33, 0.0  ;;  %v6252_v63 = vmul.f32 1.442695, %v6238_v21  ;;  %v10288_v21 = vld [vmem:[%s17071_s5 + $0x3a0] sm:$0xff]  ;;  %v10289_v62 = vld [vmem:[%s17071_s5 + $0x3a8] sm:$0xff] }
0x111b   :  { %6269 = vadd.xlane.f32.xlu0 %v6268_v28  ;;  %13209 = vpow2.f32 %v6254_v9  ;;  %v12779_v9 = vpack.c.bf16 %v10307_v56, %v10306_v19  ;;  %v12747_v28 = vpack.c.bf16 %v10289_v62, %v10288_v21  ;;  %v10327_v19 = vld [vmem:[%s17071_s5 + $0x5b8] sm:$0xff]  ;;  %v10329_v21 = vld [vmem:[%s17071_s5 + $0x5c8] sm:$0xff] }
0x111c   :  { %13211 = vpow2.f32 %v6252_v63  ;;  %v10308_v63 = vld [vmem:[%s17071_s5 + $0x4b0] sm:$0xff] }
0x1125   :  { %v15658_v59 = vpop.eup %13209 }
0x1126   :  { %v15660_v49 = vpop.eup %13211  ;;  %v6277_v46 = vsel %vm1442_vm10, %v15658_v59, 0.0 }
0x1127   :  { %6278 = vadd.xlane.f32.xlu1 %v6277_v46  ;;  %v6274_v55 = vsel %vm1442_vm10, %v15660_v49, 0.0  ;;  %v10291_v46 = vld [vmem:[%s17071_s5 + $0x3b8] sm:$0xff] }
0x1128   :  { %6275 = vadd.xlane.f32.xlu0 %v6274_v55 }
0x118d   :  { %v6261_v27 = vpop.xlane.xlu1 %6260 }
0x118e   :  { %13213 = vrcp.f32 %v6261_v27  ;;  %v6258_v51 = vpop.xlane.xlu0 %6257 }
0x118f   :  { %13215 = vrcp.f32 %v6258_v51  ;;  %v10310_v51 = vld [vmem:[%s17071_s5 + $0x4c0] sm:$0xff] }
0x1198   :  { %v6267_v16 = vpop.xlane.xlu1 %6266  ;;  %v13214_v3 = vpop.eup %13213 }
0x1199   :  { %13217 = vrcp.f32 %v6267_v16  ;;  %v6264_v47 = vpop.xlane.xlu0 %6263  ;;  %v13216_v4 = vpop.eup %13215  ;;  %v6283_v22 = vmul.f32 %v13214_v3, %v13198_v8  ;;  %v10284_v8 = vld [vmem:[%s17071_s5 + $0x380] sm:$0xff]  ;;  %v10311_v16 = vld [vmem:[%s17071_s5 + $0x4c8] sm:$0xff] }
0x119a   :  { %13219 = vrcp.f32 %v6264_v47  ;;  %v6281_v58 = vmul.f32 %v13216_v4, %v13200_v45  ;;  %v10285_v45 = vld [vmem:[%s17071_s5 + $0x388] sm:$0xff]  ;;  %v10292_v3 = vld [vmem:[%s17071_s5 + $0x3c0] sm:$0xff]  ;;  %v12787_v4 = vpack.c.bf16 %v10311_v16, %v10310_v51 }
0x119b   :  { %11959 = vmatmul.mubr.msk.f32.vlgmr.msra.gmra.mrb[128].mxu1 %vm1442_vm10, %v6283_v22  ;;  %v12739_v38 = vpack.c.bf16 %v10285_v45, %v10284_v8  ;;  %v10293_v47 = vld [vmem:[%s17071_s5 + $0x3c8] sm:$0xff] }
0x119c   :  { %11967 = vmatpush3.msra.mxu1 %v15620_v29  ;;  %11954 = vmatmul.mubr.msk.f32.vlgmr.msra.gmra.mrb[112].mxu0 %vm1442_vm10, %v6281_v58  ;;  %v12755_v22 = vpack.c.bf16 %v10293_v47, %v10292_v3  ;;  %v10312_v58 = vld [vmem:[%s17071_s5 + $0x4d0] sm:$0xff] }
0x119d   :  { %11962 = vmatpush3.msra.mxu0 %v15625_v40  ;;  %11968 = vmatprep.mubr.msk.f32.mxu1 %vm13411_vm8, %v17174_v0 }
0x119e   :  { %11976 = vmatprep.subr.mxu1 %v17174_v0  ;;  %11963 = vmatprep.mubr.msk.f32.mxu0 %vm13411_vm8, %v17174_v0 }
0x119f   :  { %11971 = vmatprep.subr.mxu0 %v17174_v0 }
0x11a3   :  { %v13218_v10 = vpop.eup %13217 }
0x11a4   :  { %v13220_v17 = vpop.eup %13219  ;;  %v6287_v26 = vmul.f32 %v13218_v10, %v13202_v24  ;;  %v10313_v10 = vld [vmem:[%s17071_s5 + $0x4d8] sm:$0xff] }
0x11a5   :  { %v6285_v30 = vmul.f32 %v13220_v17, %v13204_v12  ;;  %v10294_v17 = vld [vmem:[%s17071_s5 + $0x3d0] sm:$0xff] }
0x11a6   :  { %11969 = vmatmul.mubr.msk.f32.vlgmr.msra.gmra.mrb[130].mxu1 %vm1442_vm10, %v6287_v26  ;;  %v10295_v26 = vld [vmem:[%s17071_s5 + $0x3d8] sm:$0xff] }
0x11a7   :  { %v6273_v29 = vpop.xlane.xlu1 %6272  ;;  %11977 = vmatpush3.msra.mxu1 %v15628_v44  ;;  %11964 = vmatmul.mubr.msk.f32.vlgmr.msra.gmra.mrb[114].mxu0 %vm1442_vm10, %v6285_v30  ;;  %v10302_v44 = vld [vmem:[%s17071_s5 + $0x480] sm:$0xff]  ;;  %v12791_v30 = vpack.c.bf16 %v10313_v10, %v10312_v58 }
0x11a8   :  { %13221 = vrcp.f32 %v6273_v29  ;;  %v6270_v40 = vpop.xlane.xlu0 %6269  ;;  %11972 = vmatpush3.msra.mxu0 %v15630_v18  ;;  %11978 = vmatprep.mubr.msk.f32.mxu1 %vm13411_vm8, %v17174_v0  ;;  %v12771_v34 = vpack.c.bf16 %v10303_v5, %v10302_v44  ;;  %v12759_v29 = vpack.c.bf16 %v10295_v26, %v10294_v17  ;;  %v10315_v44 = vld [vmem:[%s17071_s5 + $0x4e8] sm:$0xff]  ;;  %v10296_v5 = vld [vmem:[%s17071_s5 + $0x3e0] sm:$0xff] }
0x11a9   :  { %13223 = vrcp.f32 %v6270_v40  ;;  %11986 = vmatprep.subr.mxu1 %v17174_v0  ;;  %11973 = vmatprep.mubr.msk.f32.mxu0 %vm13411_vm8, %v17174_v0  ;;  %v10314_v40 = vld [vmem:[%s17071_s5 + $0x4e0] sm:$0xff] }
0x11aa   :  { %11981 = vmatprep.subr.mxu0 %v17174_v0  ;;  %v12795_v8 = vpack.c.bf16 %v10315_v44, %v10314_v40 }
0x11b2   :  { %v13222_v18 = vpop.eup %13221 }
0x11b3   :  { %v13224_v54 = vpop.eup %13223  ;;  %v6291_v6 = vmul.f32 %v13222_v18, %v13206_v31  ;;  %v10297_v18 = vld [vmem:[%s17071_s5 + $0x3e8] sm:$0xff] }
0x11b4   :  { %v6289_v24 = vmul.f32 %v13224_v54, %v13208_v33  ;;  %v6279_v12 = vpop.xlane.xlu1 %6278  ;;  %v12763_v45 = vpack.c.bf16 %v10297_v18, %v10296_v5  ;;  %v10316_v54 = vld [vmem:[%s17071_s5 + $0x4f0] sm:$0xff] }
0x11b5   :  { %11979 = vmatmul.mubr.msk.f32.vlgmr.msra.gmra.mrb[132].mxu1 %vm1442_vm10, %v6291_v6  ;;  %13225 = vrcp.f32 %v6279_v12  ;;  %v6276_v39 = vpop.xlane.xlu0 %6275  ;;  %v10317_v6 = vld [vmem:[%s17071_s5 + $0x4f8] sm:$0xff] }
0x11b6   :  { %11987 = vmatpush3.msra.mxu1 %v15632_v48  ;;  %11974 = vmatmul.mubr.msk.f32.vlgmr.msra.gmra.mrb[116].mxu0 %vm1442_vm10, %v6289_v24  ;;  %13227 = vrcp.f32 %v6276_v39  ;;  %v10305_v48 = vld [vmem:[%s17071_s5 + $0x498] sm:$0xff]  ;;  %v10298_v24 = vld [vmem:[%s17071_s5 + $0x3f0] sm:$0xff]  ;;  %v12799_v12 = vpack.c.bf16 %v10317_v6, %v10316_v54  ;;  %v10320_v39 = vld [vmem:[%s17071_s5 + $0x580] sm:$0xff] }
0x11b7   :  { %11982 = vmatpush3.msra.mxu0 %v15634_v53  ;;  %11988 = vmatprep.mubr.msk.f32.mxu1 %vm13411_vm8, %v17174_v0  ;;  %v10286_v53 = vld [vmem:[%s17071_s5 + $0x390] sm:$0xff]  ;;  %v12775_v31 = vpack.c.bf16 %v10305_v48, %v10304_v60  ;;  %v10321_v60 = vld [vmem:[%s17071_s5 + $0x588] sm:$0xff] }
0x11b8   :  { %12772 = vmatprep.subr.bf16.mxu1 %v12771_v34  ;;  %11983 = vmatprep.mubr.msk.f32.mxu0 %vm13411_vm8, %v17174_v0  ;;  %v12743_v33 = vpack.c.bf16 %v10287_v1, %v10286_v53  ;;  %v12803_v48 = vpack.c.bf16 %v10321_v60, %v10320_v39  ;;  %v10323_v53 = vld [vmem:[%s17071_s5 + $0x598] sm:$0xff] }
0x11b9   :  { %12740 = vmatprep.subr.bf16.mxu0 %v12739_v38 }
0x11bf   :  { %v13226_v35 = vpop.eup %13225 }
0x11c0   :  { %v13228_v61 = vpop.eup %13227  ;;  %v6295_v11 = vmul.f32 %v13226_v35, %v15658_v59  ;;  %v10309_v59 = vld [vmem:[%s17071_s5 + $0x4b8] sm:$0xff]  ;;  %v10322_v35 = vld [vmem:[%s17071_s5 + $0x590] sm:$0xff] }
0x11c1   :  { %v6293_v15 = vmul.f32 %v13228_v61, %v15660_v49  ;;  %v10290_v49 = vld [vmem:[%s17071_s5 + $0x3b0] sm:$0xff]  ;;  %v12783_v55 = vpack.c.bf16 %v10309_v59, %v10308_v63  ;;  %v12807_v1 = vpack.c.bf16 %v10323_v53, %v10322_v35  ;;  %v10324_v61 = vld [vmem:[%s17071_s5 + $0x5a0] sm:$0xff] }
0x11c2   :  { %11989 = vmatmul.mubr.msk.f32.vlgmr.msra.gmra.mrb[134].mxu1 %vm1442_vm10, %v6295_v11  ;;  %v12751_v27 = vpack.c.bf16 %v10291_v46, %v10290_v49  ;;  %v10325_v11 = vld [vmem:[%s17071_s5 + $0x5a8] sm:$0xff]  ;;  %v10332_v59 = vld [vmem:[%s17071_s5 + $0x5e0] sm:$0xff] }
0x11c3   :  { %12774 = vmatpush3.bf16.msra.mxu1 %v12771_v34  ;;  %11984 = vmatmul.mubr.msk.f32.vlgmr.msra.gmra.mrb[118].mxu0 %vm1442_vm10, %v6293_v15  ;;  %v10299_v34 = vld [vmem:[%s17071_s5 + $0x3f8] sm:$0xff]  ;;  %v12811_v15 = vpack.c.bf16 %v10325_v11, %v10324_v61  ;;  %v10333_v49 = vld [vmem:[%s17071_s5 + $0x5e8] sm:$0xff] }
0x11c4   :  { %12742 = vmatpush3.bf16.msra.mxu0 %v12739_v38  ;;  %12067 = vmatprep.mubr.f32.mxu1 %v15465_v52  ;;  %v12767_v38 = vpack.c.bf16 %v10299_v34, %v10298_v24  ;;  %v12827_v46 = vpack.c.bf16 %v10333_v49, %v10332_v59  ;;  %v10301_v34 = vld [vmem:[%s17072_s6 + $0x7] ss:$0 sm:$0xff] }
0x11c5   :  { %12023 = vmatprep.mubr.f32.mxu0 %v15465_v52  ;;  %12776 = vmatprep.subr.bf16.mxu1 %v12775_v31 }
0x11c6   :  { %12744 = vmatprep.subr.bf16.mxu0 %v12743_v33 }
0x11c7   :  { %12778 = vmatpush3.bf16.msra.mxu1 %v12775_v31  ;;  %v10326_v31 = vld [vmem:[%s17071_s5 + $0x5b0] sm:$0xff] }
0x11c8   :  { %12746 = vmatpush3.bf16.msra.mxu0 %v12743_v33  ;;  %12780 = vmatprep.subr.bf16.mxu1 %v12779_v9  ;;  %v12815_v56 = vpack.c.bf16 %v10327_v19, %v10326_v31  ;;  %v10328_v33 = vld [vmem:[%s17071_s5 + $0x5c0] sm:$0xff] }
0x11c9   :  { %12748 = vmatprep.subr.bf16.mxu0 %v12747_v28  ;;  %v12819_v62 = vpack.c.bf16 %v10329_v21, %v10328_v33 }
0x11cb   :  { %12782 = vmatpush3.bf16.msra.mxu1 %v12779_v9  ;;  %v10330_v9 = vld [vmem:[%s17071_s5 + $0x5d0] sm:$0xff] }
0x11cc   :  { %12750 = vmatpush3.bf16.msra.mxu0 %v12747_v28  ;;  %12784 = vmatprep.subr.bf16.mxu1 %v12783_v55  ;;  %v10331_v28 = vld [vmem:[%s17071_s5 + $0x5d8] sm:$0xff] }
0x11cd   :  { %12752 = vmatprep.subr.bf16.mxu0 %v12751_v27  ;;  %v12823_v63 = vpack.c.bf16 %v10331_v28, %v10330_v9 }
0x11cf   :  { %12786 = vmatpush3.bf16.msra.mxu1 %v12783_v55  ;;  %v10334_v55 = vld [vmem:[%s17071_s5 + $0x5f0] sm:$0xff] }
0x11d0   :  { %12754 = vmatpush3.bf16.msra.mxu0 %v12751_v27  ;;  %12788 = vmatprep.subr.bf16.mxu1 %v12787_v4  ;;  %v10335_v27 = vld [vmem:[%s17071_s5 + $0x5f8] sm:$0xff] }
0x11d1   :  { %12756 = vmatprep.subr.bf16.mxu0 %v12755_v22  ;;  %v12831_v51 = vpack.c.bf16 %v10335_v27, %v10334_v55 }
0x11d3   :  { %12790 = vmatpush3.bf16.msra.mxu1 %v12787_v4 }
0x11d4   :  { %12758 = vmatpush3.bf16.msra.mxu0 %v12755_v22  ;;  %12792 = vmatprep.subr.bf16.mxu1 %v12791_v30 }
0x11d5   :  { %12760 = vmatprep.subr.bf16.mxu0 %v12759_v29 }
0x11d7   :  { %12794 = vmatpush3.bf16.msra.mxu1 %v12791_v30 }
0x11d8   :  { %12762 = vmatpush3.bf16.msra.mxu0 %v12759_v29  ;;  %12796 = vmatprep.subr.bf16.mxu1 %v12795_v8 }
0x11d9   :  { %12764 = vmatprep.subr.bf16.mxu0 %v12763_v45 }
0x11db   :  { %12798 = vmatpush3.bf16.msra.mxu1 %v12795_v8 }
0x11dc   :  { %12766 = vmatpush3.bf16.msra.mxu0 %v12763_v45  ;;  %12800 = vmatprep.subr.bf16.mxu1 %v12799_v12  ;;  %v10319_v45 = vld [vmem:[%s17072_s6 + $0x9] ss:$0 sm:$0xff] }
0x11dd   :  { %12768 = vmatprep.subr.bf16.mxu0 %v12767_v38 }
0x11df   :  { %12802 = vmatpush3.bf16.msra.mxu1 %v12799_v12 }
0x11e0   :  { %12770 = vmatpush3.bf16.msra.mxu0 %v12767_v38  ;;  %12123 = vmatprep.subr.mxu1 %v17174_v0 }
0x11e1   :  { %12804 = vmatprep.subr.bf16.mxu0 %v12803_v48 }
0x11e2   :  { %12068 = vmatmul.mubr.f32.vlgmr.msra.gmra.mrb[136].mxu1 %v15478_v2 }
0x11e3   :  { %12024 = vmatmul.mubr.f32.vlgmr.msra.gmra.mrb[120].mxu0 %v15478_v2  ;;  %12070 = vmatprep.mubr.f32.mxu1 %v15491_v37 }
0x11e4   :  { %12026 = vmatprep.mubr.f32.mxu0 %v15491_v37  ;;  %12806 = vmatpush3.bf16.msra.mxu0 %v12803_v48 }
0x11e5   :  { %12808 = vmatprep.subr.bf16.mxu0 %v12807_v1 }
0x11e6   :  { %12071 = vmatmul.mubr.f32.gmra.mrb[138].mxu1 %v15504_v20 }
0x11e7   :  { %12027 = vmatmul.mubr.f32.gmra.mrb[122].mxu0 %v15504_v20  ;;  %12073 = vmatprep.mubr.f32.mxu1 %v15523_v7 }
0x11e8   :  { %12029 = vmatprep.mubr.f32.mxu0 %v15523_v7  ;;  %12810 = vmatpush3.bf16.msra.mxu0 %v12807_v1 }
0x11e9   :  { %12812 = vmatprep.subr.bf16.mxu0 %v12811_v15 }
0x11ea   :  { %12074 = vmatmul.mubr.f32.gmra.mrb[140].mxu1 %v15542_v25 }
0x11eb   :  { %12030 = vmatmul.mubr.f32.gmra.mrb[124].mxu0 %v15542_v25  ;;  %12076 = vmatprep.mubr.f32.mxu1 %v15549_v50 }
0x11ec   :  { %12032 = vmatprep.mubr.f32.mxu0 %v15549_v50  ;;  %12814 = vmatpush3.bf16.msra.mxu0 %v12811_v15 }
0x11ed   :  { %12816 = vmatprep.subr.bf16.mxu0 %v12815_v56 }
0x11ee   :  { %12077 = vmatmul.mubr.f32.gmra.mrb[142].mxu1 %v15557_v13 }
0x11ef   :  { %12033 = vmatmul.mubr.f32.gmra.mrb[126].mxu0 %v15557_v13  ;;  %12125 = vmatprep.mubr.msk.f32.mxu1 %vm13411_vm8, %v17174_v0 }
0x11f0   :  { %12818 = vmatpush3.bf16.msra.mxu0 %v12815_v56  ;;  %12111 = vmatprep.mubr.f32.mxu0 %v15465_v52 }
0x11f1   :  { %12820 = vmatprep.subr.bf16.mxu0 %v12819_v62 }
0x11f4   :  { %12822 = vmatpush3.bf16.msra.mxu0 %v12819_v62 }
0x11f5   :  { %12824 = vmatprep.subr.bf16.mxu0 %v12823_v63 }
0x11f8   :  { %12826 = vmatpush3.bf16.msra.mxu0 %v12823_v63 }
0x11f9   :  { %12828 = vmatprep.subr.bf16.mxu0 %v12827_v46 }
0x11fc   :  { %12830 = vmatpush3.bf16.msra.mxu0 %v12827_v46 }
0x11fd   :  { %12832 = vmatprep.subr.bf16.mxu0 %v12831_v51 }
0x1200   :  { %12834 = vmatpush3.bf16.msra.mxu0 %v12831_v51 }
0x1201   :  { %12163 = vmatprep.subr.mxu0 %v17174_v0 }
0x1203   :  { %12112 = vmatmul.mubr.f32.vlgmr.msra.gmra.mrb[128].mxu0 %v15478_v2 }
0x1204   :  { %12114 = vmatprep.mubr.f32.mxu0 %v15491_v37 }
0x1207   :  { %12115 = vmatmul.mubr.f32.gmra.mrb[130].mxu0 %v15504_v20 }
0x1208   :  { %12117 = vmatprep.mubr.f32.mxu0 %v15523_v7 }
0x120b   :  { %12118 = vmatmul.mubr.f32.gmra.mrb[132].mxu0 %v15542_v25 }
0x120c   :  { %12120 = vmatprep.mubr.f32.mxu0 %v15549_v50 }
0x120f   :  { %12121 = vmatmul.mubr.f32.gmra.mrb[134].mxu0 %v15557_v13 }
0x1210   :  { %12165 = vmatprep.mubr.msk.f32.mxu0 %vm13411_vm8, %v17174_v0 }
0x126e   :  { %v15872_v16 = vpop.f32.mrb[128].mxu1 }
0x126f   :  { %v15874_v3 = vpop.f32.mrb[112].mxu0  ;;  %v11960_v47 = vpop.f32.mrb[129].mxu1 }
0x1270   :  { %v11955_v4 = vpop.f32.mrb[113].mxu0 }
0x1279   :  { %v15876_v22 = vpop.f32.mrb[130].mxu1 }
0x127a   :  { %v15878_v58 = vpop.f32.mrb[114].mxu0  ;;  %v11970_v10 = vpop.f32.mrb[131].mxu1 }
0x127b   :  { %v11965_v17 = vpop.f32.mrb[115].mxu0  ;;  %v10337_v10 = vld [vmem:[%s17072_s6 + $0xb] ss:$0 sm:$0xff] }
0x1288   :  { %v15880_v26 = vpop.f32.mrb[132].mxu1 }
0x1289   :  { %v15882_v30 = vpop.f32.mrb[116].mxu0  ;;  %v11980_v29 = vpop.f32.mrb[133].mxu1 }
0x128a   :  { %v11975_v40 = vpop.f32.mrb[117].mxu0 }
0x1295   :  { %v15884_v44 = vpop.f32.mrb[134].mxu1 }
0x1296   :  { %v15886_v5 = vpop.f32.mrb[118].mxu0  ;;  %v11990_v18 = vpop.f32.mrb[135].mxu1 }
0x1297   :  { %v11985_v8 = vpop.f32.mrb[119].mxu0 }
0x12b5   :  { %v12069_v54 = vpop.f32.mrb[136].mxu1 }
0x12b6   :  { %v12025_v6 = vpop.f32.mrb[120].mxu0  ;;  %v7110_v24 = vpop.f32.mrb[137].mxu1  ;;  %v7116_v53 = vadd.f32 %v12069_v54, %v10319_v45 }
0x12b7   :  { %v7111_v12 = vadd.f32 %v10319_v45, %v7110_v24  ;;  %v6980_v38 = vpop.f32.mrb[121].mxu0  ;;  %v6986_v11 = vadd.f32 %v12025_v6, %v10301_v34 }
0x12b8   :  { %v6981_v60 = vadd.f32 %v10301_v34, %v6980_v38 }
0x12b9   :  { %v12072_v39 = vpop.f32.mrb[138].mxu1  ;;  %12124 = vmatpush3.xpose.msk.msra.mxu1 %vm833_vm9, %v7111_v12 }
0x12ba   :  { %v12028_v48 = vpop.f32.mrb[122].mxu0  ;;  %v7120_v35 = vpop.f32.mrb[139].mxu1  ;;  %12128 = vmatprep.subr.mxu1 %v17174_v0  ;;  %v7126_v28 = vadd.f32 %v12072_v39, %v10319_v45 }
0x12bb   :  { %v6990_v1 = vpop.f32.mrb[123].mxu0  ;;  %v7121_v19 = vadd.f32 %v10319_v45, %v7120_v35  ;;  %v6996_v59 = vadd.f32 %v12028_v48, %v10301_v34 }
0x12bc   :  { %12126 = vmatmul.mubr.msk.f32.vlgmr.msra.gmra.mrb[144].mxu1 %vm833_vm9, %v6981_v60  ;;  %v6991_v21 = vadd.f32 %v10301_v34, %v6990_v1 }
0x12bd   :  { %v12075_v61 = vpop.f32.mrb[140].mxu1  ;;  %12129 = vmatpush3.xpose.msk.msra.mxu1 %vm833_vm9, %v7116_v53  ;;  %12130 = vmatprep.mubr.msk.f32.mxu1 %vm13411_vm8, %v17174_v0 }
0x12be   :  { %v12031_v15 = vpop.f32.mrb[124].mxu0  ;;  %v7130_v31 = vpop.f32.mrb[141].mxu1  ;;  %12133 = vmatprep.subr.mxu1 %v17174_v0  ;;  %v7136_v55 = vadd.f32 %v12075_v61, %v10319_v45 }
0x12bf   :  { %v7000_v56 = vpop.f32.mrb[125].mxu0  ;;  %v7131_v49 = vadd.f32 %v10319_v45, %v7130_v31  ;;  %v7006_v27 = vadd.f32 %v12031_v15, %v10301_v34 }
0x12c0   :  { %12131 = vmatmul.mubr.msk.f32.vlgmr.msra.gmra.mrb[146].mxu1 %vm833_vm9, %v6986_v11  ;;  %v7001_v46 = vadd.f32 %v10301_v34, %v7000_v56 }
0x12c1   :  { %v12078_v33 = vpop.f32.mrb[142].mxu1  ;;  %12134 = vmatpush3.xpose.msk.msra.mxu1 %vm833_vm9, %v7121_v19  ;;  %12135 = vmatprep.mubr.msk.f32.mxu1 %vm13411_vm8, %v17174_v0 }
0x12c2   :  { %v12034_v62 = vpop.f32.mrb[126].mxu0  ;;  %v7140_v9 = vpop.f32.mrb[143].mxu1  ;;  %12138 = vmatprep.subr.mxu1 %v17174_v0  ;;  %v7146_v4 = vadd.f32 %v12078_v33, %v10319_v45 }
0x12c3   :  { %v7010_v63 = vpop.f32.mrb[127].mxu0  ;;  %v7141_v51 = vadd.f32 %v10319_v45, %v7140_v9  ;;  %v7016_v17 = vadd.f32 %v12034_v62, %v10301_v34 }
0x12c4   :  { %12136 = vmatmul.mubr.msk.f32.vlgmr.msra.gmra.mrb[148].mxu1 %vm833_vm9, %v6991_v21  ;;  %v7011_v47 = vadd.f32 %v10301_v34, %v7010_v63 }
0x12c5   :  { %12139 = vmatpush3.xpose.msk.msra.mxu1 %vm833_vm9, %v7126_v28  ;;  %12140 = vmatprep.mubr.msk.f32.mxu1 %vm13411_vm8, %v17174_v0 }
0x12c6   :  { %12143 = vmatprep.subr.mxu1 %v17174_v0 }
0x12c8   :  { %12141 = vmatmul.mubr.msk.f32.vlgmr.msra.gmra.mrb[150].mxu1 %vm833_vm9, %v6996_v59 }
0x12c9   :  { %12144 = vmatpush3.xpose.msk.msra.mxu1 %vm833_vm9, %v7131_v49  ;;  %12145 = vmatprep.mubr.msk.f32.mxu1 %vm13411_vm8, %v17174_v0 }
0x12ca   :  { %12148 = vmatprep.subr.mxu1 %v17174_v0 }
0x12cc   :  { %12146 = vmatmul.mubr.msk.f32.vlgmr.msra.gmra.mrb[152].mxu1 %vm833_vm9, %v7001_v46 }
0x12cd   :  { %12149 = vmatpush3.xpose.msk.msra.mxu1 %vm833_vm9, %v7136_v55  ;;  %12150 = vmatprep.mubr.msk.f32.mxu1 %vm13411_vm8, %v17174_v0 }
0x12ce   :  { %12153 = vmatprep.subr.mxu1 %v17174_v0 }
0x12d0   :  { %12151 = vmatmul.mubr.msk.f32.vlgmr.msra.gmra.mrb[154].mxu1 %vm833_vm9, %v7006_v27 }
0x12d1   :  { %12154 = vmatpush3.xpose.msk.msra.mxu1 %vm833_vm9, %v7141_v51  ;;  %12155 = vmatprep.mubr.msk.f32.mxu1 %vm13411_vm8, %v17174_v0 }
0x12d2   :  { %12158 = vmatprep.subr.mxu1 %v17174_v0 }
0x12d4   :  { %12156 = vmatmul.mubr.msk.f32.vlgmr.msra.gmra.mrb[156].mxu1 %vm833_vm9, %v7011_v47 }
0x12d5   :  { %12159 = vmatpush3.xpose.msk.msra.mxu1 %vm833_vm9, %v7146_v4  ;;  %12160 = vmatprep.mubr.msk.f32.mxu1 %vm13411_vm8, %v17174_v0 }
0x12d6   :  { %v12113_v29 = vpop.f32.mrb[128].mxu0  ;;  %12168 = vmatprep.subr.mxu1 %v17174_v0 }
0x12d7   :  { %v7246_v40 = vadd.f32 %v12113_v29, %v10337_v10  ;;  %v7240_v18 = vpop.f32.mrb[129].mxu0 }
0x12d8   :  { %v7241_v8 = vadd.f32 %v10337_v10, %v7240_v18  ;;  %12161 = vmatmul.mubr.msk.f32.vlgmr.msra.gmra.mrb[158].mxu1 %vm833_vm9, %v7016_v17 }
0x12d9   :  { %12169 = vmatpush3.msra.mxu1 %v7246_v40  ;;  %12170 = vmatprep.mubr.msk.f32.mxu1 %vm13411_vm8, %v17174_v0 }
0x12da   :  { %v12116_v45 = vpop.f32.mrb[130].mxu0  ;;  %12164 = vmatpush3.msra.mxu0 %v7241_v8  ;;  %12178 = vmatprep.subr.mxu1 %v17174_v0 }
0x12db   :  { %v15938_v54 = vadd.f32 %v12116_v45, %v10337_v10  ;;  %v7250_v6 = vpop.f32.mrb[131].mxu0  ;;  %12173 = vmatprep.subr.mxu0 %v17174_v0 }
0x12dc   :  { %v15941_v24 = vadd.f32 %v10337_v10, %v7250_v6 }
0x12de   :  { %v12119_v34 = vpop.f32.mrb[132].mxu0 }
0x12df   :  { %v15943_v12 = vadd.f32 %v12119_v34, %v10337_v10  ;;  %v7260_v38 = vpop.f32.mrb[133].mxu0 }
0x12e0   :  { %v15945_v39 = vadd.f32 %v10337_v10, %v7260_v38 }
0x12e2   :  { %v12122_v60 = vpop.f32.mrb[134].mxu0 }
0x12e3   :  { %v15947_v48 = vadd.f32 %v12122_v60, %v10337_v10  ;;  %v7270_v35 = vpop.f32.mrb[135].mxu0 }
0x12e4   :  { %v15949_v53 = vadd.f32 %v10337_v10, %v7270_v35 }
0x138f   :  { %v7351_v1 = vpop.f32.mrb[144].mxu1 }
0x1390   :  { %v7352_v61 = vadd.f32 %v7351_v1, %v17176_v14  ;;  %v12127_v11 = vpop.f32.mrb[145].mxu1 }
0x1392   :  { %v7887_v15 = vsel %vm1442_vm10, %v7352_v61, -inf }
0x1393   :  { %7888 = vmax.xlane.f32.xlu1 %v7887_v15  ;;  %v7427_v31 = vpop.f32.mrb[146].mxu1 }
0x1394   :  { %v7428_v19 = vadd.f32 %v7427_v31, %v17175_v23  ;;  %v12132_v56 = vpop.f32.mrb[147].mxu1 }
0x1396   :  { %v7890_v33 = vsel %vm1442_vm10, %v7428_v19, -inf }
0x1397   :  { %7891 = vmax.xlane.f32.xlu0 %v7890_v33  ;;  %v7503_v21 = vpop.f32.mrb[148].mxu1 }
0x1398   :  { %v7504_v62 = vadd.f32 %v7503_v21, %v17178_v32  ;;  %v12137_v9 = vpop.f32.mrb[149].mxu1 }
0x139a   :  { %v7893_v28 = vsel %vm1442_vm10, %v7504_v62, -inf }
0x139b   :  { %7894 = vmax.xlane.f32.xlu1 %v7893_v28  ;;  %v7579_v63 = vpop.f32.mrb[150].mxu1 }
0x139c   :  { %v7580_v14 = vadd.f32 %v7579_v63, %v17177_v57  ;;  %v12142_v59 = vpop.f32.mrb[151].mxu1 }
0x139e   :  { %v7896_v49 = vsel %vm1442_vm10, %v7580_v14, -inf }
0x139f   :  { %7897 = vmax.xlane.f32.xlu0 %v7896_v49  ;;  %v7655_v46 = vpop.f32.mrb[152].mxu1 }
0x13a0   :  { %v7656_v23 = vadd.f32 %v7655_v46, %v17180_v41  ;;  %v12147_v55 = vpop.f32.mrb[153].mxu1 }
0x13a2   :  { %v7899_v27 = vsel %vm1442_vm10, %v7656_v23, -inf }
0x13a3   :  { %7900 = vmax.xlane.f32.xlu1 %v7899_v27  ;;  %v7731_v51 = vpop.f32.mrb[154].mxu1 }
0x13a4   :  { %v7732_v32 = vadd.f32 %v7731_v51, %v17179_v42  ;;  %v12152_v47 = vpop.f32.mrb[155].mxu1 }
0x13a6   :  { %v7902_v4 = vsel %vm1442_vm10, %v7732_v32, -inf }
0x13a7   :  { %7903 = vmax.xlane.f32.xlu0 %v7902_v4  ;;  %v7807_v10 = vpop.f32.mrb[156].mxu1 }
0x13a8   :  { %v7808_v57 = vadd.f32 %v7807_v10, %v17182_v43  ;;  %v12157_v17 = vpop.f32.mrb[157].mxu1 }
0x13aa   :  { %v7905_v29 = vsel %vm1442_vm10, %v7808_v57, -inf }
0x13ab   :  { %7906 = vmax.xlane.f32.xlu1 %v7905_v29  ;;  %v7883_v40 = vpop.f32.mrb[158].mxu1 }
0x13ac   :  { %v7884_v41 = vadd.f32 %v7883_v40, %v17181_v36  ;;  %v12162_v18 = vpop.f32.mrb[159].mxu1 }
0x13ae   :  { %v7908_v8 = vsel %vm1442_vm10, %v7884_v41, -inf }
0x13af   :  { %7909 = vmax.xlane.f32.xlu0 %v7908_v8 }
0x1420   :  { %v7889_v45 = vpop.xlane.xlu1 %7888 }
0x1421   :  { %v7911_v42 = vsub.f32 %v7352_v61, %v7889_v45 }
0x1423   :  { %v7919_v6 = vmul.f32 1.442695, %v7911_v42 }
0x1424   :  { %v7892_v34 = vpop.xlane.xlu0 %7891 }
0x1425   :  { %13229 = vpow2.f32 %v7919_v6  ;;  %v7912_v38 = vsub.f32 %v7428_v19, %v7892_v34 }
0x1427   :  { %v7921_v60 = vmul.f32 1.442695, %v7912_v38 }
0x1428   :  { %v7895_v35 = vpop.xlane.xlu1 %7894 }
0x1429   :  { %13231 = vpow2.f32 %v7921_v60  ;;  %v7913_v43 = vsub.f32 %v7504_v62, %v7895_v35 }
0x142b   :  { %v7923_v1 = vmul.f32 1.442695, %v7913_v43 }
0x142c   :  { %v7898_v11 = vpop.xlane.xlu0 %7897 }
0x142d   :  { %13233 = vpow2.f32 %v7923_v1  ;;  %v7914_v15 = vsub.f32 %v7580_v14, %v7898_v11 }
0x142f   :  { %v13230_v31 = vpop.eup %13229  ;;  %v7925_v36 = vmul.f32 1.442695, %v7914_v15 }
0x1430   :  { %v7901_v56 = vpop.xlane.xlu1 %7900  ;;  %v7935_v33 = vsel %vm1442_vm10, %v13230_v31, 0.0 }
0x1431   :  { %13235 = vpow2.f32 %v7925_v36  ;;  %v7915_v21 = vsub.f32 %v7656_v23, %v7901_v56  ;;  %7936 = vadd.xlane.f32.xlu1 %v7935_v33  ;;  %v10363_v56 = vld [vmem:[%s17073_s7 + $0xc8] sm:$0xff] }
0x1433   :  { %v13232_v61 = vpop.eup %13231  ;;  %v7927_v9 = vmul.f32 1.442695, %v7915_v21 }
0x1434   :  { %v7904_v28 = vpop.xlane.xlu0 %7903  ;;  %v7938_v19 = vsel %vm1442_vm10, %v13232_v61, 0.0 }
0x1435   :  { %13237 = vpow2.f32 %v7927_v9  ;;  %v7916_v63 = vsub.f32 %v7732_v32, %v7904_v28  ;;  %7939 = vadd.xlane.f32.xlu0 %v7938_v19  ;;  %v10365_v19 = vld [vmem:[%s17073_s7 + $0xd8] sm:$0xff] }
0x1437   :  { %v13234_v62 = vpop.eup %13233  ;;  %v7929_v59 = vmul.f32 1.442695, %v7916_v63 }
0x1438   :  { %v7907_v49 = vpop.xlane.xlu1 %7906  ;;  %v7941_v14 = vsel %vm1442_vm10, %v13234_v62, 0.0 }
0x1439   :  { %13239 = vpow2.f32 %v7929_v59  ;;  %v7917_v46 = vsub.f32 %v7808_v57, %v7907_v49  ;;  %7942 = vadd.xlane.f32.xlu1 %v7941_v14  ;;  %v10366_v59 = vld [vmem:[%s17073_s7 + $0xe0] sm:$0xff]  ;;  %v10367_v49 = vld [vmem:[%s17073_s7 + $0xe8] sm:$0xff] }
0x143b   :  { %v13236_v55 = vpop.eup %13235  ;;  %v7931_v27 = vmul.f32 1.442695, %v7917_v46  ;;  %v12843_v46 = vpack.c.bf16 %v10367_v49, %v10366_v59 }
0x143c   :  { %v7910_v23 = vpop.xlane.xlu0 %7909  ;;  %v7944_v51 = vsel %vm1442_vm10, %v13236_v55, 0.0 }
0x143d   :  { %13241 = vpow2.f32 %v7931_v27  ;;  %v7918_v47 = vsub.f32 %v7884_v41, %v7910_v23  ;;  %7945 = vadd.xlane.f32.xlu0 %v7944_v51  ;;  %v10369_v27 = vld [vmem:[%s17073_s7 + $0xf8] sm:$0xff]  ;;  %v10276_v51 = vld [vmem:[%s17073_s7 + $0x80] sm:$0xff] }
0x143f   :  { %v13238_v4 = vpop.eup %13237  ;;  %v7933_v10 = vmul.f32 1.442695, %v7918_v47  ;;  %v10277_v47 = vld [vmem:[%s17073_s7 + $0x88] sm:$0xff] }
0x1440   :  { %v7947_v32 = vsel %vm1442_vm10, %v13238_v4, 0.0 }
0x1441   :  { %13243 = vpow2.f32 %v7933_v10  ;;  %7948 = vadd.xlane.f32.xlu1 %v7947_v32  ;;  %v10278_v32 = vld [vmem:[%s17073_s7 + $0x90] sm:$0xff] }
0x1443   :  { %v13240_v17 = vpop.eup %13239 }
0x1444   :  { %v7950_v29 = vsel %vm1442_vm10, %v13240_v17, 0.0 }
0x1445   :  { %7951 = vadd.xlane.f32.xlu0 %v7950_v29 }
0x1447   :  { %v15973_v57 = vpop.eup %13241 }
0x1448   :  { %v7953_v40 = vsel %vm1442_vm10, %v15973_v57, 0.0 }
0x1449   :  { %7954 = vadd.xlane.f32.xlu1 %v7953_v40 }
0x144b   :  { %v15977_v18 = vpop.eup %13243 }
0x144c   :  { %v7956_v41 = vsel %vm1442_vm10, %v15977_v18, 0.0 }
0x144d   :  { %7957 = vadd.xlane.f32.xlu0 %v7956_v41  ;;  %v10281_v41 = vld [vmem:[%s17073_s7 + $0xa8] sm:$0xff] }
0x14be   :  { %v7937_v8 = vpop.xlane.xlu1 %7936 }
0x14bf   :  { %13245 = vrcp.f32 %v7937_v8 }
0x14c2   :  { %v7940_v45 = vpop.xlane.xlu0 %7939 }
0x14c3   :  { %13247 = vrcp.f32 %v7940_v45 }
0x14c6   :  { %v7943_v42 = vpop.xlane.xlu1 %7942 }
0x14c7   :  { %13249 = vrcp.f32 %v7943_v42 }
0x14c9   :  { %v13246_v6 = vpop.eup %13245 }
0x14ca   :  { %v7960_v34 = vmul.f32 %v13246_v6, %v13230_v31  ;;  %v7946_v38 = vpop.xlane.xlu0 %7945  ;;  %v10282_v6 = vld [vmem:[%s17073_s7 + $0xb0] sm:$0xff] }
0x14cb   :  { %13251 = vrcp.f32 %v7946_v38 }
0x14cc   :  { %12166 = vmatmul.mubr.msk.f32.vlgmr.msra.gmra.mrb[136].mxu0 %vm1442_vm10, %v7960_v34  ;;  %v10283_v34 = vld [vmem:[%s17073_s7 + $0xb8] sm:$0xff] }
0x14cd   :  { %v13248_v60 = vpop.eup %13247  ;;  %12174 = vmatpush3.msra.mxu0 %v15941_v24  ;;  %12175 = vmatprep.mubr.msk.f32.mxu0 %vm13411_vm8, %v17174_v0 }
0x14ce   :  { %v7962_v35 = vmul.f32 %v13248_v60, %v13232_v61  ;;  %v7949_v43 = vpop.xlane.xlu1 %7948  ;;  %12183 = vmatprep.subr.mxu0 %v17174_v0  ;;  %v12863_v60 = vpack.c.bf16 %v10283_v34, %v10282_v6  ;;  %v10413_v6 = vld [vmem:[%s17076_s10 + $0x2a8] sm:$0xff] }
0x14cf   :  { %13253 = vrcp.f32 %v7949_v43 }
0x14d0   :  { %12171 = vmatmul.mubr.msk.f32.vlgmr.msra.gmra.mrb[160].mxu1 %vm1442_vm10, %v7962_v35 }
0x14d1   :  { %v13250_v1 = vpop.eup %13249  ;;  %12179 = vmatpush3.msra.mxu1 %v15938_v54  ;;  %12180 = vmatprep.mubr.msk.f32.mxu1 %vm13411_vm8, %v17174_v0  ;;  %v10362_v54 = vld [vmem:[%s17073_s7 + $0xc0] sm:$0xff] }
0x14d2   :  { %v7964_v11 = vmul.f32 %v13250_v1, %v13234_v62  ;;  %v7952_v15 = vpop.xlane.xlu0 %7951  ;;  %12188 = vmatprep.subr.mxu1 %v17174_v0  ;;  %v12835_v61 = vpack.c.bf16 %v10363_v56, %v10362_v54 }
0x14d3   :  { %13255 = vrcp.f32 %v7952_v15 }
0x14d4   :  { %12176 = vmatmul.mubr.msk.f32.vlgmr.msra.gmra.mrb[138].mxu0 %vm1442_vm10, %v7964_v11 }
0x14d5   :  { %v13252_v24 = vpop.eup %13251  ;;  %12184 = vmatpush3.msra.mxu0 %v15945_v39  ;;  %12185 = vmatprep.mubr.msk.f32.mxu0 %vm13411_vm8, %v17174_v0 }
0x14d6   :  { %v7966_v31 = vmul.f32 %v13252_v24, %v13236_v55  ;;  %v7955_v36 = vpop.xlane.xlu1 %7954  ;;  %12193 = vmatprep.subr.mxu0 %v17174_v0  ;;  %v10368_v55 = vld [vmem:[%s17073_s7 + $0xf0] sm:$0xff] }
0x14d7   :  { %13257 = vrcp.f32 %v7955_v36  ;;  %v12847_v23 = vpack.c.bf16 %v10369_v27, %v10368_v55 }
0x14d8   :  { %12181 = vmatmul.mubr.msk.f32.vlgmr.msra.gmra.mrb[162].mxu1 %vm1442_vm10, %v7966_v31 }
0x14d9   :  { %v13254_v33 = vpop.eup %13253  ;;  %12189 = vmatpush3.msra.mxu1 %v15943_v12  ;;  %12190 = vmatprep.mubr.msk.f32.mxu1 %vm13411_vm8, %v17174_v0  ;;  %v10364_v12 = vld [vmem:[%s17073_s7 + $0xd0] sm:$0xff] }
0x14da   :  { %v7968_v39 = vmul.f32 %v13254_v33, %v13238_v4  ;;  %v7958_v21 = vpop.xlane.xlu0 %7957  ;;  %12198 = vmatprep.subr.mxu1 %v17174_v0  ;;  %v12839_v62 = vpack.c.bf16 %v10365_v19, %v10364_v12  ;;  %v12851_v4 = vpack.c.bf16 %v10277_v47, %v10276_v51  ;;  %v10398_v51 = vld [vmem:[%s17076_s10 + $0x230] sm:$0xff]  ;;  %v10401_v47 = vld [vmem:[%s17076_s10 + $0x248] sm:$0xff] }
0x14db   :  { %13259 = vrcp.f32 %v7958_v21 }
0x14dc   :  { %12186 = vmatmul.mubr.msk.f32.vlgmr.msra.gmra.mrb[140].mxu0 %vm1442_vm10, %v7968_v39 }
0x14dd   :  { %v13256_v9 = vpop.eup %13255  ;;  %12194 = vmatpush3.msra.mxu0 %v15949_v53  ;;  %12195 = vmatprep.mubr.msk.f32.mxu0 %vm13411_vm8, %v17174_v0 }
0x14de   :  { %v7970_v28 = vmul.f32 %v13256_v9, %v13240_v17  ;;  %12836 = vmatprep.subr.bf16.mxu0 %v12835_v61  ;;  %v10279_v17 = vld [vmem:[%s17073_s7 + $0x98] sm:$0xff] }
0x14e0   :  { %12191 = vmatmul.mubr.msk.f32.vlgmr.msra.gmra.mrb[164].mxu1 %vm1442_vm10, %v7970_v28 }
0x14e1   :  { %v13258_v63 = vpop.eup %13257  ;;  %12199 = vmatpush3.msra.mxu1 %v15947_v48  ;;  %12200 = vmatprep.mubr.msk.f32.mxu1 %vm13411_vm8, %v17174_v0 }
0x14e2   :  { %v7972_v53 = vmul.f32 %v13258_v63, %v15973_v57  ;;  %v12855_v57 = vpack.c.bf16 %v10279_v17, %v10278_v32  ;;  %v10403_v32 = vld [vmem:[%s17076_s10 + $0x258] sm:$0xff] }
0x14e3   :  { %v10407_v17 = vld [vmem:[%s17076_s10 + $0x278] sm:$0xff] }
0x14e4   :  { %12196 = vmatmul.mubr.msk.f32.vlgmr.msra.gmra.mrb[142].mxu0 %vm1442_vm10, %v7972_v53 }
0x14e5   :  { %v13260_v14 = vpop.eup %13259  ;;  %12838 = vmatpush3.bf16.msra.mxu0 %v12835_v61 }
0x14e6   :  { %v7974_v48 = vmul.f32 %v13260_v14, %v15977_v18  ;;  %12840 = vmatprep.subr.bf16.mxu0 %v12839_v62  ;;  %v10280_v18 = vld [vmem:[%s17073_s7 + $0xa0] sm:$0xff] }
0x14e7   :  { %v12859_v45 = vpack.c.bf16 %v10281_v41, %v10280_v18  ;;  %v10404_v18 = vld [vmem:[%s17076_s10 + $0x260] sm:$0xff]  ;;  %v10402_v41 = vld [vmem:[%s17076_s10 + $0x250] sm:$0xff] }
0x14e8   :  { %12201 = vmatmul.mubr.msk.f32.vlgmr.msra.gmra.mrb[166].mxu1 %vm1442_vm10, %v7974_v48  ;;  %v10392_v48 = vld [vmem:[%s17076_s10 + $0x200] sm:$0xff] }
0x14e9   :  { %12842 = vmatpush3.bf16.msra.mxu0 %v12839_v62  ;;  %9122 = vmatprep.mubr.f32.mxu1 %v17174_v0 }
0x14ea   :  { %12844 = vmatprep.subr.bf16.mxu0 %v12843_v46 }
0x14ed   :  { %12846 = vmatpush3.bf16.msra.mxu0 %v12843_v46  ;;  %v10396_v46 = vld [vmem:[%s17076_s10 + $0x220] sm:$0xff] }
0x14ee   :  { %12848 = vmatprep.subr.bf16.mxu0 %v12847_v23  ;;  %v12869_v27 = vpack.c.bf16 %v10396_v46, %v10392_v48 }
0x14f1   :  { %12850 = vmatpush3.bf16.msra.mxu0 %v12847_v23  ;;  %v10394_v23 = vld [vmem:[%s17076_s10 + $0x210] sm:$0xff] }
0x14f2   :  { %12852 = vmatprep.subr.bf16.mxu0 %v12851_v4 }
0x159f   :  { %v8044_v10 = vpop.f32.mrb[136].mxu0 }
0x15a0   :  { %v12167_v29 = vpop.f32.mrb[137].mxu0  ;;  %12219 = vmatprep.mubr.msk.f32.mxu0 %vm833_vm9, %v8044_v10  ;;  %v10405_v10 = vld [vmem:[%s17076_s10 + $0x268] sm:$0xff] }
0x15a1   :  { %v12871_v29 = vpack.c.bf16 %v10405_v10, %v10401_v47  ;;  %v10420_v47 = vld [vmem:[%s17076_s10 + $0x2e0] sm:$0xff] }
0x15a3   :  { %v8117_v40 = vpop.f32.mrb[160].mxu1 }
0x15a4   :  { %v12172_v8 = vpop.f32.mrb[161].mxu1  ;;  %12220 = vmatmul.mubr.msk.f32.vlgmr.msra.gmra.mrb[144].mxu0 %vm833_vm9, %v8117_v40  ;;  %v10400_v40 = vld [vmem:[%s17076_s10 + $0x240] sm:$0xff] }
0x15a5   :  { %12854 = vmatpush3.bf16.msra.mxu0 %v12851_v4  ;;  %v12901_v4 = vpack.c.bf16 %v10398_v51, %v10394_v23  ;;  %v12873_v8 = vpack.c.bf16 %v10404_v18, %v10400_v40  ;;  %v10423_v23 = vld [vmem:[%s17076_s10 + $0x2f8] sm:$0xff]  ;;  %v10416_v51 = vld [vmem:[%s17076_s10 + $0x2c0] sm:$0xff]  ;;  %v10429_v40 = vld [vmem:[%s17076_s10 + $0x328] sm:$0xff] }
0x15a6   :  { %12856 = vmatprep.subr.bf16.mxu0 %v12855_v57  ;;  %v12881_v10 = vpack.c.bf16 %v10420_v47, %v10416_v51  ;;  %v10427_v18 = vld [vmem:[%s17076_s10 + $0x318] sm:$0xff]  ;;  %v10473_v51 = vld [vmem:[%s17078_s12 + $0x280] sm:$0xff]  ;;  %v10474_v47 = vld [vmem:[%s17078_s12 + $0x288] sm:$0xff] }
0x15a7   :  { %v8190_v42 = vpop.f32.mrb[138].mxu0 }
0x15a8   :  { %v12177_v38 = vpop.f32.mrb[139].mxu0  ;;  %12222 = vmatprep.mubr.msk.f32.mxu0 %vm833_vm9, %v8190_v42  ;;  %v10409_v42 = vld [vmem:[%s17076_s10 + $0x288] sm:$0xff] }
0x15a9   :  { %12858 = vmatpush3.bf16.msra.mxu0 %v12855_v57  ;;  %v12903_v57 = vpack.c.bf16 %v10407_v17, %v10403_v32  ;;  %v12875_v38 = vpack.c.bf16 %v10413_v6, %v10409_v42  ;;  %v10418_v32 = vld [vmem:[%s17076_s10 + $0x2d0] sm:$0xff]  ;;  %v10428_v42 = vld [vmem:[%s17076_s10 + $0x320] sm:$0xff] }
0x15aa   :  { %12860 = vmatprep.subr.bf16.mxu0 %v12859_v45  ;;  %v10422_v17 = vld [vmem:[%s17076_s10 + $0x2f0] sm:$0xff] }
0x15ab   :  { %v8263_v35 = vpop.f32.mrb[162].mxu1 }
0x15ac   :  { %v12182_v43 = vpop.f32.mrb[163].mxu1  ;;  %12223 = vmatmul.mubr.msk.f32.gmra.mrb[146].mxu0 %vm833_vm9, %v8263_v35  ;;  %v10415_v35 = vld [vmem:[%s17076_s10 + $0x2b8] sm:$0xff] }
0x15ad   :  { %12862 = vmatpush3.bf16.msra.mxu0 %v12859_v45  ;;  %v10406_v45 = vld [vmem:[%s17076_s10 + $0x270] sm:$0xff]  ;;  %v10408_v43 = vld [vmem:[%s17076_s10 + $0x280] sm:$0xff] }
0x15ae   :  { %12864 = vmatprep.subr.bf16.mxu0 %v12863_v60  ;;  %v12905_v34 = vpack.c.bf16 %v10406_v45, %v10402_v41  ;;  %v10424_v45 = vld [vmem:[%s17076_s10 + $0x300] sm:$0xff] }
0x15af   :  { %v8336_v1 = vpop.f32.mrb[140].mxu0 }
0x15b0   :  { %v12187_v11 = vpop.f32.mrb[141].mxu0  ;;  %12225 = vmatprep.mubr.msk.f32.mxu0 %vm833_vm9, %v8336_v1 }
0x15b1   :  { %12866 = vmatpush3.bf16.msra.mxu0 %v12863_v60  ;;  %v10411_v60 = vld [vmem:[%s17076_s10 + $0x298] sm:$0xff]  ;;  %v10412_v11 = vld [vmem:[%s17076_s10 + $0x2a0] sm:$0xff] }
0x15b2   :  { %v12907_v1 = vpack.c.bf16 %v10415_v35, %v10411_v60  ;;  %v10430_v60 = vld [vmem:[%s17076_s10 + $0x330] sm:$0xff] }
0x15b3   :  { %v8409_v15 = vpop.f32.mrb[164].mxu1 }
0x15b4   :  { %v12192_v24 = vpop.f32.mrb[165].mxu1  ;;  %12226 = vmatmul.mubr.msk.f32.gmra.mrb[148].mxu0 %vm833_vm9, %v8409_v15  ;;  %v10410_v15 = vld [vmem:[%s17076_s10 + $0x290] sm:$0xff] }
0x15b5   :  { %v10414_v24 = vld [vmem:[%s17076_s10 + $0x2b0] sm:$0xff] }
0x15b7   :  { %v8482_v31 = vpop.f32.mrb[142].mxu0 }
0x15b8   :  { %v12197_v36 = vpop.f32.mrb[143].mxu0  ;;  %12228 = vmatprep.mubr.msk.f32.mxu0 %vm833_vm9, %v8482_v31  ;;  %v12877_v31 = vpack.c.bf16 %v10412_v11, %v10408_v43  ;;  %v10433_v43 = vld [vmem:[%s17076_s10 + $0x348] sm:$0xff]  ;;  %v10435_v11 = vld [vmem:[%s17076_s10 + $0x358] sm:$0xff] }
0x15b9   :  { %v12909_v36 = vpack.c.bf16 %v10414_v24, %v10410_v15  ;;  %v10439_v24 = vld [vmem:[%s17076_s10 + $0x378] sm:$0xff] }
0x15bb   :  { %v8555_v54 = vpop.f32.mrb[166].mxu1 }
0x15bc   :  { %v12202_v56 = vpop.f32.mrb[167].mxu1  ;;  %12229 = vmatmul.mubr.msk.f32.gmra.mrb[150].mxu0 %vm833_vm9, %v8555_v54 }
0x15bd   :  { %12247 = vmatprep.mubr.msk.f32.mxu0 %vm833_vm9, %v15874_v3 }
0x15c0   :  { %12248 = vmatmul.mubr.msk.f32.vlgmr.msra.gmra.mrb[144].mxu0 %vm833_vm9, %v15872_v16  ;;  %v10387_v16 = vld [vmem:[%s17074_s8 + $0x1] ss:$0 sm:$0xff] }
0x15c1   :  { %12250 = vmatprep.mubr.msk.f32.mxu0 %vm833_vm9, %v15878_v58 }
0x15c4   :  { %12251 = vmatmul.mubr.msk.f32.gmra.mrb[146].mxu0 %vm833_vm9, %v15876_v22 }
0x15c5   :  { %12253 = vmatprep.mubr.msk.f32.mxu0 %vm833_vm9, %v15882_v30 }
0x15c8   :  { %12254 = vmatmul.mubr.msk.f32.gmra.mrb[148].mxu0 %vm833_vm9, %v15880_v26 }
0x15c9   :  { %12256 = vmatprep.mubr.msk.f32.mxu0 %vm833_vm9, %v15886_v5 }
0x15cc   :  { %12257 = vmatmul.mubr.msk.f32.gmra.mrb[150].mxu0 %vm833_vm9, %v15884_v44 }
0x15cd   :  { %9235 = vmatprep.mubr.f32.mxu0 %v17174_v0 }
0x1693   :  { %v12249_v3 = vpop.f32.mrb[144].mxu0 }
0x1694   :  { %v8835_v22 = vadd.f32 %v12249_v3, %v10387_v16  ;;  %v8787_v58 = vpop.f32.mrb[145].mxu0 }
0x1695   :  { %v8834_v33 = vadd.f32 %v10387_v16, %v8787_v58 }
0x1696   :  { %v16091_v30 = vadd.f32 %v8835_v22, %v15478_v2 }
0x1697   :  { %v16094_v26 = vadd.f32 %v8834_v33, %v15465_v52  ;;  %v12252_v5 = vpop.f32.mrb[146].mxu0 }
0x1698   :  { %v8837_v39 = vadd.f32 %v12252_v5, %v10387_v16  ;;  %8856 = vadd.xlane.f32.xlu0 %v16091_v30  ;;  %v8797_v44 = vpop.f32.mrb[147].mxu0 }
0x1699   :  { %v8836_v21 = vadd.f32 %v10387_v16, %v8797_v44  ;;  %8854 = vadd.xlane.f32.xlu1 %v16094_v26 }
0x169a   :  { %v16099_v61 = vadd.f32 %v8837_v39, %v15504_v20 }
0x169b   :  { %v16102_v9 = vadd.f32 %v8836_v21, %v15491_v37  ;;  %v12255_v28 = vpop.f32.mrb[148].mxu0 }
0x169c   :  { %v8839_v2 = vadd.f32 %v12255_v28, %v10387_v16  ;;  %8860 = vadd.xlane.f32.xlu0 %v16099_v61  ;;  %v8807_v52 = vpop.f32.mrb[149].mxu0 }
0x169d   :  { %v8838_v12 = vadd.f32 %v10387_v16, %v8807_v52  ;;  %8858 = vadd.xlane.f32.xlu1 %v16102_v9 }
0x169e   :  { %v16107_v19 = vadd.f32 %v8839_v2, %v15542_v25  ;;  %v10397_v25 = vld [vmem:[%s17076_s10 + $0x228] sm:$0xff] }
0x169f   :  { %v16110_v63 = vadd.f32 %v8838_v12, %v15523_v7  ;;  %v12258_v53 = vpop.f32.mrb[150].mxu0  ;;  %v10393_v7 = vld [vmem:[%s17076_s10 + $0x208] sm:$0xff] }
0x16a0   :  { %v8841_v20 = vadd.f32 %v12258_v53, %v10387_v16  ;;  %8864 = vadd.xlane.f32.xlu0 %v16107_v19  ;;  %v8817_v37 = vpop.f32.mrb[151].mxu0  ;;  %v12867_v14 = vpack.c.bf16 %v10397_v25, %v10393_v7 }
0x16a1   :  { %v8840_v62 = vadd.f32 %v10387_v16, %v8817_v37  ;;  %8862 = vadd.xlane.f32.xlu1 %v16110_v63 }
0x16a2   :  { %v16115_v59 = vadd.f32 %v8841_v20, %v15557_v13  ;;  %v10395_v13 = vld [vmem:[%s17076_s10 + $0x218] sm:$0xff]  ;;  %12868 = vmatprep.subr.bf16.mxu1 %v12867_v14 }
0x16a3   :  { %v16118_v49 = vadd.f32 %v8840_v62, %v15549_v50  ;;  %v10399_v50 = vld [vmem:[%s17076_s10 + $0x238] sm:$0xff]  ;;  %12870 = vmatpush1.bf16.msra.mxu1 %v12869_v27 }
0x16a4   :  { %8868 = vadd.xlane.f32.xlu0 %v16115_v59  ;;  %v12899_v55 = vpack.c.bf16 %v10399_v50, %v10395_v13  ;;  %12872 = vmatprep.subr.bf16.mxu1 %v12871_v29  ;;  %v12913_v29 = vpack.c.bf16 %v10422_v17, %v10418_v32  ;;  %v10506_v32 = vld [vmem:[%s17078_s12 + $0x388] sm:$0xff] }
0x16a5   :  { %8866 = vadd.xlane.f32.xlu1 %v16118_v49 }
0x16a6   :  { %12900 = vmatprep.subr.bf16.mxu0 %v12899_v55  ;;  %v10417_v55 = vld [vmem:[%s17076_s10 + $0x2c8] sm:$0xff] }
0x16a7   :  { %12902 = vmatpush1.bf16.msra.mxu0 %v12901_v4  ;;  %12874 = vmatpush1.bf16.msra.mxu1 %v12873_v8  ;;  %v10431_v8 = vld [vmem:[%s17076_s10 + $0x338] sm:$0xff] }
0x16a8   :  { %12904 = vmatprep.subr.bf16.mxu0 %v12903_v57  ;;  %12876 = vmatprep.subr.bf16.mxu1 %v12875_v38  ;;  %v10425_v57 = vld [vmem:[%s17076_s10 + $0x308] sm:$0xff]  ;;  %v12915_v6 = vpack.c.bf16 %v10431_v8, %v10427_v18  ;;  %v10426_v38 = vld [vmem:[%s17076_s10 + $0x310] sm:$0xff] }
0x16a9   :  { %v12883_v41 = vpack.c.bf16 %v10429_v40, %v10425_v57  ;;  %v12917_v35 = vpack.c.bf16 %v10430_v60, %v10426_v38 }
0x16ab   :  { %12906 = vmatpush1.bf16.msra.mxu0 %v12905_v34  ;;  %12878 = vmatpush1.bf16.msra.mxu1 %v12877_v31  ;;  %v12885_v34 = vpack.c.bf16 %v10428_v42, %v10424_v45  ;;  %v10432_v31 = vld [vmem:[%s17076_s10 + $0x340] sm:$0xff] }
0x16ac   :  { %12908 = vmatprep.subr.bf16.mxu0 %v12907_v1  ;;  %v10437_v1 = vld [vmem:[%s17076_s10 + $0x368] sm:$0xff] }
0x16ad   :  { %v12887_v15 = vpack.c.bf16 %v10437_v1, %v10433_v43 }
0x16af   :  { %12910 = vmatpush1.bf16.msra.mxu0 %v12909_v36  ;;  %v10436_v36 = vld [vmem:[%s17076_s10 + $0x360] sm:$0xff] }
0x1725   :  { %v8857_v54 = vpop.xlane.xlu0 %8856 }
0x1726   :  { %v8871_v56 = vmul.f32 0.0078125, %v8857_v54  ;;  %v8855_v16 = vpop.xlane.xlu1 %8854  ;;  %v12919_v54 = vpack.c.bf16 %v10439_v24, %v10435_v11 }
0x1727   :  { %v8870_v3 = vmul.f32 0.0078125, %v8855_v16  ;;  %v10434_v16 = vld [vmem:[%s17076_s10 + $0x350] sm:$0xff] }
0x1728   :  { %v16195_v22 = vsub.f32 %v16091_v30, %v8871_v56  ;;  %v12889_v56 = vpack.c.bf16 %v10436_v36, %v10432_v31 }
0x1729   :  { %v16198_v58 = vsub.f32 %v16094_v26, %v8870_v3  ;;  %v8861_v33 = vpop.xlane.xlu0 %8860  ;;  %v10438_v3 = vld [vmem:[%s17076_s10 + $0x370] sm:$0xff] }
0x172a   :  { %v8873_v5 = vmul.f32 0.0078125, %v8861_v33  ;;  %v8859_v39 = vpop.xlane.xlu1 %8858  ;;  %v8887_v44 = vmul.f32 %v16195_v22, %v16195_v22  ;;  %v12921_v33 = vpack.c.bf16 %v10438_v3, %v10434_v16  ;;  %v16369_v16 = vld [vmem:[%s17075_s9 + $0x2] ss:$0 sm:$0xff] }
0x172b   :  { %v8872_v21 = vmul.f32 0.0078125, %v8859_v39  ;;  %v8886_v28 = vmul.f32 %v16198_v58, %v16198_v58  ;;  %v10445_v39 = vld [vmem:[%s17076_s10 + $0x3a8] sm:$0xff] }
0x172c   :  { %v16205_v2 = vsub.f32 %v16099_v61, %v8873_v5  ;;  %8896 = vadd.xlane.f32.xlu0 %v8887_v44  ;;  %v10441_v5 = vld [vmem:[%s17076_s10 + $0x388] sm:$0xff]  ;;  %v10443_v44 = vld [vmem:[%s17076_s10 + $0x398] sm:$0xff] }
0x172d   :  { %v16208_v30 = vsub.f32 %v16102_v9, %v8872_v21  ;;  %v8865_v52 = vpop.xlane.xlu0 %8864  ;;  %8894 = vadd.xlane.f32.xlu1 %v8886_v28  ;;  %v12891_v21 = vpack.c.bf16 %v10445_v39, %v10441_v5  ;;  %v10447_v28 = vld [vmem:[%s17076_s10 + $0x3b8] sm:$0xff]  ;;  %v10457_v39 = vld [vmem:[%s17078_s12 + $0x200] sm:$0xff] }
0x172e   :  { %v8875_v26 = vmul.f32 0.0078125, %v8865_v52  ;;  %v8863_v12 = vpop.xlane.xlu1 %8862  ;;  %v8889_v53 = vmul.f32 %v16205_v2, %v16205_v2  ;;  %v10440_v52 = vld [vmem:[%s17076_s10 + $0x380] sm:$0xff] }
0x172f   :  { %v8874_v20 = vmul.f32 0.0078125, %v8863_v12  ;;  %v8888_v37 = vmul.f32 %v16208_v30, %v16208_v30  ;;  %v12923_v12 = vpack.c.bf16 %v10447_v28, %v10443_v44  ;;  %v10458_v44 = vld [vmem:[%s17078_s12 + $0x208] sm:$0xff]  ;;  %v10489_v28 = vld [vmem:[%s17078_s12 + $0x300] sm:$0xff] }
0x1730   :  { %v16215_v62 = vsub.f32 %v16107_v19, %v8875_v26  ;;  %8900 = vadd.xlane.f32.xlu0 %v8889_v53  ;;  %v10444_v26 = vld [vmem:[%s17076_s10 + $0x3a0] sm:$0xff] }
0x1731   :  { %v16218_v61 = vsub.f32 %v16110_v63, %v8874_v20  ;;  %v8869_v9 = vpop.xlane.xlu0 %8868  ;;  %8898 = vadd.xlane.f32.xlu1 %v8888_v37  ;;  %v12893_v53 = vpack.c.bf16 %v10444_v26, %v10440_v52  ;;  %v10442_v20 = vld [vmem:[%s17076_s10 + $0x390] sm:$0xff] }
0x1732   :  { %v8877_v7 = vmul.f32 0.0078125, %v8869_v9  ;;  %v8867_v25 = vpop.xlane.xlu1 %8866  ;;  %v8891_v13 = vmul.f32 %v16215_v62, %v16215_v62  ;;  %v10446_v37 = vld [vmem:[%s17076_s10 + $0x3b0] sm:$0xff]  ;;  %v10449_v9 = vld [vmem:[%s17076_s10 + $0x3c8] sm:$0xff] }
0x1733   :  { %v8876_v14 = vmul.f32 0.0078125, %v8867_v25  ;;  %v8890_v50 = vmul.f32 %v16218_v61, %v16218_v61  ;;  %v10453_v25 = vld [vmem:[%s17076_s10 + $0x3e8] sm:$0xff] }
0x1734   :  { %v16225_v48 = vsub.f32 %v16115_v59, %v8877_v7  ;;  %8904 = vadd.xlane.f32.xlu0 %v8891_v13  ;;  %v10421_v59 = vld [vmem:[%s17076_s10 + $0x2e8] sm:$0xff]  ;;  %v12925_v7 = vpack.c.bf16 %v10446_v37, %v10442_v20  ;;  %v10451_v13 = vld [vmem:[%s17076_s10 + $0x3d8] sm:$0xff] }
0x1735   :  { %v16228_v19 = vsub.f32 %v16118_v49, %v8876_v14  ;;  %8902 = vadd.xlane.f32.xlu1 %v8890_v50  ;;  %v10419_v49 = vld [vmem:[%s17076_s10 + $0x2d8] sm:$0xff]  ;;  %v12879_v27 = vpack.c.bf16 %v10421_v59, %v10417_v55  ;;  %v12895_v50 = vpack.c.bf16 %v10453_v25, %v10449_v9  ;;  %v10452_v55 = vld [vmem:[%s17076_s10 + $0x3e0] sm:$0xff]  ;;  %v10450_v59 = vld [vmem:[%s17076_s10 + $0x3d0] sm:$0xff] }
0x1736   :  { %v8893_v63 = vmul.f32 %v16225_v48, %v16225_v48  ;;  %v12911_v4 = vpack.c.bf16 %v10423_v23, %v10419_v49  ;;  %v10455_v14 = vld [vmem:[%s17076_s10 + $0x3f8] sm:$0xff] }
0x1737   :  { %v8892_v46 = vmul.f32 %v16228_v19, %v16228_v19  ;;  %12880 = vmatprep.subr.bf16.mxu1 %v12879_v27  ;;  %v10454_v27 = vld [vmem:[%s17076_s10 + $0x3f0] sm:$0xff] }
0x1738   :  { %8908 = vadd.xlane.f32.xlu0 %v8893_v63  ;;  %12912 = vmatprep.subr.bf16.mxu0 %v12911_v4  ;;  %v12927_v63 = vpack.c.bf16 %v10455_v14, %v10451_v13  ;;  %v12929_v23 = vpack.c.bf16 %v10454_v27, %v10450_v59  ;;  %v10505_v4 = vld [vmem:[%s17078_s12 + $0x380] sm:$0xff] }
0x1739   :  { %8906 = vadd.xlane.f32.xlu1 %v8892_v46  ;;  %12882 = vmatpush1.bf16.msra.mxu1 %v12881_v10  ;;  %v10448_v46 = vld [vmem:[%s17076_s10 + $0x3c0] sm:$0xff]  ;;  %v12931_v10 = vpack.c.bf16 %v10474_v47, %v10473_v51  ;;  %v12963_v17 = vpack.c.bf16 %v10506_v32, %v10505_v4 }
0x173a   :  { %12914 = vmatpush1.bf16.msra.mxu0 %v12913_v29  ;;  %12884 = vmatprep.subr.bf16.mxu1 %v12883_v41  ;;  %v12897_v49 = vpack.c.bf16 %v10452_v55, %v10448_v46 }
0x173b   :  { %12916 = vmatprep.subr.bf16.mxu0 %v12915_v6 }
0x173d   :  { %12886 = vmatpush1.bf16.msra.mxu1 %v12885_v34 }
0x173e   :  { %12918 = vmatpush1.bf16.msra.mxu0 %v12917_v35  ;;  %12888 = vmatprep.subr.bf16.mxu1 %v12887_v15 }
0x173f   :  { %12920 = vmatprep.subr.bf16.mxu0 %v12919_v54 }
0x1741   :  { %12890 = vmatpush1.bf16.msra.mxu1 %v12889_v56 }
0x1742   :  { %12922 = vmatpush1.bf16.msra.mxu0 %v12921_v33  ;;  %12892 = vmatprep.subr.bf16.mxu1 %v12891_v21  ;;  %v16382_v21 = vld [vmem:[%s17075_s9 + $0x3] ss:$0 sm:$0xff] }
0x1743   :  { %12924 = vmatprep.subr.bf16.mxu0 %v12923_v12 }
0x1745   :  { %12894 = vmatpush1.bf16.msra.mxu1 %v12893_v53  ;;  %v12933_v53 = vpack.c.bf16 %v10458_v44, %v10457_v39  ;;  %v10511_v39 = vld [vmem:[%s17078_s12 + $0x3b0] sm:$0xff] }
0x1746   :  { %12926 = vmatpush1.bf16.msra.mxu0 %v12925_v7  ;;  %12896 = vmatprep.subr.bf16.mxu1 %v12895_v50 }
0x1747   :  { %12928 = vmatprep.subr.bf16.mxu0 %v12927_v63 }
0x1749   :  { %12898 = vmatpush1.bf16.msra.mxu1 %v12897_v49 }
0x174a   :  { %12930 = vmatpush1.bf16.msra.mxu0 %v12929_v23  ;;  %12932 = vmatprep.subr.bf16.mxu1 %v12931_v10 }
0x174b   :  { %12964 = vmatprep.subr.bf16.mxu0 %v12963_v17 }
0x17b9   :  { %v8897_v29 = vpop.xlane.xlu0 %8896 }
0x17ba   :  { %v8911_v57 = vmul.f32 0.0078125, %v8897_v29  ;;  %v8895_v40 = vpop.xlane.xlu1 %8894 }
0x17bb   :  { %v8910_v18 = vmul.f32 0.0078125, %v8895_v40  ;;  %v10476_v40 = vld [vmem:[%s17078_s12 + $0x298] sm:$0xff] }
0x17bc   :  { %v8919_v41 = vadd.f32 1e-12, %v8911_v57  ;;  %v10475_v57 = vld [vmem:[%s17078_s12 + $0x290] sm:$0xff] }
0x17bd   :  { %v8918_v8 = vadd.f32 1e-12, %v8910_v18  ;;  %v8901_v45 = vpop.xlane.xlu0 %8900  ;;  %v10507_v18 = vld [vmem:[%s17078_s12 + $0x390] sm:$0xff] }
0x17be   :  { %13261 = vrsqrt.f32 %v8919_v41  ;;  %v8913_v42 = vmul.f32 0.0078125, %v8901_v45  ;;  %v8899_v6 = vpop.xlane.xlu1 %8898  ;;  %v10508_v41 = vld [vmem:[%s17078_s12 + $0x398] sm:$0xff] }
0x17bf   :  { %13263 = vrsqrt.f32 %v8918_v8  ;;  %v8912_v34 = vmul.f32 0.0078125, %v8899_v6  ;;  %v10459_v8 = vld [vmem:[%s17078_s12 + $0x210] sm:$0xff]  ;;  %v10460_v45 = vld [vmem:[%s17078_s12 + $0x218] sm:$0xff] }
0x17c0   :  { %v8921_v38 = vadd.f32 1e-12, %v8913_v42  ;;  %v12967_v42 = vpack.c.bf16 %v10508_v41, %v10507_v18  ;;  %v12937_v6 = vpack.c.bf16 %v10460_v45, %v10459_v8  ;;  %v10500_v18 = vld [vmem:[%s17078_s12 + $0x358] sm:$0xff]  ;;  %v10485_v41 = vld [vmem:[%s17078_s12 + $0x2e0] sm:$0xff]  ;;  %v10486_v8 = vld [vmem:[%s17078_s12 + $0x2e8] sm:$0xff] }
0x17c1   :  { %v8920_v60 = vadd.f32 1e-12, %v8912_v34  ;;  %v8905_v35 = vpop.xlane.xlu0 %8904  ;;  %v10491_v34 = vld [vmem:[%s17078_s12 + $0x310] sm:$0xff]  ;;  %v10517_v45 = vld [vmem:[%s17078_s12 + $0x3e0] sm:$0xff] }
0x17c2   :  { %v8903_v43 = vpop.xlane.xlu1 %8902  ;;  %v8915_v11 = vmul.f32 0.0078125, %v8905_v35  ;;  %v10477_v35 = vld [vmem:[%s17078_s12 + $0x2a0] sm:$0xff] }
0x17c3   :  { %13265 = vrsqrt.f32 %v8920_v60  ;;  %v8914_v1 = vmul.f32 0.0078125, %v8903_v43  ;;  %v10478_v43 = vld [vmem:[%s17078_s12 + $0x2a8] sm:$0xff] }
0x17c4   :  { %13267 = vrsqrt.f32 %v8921_v38  ;;  %v8923_v54 = vadd.f32 1e-12, %v8915_v11  ;;  %v10492_v38 = vld [vmem:[%s17078_s12 + $0x318] sm:$0xff]  ;;  %v12939_v11 = vpack.c.bf16 %v10478_v43, %v10477_v35  ;;  %v10501_v43 = vld [vmem:[%s17078_s12 + $0x360] sm:$0xff] }
0x17c5   :  { %v8922_v15 = vadd.f32 1e-12, %v8914_v1  ;;  %v8909_v3 = vpop.xlane.xlu0 %8908  ;;  %v12969_v60 = vpack.c.bf16 %v10492_v38, %v10491_v34  ;;  %v10509_v1 = vld [vmem:[%s17078_s12 + $0x3a0] sm:$0xff]  ;;  %v10470_v38 = vld [vmem:[%s17078_s12 + $0x268] sm:$0xff] }
0x17c6   :  { %v8907_v24 = vpop.xlane.xlu1 %8906  ;;  %v8917_v26 = vmul.f32 0.0078125, %v8909_v3  ;;  %v10469_v34 = vld [vmem:[%s17078_s12 + $0x260] sm:$0xff] }
0x17c7   :  { %13269 = vrsqrt.f32 %v8922_v15  ;;  %v8916_v56 = vmul.f32 0.0078125, %v8907_v24  ;;  %v10510_v15 = vld [vmem:[%s17078_s12 + $0x3a8] sm:$0xff]  ;;  %v10461_v24 = vld [vmem:[%s17078_s12 + $0x220] sm:$0xff]  ;;  %v12957_v35 = vpack.c.bf16 %v10470_v38, %v10469_v34 }
0x17c8   :  { %v13262_v31 = vpop.eup %13261  ;;  %13271 = vrsqrt.f32 %v8923_v54  ;;  %v8925_v13 = vadd.f32 1e-12, %v8917_v26  ;;  %v10495_v26 = vld [vmem:[%s17078_s12 + $0x330] sm:$0xff] }
0x17c9   :  { %v13264_v36 = vpop.eup %13263  ;;  %v8935_v5 = vmul.f32 %v13262_v31, %v16195_v22  ;;  %v10490_v22 = vld [vmem:[%s17078_s12 + $0x308] sm:$0xff]  ;;  %v8924_v12 = vadd.f32 1e-12, %v8916_v56  ;;  %v10493_v56 = vld [vmem:[%s17078_s12 + $0x320] sm:$0xff] }
0x17ca   :  { %v8934_v33 = vmul.f32 %v13264_v36, %v16198_v58  ;;  %v12965_v7 = vpack.c.bf16 %v10490_v22, %v10489_v28  ;;  %v10462_v31 = vld [vmem:[%s17078_s12 + $0x228] sm:$0xff]  ;;  %v12971_v36 = vpack.c.bf16 %v10510_v15, %v10509_v1  ;;  %v10463_v28 = vld [vmem:[%s17078_s12 + $0x230] sm:$0xff]  ;;  %v10464_v22 = vld [vmem:[%s17078_s12 + $0x238] sm:$0xff] }
0x17cb   :  { %v8949_v37 = vmul.f32 %v16369_v16, %v8935_v5  ;;  %13273 = vrsqrt.f32 %v8924_v12  ;;  %v12941_v54 = vpack.c.bf16 %v10462_v31, %v10461_v24  ;;  %v10480_v5 = vld [vmem:[%s17078_s12 + $0x2b8] sm:$0xff]  ;;  %v10502_v1 = vld [vmem:[%s17078_s12 + $0x368] sm:$0xff]  ;;  %v10487_v15 = vld [vmem:[%s17078_s12 + $0x2f0] sm:$0xff] }
0x17cc   :  { %v8948_v58 = vmul.f32 %v16369_v16, %v8934_v33  ;;  %13275 = vrsqrt.f32 %v8925_v13  ;;  %v10479_v33 = vld [vmem:[%s17078_s12 + $0x2b0] sm:$0xff]  ;;  %v10496_v12 = vld [vmem:[%s17078_s12 + $0x338] sm:$0xff]  ;;  %v10514_v13 = vld [vmem:[%s17078_s12 + $0x3c8] sm:$0xff] }
0x17cd   :  { %v13266_v52 = vpop.eup %13265  ;;  %v16401_v14 = vadd.f32 %v16382_v21, %v8949_v37  ;;  %v12943_v44 = vpack.c.bf16 %v10480_v5, %v10479_v33  ;;  %v10481_v37 = vld [vmem:[%s17078_s12 + $0x2c0] sm:$0xff]  ;;  %v10488_v24 = vld [vmem:[%s17078_s12 + $0x2f8] sm:$0xff]  ;;  %v10519_v31 = vld [vmem:[%s17078_s12 + $0x3f0] sm:$0xff] }
0x17ce   :  { %v16392_v20 = vadd.f32 %v16382_v21, %v8948_v58  ;;  %v8936_v9 = vmul.f32 %v13266_v52, %v16208_v30  ;;  %v13268_v25 = vpop.eup %13267  ;;  %v12945_v52 = vpack.c.bf16 %v10464_v22, %v10463_v28  ;;  %v10503_v5 = vld [vmem:[%s17078_s12 + $0x370] sm:$0xff] }
0x17cf   :  { %17184 = vst [vmem:[#allocation31_spill] sm:$0xff] %v16401_v14  ;;  %v8937_v63 = vmul.f32 %v13268_v25, %v16205_v2  ;;  %v17191_v28 = vld [vmem:[#allocation9_spill] sm:$0xff] }
0x17d0   :  { %17183 = vst [vmem:[#allocation28_spill] sm:$0xff] %v16392_v20  ;;  %9123 = vmatmul.mubr.f32.vlgmr.msra.gmra.mrb[168].mxu1 %v16392_v20  ;;  %9236 = vmatmul.mubr.f32.vlgmr.msra.gmra.mrb[152].mxu0 %v16392_v20  ;;  %v8950_v50 = vmul.f32 %v16369_v16, %v8936_v9  ;;  %v10482_v9 = vld [vmem:[%s17078_s12 + $0x2c8] sm:$0xff] }
0x17d1   :  { %9128 = vmatprep.mubr.f32.mxu1 %v17174_v0  ;;  %9241 = vmatprep.mubr.f32.mxu0 %v17174_v0  ;;  %v13270_v30 = vpop.eup %13269  ;;  %v8951_v55 = vmul.f32 %v16369_v16, %v8937_v63  ;;  %v12947_v25 = vpack.c.bf16 %v10482_v9, %v10481_v37  ;;  %v10466_v63 = vld [vmem:[%s17078_s12 + $0x248] sm:$0xff] }
0x17d2   :  { %12934 = vmatpush3.bf16.msra.mxu1 %v12933_v53  ;;  %12966 = vmatpush3.bf16.msra.mxu0 %v12965_v7  ;;  %v16410_v46 = vadd.f32 %v16382_v21, %v8950_v50  ;;  %v8938_v59 = vmul.f32 %v13270_v30, %v16218_v61  ;;  %v13272_v2 = vpop.eup %13271  ;;  %v12977_v53 = vpack.c.bf16 %v10496_v12, %v10495_v26  ;;  %v10513_v7 = vld [vmem:[%s17078_s12 + $0x3c0] sm:$0xff] }
0x17d3   :  { %v16419_v49 = vadd.f32 %v16382_v21, %v8951_v55  ;;  %v8939_v23 = vmul.f32 %v13272_v2, %v16215_v62  ;;  %12968 = vmatprep.subr.bf16.mxu0 %v12967_v42  ;;  %v10465_v50 = vld [vmem:[%s17078_s12 + $0x240] sm:$0xff]  ;;  %v12979_v30 = vpack.c.bf16 %v10514_v13, %v10513_v7  ;;  %v10498_v2 = vld [vmem:[%s17078_s12 + $0x348] sm:$0xff]  ;;  %v12955_v42 = vpack.c.bf16 %v10486_v8, %v10485_v41 }
0x17d4   :  { %9129 = vmatmul.mubr.f32.gmra.mrb[170].mxu1 %v16401_v14  ;;  %9242 = vmatmul.mubr.f32.gmra.mrb[154].mxu0 %v16401_v14  ;;  %17185 = vst [vmem:[#allocation26_spill] sm:$0xff] %v16410_v46  ;;  %v8952_v27 = vmul.f32 %v16369_v16, %v8938_v59  ;;  %v12949_v55 = vpack.c.bf16 %v10466_v63, %v10465_v50  ;;  %v10497_v59 = vld [vmem:[%s17078_s12 + $0x340] sm:$0xff] }
0x17d5   :  { %9134 = vmatprep.mubr.f32.mxu1 %v17174_v0  ;;  %9247 = vmatprep.mubr.f32.mxu0 %v17174_v0  ;;  %17186 = vst [vmem:[#allocation29_spill] sm:$0xff] %v16419_v49  ;;  %v13274_v51 = vpop.eup %13273  ;;  %v8953_v47 = vmul.f32 %v16369_v16, %v8939_v23  ;;  %v10483_v23 = vld [vmem:[%s17078_s12 + $0x2d0] sm:$0xff] }
0x17d6   :  { %v16428_v61 = vadd.f32 %v16382_v21, %v8952_v27  ;;  %v8940_v4 = vmul.f32 %v13274_v51, %v16228_v19  ;;  %v13276_v10 = vpop.eup %13275  ;;  %12970 = vmatpush3.bf16.msra.mxu0 %v12969_v60  ;;  %v12981_v27 = vpack.c.bf16 %v10498_v2, %v10497_v59  ;;  %v10484_v51 = vld [vmem:[%s17078_s12 + $0x2d8] sm:$0xff] }
0x17d7   :  { %v16437_v62 = vadd.f32 %v16382_v21, %v8953_v47  ;;  %v8941_v17 = vmul.f32 %v13276_v10, %v16225_v48  ;;  %12972 = vmatprep.subr.bf16.mxu0 %v12971_v36  ;;  %v10515_v47 = vld [vmem:[%s17078_s12 + $0x3d0] sm:$0xff]  ;;  %v10516_v10 = vld [vmem:[%s17078_s12 + $0x3d8] sm:$0xff]  ;;  %v12959_v36 = vpack.c.bf16 %v10488_v24, %v10487_v15 }
0x17d8   :  { %9135 = vmatmul.mubr.f32.gmra.mrb[172].mxu1 %v16410_v46  ;;  %9248 = vmatmul.mubr.f32.gmra.mrb[156].mxu0 %v16410_v46  ;;  %17187 = vst [vmem:[#allocation27_spill] sm:$0xff] %v16428_v61  ;;  %v8954_v32 = vmul.f32 %v16369_v16, %v8940_v4  ;;  %v12951_v4 = vpack.c.bf16 %v10484_v51, %v10483_v23 }
0x17d9   :  { %9140 = vmatprep.mubr.f32.mxu1 %v17174_v0  ;;  %9253 = vmatprep.mubr.f32.mxu0 %v17174_v0  ;;  %17188 = vst [vmem:[#allocation30_spill] sm:$0xff] %v16437_v62  ;;  %v8955_v29 = vmul.f32 %v16369_v16, %v8941_v17  ;;  %v10494_v16 = vld [vmem:[%s17078_s12 + $0x328] sm:$0xff]  ;;  %v10468_v17 = vld [vmem:[%s17078_s12 + $0x258] sm:$0xff] }
0x17da   :  { %v16446_v19 = vadd.f32 %v16382_v21, %v8954_v32  ;;  %v12973_v3 = vpack.c.bf16 %v10494_v16, %v10493_v56  ;;  %v10467_v32 = vld [vmem:[%s17078_s12 + $0x250] sm:$0xff]  ;;  %v10472_v16 = vld [vmem:[%s17078_s12 + $0x278] sm:$0xff] }
0x17db   :  { %v16454_v48 = vadd.f32 %v16382_v21, %v8955_v29  ;;  %v10512_v21 = vld [vmem:[%s17078_s12 + $0x3b8] sm:$0xff]  ;;  %v12983_v29 = vpack.c.bf16 %v10516_v10, %v10515_v47  ;;  %v10471_v56 = vld [vmem:[%s17078_s12 + $0x270] sm:$0xff] }
0x17dc   :  { %9141 = vmatmul.mubr.f32.gmra.mrb[174].mxu1 %v16419_v49  ;;  %9254 = vmatmul.mubr.f32.gmra.mrb[158].mxu0 %v16419_v49  ;;  %17189 = vst [vmem:[#allocation32_spill] sm:$0xff] %v16446_v19  ;;  %v12975_v58 = vpack.c.bf16 %v10512_v21, %v10511_v39  ;;  %v12961_v33 = vpack.c.bf16 %v10472_v16, %v10471_v56  ;;  %v10504_v39 = vld [vmem:[%s17078_s12 + $0x378] sm:$0xff]  ;;  %v10456_v21 = vld [vmem:[%s17077_s11 + $0x4] sm:$0xf] }
0x17dd   :  { %9146 = vmatprep.mubr.f32.mxu1 %v17174_v0  ;;  %9259 = vmatprep.mubr.f32.mxu0 %v17174_v0  ;;  %17190 = vst [vmem:[#allocation18_spill] sm:$0xff] %v16454_v48  ;;  %v16630_v22 = vrot.slane %v10456_v21, %v17191_v28 }
0x17de   :  { %12974 = vmatpush3.bf16.msra.mxu0 %v12973_v3 }
0x17df   :  { %12976 = vmatprep.subr.bf16.mxu0 %v12975_v58  ;;  %v17192_v58 = vld [vmem:[#allocation8_spill] sm:$0xff] }
0x17e0   :  { %9147 = vmatmul.mubr.f32.gmra.mrb[176].mxu1 %v16428_v61  ;;  %9260 = vmatmul.mubr.f32.gmra.mrb[160].mxu0 %v16428_v61  ;;  %v17194_v12 = vsub.s32 1, %v17192_v58  ;;  %v17195_v37 = vsub.s32 3, %v17192_v58 }
0x17e1   :  { %9152 = vmatprep.mubr.f32.mxu1 %v17174_v0  ;;  %9265 = vmatprep.mubr.f32.mxu0 %v17174_v0 }
0x17e2   :  { %12978 = vmatpush3.bf16.msra.mxu0 %v12977_v53  ;;  %v16638_v53 = vrot.slane %v10456_v21, %v17194_v12  ;;  %v16642_v9 = vrot.slane %v10456_v21, %v17195_v37 }
0x17e3   :  { %12980 = vmatprep.subr.bf16.mxu0 %v12979_v30 }
0x17e4   :  { %9153 = vmatmul.mubr.f32.gmra.mrb[178].mxu1 %v16437_v62  ;;  %9266 = vmatmul.mubr.f32.gmra.mrb[162].mxu0 %v16437_v62 }
0x17e5   :  { %9158 = vmatprep.mubr.f32.mxu1 %v17174_v0  ;;  %9271 = vmatprep.mubr.f32.mxu0 %v17174_v0 }
0x17e6   :  { %12982 = vmatpush3.bf16.msra.mxu0 %v12981_v27 }
0x17e7   :  { %12984 = vmatprep.subr.bf16.mxu0 %v12983_v29 }
0x17e8   :  { %9159 = vmatmul.mubr.f32.gmra.mrb[180].mxu1 %v16446_v19  ;;  %9272 = vmatmul.mubr.f32.gmra.mrb[164].mxu0 %v16446_v19 }
0x17e9   :  { %9164 = vmatprep.mubr.f32.mxu1 %v17174_v0  ;;  %9277 = vmatprep.mubr.f32.mxu0 %v17174_v0  ;;  %v12935_v0 = vpack.c.bf16 %v10476_v40, %v10475_v57  ;;  %v12953_v57 = vpack.c.bf16 %v10468_v17, %v10467_v32  ;;  %v10499_v40 = vld [vmem:[%s17078_s12 + $0x350] sm:$0xff] }
0x17eb   :  { %12936 = vmatprep.subr.bf16.mxu1 %v12935_v0  ;;  %v12985_v0 = vpack.c.bf16 %v10500_v18, %v10499_v40 }
0x17ec   :  { %9165 = vmatmul.mubr.f32.gmra.mrb[182].mxu1 %v16454_v48  ;;  %9278 = vmatmul.mubr.f32.gmra.mrb[166].mxu0 %v16454_v48 }
0x17ed   :  { %12938 = vmatpush3.bf16.msra.mxu1 %v12937_v6  ;;  %12986 = vmatpush3.bf16.msra.mxu0 %v12985_v0  ;;  %v10518_v6 = vld [vmem:[%s17078_s12 + $0x3e8] sm:$0xff] }
0x17ee   :  { %12940 = vmatprep.subr.bf16.mxu1 %v12939_v11  ;;  %v12987_v60 = vpack.c.bf16 %v10518_v6, %v10517_v45  ;;  %v12989_v11 = vpack.c.bf16 %v10502_v1, %v10501_v43 }
0x17f0   :  { %12988 = vmatprep.subr.bf16.mxu0 %v12987_v60 }
0x17f1   :  { %12942 = vmatpush3.bf16.msra.mxu1 %v12941_v54  ;;  %12990 = vmatpush3.bf16.msra.mxu0 %v12989_v11  ;;  %v10520_v54 = vld [vmem:[%s17078_s12 + $0x3f8] sm:$0xff] }
0x17f2   :  { %12944 = vmatprep.subr.bf16.mxu1 %v12943_v44  ;;  %v12991_v3 = vpack.c.bf16 %v10520_v54, %v10519_v31  ;;  %v12993_v44 = vpack.c.bf16 %v10504_v39, %v10503_v5 }
0x17f4   :  { %12992 = vmatprep.subr.bf16.mxu0 %v12991_v3 }
0x17f5   :  { %12946 = vmatpush3.bf16.msra.mxu1 %v12945_v52  ;;  %12994 = vmatpush3.bf16.msra.mxu0 %v12993_v44  ;;  %v17193_v52 = vsub.s32 2, %v17192_v58 }
0x17f6   :  { %12948 = vmatprep.subr.bf16.mxu1 %v12947_v25 }
0x17f7   :  { %v16634_v26 = vrot.slane %v10456_v21, %v17193_v52 }
0x17f9   :  { %12950 = vmatpush3.bf16.msra.mxu1 %v12949_v55 }
0x17fa   :  { %12952 = vmatprep.subr.bf16.mxu1 %v12951_v4 }
0x17fd   :  { %12954 = vmatpush3.bf16.msra.mxu1 %v12953_v57 }
0x17fe   :  { %12956 = vmatprep.subr.bf16.mxu1 %v12955_v42 }
0x1801   :  { %12958 = vmatpush3.bf16.msra.mxu1 %v12957_v35 }
0x1802   :  { %12960 = vmatprep.subr.bf16.mxu1 %v12959_v36 }
0x1805   :  { %12962 = vmatpush3.bf16.msra.mxu1 %v12961_v33 }
0x18a3   :  { %v9124_v7 = vpop.f32.mrb[168].mxu1  ;;  %v9237_v25 = vpop.f32.mrb[152].mxu0 }
0x18a4   :  { %v9125_v13 = vadd.f32 %v9124_v7, %v16630_v22  ;;  %v9238_v50 = vadd.f32 %v9237_v25, %v16634_v26  ;;  %v9126_v63 = vpop.f32.mrb[169].mxu1  ;;  %v9239_v30 = vpop.f32.mrb[153].mxu0 }
0x18a5   :  { %v16647_v55 = vadd.f32 %v9126_v63, %v16638_v53  ;;  %v16650_v59 = vadd.f32 %v9239_v30, %v16642_v9 }
0x18a6   :  { %v9316_v2 = vmul.f32 0.044715, %v9125_v13  ;;  %v9318_v27 = vmul.f32 0.044715, %v9238_v50  ;;  %v16670_v15 = vmul.f32 0.5, %v9125_v13  ;;  %v16679_v54 = vmul.f32 0.5, %v9238_v50 }
0x18a7   :  { %v9317_v23 = vmul.f32 0.044715, %v16647_v55  ;;  %v9319_v51 = vmul.f32 0.044715, %v16650_v59  ;;  %v9130_v47 = vpop.f32.mrb[170].mxu1  ;;  %v9243_v4 = vpop.f32.mrb[154].mxu0 }
0x18a8   :  { %v9348_v10 = vmul.f32 %v9316_v2, %v9125_v13  ;;  %v9350_v32 = vmul.f32 %v9318_v27, %v9238_v50  ;;  %v16655_v17 = vadd.f32 %v9130_v47, %v16630_v22  ;;  %v16658_v29 = vadd.f32 %v9243_v4, %v16634_v26  ;;  %v9132_v57 = vpop.f32.mrb[171].mxu1  ;;  %v9245_v40 = vpop.f32.mrb[155].mxu0 }
0x18a9   :  { %v16661_v18 = vadd.f32 %v9132_v57, %v16638_v53  ;;  %v9349_v8 = vmul.f32 %v9317_v23, %v16647_v55  ;;  %v9351_v45 = vmul.f32 %v9319_v51, %v16650_v59  ;;  %v16666_v42 = vadd.f32 %v9245_v40, %v16642_v9 }
0x18aa   :  { %v9380_v0 = vmul.f32 %v9348_v10, %v9125_v13  ;;  %v9382_v41 = vmul.f32 %v9350_v32, %v9238_v50  ;;  %v9320_v35 = vmul.f32 0.044715, %v16655_v17  ;;  %v9322_v43 = vmul.f32 0.044715, %v16658_v29 }
0x18ab   :  { %v9136_v6 = vpop.f32.mrb[172].mxu1  ;;  %v9249_v34 = vpop.f32.mrb[156].mxu0  ;;  %v9321_v24 = vmul.f32 0.044715, %v16661_v18  ;;  %v9381_v3 = vmul.f32 %v9349_v8, %v16647_v55  ;;  %v9323_v5 = vmul.f32 0.044715, %v16666_v42  ;;  %v9383_v21 = vmul.f32 %v9351_v45, %v16650_v59 }
0x18ac   :  { %v9412_v38 = vadd.f32 %v9380_v0, %v9125_v13  ;;  %v9414_v60 = vadd.f32 %v9382_v41, %v9238_v50  ;;  %v9138_v1 = vpop.f32.mrb[173].mxu1  ;;  %v9251_v11 = vpop.f32.mrb[157].mxu0  ;;  %v16674_v31 = vadd.f32 %v9136_v6, %v16630_v22  ;;  %v16677_v36 = vadd.f32 %v9249_v34, %v16634_v26 }
0x18ad   :  { %v16682_v56 = vadd.f32 %v9138_v1, %v16638_v53  ;;  %v16685_v16 = vadd.f32 %v9251_v11, %v16642_v9  ;;  %v16691_v58 = vmul.f32 %v9320_v35, %v16655_v17  ;;  %v16694_v52 = vmul.f32 %v9322_v43, %v16658_v29 }
0x18ae   :  { %v9444_v33 = vmul.f32 0.7978846, %v9412_v38  ;;  %v9446_v28 = vmul.f32 0.7978846, %v9414_v60  ;;  %v9353_v25 = vmul.f32 %v9321_v24, %v16661_v18  ;;  %v9324_v13 = vmul.f32 0.044715, %v16674_v31 }
0x18af   :  { %v9142_v39 = vpop.f32.mrb[174].mxu1  ;;  %v9255_v44 = vpop.f32.mrb[158].mxu0  ;;  %v9326_v50 = vmul.f32 0.044715, %v16677_v36  ;;  %v9325_v30 = vmul.f32 0.044715, %v16682_v56  ;;  %v9413_v23 = vadd.f32 %v9381_v3, %v16647_v55  ;;  %v9355_v51 = vmul.f32 %v9323_v5, %v16666_v42 }
0x18b0   :  { %v16697_v12 = vadd.f32 %v9142_v39, %v16630_v22  ;;  %v9144_v37 = vpop.f32.mrb[175].mxu1  ;;  %v9257_v7 = vpop.f32.mrb[159].mxu0  ;;  %v16703_v63 = vadd.f32 %v9255_v44, %v16634_v26  ;;  %v9327_v2 = vmul.f32 0.044715, %v16685_v16  ;;  %13277 = vtanh.f32 %v9444_v33 }
0x18b1   :  { %v16708_v27 = vadd.f32 %v9144_v37, %v16638_v53  ;;  %v16713_v47 = vadd.f32 %v9257_v7, %v16642_v9  ;;  %v9415_v32 = vadd.f32 %v9383_v21, %v16650_v59  ;;  %13279 = vtanh.f32 %v9446_v28 }
0x18b2   :  { %v9328_v57 = vmul.f32 0.044715, %v16697_v12  ;;  %v16724_v45 = vmul.f32 %v9324_v13, %v16674_v31  ;;  %v9330_v6 = vmul.f32 0.044715, %v16703_v63  ;;  %v16730_v60 = vmul.f32 %v9326_v50, %v16677_v36 }
0x18b3   :  { %v9148_v4 = vpop.f32.mrb[176].mxu1  ;;  %v9261_v10 = vpop.f32.mrb[160].mxu0  ;;  %v9329_v34 = vmul.f32 0.044715, %v16708_v27  ;;  %v9331_v38 = vmul.f32 0.044715, %v16713_v47  ;;  %v16733_v35 = vmul.f32 %v9325_v30, %v16682_v56  ;;  %v16736_v43 = vmul.f32 %v9327_v2, %v16685_v16 }
0x18b4   :  { %v16718_v40 = vadd.f32 %v9148_v4, %v16630_v22  ;;  %v16721_v0 = vadd.f32 %v9261_v10, %v16634_v26  ;;  %v9150_v41 = vpop.f32.mrb[177].mxu1  ;;  %v9263_v8 = vpop.f32.mrb[161].mxu0  ;;  %v9445_v1 = vmul.f32 0.7978846, %v9413_v23  ;;  %v16746_v39 = vmul.f32 0.5, %v16647_v55 }
0x18b5   :  { %v16740_v24 = vadd.f32 %v9150_v41, %v16638_v53  ;;  %v16743_v3 = vadd.f32 %v9263_v8, %v16642_v9  ;;  %v16749_v44 = vmul.f32 %v9328_v57, %v16697_v12  ;;  %v16756_v13 = vmul.f32 0.5, %v16650_v59 }
0x18b6   :  { %17196 = vst [vmem:[#allocation19_spill] sm:$0xff] %v16718_v40  ;;  %17197 = vst [vmem:[#allocation20_spill] sm:$0xff] %v16721_v0  ;;  %v9332_v11 = vmul.f32 0.044715, %v16718_v40  ;;  %v9334_v21 = vmul.f32 0.044715, %v16721_v0  ;;  %v16759_v50 = vmul.f32 %v9330_v6, %v16703_v63  ;;  %v16762_v30 = vmul.f32 %v9329_v34, %v16708_v27 }
0x18b7   :  { %17198 = vst [vmem:[#allocation21_spill] sm:$0xff] %v16743_v3  ;;  %v9154_v33 = vpop.f32.mrb[178].mxu1  ;;  %v9267_v5 = vpop.f32.mrb[162].mxu0  ;;  %v16765_v55 = vmul.f32 %v9331_v38, %v16713_v47  ;;  %13281 = vtanh.f32 %v9445_v1  ;;  %v9447_v59 = vmul.f32 0.7978846, %v9415_v32  ;;  %v9385_v34 = vmul.f32 %v9353_v25, %v16661_v18 }
0x18b8   :  { %v16753_v28 = vadd.f32 %v9154_v33, %v16630_v22  ;;  %v9156_v37 = vpop.f32.mrb[179].mxu1  ;;  %v9269_v7 = vpop.f32.mrb[163].mxu0  ;;  %v16768_v2 = vadd.f32 %v9267_v5, %v16634_v26  ;;  %v16777_v10 = vmul.f32 %v9332_v11, %v16718_v40  ;;  %v9333_v57 = vmul.f32 0.044715, %v16740_v24 }
0x18b9   :  { %v16771_v23 = vadd.f32 %v9156_v37, %v16638_v53  ;;  %v16774_v4 = vadd.f32 %v9269_v7, %v16642_v9  ;;  %v9335_v41 = vmul.f32 0.044715, %v16743_v3  ;;  %v16783_v38 = vmul.f32 %v9334_v21, %v16721_v0 }
0x18ba   :  { %17199 = vst [vmem:[#allocation22_spill] sm:$0xff] %v16777_v10  ;;  %v9336_v33 = vmul.f32 0.044715, %v16753_v28  ;;  %v13278_v37 = vpop.eup %13277  ;;  %v9338_v7 = vmul.f32 0.044715, %v16768_v2  ;;  %v9387_v21 = vmul.f32 %v9355_v51, %v16666_v42  ;;  %13283 = vtanh.f32 %v9447_v59 }
0x18bb   :  { %v9160_v8 = vpop.f32.mrb[180].mxu1  ;;  %v9273_v6 = vpop.f32.mrb[164].mxu0  ;;  %17200 = vst [vmem:[#allocation23_spill] sm:$0xff] %v16783_v38  ;;  %v9339_v62 = vmul.f32 0.044715, %v16774_v4  ;;  %v16804_v61 = vmul.f32 %v9333_v57, %v16740_v24  ;;  %v16807_v49 = vmul.f32 %v9335_v41, %v16743_v3  ;;  %v9417_v0 = vadd.f32 %v9385_v34, %v16661_v18 }
0x18bc   :  { %v16787_v5 = vadd.f32 %v9160_v8, %v16630_v22  ;;  %v16790_v32 = vadd.f32 %v9273_v6, %v16634_v26  ;;  %v9162_v1 = vpop.f32.mrb[181].mxu1  ;;  %v9275_v11 = vpop.f32.mrb[165].mxu0  ;;  %v9337_v8 = vmul.f32 0.044715, %v16771_v23  ;;  %v16820_v41 = vmul.f32 %v9336_v33, %v16753_v28 }
0x18bd   :  { %v16794_v48 = vadd.f32 %v9162_v1, %v16638_v53  ;;  %v16797_v25 = vadd.f32 %v9275_v11, %v16642_v9  ;;  %v13280_v19 = vpop.eup %13279  ;;  %17201 = vst [vmem:[#allocation24_spill] sm:$0xff] %v16807_v49  ;;  %v16823_v10 = vmul.f32 %v9338_v7, %v16768_v2  ;;  %v9508_v40 = vadd.f32 1.0, %v13278_v37 }
0x18be   :  { %v9340_v6 = vmul.f32 0.044715, %v16787_v5  ;;  %v9342_v1 = vmul.f32 0.044715, %v16790_v32  ;;  %v9419_v49 = vadd.f32 %v9387_v21, %v16666_v42  ;;  %v16827_v3 = vmul.f32 %v9337_v8, %v16771_v23 }
0x18bf   :  { %v9341_v11 = vmul.f32 0.044715, %v16794_v48  ;;  %v9166_v46 = vpop.f32.mrb[182].mxu1  ;;  %v9279_v51 = vpop.f32.mrb[166].mxu0  ;;  %v9343_v14 = vmul.f32 0.044715, %v16797_v25  ;;  %v16838_v34 = vmul.f32 %v9339_v62, %v16774_v4 }
0x18c0   :  { %v16813_v20 = vadd.f32 %v9166_v46, %v16630_v22  ;;  %v16816_v38 = vadd.f32 %v9279_v51, %v16634_v26  ;;  %v9168_v59 = vpop.f32.mrb[183].mxu1  ;;  %v9281_v57 = vpop.f32.mrb[167].mxu0  ;;  %v9384_v26 = vmul.f32 %v16691_v58, %v16655_v17  ;;  %v16841_v33 = vmul.f32 %v9340_v6, %v16787_v5 }
0x18c1   :  { %v16830_v46 = vadd.f32 %v9168_v59, %v16638_v53  ;;  %v16833_v22 = vadd.f32 %v9281_v57, %v16642_v9  ;;  %v16844_v37 = vmul.f32 %v9342_v1, %v16790_v32  ;;  %v16847_v7 = vmul.f32 %v9341_v11, %v16794_v48  ;;  %v13282_v53 = vpop.eup %13281 }
0x18c2   :  { %v16850_v21 = vmul.f32 %v9343_v14, %v16797_v25  ;;  %v9344_v9 = vmul.f32 0.044715, %v16813_v20  ;;  %v9346_v58 = vmul.f32 0.044715, %v16816_v38  ;;  %v9449_v8 = vmul.f32 0.7978846, %v9417_v0 }
0x18c3   :  { %17202 = vst [vmem:[#allocation25_spill] sm:$0xff] %v16844_v37  ;;  %v9509_v62 = vadd.f32 1.0, %v13282_v53  ;;  %v9540_v51 = vmul.f32 %v9508_v40, %v16670_v15  ;;  %v9510_v6 = vadd.f32 1.0, %v13280_v19  ;;  %v9451_v59 = vmul.f32 0.7978846, %v9419_v49 }
0x18c4   :  { %v9345_v1 = vmul.f32 0.044715, %v16830_v46  ;;  %v9347_v57 = vmul.f32 0.044715, %v16833_v22  ;;  %13285 = vtanh.f32 %v9449_v8  ;;  %v9416_v11 = vadd.f32 %v9384_v26, %v16655_v17  ;;  %v13284_v53 = vpop.eup %13283 }
0x18c5   :  { %v9541_v14 = vmul.f32 %v9509_v62, %v16746_v39  ;;  %v9289_v37 = vmul.f32 0.5, %v16661_v18  ;;  %13287 = vtanh.f32 %v9451_v59  ;;  %v9386_v0 = vmul.f32 %v16694_v52, %v16658_v29 }
0x18c6   :  { %v9291_v15 = vmul.f32 0.5, %v16666_v42  ;;  %v9448_v19 = vmul.f32 0.7978846, %v9416_v11  ;;  %v9389_v49 = vmul.f32 %v16733_v35, %v16682_v56  ;;  %v9391_v40 = vmul.f32 %v16736_v43, %v16685_v16 }
0x18c7   :  { %v16868_v26 = vmul.f32 %v9344_v9, %v16813_v20  ;;  %9709 = vmatprep.mubr.f32.mxu1 %v9541_v14  ;;  %v9511_v39 = vadd.f32 1.0, %v13284_v53  ;;  %v9418_v18 = vadd.f32 %v9386_v0, %v16658_v29  ;;  %v9388_v52 = vmul.f32 %v16724_v45, %v16674_v31 }
0x18c8   :  { %v16874_v8 = vmul.f32 %v9346_v58, %v16816_v38  ;;  %9710 = vmatmul.mubr.f32.vlgmr.msra.gmra.mrb[184].mxu1 %v9540_v51  ;;  %13289 = vtanh.f32 %v9448_v19  ;;  %v9421_v42 = vadd.f32 %v9389_v49, %v16682_v56  ;;  %v9423_v35 = vadd.f32 %v9391_v40, %v16685_v16 }
0x18c9   :  { %v9543_v43 = vmul.f32 %v9511_v39, %v16756_v13  ;;  %v9450_v9 = vmul.f32 0.7978846, %v9418_v18  ;;  %v9420_v62 = vadd.f32 %v9388_v52, %v16674_v31  ;;  %v9390_v59 = vmul.f32 %v16730_v60, %v16677_v36 }
0x18ca   :  { %v9542_v11 = vmul.f32 %v9510_v6, %v16679_v54  ;;  %v9453_v45 = vmul.f32 0.7978846, %v9421_v42  ;;  %v9455_v14 = vmul.f32 0.7978846, %v9423_v35  ;;  %v9393_v58 = vmul.f32 %v16762_v30, %v16708_v27 }
0x18cb   :  { %v16886_v51 = vmul.f32 %v9345_v1, %v16830_v46  ;;  %9814 = vmatprep.mubr.f32.mxu0 %v9543_v43  ;;  %13291 = vtanh.f32 %v9450_v9  ;;  %v9452_v0 = vmul.f32 0.7978846, %v9420_v62  ;;  %v9422_v13 = vadd.f32 %v9390_v59, %v16677_v36 }
0x18cc   :  { %v16890_v53 = vmul.f32 %v9347_v57, %v16833_v22  ;;  %9815 = vmatmul.mubr.f32.vlgmr.msra.gmra.mrb[168].mxu0 %v9542_v11  ;;  %13293 = vtanh.f32 %v9453_v45  ;;  %v9425_v54 = vadd.f32 %v9393_v58, %v16708_v27  ;;  %v9395_v60 = vmul.f32 %v16765_v55, %v16713_v47  ;;  %v17204_v45 = vld [vmem:[#allocation24_spill] sm:$0xff] }
0x18cd   :  { %v9288_v30 = vmul.f32 0.5, %v16655_v17  ;;  %13295 = vtanh.f32 %v9455_v14  ;;  %v9454_v6 = vmul.f32 0.7978846, %v9422_v13  ;;  %v9392_v1 = vmul.f32 %v16749_v44, %v16697_v12  ;;  %v17205_v13 = vld [vmem:[#allocation19_spill] sm:$0xff] }
0x18ce   :  { %v13286_v19 = vpop.eup %13285  ;;  %13297 = vtanh.f32 %v9452_v0  ;;  %v9457_v49 = vmul.f32 0.7978846, %v9425_v54  ;;  %v9427_v57 = vadd.f32 %v9395_v60, %v16713_v47  ;;  %v9394_v40 = vmul.f32 %v16759_v50, %v16703_v63 }
0x18cf   :  { %v13288_v39 = vpop.eup %13287  ;;  %v9513_v18 = vadd.f32 1.0, %v13286_v19  ;;  %v9290_v52 = vmul.f32 0.5, %v16658_v29  ;;  %13299 = vtanh.f32 %v9454_v6  ;;  %v9424_v17 = vadd.f32 %v9392_v1, %v16697_v12  ;;  %v17203_v29 = vld [vmem:[#allocation21_spill] sm:$0xff] }
0x18d0   :  { %v9515_v55 = vadd.f32 1.0, %v13288_v39  ;;  %13301 = vtanh.f32 %v9457_v49  ;;  %v9459_v42 = vmul.f32 0.7978846, %v9427_v57  ;;  %v9426_v44 = vadd.f32 %v9394_v40, %v16703_v63  ;;  %v17207_v49 = vld [vmem:[#allocation20_spill] sm:$0xff]  ;;  %v17208_v57 = vld [vmem:[#allocation23_spill] sm:$0xff] }
0x18d1   :  { %v9545_v35 = vmul.f32 %v9513_v18, %v9289_v37  ;;  %v9293_v43 = vmul.f32 0.5, %v16682_v56  ;;  %v9456_v9 = vmul.f32 0.7978846, %v9424_v17  ;;  %v9397_v62 = vmul.f32 %v16804_v61, %v16740_v24 }
0x18d2   :  { %v13290_v50 = vpop.eup %13289  ;;  %v9547_v59 = vmul.f32 %v9515_v55, %v9291_v15  ;;  %13303 = vtanh.f32 %v9459_v42  ;;  %v9458_v11 = vmul.f32 0.7978846, %v9426_v44  ;;  %v9399_v14 = vmul.f32 %v17204_v45, %v17203_v29  ;;  %v17206_v15 = vld [vmem:[#allocation22_spill] sm:$0xff] }
0x18d3   :  { %9714 = vmatprep.mubr.f32.mxu1 %v9545_v35  ;;  %v9512_v58 = vadd.f32 1.0, %v13290_v50  ;;  %v9295_v0 = vmul.f32 0.5, %v16685_v16  ;;  %13305 = vtanh.f32 %v9456_v9  ;;  %v9429_v37 = vadd.f32 %v9397_v62, %v16740_v24 }
0x18d4   :  { %9819 = vmatprep.mubr.f32.mxu0 %v9547_v59  ;;  %v9292_v56 = vmul.f32 0.5, %v16674_v31  ;;  %13307 = vtanh.f32 %v9458_v11  ;;  %v9431_v61 = vadd.f32 %v9399_v14, %v17203_v29  ;;  %v9396_v54 = vmul.f32 %v17206_v15, %v17205_v13 }
0x18d5   :  { %v13292_v60 = vpop.eup %13291  ;;  %v9544_v6 = vmul.f32 %v9512_v58, %v9288_v30  ;;  %v9294_v1 = vmul.f32 0.5, %v16677_v36  ;;  %v9461_v19 = vmul.f32 0.7978846, %v9429_v37  ;;  %v9398_v16 = vmul.f32 %v17208_v57, %v17207_v49 }
0x18d6   :  { %v13294_v40 = vpop.eup %13293  ;;  %v9514_v39 = vadd.f32 1.0, %v13292_v60  ;;  %v9463_v18 = vmul.f32 0.7978846, %v9431_v61  ;;  %v9428_v17 = vadd.f32 %v9396_v54, %v17205_v13  ;;  %v9401_v31 = vmul.f32 %v16827_v3, %v16771_v23 }
0x18d7   :  { %v13296_v55 = vpop.eup %13295  ;;  %9715 = vmatmul.mubr.f32.gmra.mrb[186].mxu1 %v9544_v6  ;;  %v9517_v42 = vadd.f32 1.0, %v13294_v40  ;;  %v9297_v44 = vmul.f32 0.5, %v16708_v27  ;;  %13309 = vtanh.f32 %v9461_v19  ;;  %v9430_v36 = vadd.f32 %v9398_v16, %v17207_v49 }
0x18d8   :  { %v13298_v30 = vpop.eup %13297  ;;  %v9546_v35 = vmul.f32 %v9514_v39, %v9290_v52  ;;  %v9519_v9 = vadd.f32 1.0, %v13296_v55  ;;  %13311 = vtanh.f32 %v9463_v18  ;;  %v9460_v62 = vmul.f32 0.7978846, %v9428_v17 }
0x18d9   :  { %v13300_v50 = vpop.eup %13299  ;;  %v9549_v59 = vmul.f32 %v9517_v42, %v9293_v43  ;;  %v9516_v11 = vadd.f32 1.0, %v13298_v30  ;;  %v9462_v45 = vmul.f32 0.7978846, %v9430_v36  ;;  %v9433_v14 = vadd.f32 %v9401_v31, %v16771_v23 }
0x18da   :  { %v13302_v3 = vpop.eup %13301  ;;  %9820 = vmatmul.mubr.f32.gmra.mrb[170].mxu0 %v9546_v35  ;;  %v9551_v58 = vmul.f32 %v9519_v9, %v9295_v0  ;;  %v9518_v37 = vadd.f32 1.0, %v13300_v50  ;;  %13313 = vtanh.f32 %v9460_v62  ;;  %v9403_v27 = vmul.f32 %v16838_v34, %v16774_v4 }
0x18db   :  { %9719 = vmatprep.mubr.f32.mxu1 %v9549_v59  ;;  %v9548_v61 = vmul.f32 %v9516_v11, %v9292_v56  ;;  %v9521_v52 = vadd.f32 1.0, %v13302_v3  ;;  %13315 = vtanh.f32 %v9462_v45  ;;  %v9465_v15 = vmul.f32 0.7978846, %v9433_v14 }
0x18dc   :  { %v13304_v54 = vpop.eup %13303  ;;  %9824 = vmatprep.mubr.f32.mxu0 %v9551_v58  ;;  %v9550_v43 = vmul.f32 %v9518_v37, %v9294_v1  ;;  %v9299_v60 = vmul.f32 0.5, %v16713_v47  ;;  %v9435_v6 = vadd.f32 %v9403_v27, %v16774_v4  ;;  %v9400_v0 = vmul.f32 %v16820_v41, %v16753_v28 }
0x18dd   :  { %v13306_v19 = vpop.eup %13305  ;;  %9720 = vmatmul.mubr.f32.gmra.mrb[188].mxu1 %v9548_v61  ;;  %v9553_v57 = vmul.f32 %v9521_v52, %v9297_v44  ;;  %v9523_v16 = vadd.f32 1.0, %v13304_v54  ;;  %v9296_v34 = vmul.f32 0.5, %v16697_v12  ;;  %13317 = vtanh.f32 %v9465_v15 }
0x18de   :  { %v13308_v56 = vpop.eup %13307  ;;  %9825 = vmatmul.mubr.f32.gmra.mrb[172].mxu0 %v9550_v43  ;;  %v9520_v40 = vadd.f32 1.0, %v13306_v19  ;;  %v9467_v39 = vmul.f32 0.7978846, %v9435_v6  ;;  %v9432_v1 = vadd.f32 %v9400_v0, %v16753_v28  ;;  %v9402_v47 = vmul.f32 %v16823_v10, %v16768_v2 }
0x18df   :  { %9724 = vmatprep.mubr.f32.mxu1 %v9553_v57  ;;  %v9555_v18 = vmul.f32 %v9523_v16, %v9299_v60  ;;  %v9298_v41 = vmul.f32 0.5, %v16703_v63  ;;  %v9522_v17 = vadd.f32 1.0, %v13308_v56  ;;  %v9405_v31 = vmul.f32 %v16847_v7, %v16794_v48 }
0x18e0   :  { %v9552_v55 = vmul.f32 %v9520_v40, %v9296_v34  ;;  %13319 = vtanh.f32 %v9467_v39  ;;  %v9464_v12 = vmul.f32 0.7978846, %v9432_v1  ;;  %v9434_v42 = vadd.f32 %v9402_v47, %v16768_v2 }
0x18e1   :  { %v13310_v44 = vpop.eup %13309  ;;  %9829 = vmatprep.mubr.f32.mxu0 %v9555_v18  ;;  %v9554_v36 = vmul.f32 %v9522_v17, %v9298_v41  ;;  %v9301_v30 = vmul.f32 0.5, %v16740_v24  ;;  %v9437_v10 = vadd.f32 %v9405_v31, %v16794_v48  ;;  %v9407_v35 = vmul.f32 %v16850_v21, %v16797_v25  ;;  %v17209_v21 = vld [vmem:[#allocation25_spill] sm:$0xff] }
0x18e2   :  { %v13312_v63 = vpop.eup %13311  ;;  %9725 = vmatmul.mubr.f32.gmra.mrb[190].mxu1 %v9552_v55  ;;  %v9525_v9 = vadd.f32 1.0, %v13310_v44  ;;  %v9303_v7 = vmul.f32 0.5, %v17203_v29  ;;  %13321 = vtanh.f32 %v9464_v12  ;;  %v9466_v62 = vmul.f32 0.7978846, %v9434_v42 }
0x18e3   :  { %9830 = vmatmul.mubr.f32.gmra.mrb[174].mxu0 %v9554_v36  ;;  %v9527_v50 = vadd.f32 1.0, %v13312_v63  ;;  %v9469_v59 = vmul.f32 0.7978846, %v9437_v10  ;;  %v9439_v11 = vadd.f32 %v9407_v35, %v16797_v25  ;;  %v9404_v24 = vmul.f32 %v16841_v33, %v16787_v5 }
0x18e4   :  { %v13314_v45 = vpop.eup %13313  ;;  %v9557_v14 = vmul.f32 %v9525_v9, %v9301_v30  ;;  %v9300_v3 = vmul.f32 0.5, %v17205_v13  ;;  %13323 = vtanh.f32 %v9466_v62  ;;  %v9406_v58 = vmul.f32 %v17209_v21, %v16790_v32 }
0x18e5   :  { %v13316_v37 = vpop.eup %13315  ;;  %v9559_v29 = vmul.f32 %v9527_v50, %v9303_v7  ;;  %v9524_v27 = vadd.f32 1.0, %v13314_v45  ;;  %13325 = vtanh.f32 %v9469_v59  ;;  %v9471_v61 = vmul.f32 0.7978846, %v9439_v11 }
0x18e6   :  { %9729 = vmatprep.mubr.f32.mxu1 %v9557_v14  ;;  %v9302_v52 = vmul.f32 0.5, %v17207_v49  ;;  %v9526_v15 = vadd.f32 1.0, %v13316_v37  ;;  %v9436_v54 = vadd.f32 %v9404_v24, %v16787_v5  ;;  %v9438_v33 = vadd.f32 %v9406_v58, %v16790_v32 }
0x18e7   :  { %v13318_v43 = vpop.eup %13317  ;;  %9834 = vmatprep.mubr.f32.mxu0 %v9559_v29  ;;  %v9556_v13 = vmul.f32 %v9524_v27, %v9300_v3  ;;  %v9305_v60 = vmul.f32 0.5, %v16771_v23  ;;  %13327 = vtanh.f32 %v9471_v61  ;;  %v9409_v6 = vmul.f32 %v16886_v51, %v16830_v46 }
0x18e8   :  { %v9558_v0 = vmul.f32 %v9526_v15, %v9302_v52  ;;  %v9529_v19 = vadd.f32 1.0, %v13318_v43  ;;  %v9468_v57 = vmul.f32 0.7978846, %v9436_v54  ;;  %v9470_v16 = vmul.f32 0.7978846, %v9438_v33 }
0x18e9   :  { %9730 = vmatmul.mubr.f32.gmra.mrb[192].mxu1 %v9556_v13  ;;  %v9441_v49 = vadd.f32 %v9409_v6, %v16830_v46  ;;  %v9411_v34 = vmul.f32 %v16890_v53, %v16833_v22  ;;  %v9408_v56 = vmul.f32 %v16868_v26, %v16813_v20  ;;  %v9307_v39 = vmul.f32 0.5, %v16774_v4 }
0x18ea   :  { %v13320_v40 = vpop.eup %13319  ;;  %9835 = vmatmul.mubr.f32.gmra.mrb[176].mxu0 %v9558_v0  ;;  %v9561_v23 = vmul.f32 %v9529_v19, %v9305_v60  ;;  %13329 = vtanh.f32 %v9468_v57  ;;  %v9410_v51 = vmul.f32 %v16874_v8, %v16816_v38  ;;  %v9304_v53 = vmul.f32 0.5, %v16753_v28 }
0x18eb   :  { %v9531_v1 = vadd.f32 1.0, %v13320_v40  ;;  %13331 = vtanh.f32 %v9470_v16  ;;  %v9473_v47 = vmul.f32 0.7978846, %v9441_v49  ;;  %v9443_v18 = vadd.f32 %v9411_v34, %v16833_v22  ;;  %v17210_v34 = vld [vmem:[#allocation28_spill] sm:$0xff] }
0x18ec   :  { %v13322_v41 = vpop.eup %13321  ;;  %9734 = vmatprep.mubr.f32.mxu1 %v9561_v23  ;;  %v9440_v26 = vadd.f32 %v9408_v56, %v16813_v20  ;;  %v9442_v17 = vadd.f32 %v9410_v51, %v16816_v38  ;;  %v9306_v30 = vmul.f32 0.5, %v16768_v2  ;;  %v9309_v28 = vmul.f32 0.5, %v16794_v48 }
0x18ed   :  { %v9563_v31 = vmul.f32 %v9531_v1, %v9307_v39  ;;  %v9528_v55 = vadd.f32 1.0, %v13322_v41  ;;  %13333 = vtanh.f32 %v9473_v47  ;;  %v9475_v4 = vmul.f32 0.7978846, %v9443_v18 }
0x18ee   :  { %v13324_v12 = vpop.eup %13323  ;;  %v9472_v42 = vmul.f32 0.7978846, %v9440_v26  ;;  %v9474_v8 = vmul.f32 0.7978846, %v9442_v17  ;;  %v9311_v62 = vmul.f32 0.5, %v16797_v25  ;;  %v9308_v2 = vmul.f32 0.5, %v16787_v5 }
0x18ef   :  { %v13326_v44 = vpop.eup %13325  ;;  %9839 = vmatprep.mubr.f32.mxu0 %v9563_v31  ;;  %v9560_v36 = vmul.f32 %v9528_v55, %v9304_v53  ;;  %v9530_v10 = vadd.f32 1.0, %v13324_v12  ;;  %13335 = vtanh.f32 %v9475_v4  ;;  %v9310_v48 = vmul.f32 0.5, %v16790_v32  ;;  %v17211_v12 = vld [vmem:[#allocation31_spill] sm:$0xff] }
0x18f0   :  { %v9533_v35 = vadd.f32 1.0, %v13326_v44  ;;  %13337 = vtanh.f32 %v9472_v42  ;;  %v9313_v37 = vmul.f32 0.5, %v16830_v46  ;;  %v9315_v52 = vmul.f32 0.5, %v16833_v22  ;;  %v16979_v22 = vld [vmem:[%s17079_s13 + $0x1] ss:$0 sm:$0xff] }
0x18f1   :  { %v13328_v63 = vpop.eup %13327  ;;  %9735 = vmatmul.mubr.f32.gmra.mrb[194].mxu1 %v9560_v36  ;;  %v9562_v9 = vmul.f32 %v9530_v10, %v9306_v30  ;;  %13339 = vtanh.f32 %v9474_v8  ;;  %v9312_v54 = vmul.f32 0.5, %v16813_v20  ;;  %v9314_v43 = vmul.f32 0.5, %v16816_v38 }
0x18f2   :  { %v9565_v7 = vmul.f32 %v9533_v35, %v9309_v28  ;;  %v9535_v50 = vadd.f32 1.0, %v13328_v63 }
0x18f3   :  { %9840 = vmatmul.mubr.f32.gmra.mrb[178].mxu0 %v9562_v9  ;;  %v17212_v9 = vld [vmem:[#allocation26_spill] sm:$0xff] }
0x18f4   :  { %v13330_v59 = vpop.eup %13329  ;;  %9739 = vmatprep.mubr.f32.mxu1 %v9565_v7  ;;  %v9567_v11 = vmul.f32 %v9535_v50, %v9311_v62 }
0x18f5   :  { %v13332_v24 = vpop.eup %13331  ;;  %v9532_v45 = vadd.f32 1.0, %v13330_v59 }
0x18f6   :  { %9844 = vmatprep.mubr.f32.mxu0 %v9567_v11  ;;  %v9534_v14 = vadd.f32 1.0, %v13332_v24 }
0x18f7   :  { %v13334_v3 = vpop.eup %13333  ;;  %v9564_v21 = vmul.f32 %v9532_v45, %v9308_v2  ;;  %v17213_v2 = vld [vmem:[#allocation29_spill] sm:$0xff] }
0x18f8   :  { %v9566_v58 = vmul.f32 %v9534_v14, %v9310_v48  ;;  %v9537_v29 = vadd.f32 1.0, %v13334_v3 }
0x18f9   :  { %v13336_v25 = vpop.eup %13335  ;;  %9740 = vmatmul.mubr.f32.gmra.mrb[196].mxu1 %v9564_v21 }
0x18fa   :  { %v13338_v27 = vpop.eup %13337  ;;  %9845 = vmatmul.mubr.f32.gmra.mrb[180].mxu0 %v9566_v58  ;;  %v9569_v61 = vmul.f32 %v9537_v29, %v9313_v37  ;;  %v9539_v15 = vadd.f32 1.0, %v13336_v25  ;;  %v17214_v29 = vld [vmem:[#allocation27_spill] sm:$0xff] }
0x18fb   :  { %v13340_v5 = vpop.eup %13339  ;;  %v9536_v33 = vadd.f32 1.0, %v13338_v27 }
0x18fc   :  { %9744 = vmatprep.mubr.f32.mxu1 %v9569_v61  ;;  %v9571_v32 = vmul.f32 %v9539_v15, %v9315_v52  ;;  %v9538_v13 = vadd.f32 1.0, %v13340_v5 }
0x18fd   :  { %v9568_v60 = vmul.f32 %v9536_v33, %v9312_v54 }
0x18fe   :  { %9849 = vmatprep.mubr.f32.mxu0 %v9571_v32  ;;  %v9570_v46 = vmul.f32 %v9538_v13, %v9314_v43  ;;  %v17215_v43 = vld [vmem:[#allocation30_spill] sm:$0xff] }
0x18ff   :  { %9745 = vmatmul.mubr.f32.gmra.mrb[198].mxu1 %v9568_v60 }
0x1900   :  { %9850 = vmatmul.mubr.f32.gmra.mrb[182].mxu0 %v9570_v46 }
0x199b   :  { %v11175_v6 = vpop.f32.mrb[184].mxu1 }
0x199c   :  { %v11176_v0 = vpop.f32.mrb[185].mxu1 }
0x199d   :  { %v11177_v19 = vadd.f32 %v11176_v0, %v11175_v6 }
0x199f   :  { %v11231_v20 = vpop.f32.mrb[168].mxu0  ;;  %v9712_v57 = vadd.f32 %v11177_v19, %v16979_v22 }
0x19a0   :  { %v11232_v16 = vpop.f32.mrb[169].mxu0 }
0x19a1   :  { %v11233_v49 = vadd.f32 %v11232_v16, %v11231_v20 }
0x19a3   :  { %v9817_v38 = vadd.f32 %v11233_v49, %v9712_v57 }
0x19a5   :  { %v16983_v56 = vadd.f32 %v9817_v38, %v17210_v34 }
0x19a7   :  { %9867 = vadd.xlane.f32.xlu1 %v16983_v56 }
0x19aa   :  { %v11178_v40 = vpop.f32.mrb[186].mxu1 }
0x19ab   :  { %v11179_v23 = vpop.f32.mrb[187].mxu1 }
0x19ac   :  { %v11180_v39 = vadd.f32 %v11179_v23, %v11178_v40  ;;  %v17216_v23 = vld [vmem:[#allocation32_spill] sm:$0xff] }
0x19ad   :  { %v11234_v51 = vpop.f32.mrb[170].mxu0 }
0x19ae   :  { %v9717_v1 = vadd.f32 %v11180_v39, %v16979_v22  ;;  %v11235_v47 = vpop.f32.mrb[171].mxu0 }
0x19af   :  { %v11236_v18 = vadd.f32 %v11235_v47, %v11234_v51 }
0x19b0   :  { %v11181_v41 = vpop.f32.mrb[188].mxu1 }
0x19b1   :  { %v9822_v53 = vadd.f32 %v11236_v18, %v9717_v1  ;;  %v11237_v26 = vpop.f32.mrb[172].mxu0  ;;  %v11182_v17 = vpop.f32.mrb[189].mxu1  ;;  %v17217_v18 = vld [vmem:[#allocation18_spill] sm:$0xff] }
0x19b2   :  { %v11183_v31 = vadd.f32 %v11182_v17, %v11181_v41  ;;  %v11238_v55 = vpop.f32.mrb[173].mxu0 }
0x19b3   :  { %v11239_v4 = vadd.f32 %v11238_v55, %v11237_v26  ;;  %v16988_v42 = vadd.f32 %v9822_v53, %v17211_v12 }
0x19b4   :  { %v9722_v8 = vadd.f32 %v11183_v31, %v16979_v22 }
0x19b5   :  { %v11184_v44 = vpop.f32.mrb[190].mxu1  ;;  %9869 = vadd.xlane.f32.xlu0 %v16988_v42 }
0x19b6   :  { %v9827_v36 = vadd.f32 %v11239_v4, %v9722_v8  ;;  %v11240_v30 = vpop.f32.mrb[174].mxu0  ;;  %v11185_v10 = vpop.f32.mrb[191].mxu1 }
0x19b7   :  { %v11186_v28 = vadd.f32 %v11185_v10, %v11184_v44  ;;  %v11241_v35 = vpop.f32.mrb[175].mxu0 }
0x19b8   :  { %v11242_v63 = vadd.f32 %v11241_v35, %v11240_v30  ;;  %v9857_v7 = vadd.f32 %v9827_v36, %v17212_v9 }
0x19b9   :  { %v9727_v62 = vadd.f32 %v11186_v28, %v16979_v22 }
0x19ba   :  { %9871 = vadd.xlane.f32.xlu1 %v9857_v7 }
0x19bb   :  { %v9832_v50 = vadd.f32 %v11242_v63, %v9727_v62 }
0x19bc   :  { %v11187_v59 = vpop.f32.mrb[192].mxu1 }
0x19bd   :  { %v11243_v11 = vpop.f32.mrb[176].mxu0  ;;  %v11188_v24 = vpop.f32.mrb[193].mxu1  ;;  %v9858_v45 = vadd.f32 %v9832_v50, %v17213_v2 }
0x19be   :  { %v11189_v48 = vadd.f32 %v11188_v24, %v11187_v59  ;;  %v11244_v14 = vpop.f32.mrb[177].mxu0 }
0x19bf   :  { %v11245_v3 = vadd.f32 %v11244_v14, %v11243_v11  ;;  %9873 = vadd.xlane.f32.xlu0 %v9858_v45 }
0x19c0   :  { %v9732_v21 = vadd.f32 %v11189_v48, %v16979_v22 }
0x19c2   :  { %v9837_v58 = vadd.f32 %v11245_v3, %v9732_v21 }
0x19c4   :  { %v11190_v37 = vpop.f32.mrb[194].mxu1  ;;  %v9859_v25 = vadd.f32 %v9837_v58, %v17214_v29 }
0x19c5   :  { %v11191_v27 = vpop.f32.mrb[195].mxu1 }
0x19c6   :  { %v11246_v61 = vpop.f32.mrb[178].mxu0  ;;  %v11192_v52 = vadd.f32 %v11191_v27, %v11190_v37  ;;  %9875 = vadd.xlane.f32.xlu1 %v9859_v25 }
0x19c7   :  { %v11247_v15 = vpop.f32.mrb[179].mxu0 }
0x19c8   :  { %v9737_v5 = vadd.f32 %v11192_v52, %v16979_v22  ;;  %v11248_v54 = vadd.f32 %v11247_v15, %v11246_v61  ;;  %v17024_v52 = vld [vmem:[%s17080_s14 + $0x2] ss:$0 sm:$0xff] }
0x19ca   :  { %v9842_v33 = vadd.f32 %v11248_v54, %v9737_v5  ;;  %v17029_v54 = vld [vmem:[%s17080_s14 + $0x3] ss:$0 sm:$0xff]  ;;  %s13412_s14 = smov [#allocation5]  }
0x19cb   :  { %s9996_s19 = sshll.u32 %s13412_s14, 4  ;;  %s9997_s19 = int_to_ptr.vmem [resolvable:$true] %s9996_s19 }
0x19cc   :  { %v11193_v32 = vpop.f32.mrb[196].mxu1  ;;  %v9860_v13 = vadd.f32 %v9842_v33, %v17215_v43  ;;  %s13379_s24 = scalar_lea.vmem %s9997_s19, 1024  ;;  %p13384_p9 = scmp.lt.s32.totalorder %s9997_s19, %s9997_s19 }
0x19cd   :  { %v11249_v60 = vpop.f32.mrb[180].mxu0  ;;  %v11194_v46 = vpop.f32.mrb[197].mxu1  ;;  %p13380_p8 = scmp.ne.s32.totalorder %s9997_s19, %s13379_s24  ;;  %p13385_p10 = scmp.lt.s32.totalorder %s13379_s24, %s13379_s24 }
0x19ce   :  { %v11195_v6 = vadd.f32 %v11194_v46, %v11193_v32  ;;  %v11250_v0 = vpop.f32.mrb[181].mxu0  ;;  %9877 = vadd.xlane.f32.xlu0 %v9860_v13 }
0x19cf   :  { %v11251_v19 = vadd.f32 %v11250_v0, %v11249_v60  ;;  %p13386_p11 = por %p13385_p10, %p13384_p9 }
0x19d0   :  { %v9742_v20 = vadd.f32 %v11195_v6, %v16979_v22 }
0x19d1   :  { %p13387_p12 = pnand %p13386_p11, %p13380_p8 }
0x19d2   :  { %v9847_v57 = vadd.f32 %v11251_v19, %v9742_v20  ;;  %v11196_v16 = vpop.f32.mrb[198].mxu1 }
0x19d3   :  { %v11252_v49 = vpop.f32.mrb[182].mxu0  ;;  %v11197_v38 = vpop.f32.mrb[199].mxu1 }
0x19d4   :  { %v11198_v34 = vadd.f32 %v11197_v38, %v11196_v16  ;;  %v11253_v40 = vpop.f32.mrb[183].mxu0  ;;  %v9861_v39 = vadd.f32 %v9847_v57, %v17216_v23 }
0x19d5   :  { %v11254_v51 = vadd.f32 %v11253_v40, %v11252_v49 }
0x19d6   :  { %v9747_v1 = vadd.f32 %v11198_v34, %v16979_v22  ;;  %9879 = vadd.xlane.f32.xlu1 %v9861_v39 }
0x19d8   :  { %v9852_v47 = vadd.f32 %v11254_v51, %v9747_v1 }
0x19da   :  { %v9862_v41 = vadd.f32 %v9852_v47, %v17217_v18 }
0x19dc   :  { %9881 = vadd.xlane.f32.xlu0 %v9862_v41 }
0x1a34   :  { %v9868_v53 = vpop.xlane.xlu1 %9867 }
0x1a35   :  { %v9883_v26 = vmul.f32 0.0078125, %v9868_v53 }
0x1a37   :  { %v9891_v17 = vsub.f32 %v16983_v56, %v9883_v26 }
0x1a39   :  { %v9899_v31 = vmul.f32 %v9891_v17, %v9891_v17 }
0x1a3b   :  { %9907 = vadd.xlane.f32.xlu1 %v9899_v31 }
0x1a42   :  { %v9870_v55 = vpop.xlane.xlu0 %9869 }
0x1a43   :  { %v9884_v4 = vmul.f32 0.0078125, %v9870_v55 }
0x1a45   :  { %v9892_v12 = vsub.f32 %v16988_v42, %v9884_v4 }
0x1a47   :  { %v9872_v8 = vpop.xlane.xlu1 %9871  ;;  %v9900_v44 = vmul.f32 %v9892_v12, %v9892_v12 }
0x1a48   :  { %v9885_v36 = vmul.f32 0.0078125, %v9872_v8 }
0x1a49   :  { %9909 = vadd.xlane.f32.xlu0 %v9900_v44 }
0x1a4a   :  { %v9893_v22 = vsub.f32 %v9857_v7, %v9885_v36 }
0x1a4c   :  { %v9874_v30 = vpop.xlane.xlu0 %9873  ;;  %v9901_v10 = vmul.f32 %v9893_v22, %v9893_v22 }
0x1a4d   :  { %v9886_v28 = vmul.f32 0.0078125, %v9874_v30 }
0x1a4e   :  { %9911 = vadd.xlane.f32.xlu1 %v9901_v10 }
0x1a4f   :  { %v9894_v35 = vsub.f32 %v9858_v45, %v9886_v28 }
0x1a51   :  { %v9902_v63 = vmul.f32 %v9894_v35, %v9894_v35 }
0x1a53   :  { %v9876_v9 = vpop.xlane.xlu1 %9875  ;;  %9913 = vadd.xlane.f32.xlu0 %v9902_v63 }
0x1a54   :  { %v9887_v56 = vmul.f32 0.0078125, %v9876_v9 }
0x1a56   :  { %v17005_v62 = vsub.f32 %v9859_v25, %v9887_v56 }
0x1a58   :  { %v9903_v50 = vmul.f32 %v17005_v62, %v17005_v62 }
0x1a5a   :  { %9915 = vadd.xlane.f32.xlu1 %v9903_v50 }
0x1a5b   :  { %v9878_v42 = vpop.xlane.xlu0 %9877 }
0x1a5c   :  { %v9888_v59 = vmul.f32 0.0078125, %v9878_v42 }
0x1a5e   :  { %v17009_v11 = vsub.f32 %v9860_v13, %v9888_v59 }
0x1a60   :  { %v9904_v7 = vmul.f32 %v17009_v11, %v17009_v11 }
0x1a62   :  { %9917 = vadd.xlane.f32.xlu0 %v9904_v7 }
0x1a63   :  { %v9880_v24 = vpop.xlane.xlu1 %9879 }
0x1a64   :  { %v9889_v2 = vmul.f32 0.0078125, %v9880_v24 }
0x1a66   :  { %v17013_v45 = vsub.f32 %v9861_v39, %v9889_v2 }
0x1a68   :  { %v9905_v48 = vmul.f32 %v17013_v45, %v17013_v45 }
0x1a69   :  { %v9882_v14 = vpop.xlane.xlu0 %9881 }
0x1a6a   :  { %v9890_v3 = vmul.f32 0.0078125, %v9882_v14  ;;  %9919 = vadd.xlane.f32.xlu1 %v9905_v48 }
0x1a6c   :  { %v17017_v21 = vsub.f32 %v9862_v41, %v9890_v3 }
0x1a6e   :  { %v9906_v58 = vmul.f32 %v17017_v21, %v17017_v21 }
0x1a70   :  { %9921 = vadd.xlane.f32.xlu0 %v9906_v58 }
0x1ac8   :  { %v9908_v37 = vpop.xlane.xlu1 %9907 }
0x1ac9   :  { %v9923_v29 = vmul.f32 0.0078125, %v9908_v37 }
0x1acb   :  { %v9931_v25 = vadd.f32 1e-12, %v9923_v29 }
0x1acd   :  { %13341 = vrsqrt.f32 %v9931_v25 }
0x1ad6   :  { %v9910_v27 = vpop.xlane.xlu0 %9909 }
0x1ad7   :  { %v13342_v61 = vpop.eup %13341  ;;  %v9924_v15 = vmul.f32 0.0078125, %v9910_v27 }
0x1ad8   :  { %v9947_v5 = vmul.f32 %v13342_v61, %v9891_v17 }
0x1ad9   :  { %v9932_v33 = vadd.f32 1e-12, %v9924_v15 }
0x1ada   :  { %v9961_v32 = vmul.f32 %v17024_v52, %v9947_v5 }
0x1adb   :  { %13343 = vrsqrt.f32 %v9932_v33  ;;  %v9912_v43 = vpop.xlane.xlu1 %9911 }
0x1adc   :  { %v9975_v13 = vadd.f32 %v17029_v54, %v9961_v32  ;;  %v9925_v60 = vmul.f32 0.0078125, %v9912_v43 }
0x1ade   :  { %9983 = vst [vmem:[#allocation5] sm:$0xff] %v9975_v13  ;;  %v9933_v46 = vadd.f32 1e-12, %v9925_v60 }
0x1ae0   :  { %13345 = vrsqrt.f32 %v9933_v46  ;;  %v9914_v6 = vpop.xlane.xlu0 %9913 }
0x1ae1   :  { %v9926_v0 = vmul.f32 0.0078125, %v9914_v6 }
0x1ae3   :  { %v9934_v19 = vadd.f32 1e-12, %v9926_v0 }
0x1ae5   :  { %v13344_v20 = vpop.eup %13343  ;;  %13347 = vrsqrt.f32 %v9934_v19 }
0x1ae6   :  { %v9948_v57 = vmul.f32 %v13344_v20, %v9892_v12 }
0x1ae7   :  { %v9916_v16 = vpop.xlane.xlu1 %9915 }
0x1ae8   :  { %v9962_v49 = vmul.f32 %v17024_v52, %v9948_v57  ;;  %v9927_v38 = vmul.f32 0.0078125, %v9916_v16 }
0x1aea   :  { %v13346_v34 = vpop.eup %13345  ;;  %v9976_v40 = vadd.f32 %v17029_v54, %v9962_v49  ;;  %v9935_v23 = vadd.f32 1e-12, %v9927_v38 }
0x1aeb   :  { %v9949_v39 = vmul.f32 %v13346_v34, %v9893_v22 }
0x1aec   :  { %9984 = vst [vmem:[#allocation5 + $0x8] sm:$0xff] %v9976_v40  ;;  %13349 = vrsqrt.f32 %v9935_v23 }
0x1aed   :  { %v9963_v51 = vmul.f32 %v17024_v52, %v9949_v39 }
0x1aef   :  { %v13348_v1 = vpop.eup %13347  ;;  %v9977_v47 = vadd.f32 %v17029_v54, %v9963_v51  ;;  %v9918_v18 = vpop.xlane.xlu0 %9917 }
0x1af0   :  { %v9950_v41 = vmul.f32 %v13348_v1, %v9894_v35  ;;  %v9928_v53 = vmul.f32 0.0078125, %v9918_v18 }
0x1af1   :  { %9985 = vst [vmem:[#allocation5 + $0x10] sm:$0xff] %v9977_v47 }
0x1af2   :  { %v9964_v26 = vmul.f32 %v17024_v52, %v9950_v41  ;;  %v9936_v17 = vadd.f32 1e-12, %v9928_v53 }
0x1af4   :  { %v9978_v31 = vadd.f32 %v17029_v54, %v9964_v26  ;;  %13351 = vrsqrt.f32 %v9936_v17 }
0x1af6   :  { %v13350_v55 = vpop.eup %13349  ;;  %9986 = vst [vmem:[#allocation5 + $0x18] sm:$0xff] %v9978_v31 }
0x1af7   :  { %v9951_v4 = vmul.f32 %v13350_v55, %v17005_v62  ;;  %v9920_v12 = vpop.xlane.xlu1 %9919 }
0x1af8   :  { %v9929_v8 = vmul.f32 0.0078125, %v9920_v12 }
0x1af9   :  { %v9965_v44 = vmul.f32 %v17024_v52, %v9951_v4 }
0x1afa   :  { %v9937_v36 = vadd.f32 1e-12, %v9929_v8 }
0x1afb   :  { %v9979_v22 = vadd.f32 %v17029_v54, %v9965_v44 }
0x1afc   :  { %13353 = vrsqrt.f32 %v9937_v36 }
0x1afd   :  { %9987 = vst [vmem:[#allocation5 + $0x20] sm:$0xff] %v9979_v22  ;;  %v9922_v30 = vpop.xlane.xlu0 %9921 }
0x1afe   :  { %v13352_v10 = vpop.eup %13351  ;;  %v9930_v28 = vmul.f32 0.0078125, %v9922_v30 }
0x1aff   :  { %v9952_v35 = vmul.f32 %v13352_v10, %v17009_v11 }
0x1b00   :  { %v9938_v63 = vadd.f32 1e-12, %v9930_v28 }
0x1b01   :  { %v9966_v9 = vmul.f32 %v17024_v52, %v9952_v35 }
0x1b02   :  { %13355 = vrsqrt.f32 %v9938_v63 }
0x1b03   :  { %v9980_v56 = vadd.f32 %v17029_v54, %v9966_v9 }
0x1b05   :  { %9988 = vst [vmem:[#allocation5 + $0x28] sm:$0xff] %v9980_v56 }
0x1b06   :  { %v13354_v62 = vpop.eup %13353 }
0x1b07   :  { %v9953_v50 = vmul.f32 %v13354_v62, %v17013_v45 }
0x1b09   :  { %v9967_v42 = vmul.f32 %v17024_v52, %v9953_v50 }
0x1b0b   :  { %v9981_v59 = vadd.f32 %v17029_v54, %v9967_v42 }
0x1b0c   :  { %v13356_v7 = vpop.eup %13355 }
0x1b0d   :  { %9989 = vst [vmem:[#allocation5 + $0x30] sm:$0xff] %v9981_v59  ;;  %v9954_v24 = vmul.f32 %v13356_v7, %v17017_v21 }
0x1b0f   :  { %v9968_v11 = vmul.f32 %v17024_v52, %v9954_v24 }
0x1b11   :  { %v9982_v2 = vadd.f32 %v17029_v54, %v9968_v11 }
0x1b13   :  { %9990 = vst [vmem:[#allocation5 + $0x38] sm:$0xff] %v9982_v2 }
0x1b14   :  { %13390 = shalt.err (!%p13387_p12)
}
0x1b15   :  { %s13391_s25 = scalar_lea.hbm %s17081_s15, 1024 }
0x1b16   :  { %p13392_p13 = scmp.ne.s32.totalorder %s17081_s15, %s13391_s25  ;;  %p13395_p0 = scmp.lt.u32.totalorder %s13391_s25, %s17081_s15 }
0x1b18   :  { %p13397_p1 = pnand %p13395_p0, %p13392_p13 }
0x1b1a   :  { %13400 = shalt.err (!%p13397_p1)
}
0x1b1b   :  { %10002 = dma.vmem_to_hbm [thread:$0]  %s9997_s19, 1024, %s17081_s15, [#allocation4], %s13406_s28, %s13406_s28, %s13407_s29  }
0x1b1c   :  { %13403 = dma.done.wait [#allocation4], 1024  }
0x1b1d   :  { %13404 = vsyncadd [#allocation4], 4294966272 }
0x1b1e   :  { %10006 = vsyncpa [#allocation3], 1 }
0x1b1f   :  { %10007 = vsyncpa [#allocation4], 1 }

</bundles_post_ra>
